<compile_context>
chip_gen: v5e
topology: v5e:2x2
jax: 0.10.0
libtpu: 0.0.40
codegen_flags: <defaults>
</compile_context>

<pallas_src>
import functools

import jax
import jax.numpy as jnp
from jax.experimental import pallas as pl
from jax.experimental.pallas import tpu as pltpu

LANE = 128     # channel padding target == lane width
EPS = 1e-5     # instance-norm epsilon


# ---------------------------------------------------------------- Pallas kernels

def _conv3_norm_pe_kernel(x_ref, w_ref, b_ref, pe_ref, o_ref, acc_ref, *, H, W):
    """3x3 stride-1 conv + bias + instance-norm + ReLU + additive pos-encoding.

    x_ref : (1, H+2, W+2, 128) f32   spatially padded, channel-padded activation
    w_ref : (9*128, 128)       bf16  tap-major, channel-padded conv weight
    b_ref : (1, 128)           f32
    pe_ref: (H*W, 128)         f32
    o_ref : (1, H*W, 128)      f32
    acc_ref: VMEM scratch (H*W, 128) f32
    """
    HW = H * W
    acc_ref[...] = jnp.zeros_like(acc_ref)
    t = 0
    for i in range(3):
        for j in range(3):
            win = x_ref[0, i:i + H, j:j + W, :]                   # (H, W, 128) f32
            win = win.reshape(HW, LANE).astype(jnp.bfloat16)
            acc_ref[...] += jnp.dot(win, w_ref[t * LANE:(t + 1) * LANE, :],
                                    preferred_element_type=jnp.float32)
            t += 1
    acc = acc_ref[...] + b_ref[...]
    # single-pass instance norm over spatial positions (per batch, per channel)
    s1 = jnp.sum(acc, axis=0, keepdims=True)
    s2 = jnp.sum(acc * acc, axis=0, keepdims=True)
    mean = s1 * (1.0 / HW)
    var = jnp.maximum(s2 * (1.0 / HW) - mean * mean, 0.0)
    y = jnp.maximum((acc - mean) * jax.lax.rsqrt(var + EPS), 0.0)
    o_ref[0] = y + pe_ref[...]


def _conv5s2_norm_kernel(x_ref, w_ref, b_ref, o_ref, acc_ref, *, Ho, Wo):
    """5x5 stride-2 conv + bias + instance-norm + ReLU.

    x_ref : (1, 4, Hp, Wp, 128) f32  the 4 stride-2 phase grids of the padded input
    w_ref : (25*128, 128)       bf16
    b_ref : (1, 128)            f32
    o_ref : (1, Ho*Wo, 128)     f32
    acc_ref: VMEM scratch (Ho*Wo, 128) f32
    """
    HW = Ho * Wo
    acc_ref[...] = jnp.zeros_like(acc_ref)
    t = 0
    for i in range(5):
        for j in range(5):
            ph = (i % 2) * 2 + (j % 2)
            a, c = i // 2, j // 2
            win = x_ref[0, ph, a:a + Ho, c:c + Wo, :]             # (Ho, Wo, 128) f32
            win = win.reshape(HW, LANE).astype(jnp.bfloat16)
            acc_ref[...] += jnp.dot(win, w_ref[t * LANE:(t + 1) * LANE, :],
                                    preferred_element_type=jnp.float32)
            t += 1
    acc = acc_ref[...] + b_ref[...]
    s1 = jnp.sum(acc, axis=0, keepdims=True)
    s2 = jnp.sum(acc * acc, axis=0, keepdims=True)
    mean = s1 * (1.0 / HW)
    var = jnp.maximum(s2 * (1.0 / HW) - mean * mean, 0.0)
    o_ref[0] = jnp.maximum((acc - mean) * jax.lax.rsqrt(var + EPS), 0.0)


def _resconv_pool_mlp_kernel(x_ref, w_ref, b_ref, w1_ref, b1_ref, w2_ref, b2_ref,
                             o_ref, acc_ref, *, Ho, Wo):
    """ResConv (5x5 s1): x + ReLU(inorm(conv(x))), fused with global average pool
    and the Linear(2C,128)->ReLU->Linear(128,out) head.

    x_ref : (1, Ho+4, Wo+4, 128) f32  spatially padded stage-2 output
    w_ref : (25*128, 128)        bf16
    b_ref : (1, 128)             f32
    w1_ref: (128, 128) f32 ; b1_ref: (1, 128) f32
    w2_ref: (128, 128) f32 ; b2_ref: (1, 128) f32
    o_ref : (1, 1, 128)          f32  padded logits for this batch element
    acc_ref: VMEM scratch (Ho*Wo, 128) f32
    """
    HW = Ho * Wo
    acc_ref[...] = jnp.zeros_like(acc_ref)
    t = 0
    for i in range(5):
        for j in range(5):
            win = x_ref[0, i:i + Ho, j:j + Wo, :]                 # (Ho, Wo, 128) f32
            win = win.reshape(HW, LANE).astype(jnp.bfloat16)
            acc_ref[...] += jnp.dot(win, w_ref[t * LANE:(t + 1) * LANE, :],
                                    preferred_element_type=jnp.float32)
            t += 1
    acc = acc_ref[...] + b_ref[...]
    s1 = jnp.sum(acc, axis=0, keepdims=True)
    s2 = jnp.sum(acc * acc, axis=0, keepdims=True)
    mean = s1 * (1.0 / HW)
    var = jnp.maximum(s2 * (1.0 / HW) - mean * mean, 0.0)
    y = jnp.maximum((acc - mean) * jax.lax.rsqrt(var + EPS), 0.0)
    # residual = un-padded input = centre crop of the padded slab
    res = x_ref[0, 2:2 + Ho, 2:2 + Wo, :].reshape(HW, LANE)
    y = y + res
    # global average pool over spatial positions
    pooled = jnp.sum(y, axis=0, keepdims=True) * (1.0 / HW)       # (1, 128)
    # tiny MLP head (kept in f32; MXU-trivial)
    h = jnp.dot(pooled, w1_ref[...], preferred_element_type=jnp.float32) + b1_ref[...]
    h = jnp.maximum(h, 0.0)
    o_ref[0] = jnp.dot(h, w2_ref[...], preferred_element_type=jnp.float32) + b2_ref[...]


# ---------------------------------------------------------------- stage wrappers

def _stage1(xpad, w, b, pe, H, W):
    B = xpad.shape[0]
    HW = H * W
    kern = functools.partial(_conv3_norm_pe_kernel, H=H, W=W)
    return pl.pallas_call(
        kern,
        out_shape=jax.ShapeDtypeStruct((B, HW, LANE), jnp.float32),
        grid=(B,),
        in_specs=[
            pl.BlockSpec((1, H + 2, W + 2, LANE), lambda i: (i, 0, 0, 0)),
            pl.BlockSpec((9 * LANE, LANE), lambda i: (0, 0)),
            pl.BlockSpec((1, LANE), lambda i: (0, 0)),
            pl.BlockSpec((HW, LANE), lambda i: (0, 0)),
        ],
        out_specs=pl.BlockSpec((1, HW, LANE), lambda i: (i, 0, 0)),
        scratch_shapes=[pltpu.VMEM((HW, LANE), jnp.float32)],
        compiler_params=pltpu.CompilerParams(dimension_semantics=("parallel",)),
    )(xpad, w, b, pe)


def _stage2(phases, w, b, Ho, Wo):
    B, _, Hp, Wp, _ = phases.shape
    HW = Ho * Wo
    kern = functools.partial(_conv5s2_norm_kernel, Ho=Ho, Wo=Wo)
    return pl.pallas_call(
        kern,
        out_shape=jax.ShapeDtypeStruct((B, HW, LANE), jnp.float32),
        grid=(B,),
        in_specs=[
            pl.BlockSpec((1, 4, Hp, Wp, LANE), lambda i: (i, 0, 0, 0, 0)),
            pl.BlockSpec((25 * LANE, LANE), lambda i: (0, 0)),
            pl.BlockSpec((1, LANE), lambda i: (0, 0)),
        ],
        out_specs=pl.BlockSpec((1, HW, LANE), lambda i: (i, 0, 0)),
        scratch_shapes=[pltpu.VMEM((HW, LANE), jnp.float32)],
        compiler_params=pltpu.CompilerParams(dimension_semantics=("parallel",)),
    )(phases, w, b)


def _stage3(xpad, w, b, fc1_w, fc1_b, fc2_w, fc2_b, Ho, Wo):
    B = xpad.shape[0]
    HW = Ho * Wo
    kern = functools.partial(_resconv_pool_mlp_kernel, Ho=Ho, Wo=Wo)
    return pl.pallas_call(
        kern,
        out_shape=jax.ShapeDtypeStruct((B, 1, LANE), jnp.float32),
        grid=(B,),
        in_specs=[
            pl.BlockSpec((1, Ho + 4, Wo + 4, LANE), lambda i: (i, 0, 0, 0)),
            pl.BlockSpec((25 * LANE, LANE), lambda i: (0, 0)),
            pl.BlockSpec((1, LANE), lambda i: (0, 0)),
            pl.BlockSpec((LANE, LANE), lambda i: (0, 0)),
            pl.BlockSpec((1, LANE), lambda i: (0, 0)),
            pl.BlockSpec((LANE, LANE), lambda i: (0, 0)),
            pl.BlockSpec((1, LANE), lambda i: (0, 0)),
        ],
        out_specs=pl.BlockSpec((1, 1, LANE), lambda i: (i, 0, 0)),
        scratch_shapes=[pltpu.VMEM((HW, LANE), jnp.float32)],
        compiler_params=pltpu.CompilerParams(dimension_semantics=("parallel",)),
    )(xpad, w, b, fc1_w, fc1_b, fc2_w, fc2_b)


# ---------------------------------------------------------------- plain-JAX glue

def positional_encoding(H, W, C):
    """Additive sin/cos encoding with N = C//4 frequencies -> (H*W, C)."""
    N = C // 4
    ys = (jnp.arange(H, dtype=jnp.float32) + 0.5) / H
    xs = (jnp.arange(W, dtype=jnp.float32) + 0.5) / W
    yy, xx = jnp.meshgrid(ys, xs, indexing="ij")
    freqs = (2.0 ** jnp.arange(N, dtype=jnp.float32)) * jnp.pi
    ax = xx[..., None] * freqs
    ay = yy[..., None] * freqs
    pe = jnp.concatenate([jnp.sin(ax), jnp.cos(ax), jnp.sin(ay), jnp.cos(ay)], axis=-1)
    return pe.reshape(H * W, C)


def _kaiming_uniform(key, shape, fan_in):
    bound = (6.0 / fan_in) ** 0.5
    return jax.random.uniform(key, shape, jnp.float32, -bound, bound)


def init_params(key, in_channels, out_dims, C):
    ks = jax.random.split(key, 5)
    p = {}
    # conv 1: in_channels -> C, 3x3       (conv_norm_act kernel 0.05)
    p["w1"] = _kaiming_uniform(ks[0], (3, 3, in_channels, C), 3 * 3 * in_channels)
    p["b1"] = jnp.zeros((C,), jnp.float32)
    # conv 2: C -> 2C, 5x5, stride 2      (conv_norm_act kernel 0.2, down 0.25)
    p["w2"] = _kaiming_uniform(ks[1], (5, 5, C, 2 * C), 5 * 5 * C)
    p["b2"] = jnp.zeros((2 * C,), jnp.float32)
    # ResConv: 2C -> 2C, 5x5
    p["w3"] = _kaiming_uniform(ks[2], (5, 5, 2 * C, 2 * C), 5 * 5 * 2 * C)
    p["b3"] = jnp.zeros((2 * C,), jnp.float32)
    # out_layers: Linear(2C,128) -> ReLU -> Linear(128,out); kaiming_uniform_, zero bias
    p["fc1_w"] = _kaiming_uniform(ks[3], (2 * C, 128), 2 * C)
    p["fc1_b"] = jnp.zeros((128,), jnp.float32)
    p["fc2_w"] = _kaiming_uniform(ks[4], (128, out_dims), 128)
    p["fc2_b"] = jnp.zeros((out_dims,), jnp.float32)
    return p


def _pad_conv_weight(w):
    """(kh, kw, Cin, Cout) -> (kh*kw*128, 128) bf16, zero-padded channels."""
    kh, kw, cin, cout = w.shape
    wp = jnp.zeros((kh, kw, LANE, LANE), jnp.float32).at[:, :, :cin, :cout].set(w)
    return wp.reshape(kh * kw * LANE, LANE).astype(jnp.bfloat16)


def _pad_vec(v):
    return jnp.zeros((1, LANE), jnp.float32).at[0, :v.shape[0]].set(v)


def _pad_mat(w):
    r, c = w.shape
    return jnp.zeros((LANE, LANE), jnp.float32).at[:r, :c].set(w)


def inr_cls4_forward(params, x_nchw, C=32, out_dims=10):
    x = jnp.transpose(x_nchw, (0, 2, 3, 1)).astype(jnp.float32)       # NCHW -> NHWC
    B, H, W, cin = x.shape

    # channel-pad to lane width + spatial pad for the 3x3 conv
    x = jnp.pad(x, ((0, 0), (1, 1), (1, 1), (0, LANE - cin)))          # (B, H+2, W+2, 128)

    # lane-padded parameters (bf16 conv weights for the MXU, f32 biases / head)
    w1 = _pad_conv_weight(params["w1"]); b1 = _pad_vec(params["b1"])
    w2 = _pad_conv_weight(params["w2"]); b2 = _pad_vec(params["b2"])
    w3 = _pad_conv_weight(params["w3"]); b3 = _pad_vec(params["b3"])
    fc1_w = _pad_mat(params["fc1_w"]);   fc1_b = _pad_vec(params["fc1_b"])
    fc2_w = _pad_mat(params["fc2_w"]);   fc2_b = _pad_vec(params["fc2_b"])

    pe = jnp.pad(positional_encoding(H, W, C), ((0, 0), (0, LANE - C)))   # (HW, 128)

    # --- conv_norm_act(in, C, 0.05) + PositionalEncoding(N=C//4), fused ---
    y1 = _stage1(x, w1, b1, pe, H, W)                                  # (B, H*W, 128)

    # --- conv_norm_act(C, 2C, 0.2, down_ratio=0.25): 5x5 stride 2, fused ---
    H2, W2 = H // 2, W // 2
    y1p = jnp.pad(y1.reshape(B, H, W, LANE), ((0, 0), (2, 2), (2, 2), (0, 0)))
    # stride-2 phase decomposition so the kernel only needs unit-stride windows
    phases = jnp.stack([y1p[:, r::2, s::2, :] for r in range(2) for s in range(2)],
                       axis=1)                                         # (B, 4, ., ., 128)
    y2 = _stage2(phases, w2, b2, H2, W2)                               # (B, H2*W2, 128)

    # --- ResConv(2C, 0.3) + GlobalAvgPoolSequence(Linear->ReLU->Linear), fused ---
    y2p = jnp.pad(y2.reshape(B, H2, W2, LANE), ((0, 0), (2, 2), (2, 2), (0, 0)))
    logits = _stage3(y2p, w3, b3, fc1_w, fc1_b, fc2_w, fc2_b, H2, W2)  # (B, 1, 128)
    return logits[:, 0, :out_dims]


if __name__ == "__main__":
    B, in_channels, H, W = 2, 4, 16, 16
    out_dims, C = 10, 32

    key = jax.random.PRNGKey(0)
    k_x, k_p = jax.random.split(key)
    x = jax.random.normal(k_x, (B, in_channels, H, W), dtype=jnp.float32)   # NCHW input
    params = init_params(k_p, in_channels, out_dims, C)

    fwd = jax.jit(functools.partial(inr_cls4_forward, C=C, out_dims=out_dims))
    out = fwd(params, x)
    jax.block_until_ready(out)
    assert out.shape == (B, out_dims), out.shape
    print("KERNEL_OK")
</pallas_src>

<mosaic_0001>
module attributes {stable_mosaic.version = 11 : i64} {
  func.func @_conv3_norm_pe_kernel(%arg0: i32, %arg1: memref<1x18x18x128xf32, #tpu.memory_space<vmem>>, %arg2: memref<1152x128xbf16, #tpu.memory_space<vmem>>, %arg3: memref<1x128xf32, #tpu.memory_space<vmem>>, %arg4: memref<256x128xf32, #tpu.memory_space<vmem>>, %arg5: memref<1x256x128xf32, #tpu.memory_space<vmem>>, %arg6: memref<256x128xf32, #tpu.memory_space<vmem>>) attributes {dimension_semantics = [#tpu.dimension_semantics<parallel>], iteration_bounds = array<i64: 2>, scalar_prefetch = 0 : i64, scratch_operands = 1 : i64, tpu.core_type = #tpu.core_type<tc>, window_params = [{transform_indices = @transform_0, window_bounds = array<i64: 1, 18, 18, 128>}, {pipeline_mode = #tpu.pipeline_mode<synchronous>, transform_indices = @transform_1, window_bounds = array<i64: 1152, 128>}, {pipeline_mode = #tpu.pipeline_mode<synchronous>, transform_indices = @transform_2, window_bounds = array<i64: 1, 128>}, {pipeline_mode = #tpu.pipeline_mode<synchronous>, transform_indices = @transform_3, window_bounds = array<i64: 256, 128>}, {transform_indices = @transform_4, window_bounds = array<i64: 1, 256, 128>}]} {
    %cst = arith.constant 0.000000e+00 : f32
    %0 = vector.broadcast %cst : f32 to vector<256x128xf32>
    %c0 = arith.constant 0 : index
    %c0_0 = arith.constant 0 : index
    %1 = vector.load %arg6[%c0, %c0_0] : memref<256x128xf32, #tpu.memory_space<vmem>>, vector<256x128xf32>
    tpu.vector_store %arg6[%c0, %c0_0], %0 {strides = array<i32>} : memref<256x128xf32, #tpu.memory_space<vmem>>, vector<256x128xf32>,
    %c0_1 = arith.constant 0 : index
    %c0_2 = arith.constant 0 : index
    %c0_3 = arith.constant 0 : index
    %c0_4 = arith.constant 0 : index
    %2 = vector.load %arg1[%c0_1, %c0_2, %c0_3, %c0_4] : memref<1x18x18x128xf32, #tpu.memory_space<vmem>>, vector<1x16x16x128xf32>
    %3 = vector.shape_cast %2 : vector<1x16x16x128xf32> to vector<16x16x128xf32>
    %4 = vector.shape_cast %3 : vector<16x16x128xf32> to vector<256x128xf32>
    %5 = arith.truncf %4 : vector<256x128xf32> to vector<256x128xbf16>
    %c0_5 = arith.constant 0 : index
    %c0_6 = arith.constant 0 : index
    %6 = vector.load %arg6[%c0_5, %c0_6] : memref<256x128xf32, #tpu.memory_space<vmem>>, vector<256x128xf32>
    %c0_7 = arith.constant 0 : index
    %c0_8 = arith.constant 0 : index
    %7 = vector.load %arg2[%c0_7, %c0_8] : memref<1152x128xbf16, #tpu.memory_space<vmem>>, vector<128x128xbf16>
    %cst_9 = arith.constant dense<0.000000e+00> : vector<256x128xf32>
    %8 = tpu.matmul %5, %7, %cst_9 {dimension_numbers = #tpu.dot_dimension_numbers<[1], [0], [0], [1], [0, 0, 1, 1], [], []>} : vector<256x128xbf16>, vector<128x128xbf16>, vector<256x128xf32> -> vector<256x128xf32>
    %9 = arith.addf %6, %8 : vector<256x128xf32>
    %c0_10 = arith.constant 0 : index
    %c0_11 = arith.constant 0 : index
    %10 = vector.load %arg6[%c0_10, %c0_11] : memref<256x128xf32, #tpu.memory_space<vmem>>, vector<256x128xf32>
    tpu.vector_store %arg6[%c0_10, %c0_11], %9 {strides = array<i32>} : memref<256x128xf32, #tpu.memory_space<vmem>>, vector<256x128xf32>,
    %c0_12 = arith.constant 0 : index
    %c0_13 = arith.constant 0 : index
    %c1 = arith.constant 1 : index
    %c0_14 = arith.constant 0 : index
    %11 = vector.load %arg1[%c0_12, %c0_13, %c1, %c0_14] : memref<1x18x18x128xf32, #tpu.memory_space<vmem>>, vector<1x16x16x128xf32>
    %12 = vector.shape_cast %11 : vector<1x16x16x128xf32> to vector<16x16x128xf32>
    %13 = vector.shape_cast %12 : vector<16x16x128xf32> to vector<256x128xf32>
    %14 = arith.truncf %13 : vector<256x128xf32> to vector<256x128xbf16>
    %c0_15 = arith.constant 0 : index
    %c0_16 = arith.constant 0 : index
    %15 = vector.load %arg6[%c0_15, %c0_16] : memref<256x128xf32, #tpu.memory_space<vmem>>, vector<256x128xf32>
    %c128 = arith.constant 128 : index
    %c0_17 = arith.constant 0 : index
    %16 = vector.load %arg2[%c128, %c0_17] : memref<1152x128xbf16, #tpu.memory_space<vmem>>, vector<128x128xbf16>
    %cst_18 = arith.constant dense<0.000000e+00> : vector<256x128xf32>
    %17 = tpu.matmul %14, %16, %cst_18 {dimension_numbers = #tpu.dot_dimension_numbers<[1], [0], [0], [1], [0, 0, 1, 1], [], []>} : vector<256x128xbf16>, vector<128x128xbf16>, vector<256x128xf32> -> vector<256x128xf32>
    %18 = arith.addf %15, %17 : vector<256x128xf32>
    %c0_19 = arith.constant 0 : index
    %c0_20 = arith.constant 0 : index
    %19 = vector.load %arg6[%c0_19, %c0_20] : memref<256x128xf32, #tpu.memory_space<vmem>>, vector<256x128xf32>
    tpu.vector_store %arg6[%c0_19, %c0_20], %18 {strides = array<i32>} : memref<256x128xf32, #tpu.memory_space<vmem>>, vector<256x128xf32>,
    %c0_21 = arith.constant 0 : index
    %c0_22 = arith.constant 0 : index
    %c2 = arith.constant 2 : index
    %c0_23 = arith.constant 0 : index
    %20 = vector.load %arg1[%c0_21, %c0_22, %c2, %c0_23] : memref<1x18x18x128xf32, #tpu.memory_space<vmem>>, vector<1x16x16x128xf32>
    %21 = vector.shape_cast %20 : vector<1x16x16x128xf32> to vector<16x16x128xf32>
    %22 = vector.shape_cast %21 : vector<16x16x128xf32> to vector<256x128xf32>
    %23 = arith.truncf %22 : vector<256x128xf32> to vector<256x128xbf16>
    %c0_24 = arith.constant 0 : index
    %c0_25 = arith.constant 0 : index
    %24 = vector.load %arg6[%c0_24, %c0_25] : memref<256x128xf32, #tpu.memory_space<vmem>>, vector<256x128xf32>
    %c256 = arith.constant 256 : index
    %c0_26 = arith.constant 0 : index
    %25 = vector.load %arg2[%c256, %c0_26] : memref<1152x128xbf16, #tpu.memory_space<vmem>>, vector<128x128xbf16>
    %cst_27 = arith.constant dense<0.000000e+00> : vector<256x128xf32>
    %26 = tpu.matmul %23, %25, %cst_27 {dimension_numbers = #tpu.dot_dimension_numbers<[1], [0], [0], [1], [0, 0, 1, 1], [], []>} : vector<256x128xbf16>, vector<128x128xbf16>, vector<256x128xf32> -> vector<256x128xf32>
    %27 = arith.addf %24, %26 : vector<256x128xf32>
    %c0_28 = arith.constant 0 : index
    %c0_29 = arith.constant 0 : index
    %28 = vector.load %arg6[%c0_28, %c0_29] : memref<256x128xf32, #tpu.memory_space<vmem>>, vector<256x128xf32>
    tpu.vector_store %arg6[%c0_28, %c0_29], %27 {strides = array<i32>} : memref<256x128xf32, #tpu.memory_space<vmem>>, vector<256x128xf32>,
    %c0_30 = arith.constant 0 : index
    %c1_31 = arith.constant 1 : index
    %c0_32 = arith.constant 0 : index
    %c0_33 = arith.constant 0 : index
    %29 = vector.load %arg1[%c0_30, %c1_31, %c0_32, %c0_33] : memref<1x18x18x128xf32, #tpu.memory_space<vmem>>, vector<1x16x16x128xf32>
    %30 = vector.shape_cast %29 : vector<1x16x16x128xf32> to vector<16x16x128xf32>
    %31 = vector.shape_cast %30 : vector<16x16x128xf32> to vector<256x128xf32>
    %32 = arith.truncf %31 : vector<256x128xf32> to vector<256x128xbf16>
    %c0_34 = arith.constant 0 : index
    %c0_35 = arith.constant 0 : index
    %33 = vector.load %arg6[%c0_34, %c0_35] : memref<256x128xf32, #tpu.memory_space<vmem>>, vector<256x128xf32>
    %c384 = arith.constant 384 : index
    %c0_36 = arith.constant 0 : index
    %34 = vector.load %arg2[%c384, %c0_36] : memref<1152x128xbf16, #tpu.memory_space<vmem>>, vector<128x128xbf16>
    %cst_37 = arith.constant dense<0.000000e+00> : vector<256x128xf32>
    %35 = tpu.matmul %32, %34, %cst_37 {dimension_numbers = #tpu.dot_dimension_numbers<[1], [0], [0], [1], [0, 0, 1, 1], [], []>} : vector<256x128xbf16>, vector<128x128xbf16>, vector<256x128xf32> -> vector<256x128xf32>
    %36 = arith.addf %33, %35 : vector<256x128xf32>
    %c0_38 = arith.constant 0 : index
    %c0_39 = arith.constant 0 : index
    %37 = vector.load %arg6[%c0_38, %c0_39] : memref<256x128xf32, #tpu.memory_space<vmem>>, vector<256x128xf32>
    tpu.vector_store %arg6[%c0_38, %c0_39], %36 {strides = array<i32>} : memref<256x128xf32, #tpu.memory_space<vmem>>, vector<256x128xf32>,
    %c0_40 = arith.constant 0 : index
    %c1_41 = arith.constant 1 : index
    %c1_42 = arith.constant 1 : index
    %c0_43 = arith.constant 0 : index
    %38 = vector.load %arg1[%c0_40, %c1_41, %c1_42, %c0_43] : memref<1x18x18x128xf32, #tpu.memory_space<vmem>>, vector<1x16x16x128xf32>
    %39 = vector.shape_cast %38 : vector<1x16x16x128xf32> to vector<16x16x128xf32>
    %40 = vector.shape_cast %39 : vector<16x16x128xf32> to vector<256x128xf32>
    %41 = arith.truncf %40 : vector<256x128xf32> to vector<256x128xbf16>
    %c0_44 = arith.constant 0 : index
    %c0_45 = arith.constant 0 : index
    %42 = vector.load %arg6[%c0_44, %c0_45] : memref<256x128xf32, #tpu.memory_space<vmem>>, vector<256x128xf32>
    %c512 = arith.constant 512 : index
    %c0_46 = arith.constant 0 : index
    %43 = vector.load %arg2[%c512, %c0_46] : memref<1152x128xbf16, #tpu.memory_space<vmem>>, vector<128x128xbf16>
    %cst_47 = arith.constant dense<0.000000e+00> : vector<256x128xf32>
    %44 = tpu.matmul %41, %43, %cst_47 {dimension_numbers = #tpu.dot_dimension_numbers<[1], [0], [0], [1], [0, 0, 1, 1], [], []>} : vector<256x128xbf16>, vector<128x128xbf16>, vector<256x128xf32> -> vector<256x128xf32>
    %45 = arith.addf %42, %44 : vector<256x128xf32>
    %c0_48 = arith.constant 0 : index
    %c0_49 = arith.constant 0 : index
    %46 = vector.load %arg6[%c0_48, %c0_49] : memref<256x128xf32, #tpu.memory_space<vmem>>, vector<256x128xf32>
    tpu.vector_store %arg6[%c0_48, %c0_49], %45 {strides = array<i32>} : memref<256x128xf32, #tpu.memory_space<vmem>>, vector<256x128xf32>,
    %c0_50 = arith.constant 0 : index
    %c1_51 = arith.constant 1 : index
    %c2_52 = arith.constant 2 : index
    %c0_53 = arith.constant 0 : index
    %47 = vector.load %arg1[%c0_50, %c1_51, %c2_52, %c0_53] : memref<1x18x18x128xf32, #tpu.memory_space<vmem>>, vector<1x16x16x128xf32>
    %48 = vector.shape_cast %47 : vector<1x16x16x128xf32> to vector<16x16x128xf32>
    %49 = vector.shape_cast %48 : vector<16x16x128xf32> to vector<256x128xf32>
    %50 = arith.truncf %49 : vector<256x128xf32> to vector<256x128xbf16>
    %c0_54 = arith.constant 0 : index
    %c0_55 = arith.constant 0 : index
    %51 = vector.load %arg6[%c0_54, %c0_55] : memref<256x128xf32, #tpu.memory_space<vmem>>, vector<256x128xf32>
    %c640 = arith.constant 640 : index
    %c0_56 = arith.constant 0 : index
    %52 = vector.load %arg2[%c640, %c0_56] : memref<1152x128xbf16, #tpu.memory_space<vmem>>, vector<128x128xbf16>
    %cst_57 = arith.constant dense<0.000000e+00> : vector<256x128xf32>
    %53 = tpu.matmul %50, %52, %cst_57 {dimension_numbers = #tpu.dot_dimension_numbers<[1], [0], [0], [1], [0, 0, 1, 1], [], []>} : vector<256x128xbf16>, vector<128x128xbf16>, vector<256x128xf32> -> vector<256x128xf32>
    %54 = arith.addf %51, %53 : vector<256x128xf32>
    %c0_58 = arith.constant 0 : index
    %c0_59 = arith.constant 0 : index
    %55 = vector.load %arg6[%c0_58, %c0_59] : memref<256x128xf32, #tpu.memory_space<vmem>>, vector<256x128xf32>
    tpu.vector_store %arg6[%c0_58, %c0_59], %54 {strides = array<i32>} : memref<256x128xf32, #tpu.memory_space<vmem>>, vector<256x128xf32>,
    %c0_60 = arith.constant 0 : index
    %c2_61 = arith.constant 2 : index
    %c0_62 = arith.constant 0 : index
    %c0_63 = arith.constant 0 : index
    %56 = vector.load %arg1[%c0_60, %c2_61, %c0_62, %c0_63] : memref<1x18x18x128xf32, #tpu.memory_space<vmem>>, vector<1x16x16x128xf32>
    %57 = vector.shape_cast %56 : vector<1x16x16x128xf32> to vector<16x16x128xf32>
    %58 = vector.shape_cast %57 : vector<16x16x128xf32> to vector<256x128xf32>
    %59 = arith.truncf %58 : vector<256x128xf32> to vector<256x128xbf16>
    %c0_64 = arith.constant 0 : index
    %c0_65 = arith.constant 0 : index
    %60 = vector.load %arg6[%c0_64, %c0_65] : memref<256x128xf32, #tpu.memory_space<vmem>>, vector<256x128xf32>
    %c768 = arith.constant 768 : index
    %c0_66 = arith.constant 0 : index
    %61 = vector.load %arg2[%c768, %c0_66] : memref<1152x128xbf16, #tpu.memory_space<vmem>>, vector<128x128xbf16>
    %cst_67 = arith.constant dense<0.000000e+00> : vector<256x128xf32>
    %62 = tpu.matmul %59, %61, %cst_67 {dimension_numbers = #tpu.dot_dimension_numbers<[1], [0], [0], [1], [0, 0, 1, 1], [], []>} : vector<256x128xbf16>, vector<128x128xbf16>, vector<256x128xf32> -> vector<256x128xf32>
    %63 = arith.addf %60, %62 : vector<256x128xf32>
    %c0_68 = arith.constant 0 : index
    %c0_69 = arith.constant 0 : index
    %64 = vector.load %arg6[%c0_68, %c0_69] : memref<256x128xf32, #tpu.memory_space<vmem>>, vector<256x128xf32>
    tpu.vector_store %arg6[%c0_68, %c0_69], %63 {strides = array<i32>} : memref<256x128xf32, #tpu.memory_space<vmem>>, vector<256x128xf32>,
    %c0_70 = arith.constant 0 : index
    %c2_71 = arith.constant 2 : index
    %c1_72 = arith.constant 1 : index
    %c0_73 = arith.constant 0 : index
    %65 = vector.load %arg1[%c0_70, %c2_71, %c1_72, %c0_73] : memref<1x18x18x128xf32, #tpu.memory_space<vmem>>, vector<1x16x16x128xf32>
    %66 = vector.shape_cast %65 : vector<1x16x16x128xf32> to vector<16x16x128xf32>
    %67 = vector.shape_cast %66 : vector<16x16x128xf32> to vector<256x128xf32>
    %68 = arith.truncf %67 : vector<256x128xf32> to vector<256x128xbf16>
    %c0_74 = arith.constant 0 : index
    %c0_75 = arith.constant 0 : index
    %69 = vector.load %arg6[%c0_74, %c0_75] : memref<256x128xf32, #tpu.memory_space<vmem>>, vector<256x128xf32>
    %c896 = arith.constant 896 : index
    %c0_76 = arith.constant 0 : index
    %70 = vector.load %arg2[%c896, %c0_76] : memref<1152x128xbf16, #tpu.memory_space<vmem>>, vector<128x128xbf16>
    %cst_77 = arith.constant dense<0.000000e+00> : vector<256x128xf32>
    %71 = tpu.matmul %68, %70, %cst_77 {dimension_numbers = #tpu.dot_dimension_numbers<[1], [0], [0], [1], [0, 0, 1, 1], [], []>} : vector<256x128xbf16>, vector<128x128xbf16>, vector<256x128xf32> -> vector<256x128xf32>
    %72 = arith.addf %69, %71 : vector<256x128xf32>
    %c0_78 = arith.constant 0 : index
    %c0_79 = arith.constant 0 : index
    %73 = vector.load %arg6[%c0_78, %c0_79] : memref<256x128xf32, #tpu.memory_space<vmem>>, vector<256x128xf32>
    tpu.vector_store %arg6[%c0_78, %c0_79], %72 {strides = array<i32>} : memref<256x128xf32, #tpu.memory_space<vmem>>, vector<256x128xf32>,
    %c0_80 = arith.constant 0 : index
    %c2_81 = arith.constant 2 : index
    %c2_82 = arith.constant 2 : index
    %c0_83 = arith.constant 0 : index
    %74 = vector.load %arg1[%c0_80, %c2_81, %c2_82, %c0_83] : memref<1x18x18x128xf32, #tpu.memory_space<vmem>>, vector<1x16x16x128xf32>
    %75 = vector.shape_cast %74 : vector<1x16x16x128xf32> to vector<16x16x128xf32>
    %76 = vector.shape_cast %75 : vector<16x16x128xf32> to vector<256x128xf32>
    %77 = arith.truncf %76 : vector<256x128xf32> to vector<256x128xbf16>
    %c0_84 = arith.constant 0 : index
    %c0_85 = arith.constant 0 : index
    %78 = vector.load %arg6[%c0_84, %c0_85] : memref<256x128xf32, #tpu.memory_space<vmem>>, vector<256x128xf32>
    %c1024 = arith.constant 1024 : index
    %c0_86 = arith.constant 0 : index
    %79 = vector.load %arg2[%c1024, %c0_86] : memref<1152x128xbf16, #tpu.memory_space<vmem>>, vector<128x128xbf16>
    %cst_87 = arith.constant dense<0.000000e+00> : vector<256x128xf32>
    %80 = tpu.matmul %77, %79, %cst_87 {dimension_numbers = #tpu.dot_dimension_numbers<[1], [0], [0], [1], [0, 0, 1, 1], [], []>} : vector<256x128xbf16>, vector<128x128xbf16>, vector<256x128xf32> -> vector<256x128xf32>
    %81 = arith.addf %78, %80 : vector<256x128xf32>
    %c0_88 = arith.constant 0 : index
    %c0_89 = arith.constant 0 : index
    %82 = vector.load %arg6[%c0_88, %c0_89] : memref<256x128xf32, #tpu.memory_space<vmem>>, vector<256x128xf32>
    tpu.vector_store %arg6[%c0_88, %c0_89], %81 {strides = array<i32>} : memref<256x128xf32, #tpu.memory_space<vmem>>, vector<256x128xf32>,
    %c0_90 = arith.constant 0 : index
    %c0_91 = arith.constant 0 : index
    %83 = vector.load %arg6[%c0_90, %c0_91] : memref<256x128xf32, #tpu.memory_space<vmem>>, vector<256x128xf32>
    %c0_92 = arith.constant 0 : index
    %c0_93 = arith.constant 0 : index
    %84 = vector.load %arg3[%c0_92, %c0_93] : memref<1x128xf32, #tpu.memory_space<vmem>>, vector<1x128xf32>
    %85 = vector.broadcast %84 : vector<1x128xf32> to vector<256x128xf32>
    %86 = arith.addf %83, %85 : vector<256x128xf32>
    %cst_94 = arith.constant dense<0.000000e+00> : vector<128xf32>
    %87 = vector.multi_reduction <add>, %86, %cst_94 [0] : vector<256x128xf32> to vector<128xf32>
    %88 = vector.shape_cast %87 : vector<128xf32> to vector<1x128xf32>
    %89 = arith.mulf %86, %86 : vector<256x128xf32>
    %cst_95 = arith.constant dense<0.000000e+00> : vector<128xf32>
    %90 = vector.multi_reduction <add>, %89, %cst_95 [0] : vector<256x128xf32> to vector<128xf32>
    %91 = vector.shape_cast %90 : vector<128xf32> to vector<1x128xf32>
    %cst_96 = arith.constant 3.906250e-03 : f32
    %92 = vector.broadcast %cst_96 : f32 to vector<1x128xf32>
    %93 = arith.mulf %88, %92 : vector<1x128xf32>
    %cst_97 = arith.constant 3.906250e-03 : f32
    %94 = vector.broadcast %cst_97 : f32 to vector<1x128xf32>
    %95 = arith.mulf %91, %94 : vector<1x128xf32>
    %96 = arith.mulf %93, %93 : vector<1x128xf32>
    %97 = arith.subf %95, %96 : vector<1x128xf32>
    %cst_98 = arith.constant 0.000000e+00 : f32
    %98 = vector.broadcast %cst_98 : f32 to vector<1x128xf32>
    %99 = arith.maximumf %97, %98 : vector<1x128xf32>
    %100 = vector.broadcast %93 : vector<1x128xf32> to vector<256x128xf32>
    %101 = arith.subf %86, %100 : vector<256x128xf32>
    %cst_99 = arith.constant 9.99999974E-6 : f32
    %102 = vector.broadcast %cst_99 : f32 to vector<1x128xf32>
    %103 = arith.addf %99, %102 : vector<1x128xf32>
    %104 = math.rsqrt %103 : vector<1x128xf32>
    %105 = vector.broadcast %104 : vector<1x128xf32> to vector<256x128xf32>
    %106 = arith.mulf %101, %105 : vector<256x128xf32>
    %cst_100 = arith.constant 0.000000e+00 : f32
    %107 = vector.broadcast %cst_100 : f32 to vector<256x128xf32>
    %108 = arith.maximumf %106, %107 : vector<256x128xf32>
    %c0_101 = arith.constant 0 : index
    %c0_102 = arith.constant 0 : index
    %109 = vector.load %arg4[%c0_101, %c0_102] : memref<256x128xf32, #tpu.memory_space<vmem>>, vector<256x128xf32>
    %110 = arith.addf %108, %109 : vector<256x128xf32>
    %c0_103 = arith.constant 0 : index
    %c0_104 = arith.constant 0 : index
    %c0_105 = arith.constant 0 : index
    %111 = vector.load %arg5[%c0_103, %c0_104, %c0_105] : memref<1x256x128xf32, #tpu.memory_space<vmem>>, vector<1x256x128xf32>
    %112 = vector.shape_cast %111 : vector<1x256x128xf32> to vector<256x128xf32>
    %113 = vector.shape_cast %110 : vector<256x128xf32> to vector<1x256x128xf32>
    tpu.vector_store %arg5[%c0_103, %c0_104, %c0_105], %113 {strides = array<i32>} : memref<1x256x128xf32, #tpu.memory_space<vmem>>, vector<1x256x128xf32>,
    return
  }
  func.func @transform_0(%arg0: i32) -> (i32, i32, i32, i32) {
    %c0_i32 = arith.constant 0 : i32
    %c0_i32_0 = arith.constant 0 : i32
    %c0_i32_1 = arith.constant 0 : i32
    %c0_i32_2 = arith.constant 0 : i32
    return %arg0, %c0_i32, %c0_i32_0, %c0_i32_1 : i32, i32, i32, i32
  }
  func.func @transform_1(%arg0: i32) -> (i32, i32) {
    %c0_i32 = arith.constant 0 : i32
    %c0_i32_0 = arith.constant 0 : i32
    %c0_i32_1 = arith.constant 0 : i32
    return %c0_i32, %c0_i32_0 : i32, i32
  }
  func.func @transform_2(%arg0: i32) -> (i32, i32) {
    %c0_i32 = arith.constant 0 : i32
    %c0_i32_0 = arith.constant 0 : i32
    %c0_i32_1 = arith.constant 0 : i32
    return %c0_i32, %c0_i32_0 : i32, i32
  }
  func.func @transform_3(%arg0: i32) -> (i32, i32) {
    %c0_i32 = arith.constant 0 : i32
    %c0_i32_0 = arith.constant 0 : i32
    %c0_i32_1 = arith.constant 0 : i32
    return %c0_i32, %c0_i32_0 : i32, i32
  }
  func.func @transform_4(%arg0: i32) -> (i32, i32, i32) {
    %c0_i32 = arith.constant 0 : i32
    %c0_i32_0 = arith.constant 0 : i32
    %c0_i32_1 = arith.constant 0 : i32
    return %arg0, %c0_i32, %c0_i32_0 : i32, i32, i32
  }
}

module attributes {stable_mosaic.version = 11 : i64} {
  func.func @_conv5s2_norm_kernel(%arg0: i32, %arg1: memref<1x4x10x10x128xf32, #tpu.memory_space<vmem>>, %arg2: memref<3200x128xbf16, #tpu.memory_space<vmem>>, %arg3: memref<1x128xf32, #tpu.memory_space<vmem>>, %arg4: memref<1x64x128xf32, #tpu.memory_space<vmem>>, %arg5: memref<64x128xf32, #tpu.memory_space<vmem>>) attributes {dimension_semantics = [#tpu.dimension_semantics<parallel>], iteration_bounds = array<i64: 2>, scalar_prefetch = 0 : i64, scratch_operands = 1 : i64, tpu.core_type = #tpu.core_type<tc>, window_params = [{transform_indices = @transform_0, window_bounds = array<i64: 1, 4, 10, 10, 128>}, {pipeline_mode = #tpu.pipeline_mode<synchronous>, transform_indices = @transform_1, window_bounds = array<i64: 3200, 128>}, {pipeline_mode = #tpu.pipeline_mode<synchronous>, transform_indices = @transform_2, window_bounds = array<i64: 1, 128>}, {transform_indices = @transform_3, window_bounds = array<i64: 1, 64, 128>}]} {
    %cst = arith.constant 0.000000e+00 : f32
    %0 = vector.broadcast %cst : f32 to vector<64x128xf32>
    %c0 = arith.constant 0 : index
    %c0_0 = arith.constant 0 : index
    %1 = vector.load %arg5[%c0, %c0_0] : memref<64x128xf32, #tpu.memory_space<vmem>>, vector<64x128xf32>
    tpu.vector_store %arg5[%c0, %c0_0], %0 {strides = array<i32>} : memref<64x128xf32, #tpu.memory_space<vmem>>, vector<64x128xf32>,
    %c0_1 = arith.constant 0 : index
    %c0_2 = arith.constant 0 : index
    %c0_3 = arith.constant 0 : index
    %c0_4 = arith.constant 0 : index
    %c0_5 = arith.constant 0 : index
    %2 = vector.load %arg1[%c0_1, %c0_2, %c0_3, %c0_4, %c0_5] : memref<1x4x10x10x128xf32, #tpu.memory_space<vmem>>, vector<1x1x8x8x128xf32>
    %3 = vector.shape_cast %2 : vector<1x1x8x8x128xf32> to vector<8x8x128xf32>
    %4 = vector.shape_cast %3 : vector<8x8x128xf32> to vector<64x128xf32>
    %5 = arith.truncf %4 : vector<64x128xf32> to vector<64x128xbf16>
    %c0_6 = arith.constant 0 : index
    %c0_7 = arith.constant 0 : index
    %6 = vector.load %arg5[%c0_6, %c0_7] : memref<64x128xf32, #tpu.memory_space<vmem>>, vector<64x128xf32>
    %c0_8 = arith.constant 0 : index
    %c0_9 = arith.constant 0 : index
    %7 = vector.load %arg2[%c0_8, %c0_9] : memref<3200x128xbf16, #tpu.memory_space<vmem>>, vector<128x128xbf16>
    %cst_10 = arith.constant dense<0.000000e+00> : vector<64x128xf32>
    %8 = tpu.matmul %5, %7, %cst_10 {dimension_numbers = #tpu.dot_dimension_numbers<[1], [0], [0], [1], [0, 0, 1, 1], [], []>} : vector<64x128xbf16>, vector<128x128xbf16>, vector<64x128xf32> -> vector<64x128xf32>
    %9 = arith.addf %6, %8 : vector<64x128xf32>
    %c0_11 = arith.constant 0 : index
    %c0_12 = arith.constant 0 : index
    %10 = vector.load %arg5[%c0_11, %c0_12] : memref<64x128xf32, #tpu.memory_space<vmem>>, vector<64x128xf32>
    tpu.vector_store %arg5[%c0_11, %c0_12], %9 {strides = array<i32>} : memref<64x128xf32, #tpu.memory_space<vmem>>, vector<64x128xf32>,
    %c0_13 = arith.constant 0 : index
    %c1 = arith.constant 1 : index
    %c0_14 = arith.constant 0 : index
    %c0_15 = arith.constant 0 : index
    %c0_16 = arith.constant 0 : index
    %11 = vector.load %arg1[%c0_13, %c1, %c0_14, %c0_15, %c0_16] : memref<1x4x10x10x128xf32, #tpu.memory_space<vmem>>, vector<1x1x8x8x128xf32>
    %12 = vector.shape_cast %11 : vector<1x1x8x8x128xf32> to vector<8x8x128xf32>
    %13 = vector.shape_cast %12 : vector<8x8x128xf32> to vector<64x128xf32>
    %14 = arith.truncf %13 : vector<64x128xf32> to vector<64x128xbf16>
    %c0_17 = arith.constant 0 : index
    %c0_18 = arith.constant 0 : index
    %15 = vector.load %arg5[%c0_17, %c0_18] : memref<64x128xf32, #tpu.memory_space<vmem>>, vector<64x128xf32>
    %c128 = arith.constant 128 : index
    %c0_19 = arith.constant 0 : index
    %16 = vector.load %arg2[%c128, %c0_19] : memref<3200x128xbf16, #tpu.memory_space<vmem>>, vector<128x128xbf16>
    %cst_20 = arith.constant dense<0.000000e+00> : vector<64x128xf32>
    %17 = tpu.matmul %14, %16, %cst_20 {dimension_numbers = #tpu.dot_dimension_numbers<[1], [0], [0], [1], [0, 0, 1, 1], [], []>} : vector<64x128xbf16>, vector<128x128xbf16>, vector<64x128xf32> -> vector<64x128xf32>
    %18 = arith.addf %15, %17 : vector<64x128xf32>
    %c0_21 = arith.constant 0 : index
    %c0_22 = arith.constant 0 : index
    %19 = vector.load %arg5[%c0_21, %c0_22] : memref<64x128xf32, #tpu.memory_space<vmem>>, vector<64x128xf32>
    tpu.vector_store %arg5[%c0_21, %c0_22], %18 {strides = array<i32>} : memref<64x128xf32, #tpu.memory_space<vmem>>, vector<64x128xf32>,
    %c0_23 = arith.constant 0 : index
    %c0_24 = arith.constant 0 : index
    %c0_25 = arith.constant 0 : index
    %c1_26 = arith.constant 1 : index
    %c0_27 = arith.constant 0 : index
    %20 = vector.load %arg1[%c0_23, %c0_24, %c0_25, %c1_26, %c0_27] : memref<1x4x10x10x128xf32, #tpu.memory_space<vmem>>, vector<1x1x8x8x128xf32>
    %21 = vector.shape_cast %20 : vector<1x1x8x8x128xf32> to vector<8x8x128xf32>
    %22 = vector.shape_cast %21 : vector<8x8x128xf32> to vector<64x128xf32>
    %23 = arith.truncf %22 : vector<64x128xf32> to vector<64x128xbf16>
    %c0_28 = arith.constant 0 : index
    %c0_29 = arith.constant 0 : index
    %24 = vector.load %arg5[%c0_28, %c0_29] : memref<64x128xf32, #tpu.memory_space<vmem>>, vector<64x128xf32>
    %c256 = arith.constant 256 : index
    %c0_30 = arith.constant 0 : index
    %25 = vector.load %arg2[%c256, %c0_30] : memref<3200x128xbf16, #tpu.memory_space<vmem>>, vector<128x128xbf16>
    %cst_31 = arith.constant dense<0.000000e+00> : vector<64x128xf32>
    %26 = tpu.matmul %23, %25, %cst_31 {dimension_numbers = #tpu.dot_dimension_numbers<[1], [0], [0], [1], [0, 0, 1, 1], [], []>} : vector<64x128xbf16>, vector<128x128xbf16>, vector<64x128xf32> -> vector<64x128xf32>
    %27 = arith.addf %24, %26 : vector<64x128xf32>
    %c0_32 = arith.constant 0 : index
    %c0_33 = arith.constant 0 : index
    %28 = vector.load %arg5[%c0_32, %c0_33] : memref<64x128xf32, #tpu.memory_space<vmem>>, vector<64x128xf32>
    tpu.vector_store %arg5[%c0_32, %c0_33], %27 {strides = array<i32>} : memref<64x128xf32, #tpu.memory_space<vmem>>, vector<64x128xf32>,
    %c0_34 = arith.constant 0 : index
    %c1_35 = arith.constant 1 : index
    %c0_36 = arith.constant 0 : index
    %c1_37 = arith.constant 1 : index
    %c0_38 = arith.constant 0 : index
    %29 = vector.load %arg1[%c0_34, %c1_35, %c0_36, %c1_37, %c0_38] : memref<1x4x10x10x128xf32, #tpu.memory_space<vmem>>, vector<1x1x8x8x128xf32>
    %30 = vector.shape_cast %29 : vector<1x1x8x8x128xf32> to vector<8x8x128xf32>
    %31 = vector.shape_cast %30 : vector<8x8x128xf32> to vector<64x128xf32>
    %32 = arith.truncf %31 : vector<64x128xf32> to vector<64x128xbf16>
    %c0_39 = arith.constant 0 : index
    %c0_40 = arith.constant 0 : index
    %33 = vector.load %arg5[%c0_39, %c0_40] : memref<64x128xf32, #tpu.memory_space<vmem>>, vector<64x128xf32>
    %c384 = arith.constant 384 : index
    %c0_41 = arith.constant 0 : index
    %34 = vector.load %arg2[%c384, %c0_41] : memref<3200x128xbf16, #tpu.memory_space<vmem>>, vector<128x128xbf16>
    %cst_42 = arith.constant dense<0.000000e+00> : vector<64x128xf32>
    %35 = tpu.matmul %32, %34, %cst_42 {dimension_numbers = #tpu.dot_dimension_numbers<[1], [0], [0], [1], [0, 0, 1, 1], [], []>} : vector<64x128xbf16>, vector<128x128xbf16>, vector<64x128xf32> -> vector<64x128xf32>
    %36 = arith.addf %33, %35 : vector<64x128xf32>
    %c0_43 = arith.constant 0 : index
    %c0_44 = arith.constant 0 : index
    %37 = vector.load %arg5[%c0_43, %c0_44] : memref<64x128xf32, #tpu.memory_space<vmem>>, vector<64x128xf32>
    tpu.vector_store %arg5[%c0_43, %c0_44], %36 {strides = array<i32>} : memref<64x128xf32, #tpu.memory_space<vmem>>, vector<64x128xf32>,
    %c0_45 = arith.constant 0 : index
    %c0_46 = arith.constant 0 : index
    %c0_47 = arith.constant 0 : index
    %c2 = arith.constant 2 : index
    %c0_48 = arith.constant 0 : index
    %38 = vector.load %arg1[%c0_45, %c0_46, %c0_47, %c2, %c0_48] : memref<1x4x10x10x128xf32, #tpu.memory_space<vmem>>, vector<1x1x8x8x128xf32>
    %39 = vector.shape_cast %38 : vector<1x1x8x8x128xf32> to vector<8x8x128xf32>
    %40 = vector.shape_cast %39 : vector<8x8x128xf32> to vector<64x128xf32>
    %41 = arith.truncf %40 : vector<64x128xf32> to vector<64x128xbf16>
    %c0_49 = arith.constant 0 : index
    %c0_50 = arith.constant 0 : index
    %42 = vector.load %arg5[%c0_49, %c0_50] : memref<64x128xf32, #tpu.memory_space<vmem>>, vector<64x128xf32>
    %c512 = arith.constant 512 : index
    %c0_51 = arith.constant 0 : index
    %43 = vector.load %arg2[%c512, %c0_51] : memref<3200x128xbf16, #tpu.memory_space<vmem>>, vector<128x128xbf16>
    %cst_52 = arith.constant dense<0.000000e+00> : vector<64x128xf32>
    %44 = tpu.matmul %41, %43, %cst_52 {dimension_numbers = #tpu.dot_dimension_numbers<[1], [0], [0], [1], [0, 0, 1, 1], [], []>} : vector<64x128xbf16>, vector<128x128xbf16>, vector<64x128xf32> -> vector<64x128xf32>
    %45 = arith.addf %42, %44 : vector<64x128xf32>
    %c0_53 = arith.constant 0 : index
    %c0_54 = arith.constant 0 : index
    %46 = vector.load %arg5[%c0_53, %c0_54] : memref<64x128xf32, #tpu.memory_space<vmem>>, vector<64x128xf32>
    tpu.vector_store %arg5[%c0_53, %c0_54], %45 {strides = array<i32>} : memref<64x128xf32, #tpu.memory_space<vmem>>, vector<64x128xf32>,
    %c0_55 = arith.constant 0 : index
    %c2_56 = arith.constant 2 : index
    %c0_57 = arith.constant 0 : index
    %c0_58 = arith.constant 0 : index
    %c0_59 = arith.constant 0 : index
    %47 = vector.load %arg1[%c0_55, %c2_56, %c0_57, %c0_58, %c0_59] : memref<1x4x10x10x128xf32, #tpu.memory_space<vmem>>, vector<1x1x8x8x128xf32>
    %48 = vector.shape_cast %47 : vector<1x1x8x8x128xf32> to vector<8x8x128xf32>
    %49 = vector.shape_cast %48 : vector<8x8x128xf32> to vector<64x128xf32>
    %50 = arith.truncf %49 : vector<64x128xf32> to vector<64x128xbf16>
    %c0_60 = arith.constant 0 : index
    %c0_61 = arith.constant 0 : index
    %51 = vector.load %arg5[%c0_60, %c0_61] : memref<64x128xf32, #tpu.memory_space<vmem>>, vector<64x128xf32>
    %c640 = arith.constant 640 : index
    %c0_62 = arith.constant 0 : index
    %52 = vector.load %arg2[%c640, %c0_62] : memref<3200x128xbf16, #tpu.memory_space<vmem>>, vector<128x128xbf16>
    %cst_63 = arith.constant dense<0.000000e+00> : vector<64x128xf32>
    %53 = tpu.matmul %50, %52, %cst_63 {dimension_numbers = #tpu.dot_dimension_numbers<[1], [0], [0], [1], [0, 0, 1, 1], [], []>} : vector<64x128xbf16>, vector<128x128xbf16>, vector<64x128xf32> -> vector<64x128xf32>
    %54 = arith.addf %51, %53 : vector<64x128xf32>
    %c0_64 = arith.constant 0 : index
    %c0_65 = arith.constant 0 : index
    %55 = vector.load %arg5[%c0_64, %c0_65] : memref<64x128xf32, #tpu.memory_space<vmem>>, vector<64x128xf32>
    tpu.vector_store %arg5[%c0_64, %c0_65], %54 {strides = array<i32>} : memref<64x128xf32, #tpu.memory_space<vmem>>, vector<64x128xf32>,
    %c0_66 = arith.constant 0 : index
    %c3 = arith.constant 3 : index
    %c0_67 = arith.constant 0 : index
    %c0_68 = arith.constant 0 : index
    %c0_69 = arith.constant 0 : index
    %56 = vector.load %arg1[%c0_66, %c3, %c0_67, %c0_68, %c0_69] : memref<1x4x10x10x128xf32, #tpu.memory_space<vmem>>, vector<1x1x8x8x128xf32>
    %57 = vector.shape_cast %56 : vector<1x1x8x8x128xf32> to vector<8x8x128xf32>
    %58 = vector.shape_cast %57 : vector<8x8x128xf32> to vector<64x128xf32>
    %59 = arith.truncf %58 : vector<64x128xf32> to vector<64x128xbf16>
    %c0_70 = arith.constant 0 : index
    %c0_71 = arith.constant 0 : index
    %60 = vector.load %arg5[%c0_70, %c0_71] : memref<64x128xf32, #tpu.memory_space<vmem>>, vector<64x128xf32>
    %c768 = arith.constant 768 : index
    %c0_72 = arith.constant 0 : index
    %61 = vector.load %arg2[%c768, %c0_72] : memref<3200x128xbf16, #tpu.memory_space<vmem>>, vector<128x128xbf16>
    %cst_73 = arith.constant dense<0.000000e+00> : vector<64x128xf32>
    %62 = tpu.matmul %59, %61, %cst_73 {dimension_numbers = #tpu.dot_dimension_numbers<[1], [0], [0], [1], [0, 0, 1, 1], [], []>} : vector<64x128xbf16>, vector<128x128xbf16>, vector<64x128xf32> -> vector<64x128xf32>
    %63 = arith.addf %60, %62 : vector<64x128xf32>
    %c0_74 = arith.constant 0 : index
    %c0_75 = arith.constant 0 : index
    %64 = vector.load %arg5[%c0_74, %c0_75] : memref<64x128xf32, #tpu.memory_space<vmem>>, vector<64x128xf32>
    tpu.vector_store %arg5[%c0_74, %c0_75], %63 {strides = array<i32>} : memref<64x128xf32, #tpu.memory_space<vmem>>, vector<64x128xf32>,
    %c0_76 = arith.constant 0 : index
    %c2_77 = arith.constant 2 : index
    %c0_78 = arith.constant 0 : index
    %c1_79 = arith.constant 1 : index
    %c0_80 = arith.constant 0 : index
    %65 = vector.load %arg1[%c0_76, %c2_77, %c0_78, %c1_79, %c0_80] : memref<1x4x10x10x128xf32, #tpu.memory_space<vmem>>, vector<1x1x8x8x128xf32>
    %66 = vector.shape_cast %65 : vector<1x1x8x8x128xf32> to vector<8x8x128xf32>
    %67 = vector.shape_cast %66 : vector<8x8x128xf32> to vector<64x128xf32>
    %68 = arith.truncf %67 : vector<64x128xf32> to vector<64x128xbf16>
    %c0_81 = arith.constant 0 : index
    %c0_82 = arith.constant 0 : index
    %69 = vector.load %arg5[%c0_81, %c0_82] : memref<64x128xf32, #tpu.memory_space<vmem>>, vector<64x128xf32>
    %c896 = arith.constant 896 : index
    %c0_83 = arith.constant 0 : index
    %70 = vector.load %arg2[%c896, %c0_83] : memref<3200x128xbf16, #tpu.memory_space<vmem>>, vector<128x128xbf16>
    %cst_84 = arith.constant dense<0.000000e+00> : vector<64x128xf32>
    %71 = tpu.matmul %68, %70, %cst_84 {dimension_numbers = #tpu.dot_dimension_numbers<[1], [0], [0], [1], [0, 0, 1, 1], [], []>} : vector<64x128xbf16>, vector<128x128xbf16>, vector<64x128xf32> -> vector<64x128xf32>
    %72 = arith.addf %69, %71 : vector<64x128xf32>
    %c0_85 = arith.constant 0 : index
    %c0_86 = arith.constant 0 : index
    %73 = vector.load %arg5[%c0_85, %c0_86] : memref<64x128xf32, #tpu.memory_space<vmem>>, vector<64x128xf32>
    tpu.vector_store %arg5[%c0_85, %c0_86], %72 {strides = array<i32>} : memref<64x128xf32, #tpu.memory_space<vmem>>, vector<64x128xf32>,
    %c0_87 = arith.constant 0 : index
    %c3_88 = arith.constant 3 : index
    %c0_89 = arith.constant 0 : index
    %c1_90 = arith.constant 1 : index
    %c0_91 = arith.constant 0 : index
    %74 = vector.load %arg1[%c0_87, %c3_88, %c0_89, %c1_90, %c0_91] : memref<1x4x10x10x128xf32, #tpu.memory_space<vmem>>, vector<1x1x8x8x128xf32>
    %75 = vector.shape_cast %74 : vector<1x1x8x8x128xf32> to vector<8x8x128xf32>
    %76 = vector.shape_cast %75 : vector<8x8x128xf32> to vector<64x128xf32>
    %77 = arith.truncf %76 : vector<64x128xf32> to vector<64x128xbf16>
    %c0_92 = arith.constant 0 : index
    %c0_93 = arith.constant 0 : index
    %78 = vector.load %arg5[%c0_92, %c0_93] : memref<64x128xf32, #tpu.memory_space<vmem>>, vector<64x128xf32>
    %c1024 = arith.constant 1024 : index
    %c0_94 = arith.constant 0 : index
    %79 = vector.load %arg2[%c1024, %c0_94] : memref<3200x128xbf16, #tpu.memory_space<vmem>>, vector<128x128xbf16>
    %cst_95 = arith.constant dense<0.000000e+00> : vector<64x128xf32>
    %80 = tpu.matmul %77, %79, %cst_95 {dimension_numbers = #tpu.dot_dimension_numbers<[1], [0], [0], [1], [0, 0, 1, 1], [], []>} : vector<64x128xbf16>, vector<128x128xbf16>, vector<64x128xf32> -> vector<64x128xf32>
    %81 = arith.addf %78, %80 : vector<64x128xf32>
    %c0_96 = arith.constant 0 : index
    %c0_97 = arith.constant 0 : index
    %82 = vector.load %arg5[%c0_96, %c0_97] : memref<64x128xf32, #tpu.memory_space<vmem>>, vector<64x128xf32>
    tpu.vector_store %arg5[%c0_96, %c0_97], %81 {strides = array<i32>} : memref<64x128xf32, #tpu.memory_space<vmem>>, vector<64x128xf32>,
    %c0_98 = arith.constant 0 : index
    %c2_99 = arith.constant 2 : index
    %c0_100 = arith.constant 0 : index
    %c2_101 = arith.constant 2 : index
    %c0_102 = arith.constant 0 : index
    %83 = vector.load %arg1[%c0_98, %c2_99, %c0_100, %c2_101, %c0_102] : memref<1x4x10x10x128xf32, #tpu.memory_space<vmem>>, vector<1x1x8x8x128xf32>
    %84 = vector.shape_cast %83 : vector<1x1x8x8x128xf32> to vector<8x8x128xf32>
    %85 = vector.shape_cast %84 : vector<8x8x128xf32> to vector<64x128xf32>
    %86 = arith.truncf %85 : vector<64x128xf32> to vector<64x128xbf16>
    %c0_103 = arith.constant 0 : index
    %c0_104 = arith.constant 0 : index
    %87 = vector.load %arg5[%c0_103, %c0_104] : memref<64x128xf32, #tpu.memory_space<vmem>>, vector<64x128xf32>
    %c1152 = arith.constant 1152 : index
    %c0_105 = arith.constant 0 : index
    %88 = vector.load %arg2[%c1152, %c0_105] : memref<3200x128xbf16, #tpu.memory_space<vmem>>, vector<128x128xbf16>
    %cst_106 = arith.constant dense<0.000000e+00> : vector<64x128xf32>
    %89 = tpu.matmul %86, %88, %cst_106 {dimension_numbers = #tpu.dot_dimension_numbers<[1], [0], [0], [1], [0, 0, 1, 1], [], []>} : vector<64x128xbf16>, vector<128x128xbf16>, vector<64x128xf32> -> vector<64x128xf32>
    %90 = arith.addf %87, %89 : vector<64x128xf32>
    %c0_107 = arith.constant 0 : index
    %c0_108 = arith.constant 0 : index
    %91 = vector.load %arg5[%c0_107, %c0_108] : memref<64x128xf32, #tpu.memory_space<vmem>>, vector<64x128xf32>
    tpu.vector_store %arg5[%c0_107, %c0_108], %90 {strides = array<i32>} : memref<64x128xf32, #tpu.memory_space<vmem>>, vector<64x128xf32>,
    %c0_109 = arith.constant 0 : index
    %c0_110 = arith.constant 0 : index
    %c1_111 = arith.constant 1 : index
    %c0_112 = arith.constant 0 : index
    %c0_113 = arith.constant 0 : index
    %92 = vector.load %arg1[%c0_109, %c0_110, %c1_111, %c0_112, %c0_113] : memref<1x4x10x10x128xf32, #tpu.memory_space<vmem>>, vector<1x1x8x8x128xf32>
    %93 = vector.shape_cast %92 : vector<1x1x8x8x128xf32> to vector<8x8x128xf32>
    %94 = vector.shape_cast %93 : vector<8x8x128xf32> to vector<64x128xf32>
    %95 = arith.truncf %94 : vector<64x128xf32> to vector<64x128xbf16>
    %c0_114 = arith.constant 0 : index
    %c0_115 = arith.constant 0 : index
    %96 = vector.load %arg5[%c0_114, %c0_115] : memref<64x128xf32, #tpu.memory_space<vmem>>, vector<64x128xf32>
    %c1280 = arith.constant 1280 : index
    %c0_116 = arith.constant 0 : index
    %97 = vector.load %arg2[%c1280, %c0_116] : memref<3200x128xbf16, #tpu.memory_space<vmem>>, vector<128x128xbf16>
    %cst_117 = arith.constant dense<0.000000e+00> : vector<64x128xf32>
    %98 = tpu.matmul %95, %97, %cst_117 {dimension_numbers = #tpu.dot_dimension_numbers<[1], [0], [0], [1], [0, 0, 1, 1], [], []>} : vector<64x128xbf16>, vector<128x128xbf16>, vector<64x128xf32> -> vector<64x128xf32>
    %99 = arith.addf %96, %98 : vector<64x128xf32>
    %c0_118 = arith.constant 0 : index
    %c0_119 = arith.constant 0 : index
    %100 = vector.load %arg5[%c0_118, %c0_119] : memref<64x128xf32, #tpu.memory_space<vmem>>, vector<64x128xf32>
    tpu.vector_store %arg5[%c0_118, %c0_119], %99 {strides = array<i32>} : memref<64x128xf32, #tpu.memory_space<vmem>>, vector<64x128xf32>,
    %c0_120 = arith.constant 0 : index
    %c1_121 = arith.constant 1 : index
    %c1_122 = arith.constant 1 : index
    %c0_123 = arith.constant 0 : index
    %c0_124 = arith.constant 0 : index
    %101 = vector.load %arg1[%c0_120, %c1_121, %c1_122, %c0_123, %c0_124] : memref<1x4x10x10x128xf32, #tpu.memory_space<vmem>>, vector<1x1x8x8x128xf32>
    %102 = vector.shape_cast %101 : vector<1x1x8x8x128xf32> to vector<8x8x128xf32>
    %103 = vector.shape_cast %102 : vector<8x8x128xf32> to vector<64x128xf32>
    %104 = arith.truncf %103 : vector<64x128xf32> to vector<64x128xbf16>
    %c0_125 = arith.constant 0 : index
    %c0_126 = arith.constant 0 : index
    %105 = vector.load %arg5[%c0_125, %c0_126] : memref<64x128xf32, #tpu.memory_space<vmem>>, vector<64x128xf32>
    %c1408 = arith.constant 1408 : index
    %c0_127 = arith.constant 0 : index
    %106 = vector.load %arg2[%c1408, %c0_127] : memref<3200x128xbf16, #tpu.memory_space<vmem>>, vector<128x128xbf16>
    %cst_128 = arith.constant dense<0.000000e+00> : vector<64x128xf32>
    %107 = tpu.matmul %104, %106, %cst_128 {dimension_numbers = #tpu.dot_dimension_numbers<[1], [0], [0], [1], [0, 0, 1, 1], [], []>} : vector<64x128xbf16>, vector<128x128xbf16>, vector<64x128xf32> -> vector<64x128xf32>
    %108 = arith.addf %105, %107 : vector<64x128xf32>
    %c0_129 = arith.constant 0 : index
    %c0_130 = arith.constant 0 : index
    %109 = vector.load %arg5[%c0_129, %c0_130] : memref<64x128xf32, #tpu.memory_space<vmem>>, vector<64x128xf32>
    tpu.vector_store %arg5[%c0_129, %c0_130], %108 {strides = array<i32>} : memref<64x128xf32, #tpu.memory_space<vmem>>, vector<64x128xf32>,
    %c0_131 = arith.constant 0 : index
    %c0_132 = arith.constant 0 : index
    %c1_133 = arith.constant 1 : index
    %c1_134 = arith.constant 1 : index
    %c0_135 = arith.constant 0 : index
    %110 = vector.load %arg1[%c0_131, %c0_132, %c1_133, %c1_134, %c0_135] : memref<1x4x10x10x128xf32, #tpu.memory_space<vmem>>, vector<1x1x8x8x128xf32>
    %111 = vector.shape_cast %110 : vector<1x1x8x8x128xf32> to vector<8x8x128xf32>
    %112 = vector.shape_cast %111 : vector<8x8x128xf32> to vector<64x128xf32>
    %113 = arith.truncf %112 : vector<64x128xf32> to vector<64x128xbf16>
    %c0_136 = arith.constant 0 : index
    %c0_137 = arith.constant 0 : index
    %114 = vector.load %arg5[%c0_136, %c0_137] : memref<64x128xf32, #tpu.memory_space<vmem>>, vector<64x128xf32>
    %c1536 = arith.constant 1536 : index
    %c0_138 = arith.constant 0 : index
    %115 = vector.load %arg2[%c1536, %c0_138] : memref<3200x128xbf16, #tpu.memory_space<vmem>>, vector<128x128xbf16>
    %cst_139 = arith.constant dense<0.000000e+00> : vector<64x128xf32>
    %116 = tpu.matmul %113, %115, %cst_139 {dimension_numbers = #tpu.dot_dimension_numbers<[1], [0], [0], [1], [0, 0, 1, 1], [], []>} : vector<64x128xbf16>, vector<128x128xbf16>, vector<64x128xf32> -> vector<64x128xf32>
    %117 = arith.addf %114, %116 : vector<64x128xf32>
    %c0_140 = arith.constant 0 : index
    %c0_141 = arith.constant 0 : index
    %118 = vector.load %arg5[%c0_140, %c0_141] : memref<64x128xf32, #tpu.memory_space<vmem>>, vector<64x128xf32>
    tpu.vector_store %arg5[%c0_140, %c0_141], %117 {strides = array<i32>} : memref<64x128xf32, #tpu.memory_space<vmem>>, vector<64x128xf32>,
    %c0_142 = arith.constant 0 : index
    %c1_143 = arith.constant 1 : index
    %c1_144 = arith.constant 1 : index
    %c1_145 = arith.constant 1 : index
    %c0_146 = arith.constant 0 : index
    %119 = vector.load %arg1[%c0_142, %c1_143, %c1_144, %c1_145, %c0_146] : memref<1x4x10x10x128xf32, #tpu.memory_space<vmem>>, vector<1x1x8x8x128xf32>
    %120 = vector.shape_cast %119 : vector<1x1x8x8x128xf32> to vector<8x8x128xf32>
    %121 = vector.shape_cast %120 : vector<8x8x128xf32> to vector<64x128xf32>
    %122 = arith.truncf %121 : vector<64x128xf32> to vector<64x128xbf16>
    %c0_147 = arith.constant 0 : index
    %c0_148 = arith.constant 0 : index
    %123 = vector.load %arg5[%c0_147, %c0_148] : memref<64x128xf32, #tpu.memory_space<vmem>>, vector<64x128xf32>
    %c1664 = arith.constant 1664 : index
    %c0_149 = arith.constant 0 : index
    %124 = vector.load %arg2[%c1664, %c0_149] : memref<3200x128xbf16, #tpu.memory_space<vmem>>, vector<128x128xbf16>
    %cst_150 = arith.constant dense<0.000000e+00> : vector<64x128xf32>
    %125 = tpu.matmul %122, %124, %cst_150 {dimension_numbers = #tpu.dot_dimension_numbers<[1], [0], [0], [1], [0, 0, 1, 1], [], []>} : vector<64x128xbf16>, vector<128x128xbf16>, vector<64x128xf32> -> vector<64x128xf32>
    %126 = arith.addf %123, %125 : vector<64x128xf32>
    %c0_151 = arith.constant 0 : index
    %c0_152 = arith.constant 0 : index
    %127 = vector.load %arg5[%c0_151, %c0_152] : memref<64x128xf32, #tpu.memory_space<vmem>>, vector<64x128xf32>
    tpu.vector_store %arg5[%c0_151, %c0_152], %126 {strides = array<i32>} : memref<64x128xf32, #tpu.memory_space<vmem>>, vector<64x128xf32>,
    %c0_153 = arith.constant 0 : index
    %c0_154 = arith.constant 0 : index
    %c1_155 = arith.constant 1 : index
    %c2_156 = arith.constant 2 : index
    %c0_157 = arith.constant 0 : index
    %128 = vector.load %arg1[%c0_153, %c0_154, %c1_155, %c2_156, %c0_157] : memref<1x4x10x10x128xf32, #tpu.memory_space<vmem>>, vector<1x1x8x8x128xf32>
    %129 = vector.shape_cast %128 : vector<1x1x8x8x128xf32> to vector<8x8x128xf32>
    %130 = vector.shape_cast %129 : vector<8x8x128xf32> to vector<64x128xf32>
    %131 = arith.truncf %130 : vector<64x128xf32> to vector<64x128xbf16>
    %c0_158 = arith.constant 0 : index
    %c0_159 = arith.constant 0 : index
    %132 = vector.load %arg5[%c0_158, %c0_159] : memref<64x128xf32, #tpu.memory_space<vmem>>, vector<64x128xf32>
    %c1792 = arith.constant 1792 : index
    %c0_160 = arith.constant 0 : index
    %133 = vector.load %arg2[%c1792, %c0_160] : memref<3200x128xbf16, #tpu.memory_space<vmem>>, vector<128x128xbf16>
    %cst_161 = arith.constant dense<0.000000e+00> : vector<64x128xf32>
    %134 = tpu.matmul %131, %133, %cst_161 {dimension_numbers = #tpu.dot_dimension_numbers<[1], [0], [0], [1], [0, 0, 1, 1], [], []>} : vector<64x128xbf16>, vector<128x128xbf16>, vector<64x128xf32> -> vector<64x128xf32>
    %135 = arith.addf %132, %134 : vector<64x128xf32>
    %c0_162 = arith.constant 0 : index
    %c0_163 = arith.constant 0 : index
    %136 = vector.load %arg5[%c0_162, %c0_163] : memref<64x128xf32, #tpu.memory_space<vmem>>, vector<64x128xf32>
    tpu.vector_store %arg5[%c0_162, %c0_163], %135 {strides = array<i32>} : memref<64x128xf32, #tpu.memory_space<vmem>>, vector<64x128xf32>,
    %c0_164 = arith.constant 0 : index
    %c2_165 = arith.constant 2 : index
    %c1_166 = arith.constant 1 : index
    %c0_167 = arith.constant 0 : index
    %c0_168 = arith.constant 0 : index
    %137 = vector.load %arg1[%c0_164, %c2_165, %c1_166, %c0_167, %c0_168] : memref<1x4x10x10x128xf32, #tpu.memory_space<vmem>>, vector<1x1x8x8x128xf32>
    %138 = vector.shape_cast %137 : vector<1x1x8x8x128xf32> to vector<8x8x128xf32>
    %139 = vector.shape_cast %138 : vector<8x8x128xf32> to vector<64x128xf32>
    %140 = arith.truncf %139 : vector<64x128xf32> to vector<64x128xbf16>
    %c0_169 = arith.constant 0 : index
    %c0_170 = arith.constant 0 : index
    %141 = vector.load %arg5[%c0_169, %c0_170] : memref<64x128xf32, #tpu.memory_space<vmem>>, vector<64x128xf32>
    %c1920 = arith.constant 1920 : index
    %c0_171 = arith.constant 0 : index
    %142 = vector.load %arg2[%c1920, %c0_171] : memref<3200x128xbf16, #tpu.memory_space<vmem>>, vector<128x128xbf16>
    %cst_172 = arith.constant dense<0.000000e+00> : vector<64x128xf32>
    %143 = tpu.matmul %140, %142, %cst_172 {dimension_numbers = #tpu.dot_dimension_numbers<[1], [0], [0], [1], [0, 0, 1, 1], [], []>} : vector<64x128xbf16>, vector<128x128xbf16>, vector<64x128xf32> -> vector<64x128xf32>
    %144 = arith.addf %141, %143 : vector<64x128xf32>
    %c0_173 = arith.constant 0 : index
    %c0_174 = arith.constant 0 : index
    %145 = vector.load %arg5[%c0_173, %c0_174] : memref<64x128xf32, #tpu.memory_space<vmem>>, vector<64x128xf32>
    tpu.vector_store %arg5[%c0_173, %c0_174], %144 {strides = array<i32>} : memref<64x128xf32, #tpu.memory_space<vmem>>, vector<64x128xf32>,
    %c0_175 = arith.constant 0 : index
    %c3_176 = arith.constant 3 : index
    %c1_177 = arith.constant 1 : index
    %c0_178 = arith.constant 0 : index
    %c0_179 = arith.constant 0 : index
    %146 = vector.load %arg1[%c0_175, %c3_176, %c1_177, %c0_178, %c0_179] : memref<1x4x10x10x128xf32, #tpu.memory_space<vmem>>, vector<1x1x8x8x128xf32>
    %147 = vector.shape_cast %146 : vector<1x1x8x8x128xf32> to vector<8x8x128xf32>
    %148 = vector.shape_cast %147 : vector<8x8x128xf32> to vector<64x128xf32>
    %149 = arith.truncf %148 : vector<64x128xf32> to vector<64x128xbf16>
    %c0_180 = arith.constant 0 : index
    %c0_181 = arith.constant 0 : index
    %150 = vector.load %arg5[%c0_180, %c0_181] : memref<64x128xf32, #tpu.memory_space<vmem>>, vector<64x128xf32>
    %c2048 = arith.constant 2048 : index
    %c0_182 = arith.constant 0 : index
    %151 = vector.load %arg2[%c2048, %c0_182] : memref<3200x128xbf16, #tpu.memory_space<vmem>>, vector<128x128xbf16>
    %cst_183 = arith.constant dense<0.000000e+00> : vector<64x128xf32>
    %152 = tpu.matmul %149, %151, %cst_183 {dimension_numbers = #tpu.dot_dimension_numbers<[1], [0], [0], [1], [0, 0, 1, 1], [], []>} : vector<64x128xbf16>, vector<128x128xbf16>, vector<64x128xf32> -> vector<64x128xf32>
    %153 = arith.addf %150, %152 : vector<64x128xf32>
    %c0_184 = arith.constant 0 : index
    %c0_185 = arith.constant 0 : index
    %154 = vector.load %arg5[%c0_184, %c0_185] : memref<64x128xf32, #tpu.memory_space<vmem>>, vector<64x128xf32>
    tpu.vector_store %arg5[%c0_184, %c0_185], %153 {strides = array<i32>} : memref<64x128xf32, #tpu.memory_space<vmem>>, vector<64x128xf32>,
    %c0_186 = arith.constant 0 : index
    %c2_187 = arith.constant 2 : index
    %c1_188 = arith.constant 1 : index
    %c1_189 = arith.constant 1 : index
    %c0_190 = arith.constant 0 : index
    %155 = vector.load %arg1[%c0_186, %c2_187, %c1_188, %c1_189, %c0_190] : memref<1x4x10x10x128xf32, #tpu.memory_space<vmem>>, vector<1x1x8x8x128xf32>
    %156 = vector.shape_cast %155 : vector<1x1x8x8x128xf32> to vector<8x8x128xf32>
    %157 = vector.shape_cast %156 : vector<8x8x128xf32> to vector<64x128xf32>
    %158 = arith.truncf %157 : vector<64x128xf32> to vector<64x128xbf16>
    %c0_191 = arith.constant 0 : index
    %c0_192 = arith.constant 0 : index
    %159 = vector.load %arg5[%c0_191, %c0_192] : memref<64x128xf32, #tpu.memory_space<vmem>>, vector<64x128xf32>
    %c2176 = arith.constant 2176 : index
    %c0_193 = arith.constant 0 : index
    %160 = vector.load %arg2[%c2176, %c0_193] : memref<3200x128xbf16, #tpu.memory_space<vmem>>, vector<128x128xbf16>
    %cst_194 = arith.constant dense<0.000000e+00> : vector<64x128xf32>
    %161 = tpu.matmul %158, %160, %cst_194 {dimension_numbers = #tpu.dot_dimension_numbers<[1], [0], [0], [1], [0, 0, 1, 1], [], []>} : vector<64x128xbf16>, vector<128x128xbf16>, vector<64x128xf32> -> vector<64x128xf32>
    %162 = arith.addf %159, %161 : vector<64x128xf32>
    %c0_195 = arith.constant 0 : index
    %c0_196 = arith.constant 0 : index
    %163 = vector.load %arg5[%c0_195, %c0_196] : memref<64x128xf32, #tpu.memory_space<vmem>>, vector<64x128xf32>
    tpu.vector_store %arg5[%c0_195, %c0_196], %162 {strides = array<i32>} : memref<64x128xf32, #tpu.memory_space<vmem>>, vector<64x128xf32>,
    %c0_197 = arith.constant 0 : index
    %c3_198 = arith.constant 3 : index
    %c1_199 = arith.constant 1 : index
    %c1_200 = arith.constant 1 : index
    %c0_201 = arith.constant 0 : index
    %164 = vector.load %arg1[%c0_197, %c3_198, %c1_199, %c1_200, %c0_201] : memref<1x4x10x10x128xf32, #tpu.memory_space<vmem>>, vector<1x1x8x8x128xf32>
    %165 = vector.shape_cast %164 : vector<1x1x8x8x128xf32> to vector<8x8x128xf32>
    %166 = vector.shape_cast %165 : vector<8x8x128xf32> to vector<64x128xf32>
    %167 = arith.truncf %166 : vector<64x128xf32> to vector<64x128xbf16>
    %c0_202 = arith.constant 0 : index
    %c0_203 = arith.constant 0 : index
    %168 = vector.load %arg5[%c0_202, %c0_203] : memref<64x128xf32, #tpu.memory_space<vmem>>, vector<64x128xf32>
    %c2304 = arith.constant 2304 : index
    %c0_204 = arith.constant 0 : index
    %169 = vector.load %arg2[%c2304, %c0_204] : memref<3200x128xbf16, #tpu.memory_space<vmem>>, vector<128x128xbf16>
    %cst_205 = arith.constant dense<0.000000e+00> : vector<64x128xf32>
    %170 = tpu.matmul %167, %169, %cst_205 {dimension_numbers = #tpu.dot_dimension_numbers<[1], [0], [0], [1], [0, 0, 1, 1], [], []>} : vector<64x128xbf16>, vector<128x128xbf16>, vector<64x128xf32> -> vector<64x128xf32>
    %171 = arith.addf %168, %170 : vector<64x128xf32>
    %c0_206 = arith.constant 0 : index
    %c0_207 = arith.constant 0 : index
    %172 = vector.load %arg5[%c0_206, %c0_207] : memref<64x128xf32, #tpu.memory_space<vmem>>, vector<64x128xf32>
    tpu.vector_store %arg5[%c0_206, %c0_207], %171 {strides = array<i32>} : memref<64x128xf32, #tpu.memory_space<vmem>>, vector<64x128xf32>,
    %c0_208 = arith.constant 0 : index
    %c2_209 = arith.constant 2 : index
    %c1_210 = arith.constant 1 : index
    %c2_211 = arith.constant 2 : index
    %c0_212 = arith.constant 0 : index
    %173 = vector.load %arg1[%c0_208, %c2_209, %c1_210, %c2_211, %c0_212] : memref<1x4x10x10x128xf32, #tpu.memory_space<vmem>>, vector<1x1x8x8x128xf32>
    %174 = vector.shape_cast %173 : vector<1x1x8x8x128xf32> to vector<8x8x128xf32>
    %175 = vector.shape_cast %174 : vector<8x8x128xf32> to vector<64x128xf32>
    %176 = arith.truncf %175 : vector<64x128xf32> to vector<64x128xbf16>
    %c0_213 = arith.constant 0 : index
    %c0_214 = arith.constant 0 : index
    %177 = vector.load %arg5[%c0_213, %c0_214] : memref<64x128xf32, #tpu.memory_space<vmem>>, vector<64x128xf32>
    %c2432 = arith.constant 2432 : index
    %c0_215 = arith.constant 0 : index
    %178 = vector.load %arg2[%c2432, %c0_215] : memref<3200x128xbf16, #tpu.memory_space<vmem>>, vector<128x128xbf16>
    %cst_216 = arith.constant dense<0.000000e+00> : vector<64x128xf32>
    %179 = tpu.matmul %176, %178, %cst_216 {dimension_numbers = #tpu.dot_dimension_numbers<[1], [0], [0], [1], [0, 0, 1, 1], [], []>} : vector<64x128xbf16>, vector<128x128xbf16>, vector<64x128xf32> -> vector<64x128xf32>
    %180 = arith.addf %177, %179 : vector<64x128xf32>
    %c0_217 = arith.constant 0 : index
    %c0_218 = arith.constant 0 : index
    %181 = vector.load %arg5[%c0_217, %c0_218] : memref<64x128xf32, #tpu.memory_space<vmem>>, vector<64x128xf32>
    tpu.vector_store %arg5[%c0_217, %c0_218], %180 {strides = array<i32>} : memref<64x128xf32, #tpu.memory_space<vmem>>, vector<64x128xf32>,
    %c0_219 = arith.constant 0 : index
    %c0_220 = arith.constant 0 : index
    %c2_221 = arith.constant 2 : index
    %c0_222 = arith.constant 0 : index
    %c0_223 = arith.constant 0 : index
    %182 = vector.load %arg1[%c0_219, %c0_220, %c2_221, %c0_222, %c0_223] : memref<1x4x10x10x128xf32, #tpu.memory_space<vmem>>, vector<1x1x8x8x128xf32>
    %183 = vector.shape_cast %182 : vector<1x1x8x8x128xf32> to vector<8x8x128xf32>
    %184 = vector.shape_cast %183 : vector<8x8x128xf32> to vector<64x128xf32>
    %185 = arith.truncf %184 : vector<64x128xf32> to vector<64x128xbf16>
    %c0_224 = arith.constant 0 : index
    %c0_225 = arith.constant 0 : index
    %186 = vector.load %arg5[%c0_224, %c0_225] : memref<64x128xf32, #tpu.memory_space<vmem>>, vector<64x128xf32>
    %c2560 = arith.constant 2560 : index
    %c0_226 = arith.constant 0 : index
    %187 = vector.load %arg2[%c2560, %c0_226] : memref<3200x128xbf16, #tpu.memory_space<vmem>>, vector<128x128xbf16>
    %cst_227 = arith.constant dense<0.000000e+00> : vector<64x128xf32>
    %188 = tpu.matmul %185, %187, %cst_227 {dimension_numbers = #tpu.dot_dimension_numbers<[1], [0], [0], [1], [0, 0, 1, 1], [], []>} : vector<64x128xbf16>, vector<128x128xbf16>, vector<64x128xf32> -> vector<64x128xf32>
    %189 = arith.addf %186, %188 : vector<64x128xf32>
    %c0_228 = arith.constant 0 : index
    %c0_229 = arith.constant 0 : index
    %190 = vector.load %arg5[%c0_228, %c0_229] : memref<64x128xf32, #tpu.memory_space<vmem>>, vector<64x128xf32>
    tpu.vector_store %arg5[%c0_228, %c0_229], %189 {strides = array<i32>} : memref<64x128xf32, #tpu.memory_space<vmem>>, vector<64x128xf32>,
    %c0_230 = arith.constant 0 : index
    %c1_231 = arith.constant 1 : index
    %c2_232 = arith.constant 2 : index
    %c0_233 = arith.constant 0 : index
    %c0_234 = arith.constant 0 : index
    %191 = vector.load %arg1[%c0_230, %c1_231, %c2_232, %c0_233, %c0_234] : memref<1x4x10x10x128xf32, #tpu.memory_space<vmem>>, vector<1x1x8x8x128xf32>
    %192 = vector.shape_cast %191 : vector<1x1x8x8x128xf32> to vector<8x8x128xf32>
    %193 = vector.shape_cast %192 : vector<8x8x128xf32> to vector<64x128xf32>
    %194 = arith.truncf %193 : vector<64x128xf32> to vector<64x128xbf16>
    %c0_235 = arith.constant 0 : index
    %c0_236 = arith.constant 0 : index
    %195 = vector.load %arg5[%c0_235, %c0_236] : memref<64x128xf32, #tpu.memory_space<vmem>>, vector<64x128xf32>
    %c2688 = arith.constant 2688 : index
    %c0_237 = arith.constant 0 : index
    %196 = vector.load %arg2[%c2688, %c0_237] : memref<3200x128xbf16, #tpu.memory_space<vmem>>, vector<128x128xbf16>
    %cst_238 = arith.constant dense<0.000000e+00> : vector<64x128xf32>
    %197 = tpu.matmul %194, %196, %cst_238 {dimension_numbers = #tpu.dot_dimension_numbers<[1], [0], [0], [1], [0, 0, 1, 1], [], []>} : vector<64x128xbf16>, vector<128x128xbf16>, vector<64x128xf32> -> vector<64x128xf32>
    %198 = arith.addf %195, %197 : vector<64x128xf32>
    %c0_239 = arith.constant 0 : index
    %c0_240 = arith.constant 0 : index
    %199 = vector.load %arg5[%c0_239, %c0_240] : memref<64x128xf32, #tpu.memory_space<vmem>>, vector<64x128xf32>
    tpu.vector_store %arg5[%c0_239, %c0_240], %198 {strides = array<i32>} : memref<64x128xf32, #tpu.memory_space<vmem>>, vector<64x128xf32>,
    %c0_241 = arith.constant 0 : index
    %c0_242 = arith.constant 0 : index
    %c2_243 = arith.constant 2 : index
    %c1_244 = arith.constant 1 : index
    %c0_245 = arith.constant 0 : index
    %200 = vector.load %arg1[%c0_241, %c0_242, %c2_243, %c1_244, %c0_245] : memref<1x4x10x10x128xf32, #tpu.memory_space<vmem>>, vector<1x1x8x8x128xf32>
    %201 = vector.shape_cast %200 : vector<1x1x8x8x128xf32> to vector<8x8x128xf32>
    %202 = vector.shape_cast %201 : vector<8x8x128xf32> to vector<64x128xf32>
    %203 = arith.truncf %202 : vector<64x128xf32> to vector<64x128xbf16>
    %c0_246 = arith.constant 0 : index
    %c0_247 = arith.constant 0 : index
    %204 = vector.load %arg5[%c0_246, %c0_247] : memref<64x128xf32, #tpu.memory_space<vmem>>, vector<64x128xf32>
    %c2816 = arith.constant 2816 : index
    %c0_248 = arith.constant 0 : index
    %205 = vector.load %arg2[%c2816, %c0_248] : memref<3200x128xbf16, #tpu.memory_space<vmem>>, vector<128x128xbf16>
    %cst_249 = arith.constant dense<0.000000e+00> : vector<64x128xf32>
    %206 = tpu.matmul %203, %205, %cst_249 {dimension_numbers = #tpu.dot_dimension_numbers<[1], [0], [0], [1], [0, 0, 1, 1], [], []>} : vector<64x128xbf16>, vector<128x128xbf16>, vector<64x128xf32> -> vector<64x128xf32>
    %207 = arith.addf %204, %206 : vector<64x128xf32>
    %c0_250 = arith.constant 0 : index
    %c0_251 = arith.constant 0 : index
    %208 = vector.load %arg5[%c0_250, %c0_251] : memref<64x128xf32, #tpu.memory_space<vmem>>, vector<64x128xf32>
    tpu.vector_store %arg5[%c0_250, %c0_251], %207 {strides = array<i32>} : memref<64x128xf32, #tpu.memory_space<vmem>>, vector<64x128xf32>,
    %c0_252 = arith.constant 0 : index
    %c1_253 = arith.constant 1 : index
    %c2_254 = arith.constant 2 : index
    %c1_255 = arith.constant 1 : index
    %c0_256 = arith.constant 0 : index
    %209 = vector.load %arg1[%c0_252, %c1_253, %c2_254, %c1_255, %c0_256] : memref<1x4x10x10x128xf32, #tpu.memory_space<vmem>>, vector<1x1x8x8x128xf32>
    %210 = vector.shape_cast %209 : vector<1x1x8x8x128xf32> to vector<8x8x128xf32>
    %211 = vector.shape_cast %210 : vector<8x8x128xf32> to vector<64x128xf32>
    %212 = arith.truncf %211 : vector<64x128xf32> to vector<64x128xbf16>
    %c0_257 = arith.constant 0 : index
    %c0_258 = arith.constant 0 : index
    %213 = vector.load %arg5[%c0_257, %c0_258] : memref<64x128xf32, #tpu.memory_space<vmem>>, vector<64x128xf32>
    %c2944 = arith.constant 2944 : index
    %c0_259 = arith.constant 0 : index
    %214 = vector.load %arg2[%c2944, %c0_259] : memref<3200x128xbf16, #tpu.memory_space<vmem>>, vector<128x128xbf16>
    %cst_260 = arith.constant dense<0.000000e+00> : vector<64x128xf32>
    %215 = tpu.matmul %212, %214, %cst_260 {dimension_numbers = #tpu.dot_dimension_numbers<[1], [0], [0], [1], [0, 0, 1, 1], [], []>} : vector<64x128xbf16>, vector<128x128xbf16>, vector<64x128xf32> -> vector<64x128xf32>
    %216 = arith.addf %213, %215 : vector<64x128xf32>
    %c0_261 = arith.constant 0 : index
    %c0_262 = arith.constant 0 : index
    %217 = vector.load %arg5[%c0_261, %c0_262] : memref<64x128xf32, #tpu.memory_space<vmem>>, vector<64x128xf32>
    tpu.vector_store %arg5[%c0_261, %c0_262], %216 {strides = array<i32>} : memref<64x128xf32, #tpu.memory_space<vmem>>, vector<64x128xf32>,
    %c0_263 = arith.constant 0 : index
    %c0_264 = arith.constant 0 : index
    %c2_265 = arith.constant 2 : index
    %c2_266 = arith.constant 2 : index
    %c0_267 = arith.constant 0 : index
    %218 = vector.load %arg1[%c0_263, %c0_264, %c2_265, %c2_266, %c0_267] : memref<1x4x10x10x128xf32, #tpu.memory_space<vmem>>, vector<1x1x8x8x128xf32>
    %219 = vector.shape_cast %218 : vector<1x1x8x8x128xf32> to vector<8x8x128xf32>
    %220 = vector.shape_cast %219 : vector<8x8x128xf32> to vector<64x128xf32>
    %221 = arith.truncf %220 : vector<64x128xf32> to vector<64x128xbf16>
    %c0_268 = arith.constant 0 : index
    %c0_269 = arith.constant 0 : index
    %222 = vector.load %arg5[%c0_268, %c0_269] : memref<64x128xf32, #tpu.memory_space<vmem>>, vector<64x128xf32>
    %c3072 = arith.constant 3072 : index
    %c0_270 = arith.constant 0 : index
    %223 = vector.load %arg2[%c3072, %c0_270] : memref<3200x128xbf16, #tpu.memory_space<vmem>>, vector<128x128xbf16>
    %cst_271 = arith.constant dense<0.000000e+00> : vector<64x128xf32>
    %224 = tpu.matmul %221, %223, %cst_271 {dimension_numbers = #tpu.dot_dimension_numbers<[1], [0], [0], [1], [0, 0, 1, 1], [], []>} : vector<64x128xbf16>, vector<128x128xbf16>, vector<64x128xf32> -> vector<64x128xf32>
    %225 = arith.addf %222, %224 : vector<64x128xf32>
    %c0_272 = arith.constant 0 : index
    %c0_273 = arith.constant 0 : index
    %226 = vector.load %arg5[%c0_272, %c0_273] : memref<64x128xf32, #tpu.memory_space<vmem>>, vector<64x128xf32>
    tpu.vector_store %arg5[%c0_272, %c0_273], %225 {strides = array<i32>} : memref<64x128xf32, #tpu.memory_space<vmem>>, vector<64x128xf32>,
    %c0_274 = arith.constant 0 : index
    %c0_275 = arith.constant 0 : index
    %227 = vector.load %arg5[%c0_274, %c0_275] : memref<64x128xf32, #tpu.memory_space<vmem>>, vector<64x128xf32>
    %c0_276 = arith.constant 0 : index
    %c0_277 = arith.constant 0 : index
    %228 = vector.load %arg3[%c0_276, %c0_277] : memref<1x128xf32, #tpu.memory_space<vmem>>, vector<1x128xf32>
    %229 = vector.broadcast %228 : vector<1x128xf32> to vector<64x128xf32>
    %230 = arith.addf %227, %229 : vector<64x128xf32>
    %cst_278 = arith.constant dense<0.000000e+00> : vector<128xf32>
    %231 = vector.multi_reduction <add>, %230, %cst_278 [0] : vector<64x128xf32> to vector<128xf32>
    %232 = vector.shape_cast %231 : vector<128xf32> to vector<1x128xf32>
    %233 = arith.mulf %230, %230 : vector<64x128xf32>
    %cst_279 = arith.constant dense<0.000000e+00> : vector<128xf32>
    %234 = vector.multi_reduction <add>, %233, %cst_279 [0] : vector<64x128xf32> to vector<128xf32>
    %235 = vector.shape_cast %234 : vector<128xf32> to vector<1x128xf32>
    %cst_280 = arith.constant 1.562500e-02 : f32
    %236 = vector.broadcast %cst_280 : f32 to vector<1x128xf32>
    %237 = arith.mulf %232, %236 : vector<1x128xf32>
    %cst_281 = arith.constant 1.562500e-02 : f32
    %238 = vector.broadcast %cst_281 : f32 to vector<1x128xf32>
    %239 = arith.mulf %235, %238 : vector<1x128xf32>
    %240 = arith.mulf %237, %237 : vector<1x128xf32>
    %241 = arith.subf %239, %240 : vector<1x128xf32>
    %cst_282 = arith.constant 0.000000e+00 : f32
    %242 = vector.broadcast %cst_282 : f32 to vector<1x128xf32>
    %243 = arith.maximumf %241, %242 : vector<1x128xf32>
    %244 = vector.broadcast %237 : vector<1x128xf32> to vector<64x128xf32>
    %245 = arith.subf %230, %244 : vector<64x128xf32>
    %cst_283 = arith.constant 9.99999974E-6 : f32
    %246 = vector.broadcast %cst_283 : f32 to vector<1x128xf32>
    %247 = arith.addf %243, %246 : vector<1x128xf32>
    %248 = math.rsqrt %247 : vector<1x128xf32>
    %249 = vector.broadcast %248 : vector<1x128xf32> to vector<64x128xf32>
    %250 = arith.mulf %245, %249 : vector<64x128xf32>
    %cst_284 = arith.constant 0.000000e+00 : f32
    %251 = vector.broadcast %cst_284 : f32 to vector<64x128xf32>
    %252 = arith.maximumf %250, %251 : vector<64x128xf32>
    %c0_285 = arith.constant 0 : index
    %c0_286 = arith.constant 0 : index
    %c0_287 = arith.constant 0 : index
    %253 = vector.load %arg4[%c0_285, %c0_286, %c0_287] : memref<1x64x128xf32, #tpu.memory_space<vmem>>, vector<1x64x128xf32>
    %254 = vector.shape_cast %253 : vector<1x64x128xf32> to vector<64x128xf32>
    %255 = vector.shape_cast %252 : vector<64x128xf32> to vector<1x64x128xf32>
    tpu.vector_store %arg4[%c0_285, %c0_286, %c0_287], %255 {strides = array<i32>} : memref<1x64x128xf32, #tpu.memory_space<vmem>>, vector<1x64x128xf32>,
    return
  }
  func.func @transform_0(%arg0: i32) -> (i32, i32, i32, i32, i32) {
    %c0_i32 = arith.constant 0 : i32
    %c0_i32_0 = arith.constant 0 : i32
    %c0_i32_1 = arith.constant 0 : i32
    %c0_i32_2 = arith.constant 0 : i32
    %c0_i32_3 = arith.constant 0 : i32
    return %arg0, %c0_i32, %c0_i32_0, %c0_i32_1, %c0_i32_2 : i32, i32, i32, i32, i32
  }
  func.func @transform_1(%arg0: i32) -> (i32, i32) {
    %c0_i32 = arith.constant 0 : i32
    %c0_i32_0 = arith.constant 0 : i32
    %c0_i32_1 = arith.constant 0 : i32
    return %c0_i32, %c0_i32_0 : i32, i32
  }
  func.func @transform_2(%arg0: i32) -> (i32, i32) {
    %c0_i32 = arith.constant 0 : i32
    %c0_i32_0 = arith.constant 0 : i32
    %c0_i32_1 = arith.constant 0 : i32
    return %c0_i32, %c0_i32_0 : i32, i32
  }
  func.func @transform_3(%arg0: i32) -> (i32, i32, i32) {
    %c0_i32 = arith.constant 0 : i32
    %c0_i32_0 = arith.constant 0 : i32
    %c0_i32_1 = arith.constant 0 : i32
    return %arg0, %c0_i32, %c0_i32_0 : i32, i32, i32
  }
}

module attributes {stable_mosaic.version = 11 : i64} {
  func.func @_resconv_pool_mlp_kernel(%arg0: i32, %arg1: memref<1x12x12x128xf32, #tpu.memory_space<vmem>>, %arg2: memref<3200x128xbf16, #tpu.memory_space<vmem>>, %arg3: memref<1x128xf32, #tpu.memory_space<vmem>>, %arg4: memref<128x128xf32, #tpu.memory_space<vmem>>, %arg5: memref<1x128xf32, #tpu.memory_space<vmem>>, %arg6: memref<128x128xf32, #tpu.memory_space<vmem>>, %arg7: memref<1x128xf32, #tpu.memory_space<vmem>>, %arg8: memref<1x1x128xf32, #tpu.memory_space<vmem>>, %arg9: memref<64x128xf32, #tpu.memory_space<vmem>>) attributes {dimension_semantics = [#tpu.dimension_semantics<parallel>], iteration_bounds = array<i64: 2>, scalar_prefetch = 0 : i64, scratch_operands = 1 : i64, tpu.core_type = #tpu.core_type<tc>, window_params = [{transform_indices = @transform_0, window_bounds = array<i64: 1, 12, 12, 128>}, {pipeline_mode = #tpu.pipeline_mode<synchronous>, transform_indices = @transform_1, window_bounds = array<i64: 3200, 128>}, {pipeline_mode = #tpu.pipeline_mode<synchronous>, transform_indices = @transform_2, window_bounds = array<i64: 1, 128>}, {pipeline_mode = #tpu.pipeline_mode<synchronous>, transform_indices = @transform_3, window_bounds = array<i64: 128, 128>}, {pipeline_mode = #tpu.pipeline_mode<synchronous>, transform_indices = @transform_4, window_bounds = array<i64: 1, 128>}, {pipeline_mode = #tpu.pipeline_mode<synchronous>, transform_indices = @transform_5, window_bounds = array<i64: 128, 128>}, {pipeline_mode = #tpu.pipeline_mode<synchronous>, transform_indices = @transform_6, window_bounds = array<i64: 1, 128>}, {transform_indices = @transform_7, window_bounds = array<i64: 1, 1, 128>}]} {
    %cst = arith.constant 0.000000e+00 : f32
    %0 = vector.broadcast %cst : f32 to vector<64x128xf32>
    %c0 = arith.constant 0 : index
    %c0_0 = arith.constant 0 : index
    %1 = vector.load %arg9[%c0, %c0_0] : memref<64x128xf32, #tpu.memory_space<vmem>>, vector<64x128xf32>
    tpu.vector_store %arg9[%c0, %c0_0], %0 {strides = array<i32>} : memref<64x128xf32, #tpu.memory_space<vmem>>, vector<64x128xf32>,
    %c0_1 = arith.constant 0 : index
    %c0_2 = arith.constant 0 : index
    %c0_3 = arith.constant 0 : index
    %c0_4 = arith.constant 0 : index
    %2 = vector.load %arg1[%c0_1, %c0_2, %c0_3, %c0_4] : memref<1x12x12x128xf32, #tpu.memory_space<vmem>>, vector<1x8x8x128xf32>
    %3 = vector.shape_cast %2 : vector<1x8x8x128xf32> to vector<8x8x128xf32>
    %4 = vector.shape_cast %3 : vector<8x8x128xf32> to vector<64x128xf32>
    %5 = arith.truncf %4 : vector<64x128xf32> to vector<64x128xbf16>
    %c0_5 = arith.constant 0 : index
    %c0_6 = arith.constant 0 : index
    %6 = vector.load %arg9[%c0_5, %c0_6] : memref<64x128xf32, #tpu.memory_space<vmem>>, vector<64x128xf32>
    %c0_7 = arith.constant 0 : index
    %c0_8 = arith.constant 0 : index
    %7 = vector.load %arg2[%c0_7, %c0_8] : memref<3200x128xbf16, #tpu.memory_space<vmem>>, vector<128x128xbf16>
    %cst_9 = arith.constant dense<0.000000e+00> : vector<64x128xf32>
    %8 = tpu.matmul %5, %7, %cst_9 {dimension_numbers = #tpu.dot_dimension_numbers<[1], [0], [0], [1], [0, 0, 1, 1], [], []>} : vector<64x128xbf16>, vector<128x128xbf16>, vector<64x128xf32> -> vector<64x128xf32>
    %9 = arith.addf %6, %8 : vector<64x128xf32>
    %c0_10 = arith.constant 0 : index
    %c0_11 = arith.constant 0 : index
    %10 = vector.load %arg9[%c0_10, %c0_11] : memref<64x128xf32, #tpu.memory_space<vmem>>, vector<64x128xf32>
    tpu.vector_store %arg9[%c0_10, %c0_11], %9 {strides = array<i32>} : memref<64x128xf32, #tpu.memory_space<vmem>>, vector<64x128xf32>,
    %c0_12 = arith.constant 0 : index
    %c0_13 = arith.constant 0 : index
    %c1 = arith.constant 1 : index
    %c0_14 = arith.constant 0 : index
    %11 = vector.load %arg1[%c0_12, %c0_13, %c1, %c0_14] : memref<1x12x12x128xf32, #tpu.memory_space<vmem>>, vector<1x8x8x128xf32>
    %12 = vector.shape_cast %11 : vector<1x8x8x128xf32> to vector<8x8x128xf32>
    %13 = vector.shape_cast %12 : vector<8x8x128xf32> to vector<64x128xf32>
    %14 = arith.truncf %13 : vector<64x128xf32> to vector<64x128xbf16>
    %c0_15 = arith.constant 0 : index
    %c0_16 = arith.constant 0 : index
    %15 = vector.load %arg9[%c0_15, %c0_16] : memref<64x128xf32, #tpu.memory_space<vmem>>, vector<64x128xf32>
    %c128 = arith.constant 128 : index
    %c0_17 = arith.constant 0 : index
    %16 = vector.load %arg2[%c128, %c0_17] : memref<3200x128xbf16, #tpu.memory_space<vmem>>, vector<128x128xbf16>
    %cst_18 = arith.constant dense<0.000000e+00> : vector<64x128xf32>
    %17 = tpu.matmul %14, %16, %cst_18 {dimension_numbers = #tpu.dot_dimension_numbers<[1], [0], [0], [1], [0, 0, 1, 1], [], []>} : vector<64x128xbf16>, vector<128x128xbf16>, vector<64x128xf32> -> vector<64x128xf32>
    %18 = arith.addf %15, %17 : vector<64x128xf32>
    %c0_19 = arith.constant 0 : index
    %c0_20 = arith.constant 0 : index
    %19 = vector.load %arg9[%c0_19, %c0_20] : memref<64x128xf32, #tpu.memory_space<vmem>>, vector<64x128xf32>
    tpu.vector_store %arg9[%c0_19, %c0_20], %18 {strides = array<i32>} : memref<64x128xf32, #tpu.memory_space<vmem>>, vector<64x128xf32>,
    %c0_21 = arith.constant 0 : index
    %c0_22 = arith.constant 0 : index
    %c2 = arith.constant 2 : index
    %c0_23 = arith.constant 0 : index
    %20 = vector.load %arg1[%c0_21, %c0_22, %c2, %c0_23] : memref<1x12x12x128xf32, #tpu.memory_space<vmem>>, vector<1x8x8x128xf32>
    %21 = vector.shape_cast %20 : vector<1x8x8x128xf32> to vector<8x8x128xf32>
    %22 = vector.shape_cast %21 : vector<8x8x128xf32> to vector<64x128xf32>
    %23 = arith.truncf %22 : vector<64x128xf32> to vector<64x128xbf16>
    %c0_24 = arith.constant 0 : index
    %c0_25 = arith.constant 0 : index
    %24 = vector.load %arg9[%c0_24, %c0_25] : memref<64x128xf32, #tpu.memory_space<vmem>>, vector<64x128xf32>
    %c256 = arith.constant 256 : index
    %c0_26 = arith.constant 0 : index
    %25 = vector.load %arg2[%c256, %c0_26] : memref<3200x128xbf16, #tpu.memory_space<vmem>>, vector<128x128xbf16>
    %cst_27 = arith.constant dense<0.000000e+00> : vector<64x128xf32>
    %26 = tpu.matmul %23, %25, %cst_27 {dimension_numbers = #tpu.dot_dimension_numbers<[1], [0], [0], [1], [0, 0, 1, 1], [], []>} : vector<64x128xbf16>, vector<128x128xbf16>, vector<64x128xf32> -> vector<64x128xf32>
    %27 = arith.addf %24, %26 : vector<64x128xf32>
    %c0_28 = arith.constant 0 : index
    %c0_29 = arith.constant 0 : index
    %28 = vector.load %arg9[%c0_28, %c0_29] : memref<64x128xf32, #tpu.memory_space<vmem>>, vector<64x128xf32>
    tpu.vector_store %arg9[%c0_28, %c0_29], %27 {strides = array<i32>} : memref<64x128xf32, #tpu.memory_space<vmem>>, vector<64x128xf32>,
    %c0_30 = arith.constant 0 : index
    %c0_31 = arith.constant 0 : index
    %c3 = arith.constant 3 : index
    %c0_32 = arith.constant 0 : index
    %29 = vector.load %arg1[%c0_30, %c0_31, %c3, %c0_32] : memref<1x12x12x128xf32, #tpu.memory_space<vmem>>, vector<1x8x8x128xf32>
    %30 = vector.shape_cast %29 : vector<1x8x8x128xf32> to vector<8x8x128xf32>
    %31 = vector.shape_cast %30 : vector<8x8x128xf32> to vector<64x128xf32>
    %32 = arith.truncf %31 : vector<64x128xf32> to vector<64x128xbf16>
    %c0_33 = arith.constant 0 : index
    %c0_34 = arith.constant 0 : index
    %33 = vector.load %arg9[%c0_33, %c0_34] : memref<64x128xf32, #tpu.memory_space<vmem>>, vector<64x128xf32>
    %c384 = arith.constant 384 : index
    %c0_35 = arith.constant 0 : index
    %34 = vector.load %arg2[%c384, %c0_35] : memref<3200x128xbf16, #tpu.memory_space<vmem>>, vector<128x128xbf16>
    %cst_36 = arith.constant dense<0.000000e+00> : vector<64x128xf32>
    %35 = tpu.matmul %32, %34, %cst_36 {dimension_numbers = #tpu.dot_dimension_numbers<[1], [0], [0], [1], [0, 0, 1, 1], [], []>} : vector<64x128xbf16>, vector<128x128xbf16>, vector<64x128xf32> -> vector<64x128xf32>
    %36 = arith.addf %33, %35 : vector<64x128xf32>
    %c0_37 = arith.constant 0 : index
    %c0_38 = arith.constant 0 : index
    %37 = vector.load %arg9[%c0_37, %c0_38] : memref<64x128xf32, #tpu.memory_space<vmem>>, vector<64x128xf32>
    tpu.vector_store %arg9[%c0_37, %c0_38], %36 {strides = array<i32>} : memref<64x128xf32, #tpu.memory_space<vmem>>, vector<64x128xf32>,
    %c0_39 = arith.constant 0 : index
    %c0_40 = arith.constant 0 : index
    %c4 = arith.constant 4 : index
    %c0_41 = arith.constant 0 : index
    %38 = vector.load %arg1[%c0_39, %c0_40, %c4, %c0_41] : memref<1x12x12x128xf32, #tpu.memory_space<vmem>>, vector<1x8x8x128xf32>
    %39 = vector.shape_cast %38 : vector<1x8x8x128xf32> to vector<8x8x128xf32>
    %40 = vector.shape_cast %39 : vector<8x8x128xf32> to vector<64x128xf32>
    %41 = arith.truncf %40 : vector<64x128xf32> to vector<64x128xbf16>
    %c0_42 = arith.constant 0 : index
    %c0_43 = arith.constant 0 : index
    %42 = vector.load %arg9[%c0_42, %c0_43] : memref<64x128xf32, #tpu.memory_space<vmem>>, vector<64x128xf32>
    %c512 = arith.constant 512 : index
    %c0_44 = arith.constant 0 : index
    %43 = vector.load %arg2[%c512, %c0_44] : memref<3200x128xbf16, #tpu.memory_space<vmem>>, vector<128x128xbf16>
    %cst_45 = arith.constant dense<0.000000e+00> : vector<64x128xf32>
    %44 = tpu.matmul %41, %43, %cst_45 {dimension_numbers = #tpu.dot_dimension_numbers<[1], [0], [0], [1], [0, 0, 1, 1], [], []>} : vector<64x128xbf16>, vector<128x128xbf16>, vector<64x128xf32> -> vector<64x128xf32>
    %45 = arith.addf %42, %44 : vector<64x128xf32>
    %c0_46 = arith.constant 0 : index
    %c0_47 = arith.constant 0 : index
    %46 = vector.load %arg9[%c0_46, %c0_47] : memref<64x128xf32, #tpu.memory_space<vmem>>, vector<64x128xf32>
    tpu.vector_store %arg9[%c0_46, %c0_47], %45 {strides = array<i32>} : memref<64x128xf32, #tpu.memory_space<vmem>>, vector<64x128xf32>,
    %c0_48 = arith.constant 0 : index
    %c1_49 = arith.constant 1 : index
    %c0_50 = arith.constant 0 : index
    %c0_51 = arith.constant 0 : index
    %47 = vector.load %arg1[%c0_48, %c1_49, %c0_50, %c0_51] : memref<1x12x12x128xf32, #tpu.memory_space<vmem>>, vector<1x8x8x128xf32>
    %48 = vector.shape_cast %47 : vector<1x8x8x128xf32> to vector<8x8x128xf32>
    %49 = vector.shape_cast %48 : vector<8x8x128xf32> to vector<64x128xf32>
    %50 = arith.truncf %49 : vector<64x128xf32> to vector<64x128xbf16>
    %c0_52 = arith.constant 0 : index
    %c0_53 = arith.constant 0 : index
    %51 = vector.load %arg9[%c0_52, %c0_53] : memref<64x128xf32, #tpu.memory_space<vmem>>, vector<64x128xf32>
    %c640 = arith.constant 640 : index
    %c0_54 = arith.constant 0 : index
    %52 = vector.load %arg2[%c640, %c0_54] : memref<3200x128xbf16, #tpu.memory_space<vmem>>, vector<128x128xbf16>
    %cst_55 = arith.constant dense<0.000000e+00> : vector<64x128xf32>
    %53 = tpu.matmul %50, %52, %cst_55 {dimension_numbers = #tpu.dot_dimension_numbers<[1], [0], [0], [1], [0, 0, 1, 1], [], []>} : vector<64x128xbf16>, vector<128x128xbf16>, vector<64x128xf32> -> vector<64x128xf32>
    %54 = arith.addf %51, %53 : vector<64x128xf32>
    %c0_56 = arith.constant 0 : index
    %c0_57 = arith.constant 0 : index
    %55 = vector.load %arg9[%c0_56, %c0_57] : memref<64x128xf32, #tpu.memory_space<vmem>>, vector<64x128xf32>
    tpu.vector_store %arg9[%c0_56, %c0_57], %54 {strides = array<i32>} : memref<64x128xf32, #tpu.memory_space<vmem>>, vector<64x128xf32>,
    %c0_58 = arith.constant 0 : index
    %c1_59 = arith.constant 1 : index
    %c1_60 = arith.constant 1 : index
    %c0_61 = arith.constant 0 : index
    %56 = vector.load %arg1[%c0_58, %c1_59, %c1_60, %c0_61] : memref<1x12x12x128xf32, #tpu.memory_space<vmem>>, vector<1x8x8x128xf32>
    %57 = vector.shape_cast %56 : vector<1x8x8x128xf32> to vector<8x8x128xf32>
    %58 = vector.shape_cast %57 : vector<8x8x128xf32> to vector<64x128xf32>
    %59 = arith.truncf %58 : vector<64x128xf32> to vector<64x128xbf16>
    %c0_62 = arith.constant 0 : index
    %c0_63 = arith.constant 0 : index
    %60 = vector.load %arg9[%c0_62, %c0_63] : memref<64x128xf32, #tpu.memory_space<vmem>>, vector<64x128xf32>
    %c768 = arith.constant 768 : index
    %c0_64 = arith.constant 0 : index
    %61 = vector.load %arg2[%c768, %c0_64] : memref<3200x128xbf16, #tpu.memory_space<vmem>>, vector<128x128xbf16>
    %cst_65 = arith.constant dense<0.000000e+00> : vector<64x128xf32>
    %62 = tpu.matmul %59, %61, %cst_65 {dimension_numbers = #tpu.dot_dimension_numbers<[1], [0], [0], [1], [0, 0, 1, 1], [], []>} : vector<64x128xbf16>, vector<128x128xbf16>, vector<64x128xf32> -> vector<64x128xf32>
    %63 = arith.addf %60, %62 : vector<64x128xf32>
    %c0_66 = arith.constant 0 : index
    %c0_67 = arith.constant 0 : index
    %64 = vector.load %arg9[%c0_66, %c0_67] : memref<64x128xf32, #tpu.memory_space<vmem>>, vector<64x128xf32>
    tpu.vector_store %arg9[%c0_66, %c0_67], %63 {strides = array<i32>} : memref<64x128xf32, #tpu.memory_space<vmem>>, vector<64x128xf32>,
    %c0_68 = arith.constant 0 : index
    %c1_69 = arith.constant 1 : index
    %c2_70 = arith.constant 2 : index
    %c0_71 = arith.constant 0 : index
    %65 = vector.load %arg1[%c0_68, %c1_69, %c2_70, %c0_71] : memref<1x12x12x128xf32, #tpu.memory_space<vmem>>, vector<1x8x8x128xf32>
    %66 = vector.shape_cast %65 : vector<1x8x8x128xf32> to vector<8x8x128xf32>
    %67 = vector.shape_cast %66 : vector<8x8x128xf32> to vector<64x128xf32>
    %68 = arith.truncf %67 : vector<64x128xf32> to vector<64x128xbf16>
    %c0_72 = arith.constant 0 : index
    %c0_73 = arith.constant 0 : index
    %69 = vector.load %arg9[%c0_72, %c0_73] : memref<64x128xf32, #tpu.memory_space<vmem>>, vector<64x128xf32>
    %c896 = arith.constant 896 : index
    %c0_74 = arith.constant 0 : index
    %70 = vector.load %arg2[%c896, %c0_74] : memref<3200x128xbf16, #tpu.memory_space<vmem>>, vector<128x128xbf16>
    %cst_75 = arith.constant dense<0.000000e+00> : vector<64x128xf32>
    %71 = tpu.matmul %68, %70, %cst_75 {dimension_numbers = #tpu.dot_dimension_numbers<[1], [0], [0], [1], [0, 0, 1, 1], [], []>} : vector<64x128xbf16>, vector<128x128xbf16>, vector<64x128xf32> -> vector<64x128xf32>
    %72 = arith.addf %69, %71 : vector<64x128xf32>
    %c0_76 = arith.constant 0 : index
    %c0_77 = arith.constant 0 : index
    %73 = vector.load %arg9[%c0_76, %c0_77] : memref<64x128xf32, #tpu.memory_space<vmem>>, vector<64x128xf32>
    tpu.vector_store %arg9[%c0_76, %c0_77], %72 {strides = array<i32>} : memref<64x128xf32, #tpu.memory_space<vmem>>, vector<64x128xf32>,
    %c0_78 = arith.constant 0 : index
    %c1_79 = arith.constant 1 : index
    %c3_80 = arith.constant 3 : index
    %c0_81 = arith.constant 0 : index
    %74 = vector.load %arg1[%c0_78, %c1_79, %c3_80, %c0_81] : memref<1x12x12x128xf32, #tpu.memory_space<vmem>>, vector<1x8x8x128xf32>
    %75 = vector.shape_cast %74 : vector<1x8x8x128xf32> to vector<8x8x128xf32>
    %76 = vector.shape_cast %75 : vector<8x8x128xf32> to vector<64x128xf32>
    %77 = arith.truncf %76 : vector<64x128xf32> to vector<64x128xbf16>
    %c0_82 = arith.constant 0 : index
    %c0_83 = arith.constant 0 : index
    %78 = vector.load %arg9[%c0_82, %c0_83] : memref<64x128xf32, #tpu.memory_space<vmem>>, vector<64x128xf32>
    %c1024 = arith.constant 1024 : index
    %c0_84 = arith.constant 0 : index
    %79 = vector.load %arg2[%c1024, %c0_84] : memref<3200x128xbf16, #tpu.memory_space<vmem>>, vector<128x128xbf16>
    %cst_85 = arith.constant dense<0.000000e+00> : vector<64x128xf32>
    %80 = tpu.matmul %77, %79, %cst_85 {dimension_numbers = #tpu.dot_dimension_numbers<[1], [0], [0], [1], [0, 0, 1, 1], [], []>} : vector<64x128xbf16>, vector<128x128xbf16>, vector<64x128xf32> -> vector<64x128xf32>
    %81 = arith.addf %78, %80 : vector<64x128xf32>
    %c0_86 = arith.constant 0 : index
    %c0_87 = arith.constant 0 : index
    %82 = vector.load %arg9[%c0_86, %c0_87] : memref<64x128xf32, #tpu.memory_space<vmem>>, vector<64x128xf32>
    tpu.vector_store %arg9[%c0_86, %c0_87], %81 {strides = array<i32>} : memref<64x128xf32, #tpu.memory_space<vmem>>, vector<64x128xf32>,
    %c0_88 = arith.constant 0 : index
    %c1_89 = arith.constant 1 : index
    %c4_90 = arith.constant 4 : index
    %c0_91 = arith.constant 0 : index
    %83 = vector.load %arg1[%c0_88, %c1_89, %c4_90, %c0_91] : memref<1x12x12x128xf32, #tpu.memory_space<vmem>>, vector<1x8x8x128xf32>
    %84 = vector.shape_cast %83 : vector<1x8x8x128xf32> to vector<8x8x128xf32>
    %85 = vector.shape_cast %84 : vector<8x8x128xf32> to vector<64x128xf32>
    %86 = arith.truncf %85 : vector<64x128xf32> to vector<64x128xbf16>
    %c0_92 = arith.constant 0 : index
    %c0_93 = arith.constant 0 : index
    %87 = vector.load %arg9[%c0_92, %c0_93] : memref<64x128xf32, #tpu.memory_space<vmem>>, vector<64x128xf32>
    %c1152 = arith.constant 1152 : index
    %c0_94 = arith.constant 0 : index
    %88 = vector.load %arg2[%c1152, %c0_94] : memref<3200x128xbf16, #tpu.memory_space<vmem>>, vector<128x128xbf16>
    %cst_95 = arith.constant dense<0.000000e+00> : vector<64x128xf32>
    %89 = tpu.matmul %86, %88, %cst_95 {dimension_numbers = #tpu.dot_dimension_numbers<[1], [0], [0], [1], [0, 0, 1, 1], [], []>} : vector<64x128xbf16>, vector<128x128xbf16>, vector<64x128xf32> -> vector<64x128xf32>
    %90 = arith.addf %87, %89 : vector<64x128xf32>
    %c0_96 = arith.constant 0 : index
    %c0_97 = arith.constant 0 : index
    %91 = vector.load %arg9[%c0_96, %c0_97] : memref<64x128xf32, #tpu.memory_space<vmem>>, vector<64x128xf32>
    tpu.vector_store %arg9[%c0_96, %c0_97], %90 {strides = array<i32>} : memref<64x128xf32, #tpu.memory_space<vmem>>, vector<64x128xf32>,
    %c0_98 = arith.constant 0 : index
    %c2_99 = arith.constant 2 : index
    %c0_100 = arith.constant 0 : index
    %c0_101 = arith.constant 0 : index
    %92 = vector.load %arg1[%c0_98, %c2_99, %c0_100, %c0_101] : memref<1x12x12x128xf32, #tpu.memory_space<vmem>>, vector<1x8x8x128xf32>
    %93 = vector.shape_cast %92 : vector<1x8x8x128xf32> to vector<8x8x128xf32>
    %94 = vector.shape_cast %93 : vector<8x8x128xf32> to vector<64x128xf32>
    %95 = arith.truncf %94 : vector<64x128xf32> to vector<64x128xbf16>
    %c0_102 = arith.constant 0 : index
    %c0_103 = arith.constant 0 : index
    %96 = vector.load %arg9[%c0_102, %c0_103] : memref<64x128xf32, #tpu.memory_space<vmem>>, vector<64x128xf32>
    %c1280 = arith.constant 1280 : index
    %c0_104 = arith.constant 0 : index
    %97 = vector.load %arg2[%c1280, %c0_104] : memref<3200x128xbf16, #tpu.memory_space<vmem>>, vector<128x128xbf16>
    %cst_105 = arith.constant dense<0.000000e+00> : vector<64x128xf32>
    %98 = tpu.matmul %95, %97, %cst_105 {dimension_numbers = #tpu.dot_dimension_numbers<[1], [0], [0], [1], [0, 0, 1, 1], [], []>} : vector<64x128xbf16>, vector<128x128xbf16>, vector<64x128xf32> -> vector<64x128xf32>
    %99 = arith.addf %96, %98 : vector<64x128xf32>
    %c0_106 = arith.constant 0 : index
    %c0_107 = arith.constant 0 : index
    %100 = vector.load %arg9[%c0_106, %c0_107] : memref<64x128xf32, #tpu.memory_space<vmem>>, vector<64x128xf32>
    tpu.vector_store %arg9[%c0_106, %c0_107], %99 {strides = array<i32>} : memref<64x128xf32, #tpu.memory_space<vmem>>, vector<64x128xf32>,
    %c0_108 = arith.constant 0 : index
    %c2_109 = arith.constant 2 : index
    %c1_110 = arith.constant 1 : index
    %c0_111 = arith.constant 0 : index
    %101 = vector.load %arg1[%c0_108, %c2_109, %c1_110, %c0_111] : memref<1x12x12x128xf32, #tpu.memory_space<vmem>>, vector<1x8x8x128xf32>
    %102 = vector.shape_cast %101 : vector<1x8x8x128xf32> to vector<8x8x128xf32>
    %103 = vector.shape_cast %102 : vector<8x8x128xf32> to vector<64x128xf32>
    %104 = arith.truncf %103 : vector<64x128xf32> to vector<64x128xbf16>
    %c0_112 = arith.constant 0 : index
    %c0_113 = arith.constant 0 : index
    %105 = vector.load %arg9[%c0_112, %c0_113] : memref<64x128xf32, #tpu.memory_space<vmem>>, vector<64x128xf32>
    %c1408 = arith.constant 1408 : index
    %c0_114 = arith.constant 0 : index
    %106 = vector.load %arg2[%c1408, %c0_114] : memref<3200x128xbf16, #tpu.memory_space<vmem>>, vector<128x128xbf16>
    %cst_115 = arith.constant dense<0.000000e+00> : vector<64x128xf32>
    %107 = tpu.matmul %104, %106, %cst_115 {dimension_numbers = #tpu.dot_dimension_numbers<[1], [0], [0], [1], [0, 0, 1, 1], [], []>} : vector<64x128xbf16>, vector<128x128xbf16>, vector<64x128xf32> -> vector<64x128xf32>
    %108 = arith.addf %105, %107 : vector<64x128xf32>
    %c0_116 = arith.constant 0 : index
    %c0_117 = arith.constant 0 : index
    %109 = vector.load %arg9[%c0_116, %c0_117] : memref<64x128xf32, #tpu.memory_space<vmem>>, vector<64x128xf32>
    tpu.vector_store %arg9[%c0_116, %c0_117], %108 {strides = array<i32>} : memref<64x128xf32, #tpu.memory_space<vmem>>, vector<64x128xf32>,
    %c0_118 = arith.constant 0 : index
    %c2_119 = arith.constant 2 : index
    %c2_120 = arith.constant 2 : index
    %c0_121 = arith.constant 0 : index
    %110 = vector.load %arg1[%c0_118, %c2_119, %c2_120, %c0_121] : memref<1x12x12x128xf32, #tpu.memory_space<vmem>>, vector<1x8x8x128xf32>
    %111 = vector.shape_cast %110 : vector<1x8x8x128xf32> to vector<8x8x128xf32>
    %112 = vector.shape_cast %111 : vector<8x8x128xf32> to vector<64x128xf32>
    %113 = arith.truncf %112 : vector<64x128xf32> to vector<64x128xbf16>
    %c0_122 = arith.constant 0 : index
    %c0_123 = arith.constant 0 : index
    %114 = vector.load %arg9[%c0_122, %c0_123] : memref<64x128xf32, #tpu.memory_space<vmem>>, vector<64x128xf32>
    %c1536 = arith.constant 1536 : index
    %c0_124 = arith.constant 0 : index
    %115 = vector.load %arg2[%c1536, %c0_124] : memref<3200x128xbf16, #tpu.memory_space<vmem>>, vector<128x128xbf16>
    %cst_125 = arith.constant dense<0.000000e+00> : vector<64x128xf32>
    %116 = tpu.matmul %113, %115, %cst_125 {dimension_numbers = #tpu.dot_dimension_numbers<[1], [0], [0], [1], [0, 0, 1, 1], [], []>} : vector<64x128xbf16>, vector<128x128xbf16>, vector<64x128xf32> -> vector<64x128xf32>
    %117 = arith.addf %114, %116 : vector<64x128xf32>
    %c0_126 = arith.constant 0 : index
    %c0_127 = arith.constant 0 : index
    %118 = vector.load %arg9[%c0_126, %c0_127] : memref<64x128xf32, #tpu.memory_space<vmem>>, vector<64x128xf32>
    tpu.vector_store %arg9[%c0_126, %c0_127], %117 {strides = array<i32>} : memref<64x128xf32, #tpu.memory_space<vmem>>, vector<64x128xf32>,
    %c0_128 = arith.constant 0 : index
    %c2_129 = arith.constant 2 : index
    %c3_130 = arith.constant 3 : index
    %c0_131 = arith.constant 0 : index
    %119 = vector.load %arg1[%c0_128, %c2_129, %c3_130, %c0_131] : memref<1x12x12x128xf32, #tpu.memory_space<vmem>>, vector<1x8x8x128xf32>
    %120 = vector.shape_cast %119 : vector<1x8x8x128xf32> to vector<8x8x128xf32>
    %121 = vector.shape_cast %120 : vector<8x8x128xf32> to vector<64x128xf32>
    %122 = arith.truncf %121 : vector<64x128xf32> to vector<64x128xbf16>
    %c0_132 = arith.constant 0 : index
    %c0_133 = arith.constant 0 : index
    %123 = vector.load %arg9[%c0_132, %c0_133] : memref<64x128xf32, #tpu.memory_space<vmem>>, vector<64x128xf32>
    %c1664 = arith.constant 1664 : index
    %c0_134 = arith.constant 0 : index
    %124 = vector.load %arg2[%c1664, %c0_134] : memref<3200x128xbf16, #tpu.memory_space<vmem>>, vector<128x128xbf16>
    %cst_135 = arith.constant dense<0.000000e+00> : vector<64x128xf32>
    %125 = tpu.matmul %122, %124, %cst_135 {dimension_numbers = #tpu.dot_dimension_numbers<[1], [0], [0], [1], [0, 0, 1, 1], [], []>} : vector<64x128xbf16>, vector<128x128xbf16>, vector<64x128xf32> -> vector<64x128xf32>
    %126 = arith.addf %123, %125 : vector<64x128xf32>
    %c0_136 = arith.constant 0 : index
    %c0_137 = arith.constant 0 : index
    %127 = vector.load %arg9[%c0_136, %c0_137] : memref<64x128xf32, #tpu.memory_space<vmem>>, vector<64x128xf32>
    tpu.vector_store %arg9[%c0_136, %c0_137], %126 {strides = array<i32>} : memref<64x128xf32, #tpu.memory_space<vmem>>, vector<64x128xf32>,
    %c0_138 = arith.constant 0 : index
    %c2_139 = arith.constant 2 : index
    %c4_140 = arith.constant 4 : index
    %c0_141 = arith.constant 0 : index
    %128 = vector.load %arg1[%c0_138, %c2_139, %c4_140, %c0_141] : memref<1x12x12x128xf32, #tpu.memory_space<vmem>>, vector<1x8x8x128xf32>
    %129 = vector.shape_cast %128 : vector<1x8x8x128xf32> to vector<8x8x128xf32>
    %130 = vector.shape_cast %129 : vector<8x8x128xf32> to vector<64x128xf32>
    %131 = arith.truncf %130 : vector<64x128xf32> to vector<64x128xbf16>
    %c0_142 = arith.constant 0 : index
    %c0_143 = arith.constant 0 : index
    %132 = vector.load %arg9[%c0_142, %c0_143] : memref<64x128xf32, #tpu.memory_space<vmem>>, vector<64x128xf32>
    %c1792 = arith.constant 1792 : index
    %c0_144 = arith.constant 0 : index
    %133 = vector.load %arg2[%c1792, %c0_144] : memref<3200x128xbf16, #tpu.memory_space<vmem>>, vector<128x128xbf16>
    %cst_145 = arith.constant dense<0.000000e+00> : vector<64x128xf32>
    %134 = tpu.matmul %131, %133, %cst_145 {dimension_numbers = #tpu.dot_dimension_numbers<[1], [0], [0], [1], [0, 0, 1, 1], [], []>} : vector<64x128xbf16>, vector<128x128xbf16>, vector<64x128xf32> -> vector<64x128xf32>
    %135 = arith.addf %132, %134 : vector<64x128xf32>
    %c0_146 = arith.constant 0 : index
    %c0_147 = arith.constant 0 : index
    %136 = vector.load %arg9[%c0_146, %c0_147] : memref<64x128xf32, #tpu.memory_space<vmem>>, vector<64x128xf32>
    tpu.vector_store %arg9[%c0_146, %c0_147], %135 {strides = array<i32>} : memref<64x128xf32, #tpu.memory_space<vmem>>, vector<64x128xf32>,
    %c0_148 = arith.constant 0 : index
    %c3_149 = arith.constant 3 : index
    %c0_150 = arith.constant 0 : index
    %c0_151 = arith.constant 0 : index
    %137 = vector.load %arg1[%c0_148, %c3_149, %c0_150, %c0_151] : memref<1x12x12x128xf32, #tpu.memory_space<vmem>>, vector<1x8x8x128xf32>
    %138 = vector.shape_cast %137 : vector<1x8x8x128xf32> to vector<8x8x128xf32>
    %139 = vector.shape_cast %138 : vector<8x8x128xf32> to vector<64x128xf32>
    %140 = arith.truncf %139 : vector<64x128xf32> to vector<64x128xbf16>
    %c0_152 = arith.constant 0 : index
    %c0_153 = arith.constant 0 : index
    %141 = vector.load %arg9[%c0_152, %c0_153] : memref<64x128xf32, #tpu.memory_space<vmem>>, vector<64x128xf32>
    %c1920 = arith.constant 1920 : index
    %c0_154 = arith.constant 0 : index
    %142 = vector.load %arg2[%c1920, %c0_154] : memref<3200x128xbf16, #tpu.memory_space<vmem>>, vector<128x128xbf16>
    %cst_155 = arith.constant dense<0.000000e+00> : vector<64x128xf32>
    %143 = tpu.matmul %140, %142, %cst_155 {dimension_numbers = #tpu.dot_dimension_numbers<[1], [0], [0], [1], [0, 0, 1, 1], [], []>} : vector<64x128xbf16>, vector<128x128xbf16>, vector<64x128xf32> -> vector<64x128xf32>
    %144 = arith.addf %141, %143 : vector<64x128xf32>
    %c0_156 = arith.constant 0 : index
    %c0_157 = arith.constant 0 : index
    %145 = vector.load %arg9[%c0_156, %c0_157] : memref<64x128xf32, #tpu.memory_space<vmem>>, vector<64x128xf32>
    tpu.vector_store %arg9[%c0_156, %c0_157], %144 {strides = array<i32>} : memref<64x128xf32, #tpu.memory_space<vmem>>, vector<64x128xf32>,
    %c0_158 = arith.constant 0 : index
    %c3_159 = arith.constant 3 : index
    %c1_160 = arith.constant 1 : index
    %c0_161 = arith.constant 0 : index
    %146 = vector.load %arg1[%c0_158, %c3_159, %c1_160, %c0_161] : memref<1x12x12x128xf32, #tpu.memory_space<vmem>>, vector<1x8x8x128xf32>
    %147 = vector.shape_cast %146 : vector<1x8x8x128xf32> to vector<8x8x128xf32>
    %148 = vector.shape_cast %147 : vector<8x8x128xf32> to vector<64x128xf32>
    %149 = arith.truncf %148 : vector<64x128xf32> to vector<64x128xbf16>
    %c0_162 = arith.constant 0 : index
    %c0_163 = arith.constant 0 : index
    %150 = vector.load %arg9[%c0_162, %c0_163] : memref<64x128xf32, #tpu.memory_space<vmem>>, vector<64x128xf32>
    %c2048 = arith.constant 2048 : index
    %c0_164 = arith.constant 0 : index
    %151 = vector.load %arg2[%c2048, %c0_164] : memref<3200x128xbf16, #tpu.memory_space<vmem>>, vector<128x128xbf16>
    %cst_165 = arith.constant dense<0.000000e+00> : vector<64x128xf32>
    %152 = tpu.matmul %149, %151, %cst_165 {dimension_numbers = #tpu.dot_dimension_numbers<[1], [0], [0], [1], [0, 0, 1, 1], [], []>} : vector<64x128xbf16>, vector<128x128xbf16>, vector<64x128xf32> -> vector<64x128xf32>
    %153 = arith.addf %150, %152 : vector<64x128xf32>
    %c0_166 = arith.constant 0 : index
    %c0_167 = arith.constant 0 : index
    %154 = vector.load %arg9[%c0_166, %c0_167] : memref<64x128xf32, #tpu.memory_space<vmem>>, vector<64x128xf32>
    tpu.vector_store %arg9[%c0_166, %c0_167], %153 {strides = array<i32>} : memref<64x128xf32, #tpu.memory_space<vmem>>, vector<64x128xf32>,
    %c0_168 = arith.constant 0 : index
    %c3_169 = arith.constant 3 : index
    %c2_170 = arith.constant 2 : index
    %c0_171 = arith.constant 0 : index
    %155 = vector.load %arg1[%c0_168, %c3_169, %c2_170, %c0_171] : memref<1x12x12x128xf32, #tpu.memory_space<vmem>>, vector<1x8x8x128xf32>
    %156 = vector.shape_cast %155 : vector<1x8x8x128xf32> to vector<8x8x128xf32>
    %157 = vector.shape_cast %156 : vector<8x8x128xf32> to vector<64x128xf32>
    %158 = arith.truncf %157 : vector<64x128xf32> to vector<64x128xbf16>
    %c0_172 = arith.constant 0 : index
    %c0_173 = arith.constant 0 : index
    %159 = vector.load %arg9[%c0_172, %c0_173] : memref<64x128xf32, #tpu.memory_space<vmem>>, vector<64x128xf32>
    %c2176 = arith.constant 2176 : index
    %c0_174 = arith.constant 0 : index
    %160 = vector.load %arg2[%c2176, %c0_174] : memref<3200x128xbf16, #tpu.memory_space<vmem>>, vector<128x128xbf16>
    %cst_175 = arith.constant dense<0.000000e+00> : vector<64x128xf32>
    %161 = tpu.matmul %158, %160, %cst_175 {dimension_numbers = #tpu.dot_dimension_numbers<[1], [0], [0], [1], [0, 0, 1, 1], [], []>} : vector<64x128xbf16>, vector<128x128xbf16>, vector<64x128xf32> -> vector<64x128xf32>
    %162 = arith.addf %159, %161 : vector<64x128xf32>
    %c0_176 = arith.constant 0 : index
    %c0_177 = arith.constant 0 : index
    %163 = vector.load %arg9[%c0_176, %c0_177] : memref<64x128xf32, #tpu.memory_space<vmem>>, vector<64x128xf32>
    tpu.vector_store %arg9[%c0_176, %c0_177], %162 {strides = array<i32>} : memref<64x128xf32, #tpu.memory_space<vmem>>, vector<64x128xf32>,
    %c0_178 = arith.constant 0 : index
    %c3_179 = arith.constant 3 : index
    %c3_180 = arith.constant 3 : index
    %c0_181 = arith.constant 0 : index
    %164 = vector.load %arg1[%c0_178, %c3_179, %c3_180, %c0_181] : memref<1x12x12x128xf32, #tpu.memory_space<vmem>>, vector<1x8x8x128xf32>
    %165 = vector.shape_cast %164 : vector<1x8x8x128xf32> to vector<8x8x128xf32>
    %166 = vector.shape_cast %165 : vector<8x8x128xf32> to vector<64x128xf32>
    %167 = arith.truncf %166 : vector<64x128xf32> to vector<64x128xbf16>
    %c0_182 = arith.constant 0 : index
    %c0_183 = arith.constant 0 : index
    %168 = vector.load %arg9[%c0_182, %c0_183] : memref<64x128xf32, #tpu.memory_space<vmem>>, vector<64x128xf32>
    %c2304 = arith.constant 2304 : index
    %c0_184 = arith.constant 0 : index
    %169 = vector.load %arg2[%c2304, %c0_184] : memref<3200x128xbf16, #tpu.memory_space<vmem>>, vector<128x128xbf16>
    %cst_185 = arith.constant dense<0.000000e+00> : vector<64x128xf32>
    %170 = tpu.matmul %167, %169, %cst_185 {dimension_numbers = #tpu.dot_dimension_numbers<[1], [0], [0], [1], [0, 0, 1, 1], [], []>} : vector<64x128xbf16>, vector<128x128xbf16>, vector<64x128xf32> -> vector<64x128xf32>
    %171 = arith.addf %168, %170 : vector<64x128xf32>
    %c0_186 = arith.constant 0 : index
    %c0_187 = arith.constant 0 : index
    %172 = vector.load %arg9[%c0_186, %c0_187] : memref<64x128xf32, #tpu.memory_space<vmem>>, vector<64x128xf32>
    tpu.vector_store %arg9[%c0_186, %c0_187], %171 {strides = array<i32>} : memref<64x128xf32, #tpu.memory_space<vmem>>, vector<64x128xf32>,
    %c0_188 = arith.constant 0 : index
    %c3_189 = arith.constant 3 : index
    %c4_190 = arith.constant 4 : index
    %c0_191 = arith.constant 0 : index
    %173 = vector.load %arg1[%c0_188, %c3_189, %c4_190, %c0_191] : memref<1x12x12x128xf32, #tpu.memory_space<vmem>>, vector<1x8x8x128xf32>
    %174 = vector.shape_cast %173 : vector<1x8x8x128xf32> to vector<8x8x128xf32>
    %175 = vector.shape_cast %174 : vector<8x8x128xf32> to vector<64x128xf32>
    %176 = arith.truncf %175 : vector<64x128xf32> to vector<64x128xbf16>
    %c0_192 = arith.constant 0 : index
    %c0_193 = arith.constant 0 : index
    %177 = vector.load %arg9[%c0_192, %c0_193] : memref<64x128xf32, #tpu.memory_space<vmem>>, vector<64x128xf32>
    %c2432 = arith.constant 2432 : index
    %c0_194 = arith.constant 0 : index
    %178 = vector.load %arg2[%c2432, %c0_194] : memref<3200x128xbf16, #tpu.memory_space<vmem>>, vector<128x128xbf16>
    %cst_195 = arith.constant dense<0.000000e+00> : vector<64x128xf32>
    %179 = tpu.matmul %176, %178, %cst_195 {dimension_numbers = #tpu.dot_dimension_numbers<[1], [0], [0], [1], [0, 0, 1, 1], [], []>} : vector<64x128xbf16>, vector<128x128xbf16>, vector<64x128xf32> -> vector<64x128xf32>
    %180 = arith.addf %177, %179 : vector<64x128xf32>
    %c0_196 = arith.constant 0 : index
    %c0_197 = arith.constant 0 : index
    %181 = vector.load %arg9[%c0_196, %c0_197] : memref<64x128xf32, #tpu.memory_space<vmem>>, vector<64x128xf32>
    tpu.vector_store %arg9[%c0_196, %c0_197], %180 {strides = array<i32>} : memref<64x128xf32, #tpu.memory_space<vmem>>, vector<64x128xf32>,
    %c0_198 = arith.constant 0 : index
    %c4_199 = arith.constant 4 : index
    %c0_200 = arith.constant 0 : index
    %c0_201 = arith.constant 0 : index
    %182 = vector.load %arg1[%c0_198, %c4_199, %c0_200, %c0_201] : memref<1x12x12x128xf32, #tpu.memory_space<vmem>>, vector<1x8x8x128xf32>
    %183 = vector.shape_cast %182 : vector<1x8x8x128xf32> to vector<8x8x128xf32>
    %184 = vector.shape_cast %183 : vector<8x8x128xf32> to vector<64x128xf32>
    %185 = arith.truncf %184 : vector<64x128xf32> to vector<64x128xbf16>
    %c0_202 = arith.constant 0 : index
    %c0_203 = arith.constant 0 : index
    %186 = vector.load %arg9[%c0_202, %c0_203] : memref<64x128xf32, #tpu.memory_space<vmem>>, vector<64x128xf32>
    %c2560 = arith.constant 2560 : index
    %c0_204 = arith.constant 0 : index
    %187 = vector.load %arg2[%c2560, %c0_204] : memref<3200x128xbf16, #tpu.memory_space<vmem>>, vector<128x128xbf16>
    %cst_205 = arith.constant dense<0.000000e+00> : vector<64x128xf32>
    %188 = tpu.matmul %185, %187, %cst_205 {dimension_numbers = #tpu.dot_dimension_numbers<[1], [0], [0], [1], [0, 0, 1, 1], [], []>} : vector<64x128xbf16>, vector<128x128xbf16>, vector<64x128xf32> -> vector<64x128xf32>
    %189 = arith.addf %186, %188 : vector<64x128xf32>
    %c0_206 = arith.constant 0 : index
    %c0_207 = arith.constant 0 : index
    %190 = vector.load %arg9[%c0_206, %c0_207] : memref<64x128xf32, #tpu.memory_space<vmem>>, vector<64x128xf32>
    tpu.vector_store %arg9[%c0_206, %c0_207], %189 {strides = array<i32>} : memref<64x128xf32, #tpu.memory_space<vmem>>, vector<64x128xf32>,
    %c0_208 = arith.constant 0 : index
    %c4_209 = arith.constant 4 : index
    %c1_210 = arith.constant 1 : index
    %c0_211 = arith.constant 0 : index
    %191 = vector.load %arg1[%c0_208, %c4_209, %c1_210, %c0_211] : memref<1x12x12x128xf32, #tpu.memory_space<vmem>>, vector<1x8x8x128xf32>
    %192 = vector.shape_cast %191 : vector<1x8x8x128xf32> to vector<8x8x128xf32>
    %193 = vector.shape_cast %192 : vector<8x8x128xf32> to vector<64x128xf32>
    %194 = arith.truncf %193 : vector<64x128xf32> to vector<64x128xbf16>
    %c0_212 = arith.constant 0 : index
    %c0_213 = arith.constant 0 : index
    %195 = vector.load %arg9[%c0_212, %c0_213] : memref<64x128xf32, #tpu.memory_space<vmem>>, vector<64x128xf32>
    %c2688 = arith.constant 2688 : index
    %c0_214 = arith.constant 0 : index
    %196 = vector.load %arg2[%c2688, %c0_214] : memref<3200x128xbf16, #tpu.memory_space<vmem>>, vector<128x128xbf16>
    %cst_215 = arith.constant dense<0.000000e+00> : vector<64x128xf32>
    %197 = tpu.matmul %194, %196, %cst_215 {dimension_numbers = #tpu.dot_dimension_numbers<[1], [0], [0], [1], [0, 0, 1, 1], [], []>} : vector<64x128xbf16>, vector<128x128xbf16>, vector<64x128xf32> -> vector<64x128xf32>
    %198 = arith.addf %195, %197 : vector<64x128xf32>
    %c0_216 = arith.constant 0 : index
    %c0_217 = arith.constant 0 : index
    %199 = vector.load %arg9[%c0_216, %c0_217] : memref<64x128xf32, #tpu.memory_space<vmem>>, vector<64x128xf32>
    tpu.vector_store %arg9[%c0_216, %c0_217], %198 {strides = array<i32>} : memref<64x128xf32, #tpu.memory_space<vmem>>, vector<64x128xf32>,
    %c0_218 = arith.constant 0 : index
    %c4_219 = arith.constant 4 : index
    %c2_220 = arith.constant 2 : index
    %c0_221 = arith.constant 0 : index
    %200 = vector.load %arg1[%c0_218, %c4_219, %c2_220, %c0_221] : memref<1x12x12x128xf32, #tpu.memory_space<vmem>>, vector<1x8x8x128xf32>
    %201 = vector.shape_cast %200 : vector<1x8x8x128xf32> to vector<8x8x128xf32>
    %202 = vector.shape_cast %201 : vector<8x8x128xf32> to vector<64x128xf32>
    %203 = arith.truncf %202 : vector<64x128xf32> to vector<64x128xbf16>
    %c0_222 = arith.constant 0 : index
    %c0_223 = arith.constant 0 : index
    %204 = vector.load %arg9[%c0_222, %c0_223] : memref<64x128xf32, #tpu.memory_space<vmem>>, vector<64x128xf32>
    %c2816 = arith.constant 2816 : index
    %c0_224 = arith.constant 0 : index
    %205 = vector.load %arg2[%c2816, %c0_224] : memref<3200x128xbf16, #tpu.memory_space<vmem>>, vector<128x128xbf16>
    %cst_225 = arith.constant dense<0.000000e+00> : vector<64x128xf32>
    %206 = tpu.matmul %203, %205, %cst_225 {dimension_numbers = #tpu.dot_dimension_numbers<[1], [0], [0], [1], [0, 0, 1, 1], [], []>} : vector<64x128xbf16>, vector<128x128xbf16>, vector<64x128xf32> -> vector<64x128xf32>
    %207 = arith.addf %204, %206 : vector<64x128xf32>
    %c0_226 = arith.constant 0 : index
    %c0_227 = arith.constant 0 : index
    %208 = vector.load %arg9[%c0_226, %c0_227] : memref<64x128xf32, #tpu.memory_space<vmem>>, vector<64x128xf32>
    tpu.vector_store %arg9[%c0_226, %c0_227], %207 {strides = array<i32>} : memref<64x128xf32, #tpu.memory_space<vmem>>, vector<64x128xf32>,
    %c0_228 = arith.constant 0 : index
    %c4_229 = arith.constant 4 : index
    %c3_230 = arith.constant 3 : index
    %c0_231 = arith.constant 0 : index
    %209 = vector.load %arg1[%c0_228, %c4_229, %c3_230, %c0_231] : memref<1x12x12x128xf32, #tpu.memory_space<vmem>>, vector<1x8x8x128xf32>
    %210 = vector.shape_cast %209 : vector<1x8x8x128xf32> to vector<8x8x128xf32>
    %211 = vector.shape_cast %210 : vector<8x8x128xf32> to vector<64x128xf32>
    %212 = arith.truncf %211 : vector<64x128xf32> to vector<64x128xbf16>
    %c0_232 = arith.constant 0 : index
    %c0_233 = arith.constant 0 : index
    %213 = vector.load %arg9[%c0_232, %c0_233] : memref<64x128xf32, #tpu.memory_space<vmem>>, vector<64x128xf32>
    %c2944 = arith.constant 2944 : index
    %c0_234 = arith.constant 0 : index
    %214 = vector.load %arg2[%c2944, %c0_234] : memref<3200x128xbf16, #tpu.memory_space<vmem>>, vector<128x128xbf16>
    %cst_235 = arith.constant dense<0.000000e+00> : vector<64x128xf32>
    %215 = tpu.matmul %212, %214, %cst_235 {dimension_numbers = #tpu.dot_dimension_numbers<[1], [0], [0], [1], [0, 0, 1, 1], [], []>} : vector<64x128xbf16>, vector<128x128xbf16>, vector<64x128xf32> -> vector<64x128xf32>
    %216 = arith.addf %213, %215 : vector<64x128xf32>
    %c0_236 = arith.constant 0 : index
    %c0_237 = arith.constant 0 : index
    %217 = vector.load %arg9[%c0_236, %c0_237] : memref<64x128xf32, #tpu.memory_space<vmem>>, vector<64x128xf32>
    tpu.vector_store %arg9[%c0_236, %c0_237], %216 {strides = array<i32>} : memref<64x128xf32, #tpu.memory_space<vmem>>, vector<64x128xf32>,
    %c0_238 = arith.constant 0 : index
    %c4_239 = arith.constant 4 : index
    %c4_240 = arith.constant 4 : index
    %c0_241 = arith.constant 0 : index
    %218 = vector.load %arg1[%c0_238, %c4_239, %c4_240, %c0_241] : memref<1x12x12x128xf32, #tpu.memory_space<vmem>>, vector<1x8x8x128xf32>
    %219 = vector.shape_cast %218 : vector<1x8x8x128xf32> to vector<8x8x128xf32>
    %220 = vector.shape_cast %219 : vector<8x8x128xf32> to vector<64x128xf32>
    %221 = arith.truncf %220 : vector<64x128xf32> to vector<64x128xbf16>
    %c0_242 = arith.constant 0 : index
    %c0_243 = arith.constant 0 : index
    %222 = vector.load %arg9[%c0_242, %c0_243] : memref<64x128xf32, #tpu.memory_space<vmem>>, vector<64x128xf32>
    %c3072 = arith.constant 3072 : index
    %c0_244 = arith.constant 0 : index
    %223 = vector.load %arg2[%c3072, %c0_244] : memref<3200x128xbf16, #tpu.memory_space<vmem>>, vector<128x128xbf16>
    %cst_245 = arith.constant dense<0.000000e+00> : vector<64x128xf32>
    %224 = tpu.matmul %221, %223, %cst_245 {dimension_numbers = #tpu.dot_dimension_numbers<[1], [0], [0], [1], [0, 0, 1, 1], [], []>} : vector<64x128xbf16>, vector<128x128xbf16>, vector<64x128xf32> -> vector<64x128xf32>
    %225 = arith.addf %222, %224 : vector<64x128xf32>
    %c0_246 = arith.constant 0 : index
    %c0_247 = arith.constant 0 : index
    %226 = vector.load %arg9[%c0_246, %c0_247] : memref<64x128xf32, #tpu.memory_space<vmem>>, vector<64x128xf32>
    tpu.vector_store %arg9[%c0_246, %c0_247], %225 {strides = array<i32>} : memref<64x128xf32, #tpu.memory_space<vmem>>, vector<64x128xf32>,
    %c0_248 = arith.constant 0 : index
    %c0_249 = arith.constant 0 : index
    %227 = vector.load %arg9[%c0_248, %c0_249] : memref<64x128xf32, #tpu.memory_space<vmem>>, vector<64x128xf32>
    %c0_250 = arith.constant 0 : index
    %c0_251 = arith.constant 0 : index
    %228 = vector.load %arg3[%c0_250, %c0_251] : memref<1x128xf32, #tpu.memory_space<vmem>>, vector<1x128xf32>
    %229 = vector.broadcast %228 : vector<1x128xf32> to vector<64x128xf32>
    %230 = arith.addf %227, %229 : vector<64x128xf32>
    %cst_252 = arith.constant dense<0.000000e+00> : vector<128xf32>
    %231 = vector.multi_reduction <add>, %230, %cst_252 [0] : vector<64x128xf32> to vector<128xf32>
    %232 = vector.shape_cast %231 : vector<128xf32> to vector<1x128xf32>
    %233 = arith.mulf %230, %230 : vector<64x128xf32>
    %cst_253 = arith.constant dense<0.000000e+00> : vector<128xf32>
    %234 = vector.multi_reduction <add>, %233, %cst_253 [0] : vector<64x128xf32> to vector<128xf32>
    %235 = vector.shape_cast %234 : vector<128xf32> to vector<1x128xf32>
    %cst_254 = arith.constant 1.562500e-02 : f32
    %236 = vector.broadcast %cst_254 : f32 to vector<1x128xf32>
    %237 = arith.mulf %232, %236 : vector<1x128xf32>
    %cst_255 = arith.constant 1.562500e-02 : f32
    %238 = vector.broadcast %cst_255 : f32 to vector<1x128xf32>
    %239 = arith.mulf %235, %238 : vector<1x128xf32>
    %240 = arith.mulf %237, %237 : vector<1x128xf32>
    %241 = arith.subf %239, %240 : vector<1x128xf32>
    %cst_256 = arith.constant 0.000000e+00 : f32
    %242 = vector.broadcast %cst_256 : f32 to vector<1x128xf32>
    %243 = arith.maximumf %241, %242 : vector<1x128xf32>
    %244 = vector.broadcast %237 : vector<1x128xf32> to vector<64x128xf32>
    %245 = arith.subf %230, %244 : vector<64x128xf32>
    %cst_257 = arith.constant 9.99999974E-6 : f32
    %246 = vector.broadcast %cst_257 : f32 to vector<1x128xf32>
    %247 = arith.addf %243, %246 : vector<1x128xf32>
    %248 = math.rsqrt %247 : vector<1x128xf32>
    %249 = vector.broadcast %248 : vector<1x128xf32> to vector<64x128xf32>
    %250 = arith.mulf %245, %249 : vector<64x128xf32>
    %cst_258 = arith.constant 0.000000e+00 : f32
    %251 = vector.broadcast %cst_258 : f32 to vector<64x128xf32>
    %252 = arith.maximumf %250, %251 : vector<64x128xf32>
    %c0_259 = arith.constant 0 : index
    %c2_260 = arith.constant 2 : index
    %c2_261 = arith.constant 2 : index
    %c0_262 = arith.constant 0 : index
    %253 = vector.load %arg1[%c0_259, %c2_260, %c2_261, %c0_262] : memref<1x12x12x128xf32, #tpu.memory_space<vmem>>, vector<1x8x8x128xf32>
    %254 = vector.shape_cast %253 : vector<1x8x8x128xf32> to vector<8x8x128xf32>
    %255 = vector.shape_cast %254 : vector<8x8x128xf32> to vector<64x128xf32>
    %256 = arith.addf %252, %255 : vector<64x128xf32>
    %cst_263 = arith.constant dense<0.000000e+00> : vector<128xf32>
    %257 = vector.multi_reduction <add>, %256, %cst_263 [0] : vector<64x128xf32> to vector<128xf32>
    %258 = vector.shape_cast %257 : vector<128xf32> to vector<1x128xf32>
    %cst_264 = arith.constant 1.562500e-02 : f32
    %259 = vector.broadcast %cst_264 : f32 to vector<1x128xf32>
    %260 = arith.mulf %258, %259 : vector<1x128xf32>
    %c0_265 = arith.constant 0 : index
    %c0_266 = arith.constant 0 : index
    %261 = vector.load %arg4[%c0_265, %c0_266] : memref<128x128xf32, #tpu.memory_space<vmem>>, vector<128x128xf32>
    %cst_267 = arith.constant dense<0.000000e+00> : vector<1x128xf32>
    %262 = tpu.matmul %260, %261, %cst_267 {dimension_numbers = #tpu.dot_dimension_numbers<[1], [0], [0], [1], [0, 0, 1, 1], [], []>} : vector<1x128xf32>, vector<128x128xf32>, vector<1x128xf32> -> vector<1x128xf32>
    %c0_268 = arith.constant 0 : index
    %c0_269 = arith.constant 0 : index
    %263 = vector.load %arg5[%c0_268, %c0_269] : memref<1x128xf32, #tpu.memory_space<vmem>>, vector<1x128xf32>
    %264 = arith.addf %262, %263 : vector<1x128xf32>
    %cst_270 = arith.constant 0.000000e+00 : f32
    %265 = vector.broadcast %cst_270 : f32 to vector<1x128xf32>
    %266 = arith.maximumf %264, %265 : vector<1x128xf32>
    %c0_271 = arith.constant 0 : index
    %c0_272 = arith.constant 0 : index
    %267 = vector.load %arg6[%c0_271, %c0_272] : memref<128x128xf32, #tpu.memory_space<vmem>>, vector<128x128xf32>
    %cst_273 = arith.constant dense<0.000000e+00> : vector<1x128xf32>
    %268 = tpu.matmul %266, %267, %cst_273 {dimension_numbers = #tpu.dot_dimension_numbers<[1], [0], [0], [1], [0, 0, 1, 1], [], []>} : vector<1x128xf32>, vector<128x128xf32>, vector<1x128xf32> -> vector<1x128xf32>
    %c0_274 = arith.constant 0 : index
    %c0_275 = arith.constant 0 : index
    %269 = vector.load %arg7[%c0_274, %c0_275] : memref<1x128xf32, #tpu.memory_space<vmem>>, vector<1x128xf32>
    %270 = arith.addf %268, %269 : vector<1x128xf32>
    %c0_276 = arith.constant 0 : index
    %c0_277 = arith.constant 0 : index
    %c0_278 = arith.constant 0 : index
    %271 = vector.load %arg8[%c0_276, %c0_277, %c0_278] : memref<1x1x128xf32, #tpu.memory_space<vmem>>, vector<1x1x128xf32>
    %272 = vector.shape_cast %271 : vector<1x1x128xf32> to vector<1x128xf32>
    %273 = vector.shape_cast %270 : vector<1x128xf32> to vector<1x1x128xf32>
    tpu.vector_store %arg8[%c0_276, %c0_277, %c0_278], %273 {strides = array<i32>} : memref<1x1x128xf32, #tpu.memory_space<vmem>>, vector<1x1x128xf32>,
    return
  }
  func.func @transform_0(%arg0: i32) -> (i32, i32, i32, i32) {
    %c0_i32 = arith.constant 0 : i32
    %c0_i32_0 = arith.constant 0 : i32
    %c0_i32_1 = arith.constant 0 : i32
    %c0_i32_2 = arith.constant 0 : i32
    return %arg0, %c0_i32, %c0_i32_0, %c0_i32_1 : i32, i32, i32, i32
  }
  func.func @transform_1(%arg0: i32) -> (i32, i32) {
    %c0_i32 = arith.constant 0 : i32
    %c0_i32_0 = arith.constant 0 : i32
    %c0_i32_1 = arith.constant 0 : i32
    return %c0_i32, %c0_i32_0 : i32, i32
  }
  func.func @transform_2(%arg0: i32) -> (i32, i32) {
    %c0_i32 = arith.constant 0 : i32
    %c0_i32_0 = arith.constant 0 : i32
    %c0_i32_1 = arith.constant 0 : i32
    return %c0_i32, %c0_i32_0 : i32, i32
  }
  func.func @transform_3(%arg0: i32) -> (i32, i32) {
    %c0_i32 = arith.constant 0 : i32
    %c0_i32_0 = arith.constant 0 : i32
    %c0_i32_1 = arith.constant 0 : i32
    return %c0_i32, %c0_i32_0 : i32, i32
  }
  func.func @transform_4(%arg0: i32) -> (i32, i32) {
    %c0_i32 = arith.constant 0 : i32
    %c0_i32_0 = arith.constant 0 : i32
    %c0_i32_1 = arith.constant 0 : i32
    return %c0_i32, %c0_i32_0 : i32, i32
  }
  func.func @transform_5(%arg0: i32) -> (i32, i32) {
    %c0_i32 = arith.constant 0 : i32
    %c0_i32_0 = arith.constant 0 : i32
    %c0_i32_1 = arith.constant 0 : i32
    return %c0_i32, %c0_i32_0 : i32, i32
  }
  func.func @transform_6(%arg0: i32) -> (i32, i32) {
    %c0_i32 = arith.constant 0 : i32
    %c0_i32_0 = arith.constant 0 : i32
    %c0_i32_1 = arith.constant 0 : i32
    return %c0_i32, %c0_i32_0 : i32, i32
  }
  func.func @transform_7(%arg0: i32) -> (i32, i32, i32) {
    %c0_i32 = arith.constant 0 : i32
    %c0_i32_0 = arith.constant 0 : i32
    %c0_i32_1 = arith.constant 0 : i32
    return %arg0, %c0_i32, %c0_i32_0 : i32, i32, i32
  }
}

</mosaic_0001>

<bundles_post_ra>
// kernel: inr_cls4_forward.3
= control target key start
LH: loop header
LB: loop body
LE: loop exit
PB: predicated region body
PF: predicated region fallthrough
CT: control target
= control target key end

     0   :  { %s3974_s15 = smov 0   ;;  %s5310_s0 = inlined_call_operand.vmem [shape: f32[2,18,18,128], index: 0, kind: input, shape index: {}]   ;;  %s5311_s1 = inlined_call_operand.vmem [shape: bf16[1152,128], index: 1, kind: input, shape index: {}]   ;;  %s5312_s2 = inlined_call_operand.vmem [shape: f32[1,128], index: 2, kind: input, shape index: {}]   ;;  %s5313_s3 = inlined_call_operand.vmem [shape: f32[256,128], index: 3, kind: input, shape index: {}]   ;;  %s5314_s4 = inlined_call_operand.vmem [shape: f32[2,256,128], index: 4, kind: output, shape index: {}]  }
   0x1 LB: > { %s3342_s16 = sadd.s32 4294967295, %s3947_s15   ;;  %p3346_p0 = scmp.ge.s32.totalorder %s3947_s15, 1  ;;  %s3947_s15 = sphi %s3974_s15, %s14_s15  }
   0x2   : > { %p162_p1 = scmp.lt.s32.totalorder %s3947_s15, 3 }
   0x4   : > { %p163_p2 = pnand %p3346_p0, %p162_p1 }
   0x6   : > { %166 = sbr.rel (%p163_p2) target bundleno = 837 (0x345), region = 36 }
   0xb   : > { %v3840_v0 = vld [vmem:[%s5311_s1 + $0x38] sm:$0xff]  ;;  %v3839_v1 = vld [vmem:[%s5311_s1 + $0x30] sm:$0xff]  ;;  %v3838_v2 = vld [vmem:[%s5311_s1 + $0x28] sm:$0xff]  ;;  %p188_p3 = scmp.lt.s32.totalorder %s3342_s16, 1 }
   0xc   : > { %3905 = vmatpush.bf16.msra.mxu1 %v3840_v0  ;;  %3906 = vmatpush.bf16.msra.mxu2 %v3840_v0  ;;  %v3837_v3 = vld [vmem:[%s5311_s1 + $0x20] sm:$0xff]  ;;  %v3836_v4 = vld [vmem:[%s5311_s1 + $0x18] sm:$0xff]  ;;  %v3835_v5 = vld [vmem:[%s5311_s1 + $0x10] sm:$0xff] }
   0xd   : > { %3907 = vmatpush.bf16.msra.mxu3 %v3840_v0  ;;  %374 = vmatpush.bf16.msra.mxu0 %v3840_v0  ;;  %s5356_s16 = smov (!%p188_p3, %s3342_s16), 1  ;;  %v3834_v6 = vld [vmem:[%s5311_s1 + $0x8] sm:$0xff]  ;;  %v3833_v7 = vld [vmem:[%s5311_s1] sm:$0xff]  ;;  %v3856_v16 = vld [vmem:[%s5311_s1 + $0xb8] sm:$0xff] }
   0xe   : > { %s3929_s29 = smul.u32 432, %s5356_s16  ;;  %v3864_v17 = vld [vmem:[%s5311_s1 + $0xf8] sm:$0xff]  ;;  %v3855_v24 = vld [vmem:[%s5311_s1 + $0xb0] sm:$0xff]  ;;  %v3854_v28 = vld [vmem:[%s5311_s1 + $0xa8] sm:$0xff]  ;;  %s3832_s27 = sshll.u32 %s5356_s16, 8 }
   0xf   : > { %v3848_v22 = vld [vmem:[%s5311_s1 + $0x78] sm:$0xff]  ;;  %v3863_v25 = vld [vmem:[%s5311_s1 + $0xf0] sm:$0xff]  ;;  %v3862_v29 = vld [vmem:[%s5311_s1 + $0xe8] sm:$0xff]  ;;  %s5165_s12 = scalar_lea.vmem %s5314_s4, %s3832_s27 }
  0x10   : > { %3908 = vmatpush.bf16.msra.mxu1 %v3839_v1  ;;  %3909 = vmatpush.bf16.msra.mxu2 %v3839_v1  ;;  %s4009_s8 = scalar_lea.vmem %s5310_s0, %s3929_s29  ;;  %v3872_v23 = vld [vmem:[%s5311_s1 + $0x138] sm:$0xff]  ;;  %v3847_v26 = vld [vmem:[%s5311_s1 + $0x70] sm:$0xff]  ;;  %v3846_v30 = vld [vmem:[%s5311_s1 + $0x68] sm:$0xff] }
  0x11   : > { %3910 = vmatpush.bf16.msra.mxu3 %v3839_v1  ;;  %375 = vmatpush.bf16.msra.mxu0 %v3839_v1  ;;  %v238_v8 = vld [vmem:[%s4009_s8 + $0x60] sm:$0xff]  ;;  %v239_v9 = vld [vmem:[%s4009_s8 + $0x68] sm:$0xff]  ;;  %v3871_v27 = vld [vmem:[%s5311_s1 + $0x130] sm:$0xff] }
  0x12   : > { %v246_v10 = vld [vmem:[%s4009_s8 + $0xc0] sm:$0xff]  ;;  %v247_v11 = vld [vmem:[%s4009_s8 + $0xc8] sm:$0xff]  ;;  %v4028_v18 = vpack.c.bf16 %v239_v9, %v238_v8  ;;  %v240_v32 = vld [vmem:[%s4009_s8 + $0x78] sm:$0xff] }
  0x13   : > { %v254_v12 = vld [vmem:[%s4009_s8 + $0x120] sm:$0xff]  ;;  %v255_v13 = vld [vmem:[%s4009_s8 + $0x128] sm:$0xff]  ;;  %v4030_v19 = vpack.c.bf16 %v247_v11, %v246_v10  ;;  %v248_v36 = vld [vmem:[%s4009_s8 + $0xd8] sm:$0xff] }
  0x14   : > { %3911 = vmatpush.bf16.msra.mxu1 %v3838_v2  ;;  %3912 = vmatpush.bf16.msra.mxu2 %v3838_v2  ;;  %v230_v14 = vld [vmem:[%s4009_s8] sm:$0xff]  ;;  %v231_v15 = vld [vmem:[%s4009_s8 + $0x8] sm:$0xff]  ;;  %v274_v20 = vpack.c.bf16 %v255_v13, %v254_v12  ;;  %v256_v38 = vld [vmem:[%s4009_s8 + $0x138] sm:$0xff] }
  0x15   : > { %3913 = vmatpush.bf16.msra.mxu3 %v3838_v2  ;;  %376 = vmatpush.bf16.msra.mxu0 %v3838_v2  ;;  %v262_v21 = vpack.c.bf16 %v231_v15, %v230_v14  ;;  %v3870_v31 = vld [vmem:[%s5311_s1 + $0x128] sm:$0xff]  ;;  %v3853_v33 = vld [vmem:[%s5311_s1 + $0xa0] sm:$0xff]  ;;  %v232_v40 = vld [vmem:[%s4009_s8 + $0x18] sm:$0xff] }
  0x16   : > { %v3861_v34 = vld [vmem:[%s5311_s1 + $0xe0] sm:$0xff]  ;;  %v3852_v44 = vld [vmem:[%s5311_s1 + $0x98] sm:$0xff]  ;;  %v3851_v52 = vld [vmem:[%s5311_s1 + $0x90] sm:$0xff] }
  0x17   : > { %v241_v35 = vld [vmem:[%s4009_s8 + $0x80] sm:$0xff]  ;;  %v3860_v45 = vld [vmem:[%s5311_s1 + $0xd8] sm:$0xff]  ;;  %v3859_v53 = vld [vmem:[%s5311_s1 + $0xd0] sm:$0xff] }
  0x18   : > { %3914 = vmatpush.bf16.msra.mxu1 %v3837_v3  ;;  %3915 = vmatpush.bf16.msra.mxu2 %v3837_v3  ;;  %v249_v37 = vld [vmem:[%s4009_s8 + $0xe0] sm:$0xff]  ;;  %v4090_v46 = vpack.c.bf16 %v241_v35, %v240_v32  ;;  %v3844_v50 = vld [vmem:[%s5311_s1 + $0x58] sm:$0xff]  ;;  %v3843_v54 = vld [vmem:[%s5311_s1 + $0x50] sm:$0xff] }
  0x19   : > { %3916 = vmatpush.bf16.msra.mxu3 %v3837_v3  ;;  %377 = vmatpush.bf16.msra.mxu0 %v3837_v3  ;;  %v257_v39 = vld [vmem:[%s4009_s8 + $0x140] sm:$0xff]  ;;  %v4092_v47 = vpack.c.bf16 %v249_v37, %v248_v36  ;;  %v3868_v51 = vld [vmem:[%s5311_s1 + $0x118] sm:$0xff]  ;;  %v3867_v55 = vld [vmem:[%s5311_s1 + $0x110] sm:$0xff] }
  0x1a   : > { %v233_v41 = vld [vmem:[%s4009_s8 + $0x20] sm:$0xff]  ;;  %v275_v48 = vpack.c.bf16 %v257_v39, %v256_v38  ;;  %v3850_v56 = vld [vmem:[%s5311_s1 + $0x88] sm:$0xff]  ;;  %v242_v60 = vld [vmem:[%s4009_s8 + $0x90] sm:$0xff] }
  0x1b   : > { %v3845_v42 = vld [vmem:[%s5311_s1 + $0x60] sm:$0xff]  ;;  %v4094_v49 = vpack.c.bf16 %v233_v41, %v232_v40  ;;  %v3858_v57 = vld [vmem:[%s5311_s1 + $0xc8] sm:$0xff]  ;;  %v243_v63 = vld [vmem:[%s4009_s8 + $0x98] sm:$0xff] }
  0x1c   : > { %3917 = vmatpush.bf16.msra.mxu1 %v3836_v4  ;;  %3918 = vmatpush.bf16.msra.mxu2 %v3836_v4  ;;  %v3869_v43 = vld [vmem:[%s5311_s1 + $0x120] sm:$0xff]  ;;  %v3842_v58 = vld [vmem:[%s5311_s1 + $0x48] sm:$0xff]  ;;  %v250_v0 = vld [vmem:[%s4009_s8 + $0xf0] sm:$0xff]  ;;  %v4149_v8 = vpack.c.bf16 %v243_v63, %v242_v60 }
  0x1d   : > { %3919 = vmatpush.bf16.msra.mxu3 %v3836_v4  ;;  %378 = vmatpush.bf16.msra.mxu0 %v3836_v4  ;;  %v3866_v59 = vld [vmem:[%s5311_s1 + $0x108] sm:$0xff]  ;;  %v3849_v61 = vld [vmem:[%s5311_s1 + $0x80] sm:$0xff]  ;;  %v251_v1 = vld [vmem:[%s4009_s8 + $0xf8] sm:$0xff] }
  0x1e   : > { %v3857_v62 = vld [vmem:[%s5311_s1 + $0xc0] sm:$0xff]  ;;  %v258_v2 = vld [vmem:[%s4009_s8 + $0x150] sm:$0xff]  ;;  %v259_v3 = vld [vmem:[%s4009_s8 + $0x158] sm:$0xff]  ;;  %v4151_v9 = vpack.c.bf16 %v251_v1, %v250_v0 }
  0x1f   : > { %v234_v4 = vld [vmem:[%s4009_s8 + $0x30] sm:$0xff]  ;;  %v276_v10 = vpack.c.bf16 %v259_v3, %v258_v2  ;;  %v3888_v12 = vld [vmem:[%s5311_s1 + $0x1b8] sm:$0xff]  ;;  %v824_v32 = vld [vmem:[%s4009_s8 + $0x2] sm:$0xff] }
  0x20   : > { %3920 = vmatpush.bf16.msra.mxu1 %v3835_v5  ;;  %3921 = vmatpush.bf16.msra.mxu2 %v3835_v5  ;;  %v3896_v13 = vld [vmem:[%s5311_s1 + $0x1f8] sm:$0xff]  ;;  %v3511_v35 = vld [vmem:[%s4009_s8 + $0x21] sm:$0xff]  ;;  %v3887_v39 = vld [vmem:[%s5311_s1 + $0x1b0] sm:$0xff] }
  0x21   : > { %3922 = vmatpush.bf16.msra.mxu3 %v3835_v5  ;;  %379 = vmatpush.bf16.msra.mxu0 %v3835_v5  ;;  %v235_v5 = vld [vmem:[%s4009_s8 + $0x38] sm:$0xff]  ;;  %v3895_v40 = vld [vmem:[%s5311_s1 + $0x1f0] sm:$0xff]  ;;  %v3902_v60 = vld [vmem:[%s5311_s1 + $0x228] sm:$0xff] }
  0x22   : > { %v264_v11 = vpack.c.bf16 %v235_v5, %v234_v4  ;;  %v3880_v14 = vld [vmem:[%s5311_s1 + $0x178] sm:$0xff]  ;;  %v3879_v41 = vld [vmem:[%s5311_s1 + $0x170] sm:$0xff]  ;;  %v3516_v63 = vld [vmem:[%s4009_s8 + $0x61] sm:$0xff] }
  0x23   : > { %v3904_v15 = vld [vmem:[%s5311_s1 + $0x238] sm:$0xff]  ;;  %v3517_v0 = vld [vmem:[%s4009_s8 + $0x69] sm:$0xff] }
  0x24   : > { %3923 = vmatpush.bf16.msra.mxu1 %v3834_v6  ;;  %3924 = vmatpush.bf16.msra.mxu2 %v3834_v6  ;;  %v4242_v2 = vpack.c.bf16 %v3517_v0, %v3516_v63  ;;  %v832_v3 = vld [vmem:[%s4009_s8 + $0x62] sm:$0xff]  ;;  %v833_v4 = vld [vmem:[%s4009_s8 + $0x6a] sm:$0xff]  ;;  %v3518_v5 = vld [vmem:[%s4009_s8 + $0x79] sm:$0xff] }
  0x25   : > { %3925 = vmatpush.bf16.msra.mxu3 %v3834_v6  ;;  %380 = vmatpush.bf16.msra.mxu0 %v3834_v6  ;;  %v3841_v6 = vld [vmem:[%s5311_s1 + $0x40] sm:$0xff]  ;;  %v3525_v63 = vld [vmem:[%s4009_s8 + $0xc9] sm:$0xff] }
  0x28   : > { %3926 = vmatpush.bf16.msra.mxu1 %v3833_v7  ;;  %3927 = vmatpush.bf16.msra.mxu2 %v3833_v7 }
  0x29   : > { %3928 = vmatpush.bf16.msra.mxu3 %v3833_v7  ;;  %381 = vmatpush.bf16.msra.mxu0 %v3833_v7  ;;  %v3865_v7 = vld [vmem:[%s5311_s1 + $0x100] sm:$0xff] }
  0x2b   : > { %402 = vmatmul.bf16.vlgmr.msra.gmra.mxu1 %v4028_v18  ;;  %422 = vmatmul.bf16.vlgmr.msra.gmra.mxu2 %v4030_v19 }
  0x2c   : > { %968 = vmatpush.bf16.msrb.mxu2 %v3856_v16  ;;  %442 = vmatmul.bf16.vlgmr.msra.gmra.mxu3 %v274_v20  ;;  %v244_v16 = vld [vmem:[%s4009_s8 + $0xa8] sm:$0xff] }
  0x2d   : > { %1266 = vmatpush.bf16.msrb.mxu3 %v3864_v17  ;;  %382 = vmatmul.bf16.vlgmr.msra.gmra.mxu0 %v262_v21  ;;  %v245_v17 = vld [vmem:[%s4009_s8 + $0xb0] sm:$0xff]  ;;  %v252_v20 = vld [vmem:[%s4009_s8 + $0x108] sm:$0xff] }
  0x2e   : > { %671 = vmatpush.bf16.msrb.mxu1 %v3848_v22  ;;  %1563 = vmatpush.bf16.msrb.mxu0 %v3872_v23  ;;  %v253_v21 = vld [vmem:[%s4009_s8 + $0x110] sm:$0xff]  ;;  %v260_v22 = vld [vmem:[%s4009_s8 + $0x168] sm:$0xff] }
  0x2f   : > { %v261_v23 = vld [vmem:[%s4009_s8 + $0x170] sm:$0xff] }
  0x30   : > { %969 = vmatpush.bf16.msrb.mxu2 %v3855_v24  ;;  %v236_v24 = vld [vmem:[%s4009_s8 + $0x48] sm:$0xff] }
  0x31   : > { %1267 = vmatpush.bf16.msrb.mxu3 %v3863_v25  ;;  %v237_v25 = vld [vmem:[%s4009_s8 + $0x50] sm:$0xff] }
  0x32   : > { %672 = vmatpush.bf16.msrb.mxu1 %v3847_v26  ;;  %1564 = vmatpush.bf16.msrb.mxu0 %v3871_v27  ;;  %v4175_v26 = vpack.c.bf16 %v245_v17, %v244_v16  ;;  %v4177_v27 = vpack.c.bf16 %v253_v21, %v252_v20  ;;  %v3901_v20 = vld [vmem:[%s5311_s1 + $0x220] sm:$0xff] }
  0x33   : > { %v834_v21 = vld [vmem:[%s4009_s8 + $0x7a] sm:$0xff] }
  0x34   : > { %970 = vmatpush.bf16.msrb.mxu2 %v3854_v28  ;;  %v4179_v28 = vpack.c.bf16 %v261_v23, %v260_v22  ;;  %v835_v22 = vld [vmem:[%s4009_s8 + $0x82] sm:$0xff]  ;;  %v3520_v23 = vld [vmem:[%s4009_s8 + $0x91] sm:$0xff] }
  0x35   : > { %1268 = vmatpush.bf16.msrb.mxu3 %v3862_v29  ;;  %v265_v29 = vpack.c.bf16 %v237_v25, %v236_v24  ;;  %v3521_v24 = vld [vmem:[%s4009_s8 + $0x99] sm:$0xff] }
  0x36   : > { %673 = vmatpush.bf16.msrb.mxu1 %v3846_v30  ;;  %1565 = vmatpush.bf16.msrb.mxu0 %v3870_v31  ;;  %v527_v30 = vld [vmem:[%s4009_s8 + $0x1] sm:$0xff]  ;;  %v528_v31 = vld [vmem:[%s4009_s8 + $0x9] sm:$0xff] }
  0x37   : > { %v559_v36 = vpack.c.bf16 %v528_v31, %v527_v30  ;;  %v4289_v30 = vpack.c.bf16 %v835_v22, %v834_v21  ;;  %v840_v21 = vld [vmem:[%s4009_s8 + $0xc2] sm:$0xff]  ;;  %v841_v22 = vld [vmem:[%s4009_s8 + $0xca] sm:$0xff] }
  0x38   : > { %971 = vmatpush.bf16.msrb.mxu2 %v3853_v33  ;;  %v825_v33 = vld [vmem:[%s4009_s8 + $0xa] sm:$0xff] }
  0x39   : > { %1269 = vmatpush.bf16.msrb.mxu3 %v3861_v34  ;;  %v3510_v34 = vld [vmem:[%s4009_s8 + $0x19] sm:$0xff]  ;;  %v856_v37 = vpack.c.bf16 %v825_v33, %v824_v32  ;;  %v4293_v32 = vpack.c.bf16 %v3521_v24, %v3520_v23  ;;  %v3527_v24 = vld [vmem:[%s4009_s8 + $0xe1] sm:$0xff] }
  0x3a   : > { %674 = vmatpush.bf16.msrb.mxu1 %v3845_v42  ;;  %1566 = vmatpush.bf16.msrb.mxu0 %v3869_v43  ;;  %v1451_v38 = vpack.c.bf16 %v3511_v35, %v3510_v34  ;;  %v3903_v42 = vld [vmem:[%s5311_s1 + $0x230] sm:$0xff]  ;;  %v826_v43 = vld [vmem:[%s4009_s8 + $0x1a] sm:$0xff] }
  0x3b   : > { %407 = vmatmul.bf16.gmra.mxu1 %v4090_v46  ;;  %427 = vmatmul.bf16.gmra.mxu2 %v4092_v47  ;;  %v3526_v23 = vld [vmem:[%s4009_s8 + $0xd9] sm:$0xff] }
  0x3c   : > { %972 = vmatpush.bf16.msrb.mxu2 %v3852_v44  ;;  %447 = vmatmul.bf16.gmra.mxu3 %v275_v48  ;;  %v827_v44 = vld [vmem:[%s4009_s8 + $0x22] sm:$0xff]  ;;  %v3513_v48 = vld [vmem:[%s4009_s8 + $0x39] sm:$0xff] }
  0x3d   : > { %1270 = vmatpush.bf16.msrb.mxu3 %v3860_v45  ;;  %387 = vmatmul.bf16.gmra.mxu0 %v4094_v49  ;;  %v3512_v45 = vld [vmem:[%s4009_s8 + $0x31] sm:$0xff] }
  0x3e   : > { %675 = vmatpush.bf16.msrb.mxu1 %v3844_v50  ;;  %1567 = vmatpush.bf16.msrb.mxu0 %v3868_v51  ;;  %v4209_v50 = vpack.c.bf16 %v3513_v48, %v3512_v45  ;;  %v828_v51 = vld [vmem:[%s4009_s8 + $0x32] sm:$0xff] }
  0x40   : > { %973 = vmatpush.bf16.msrb.mxu2 %v3851_v52  ;;  %v829_v52 = vld [vmem:[%s4009_s8 + $0x3a] sm:$0xff] }
  0x41   : > { %1271 = vmatpush.bf16.msrb.mxu3 %v3859_v53  ;;  %v3514_v53 = vld [vmem:[%s4009_s8 + $0x49] sm:$0xff] }
  0x42   : > { %676 = vmatpush.bf16.msrb.mxu1 %v3843_v54  ;;  %1568 = vmatpush.bf16.msrb.mxu0 %v3867_v55  ;;  %v3515_v54 = vld [vmem:[%s4009_s8 + $0x51] sm:$0xff]  ;;  %v4217_v55 = vpack.c.bf16 %v829_v52, %v828_v51 }
  0x43   : > { %v3884_v51 = vld [vmem:[%s5311_s1 + $0x198] sm:$0xff] }
  0x44   : > { %974 = vmatpush.bf16.msrb.mxu2 %v3850_v56  ;;  %v4219_v56 = vpack.c.bf16 %v3515_v54, %v3514_v53  ;;  %v3892_v52 = vld [vmem:[%s5311_s1 + $0x1d8] sm:$0xff] }
  0x45   : > { %1272 = vmatpush.bf16.msrb.mxu3 %v3858_v57  ;;  %v3886_v57 = vld [vmem:[%s5311_s1 + $0x1a8] sm:$0xff] }
  0x46   : > { %677 = vmatpush.bf16.msrb.mxu1 %v3842_v58  ;;  %1569 = vmatpush.bf16.msrb.mxu0 %v3866_v59  ;;  %v3894_v58 = vld [vmem:[%s5311_s1 + $0x1e8] sm:$0xff] }
  0x47   : > { %v3878_v59 = vld [vmem:[%s5311_s1 + $0x168] sm:$0xff] }
  0x48   : > { %975 = vmatpush.bf16.msrb.mxu2 %v3849_v61  ;;  %v830_v61 = vld [vmem:[%s4009_s8 + $0x4a] sm:$0xff] }
  0x49   : > { %1273 = vmatpush.bf16.msrb.mxu3 %v3857_v62  ;;  %v831_v62 = vld [vmem:[%s4009_s8 + $0x52] sm:$0xff] }
  0x4a   : > { %678 = vmatpush.bf16.msrb.mxu1 %v3841_v6  ;;  %1570 = vmatpush.bf16.msrb.mxu0 %v3865_v7  ;;  %v4240_v1 = vpack.c.bf16 %v831_v62, %v830_v61  ;;  %v3519_v6 = vld [vmem:[%s4009_s8 + $0x81] sm:$0xff]  ;;  %v4252_v7 = vpack.c.bf16 %v833_v4, %v832_v3  ;;  %v839_v61 = vld [vmem:[%s4009_s8 + $0xb2] sm:$0xff] }
  0x4b   : > { %412 = vmatmul.bf16.gmra.mxu1 %v4149_v8  ;;  %432 = vmatmul.bf16.gmra.mxu2 %v4151_v9  ;;  %v3524_v62 = vld [vmem:[%s4009_s8 + $0xc1] sm:$0xff] }
  0x4c   : > { %452 = vmatmul.bf16.gmra.mxu3 %v276_v10  ;;  %2158 = vmatpush.bf16.msra.mxu2 %v3888_v12 }
  0x4d   : > { %392 = vmatmul.bf16.gmra.mxu0 %v264_v11  ;;  %2455 = vmatpush.bf16.msra.mxu3 %v3896_v13  ;;  %v3893_v13 = vld [vmem:[%s5311_s1 + $0x1e0] sm:$0xff] }
  0x4e   : > { %1860 = vmatpush.bf16.msra.mxu1 %v3880_v14  ;;  %2752 = vmatpush.bf16.msra.mxu0 %v3904_v15 }
  0x50   : > { %2159 = vmatpush.bf16.msra.mxu2 %v3887_v39  ;;  %v837_v39 = vld [vmem:[%s4009_s8 + $0x9a] sm:$0xff] }
  0x51   : > { %2456 = vmatpush.bf16.msra.mxu3 %v3895_v40  ;;  %v3522_v40 = vld [vmem:[%s4009_s8 + $0xa9] sm:$0xff] }
  0x52   : > { %1861 = vmatpush.bf16.msra.mxu1 %v3879_v41  ;;  %2753 = vmatpush.bf16.msra.mxu0 %v3903_v42  ;;  %v3523_v41 = vld [vmem:[%s4009_s8 + $0xb1] sm:$0xff] }
  0x53   : > { %v4320_v45 = vpack.c.bf16 %v3523_v41, %v3522_v40  ;;  %v4384_v40 = vpack.c.bf16 %v841_v22, %v840_v21  ;;  %v4386_v41 = vpack.c.bf16 %v3527_v24, %v3526_v23  ;;  %v3875_v22 = vld [vmem:[%s5311_s1 + $0x150] sm:$0xff] }
  0x54   : > { %2160 = vmatpush.bf16.msra.mxu2 %v3886_v57  ;;  %v3899_v23 = vld [vmem:[%s5311_s1 + $0x210] sm:$0xff] }
  0x55   : > { %2457 = vmatpush.bf16.msra.mxu3 %v3894_v58  ;;  %v3876_v58 = vld [vmem:[%s5311_s1 + $0x158] sm:$0xff] }
  0x56   : > { %1862 = vmatpush.bf16.msra.mxu1 %v3878_v59  ;;  %2754 = vmatpush.bf16.msra.mxu0 %v3902_v60  ;;  %v3900_v59 = vld [vmem:[%s5311_s1 + $0x218] sm:$0xff]  ;;  %v838_v60 = vld [vmem:[%s4009_s8 + $0xaa] sm:$0xff] }
  0x57   : > { %v4356_v4 = vpack.c.bf16 %v839_v61, %v838_v60 }
  0x59   : > { %2458 = vmatpush.bf16.msra.mxu3 %v3893_v13 }
  0x5a   : > { %2755 = vmatpush.bf16.msra.mxu0 %v3901_v20 }
  0x5b   : > { %417 = vmatmul.bf16.gmra.mxu1 %v4175_v26  ;;  %437 = vmatmul.bf16.gmra.mxu2 %v4177_v27 }
  0x5c   : > { %457 = vmatmul.bf16.gmra.mxu3 %v4179_v28 }
  0x5d   : > { %397 = vmatmul.bf16.gmra.mxu0 %v265_v29  ;;  %2459 = vmatpush.bf16.msra.mxu3 %v3892_v52 }
  0x5e   : > { %2756 = vmatpush.bf16.msra.mxu0 %v3900_v59  ;;  %v3891_v59 = vld [vmem:[%s5311_s1 + $0x1d0] sm:$0xff] }
  0x61   : > { %2460 = vmatpush.bf16.msra.mxu3 %v3891_v59  ;;  %v3529_v59 = vld [vmem:[%s4009_s8 + $0xf9] sm:$0xff] }
  0x62   : > { %2757 = vmatpush.bf16.msra.mxu0 %v3899_v23 }
  0x6b   : > { %679 = vmatmul.bf16.vlgmr.msrb.gmra.mxu1 %v559_v36  ;;  %976 = vmatmul.bf16.vlgmr.msrb.gmra.mxu2 %v856_v37 }
  0x6c   : > { %1274 = vmatmul.bf16.vlgmr.msrb.gmra.mxu3 %v4094_v49  ;;  %v4207_v49 = vpack.c.bf16 %v827_v44, %v826_v43 }
  0x6d   : > { %1571 = vmatmul.bf16.vlgmr.msrb.gmra.mxu0 %v1451_v38 }
  0x7b   : > { %684 = vmatmul.bf16.gmra.mxu1 %v1451_v38  ;;  %981 = vmatmul.bf16.gmra.mxu2 %v4207_v49  ;;  %v836_v38 = vld [vmem:[%s4009_s8 + $0x92] sm:$0xff] }
  0x7c   : > { %1279 = vmatmul.bf16.gmra.mxu3 %v264_v11  ;;  %v1455_v11 = vpack.c.bf16 %v3519_v6, %v3518_v5  ;;  %v4316_v44 = vpack.c.bf16 %v837_v39, %v836_v38  ;;  %v4360_v6 = vpack.c.bf16 %v3525_v63, %v3524_v62 }
  0x7d   : > { %1576 = vmatmul.bf16.gmra.mxu0 %v4209_v50 }
  0x8b   : > { %689 = vmatmul.bf16.gmra.mxu1 %v4209_v50  ;;  %986 = vmatmul.bf16.gmra.mxu2 %v4217_v55 }
  0x8c   : > { %1284 = vmatmul.bf16.gmra.mxu3 %v265_v29 }
  0x8d   : > { %1581 = vmatmul.bf16.gmra.mxu0 %v4219_v56 }
  0x9b   : > { %694 = vmatmul.bf16.gmra.mxu1 %v4219_v56  ;;  %991 = vmatmul.bf16.gmra.mxu2 %v4240_v1 }
  0x9c   : > { %1289 = vmatmul.bf16.gmra.mxu3 %v4028_v18  ;;  %v3885_v18 = vld [vmem:[%s5311_s1 + $0x1a0] sm:$0xff] }
  0x9d   : > { %1586 = vmatmul.bf16.gmra.mxu0 %v4242_v2  ;;  %2161 = vmatpush.bf16.msra.mxu2 %v3885_v18 }
  0xa1   : > { %2162 = vmatpush.bf16.msra.mxu2 %v3884_v51 }
  0xa8   : > { %v4254_v10 = vpop.f32.mrf.mxu1 }
  0xaa   : > { %v4256_v12 = vpop.f32.mrf.mxu0 }
  0xab   : > { %699 = vmatmul.bf16.gmra.mxu1 %v4242_v2  ;;  %996 = vmatmul.bf16.gmra.mxu2 %v4252_v7 }
  0xac   : > { %1294 = vmatmul.bf16.gmra.mxu3 %v4090_v46  ;;  %v3877_v46 = vld [vmem:[%s5311_s1 + $0x160] sm:$0xff] }
  0xad   : > { %1591 = vmatmul.bf16.gmra.mxu0 %v1455_v11  ;;  %1863 = vmatpush.bf16.msra.mxu1 %v3877_v46 }
  0xae   : > { %v4267_v14 = vpop.f32.mrf.mxu2 }
  0xaf   : > { %v4269_v15 = vpop.f32.mrf.mxu3 }
  0xb0   : > { %v4274_v16 = vpop.f32.mrf.mxu1 }
  0xb1   : > { %1864 = vmatpush.bf16.msra.mxu1 %v3876_v58  ;;  %v3883_v58 = vld [vmem:[%s5311_s1 + $0x190] sm:$0xff] }
  0xb2   : > { %v4276_v17 = vpop.f32.mrf.mxu0  ;;  %2163 = vmatpush.bf16.msra.mxu2 %v3883_v58  ;;  %v3528_v58 = vld [vmem:[%s4009_s8 + $0xf1] sm:$0xff] }
  0xb5   : > { %1865 = vmatpush.bf16.msra.mxu1 %v3875_v22 }
  0xb6   : > { %v4285_v25 = vpop.f32.mrf.mxu2 }
  0xb7   : > { %v4287_v29 = vpop.f32.mrf.mxu3 }
  0xb8   : > { %v4291_v31 = vpop.f32.mrf.mxu1 }
  0xba   : > { %v4295_v33 = vpop.f32.mrf.mxu0 }
  0xbb   : > { %704 = vmatmul.bf16.gmra.mxu1 %v1455_v11  ;;  %1001 = vmatmul.bf16.gmra.mxu2 %v4289_v30 }
  0xbc   : > { %1299 = vmatmul.bf16.gmra.mxu3 %v4149_v8 }
  0xbd   : > { %1596 = vmatmul.bf16.gmra.mxu0 %v4293_v32 }
  0xbe   : > { %v4300_v34 = vpop.f32.mrf.mxu2 }
  0xbf   : > { %v4302_v35 = vpop.f32.mrf.mxu3 }
  0xc0   : > { %v4304_v36 = vpop.f32.mrf.mxu1 }
  0xc2   : > { %v4306_v37 = vpop.f32.mrf.mxu0 }
  0xc6   : > { %v4312_v42 = vpop.f32.mrf.mxu2 }
  0xc7   : > { %v4314_v43 = vpop.f32.mrf.mxu3 }
  0xc8   : > { %v4318_v8 = vpop.f32.mrf.mxu1 }
  0xca   : > { %v4322_v48 = vpop.f32.mrf.mxu0 }
  0xcb   : > { %709 = vmatmul.bf16.gmra.mxu1 %v4293_v32  ;;  %1006 = vmatmul.bf16.gmra.mxu2 %v4316_v44 }
  0xcc   : > { %1304 = vmatmul.bf16.gmra.mxu3 %v4175_v26 }
  0xcd   : > { %1601 = vmatmul.bf16.gmra.mxu0 %v4320_v45 }
  0xce   : > { %v4334_v53 = vpop.f32.mrf.mxu2 }
  0xcf   : > { %v4336_v54 = vpop.f32.mrf.mxu3 }
  0xd0   : > { %v4338_v57 = vpop.f32.mrf.mxu1 }
  0xd2   : > { %v4340_v26 = vpop.f32.mrf.mxu0 }
  0xd6   : > { %v4352_v0 = vpop.f32.mrf.mxu2 }
  0xd7   : > { %v4354_v3 = vpop.f32.mrf.mxu3 }
  0xd8   : > { %5321 = vst [vmem:[#allocation3_spill] sm:$0xff] %v4354_v3  ;;  %v4358_v5 = vpop.f32.mrf.mxu1 }
  0xda   : > { %v4362_v11 = vpop.f32.mrf.mxu0 }
  0xdb   : > { %714 = vmatmul.bf16.gmra.mxu1 %v4320_v45  ;;  %1011 = vmatmul.bf16.gmra.mxu2 %v4356_v4 }
  0xdc   : > { %1309 = vmatmul.bf16.gmra.mxu3 %v4030_v19 }
  0xdd   : > { %1606 = vmatmul.bf16.gmra.mxu0 %v4360_v6 }
  0xde   : > { %v4368_v18 = vpop.f32.mrf.mxu2 }
  0xdf   : > { %v4370_v13 = vpop.f32.mrf.mxu3 }
  0xe0   : > { %5322 = vst [vmem:[#allocation4_spill] sm:$0xff] %v4370_v13  ;;  %v4372_v46 = vpop.f32.mrf.mxu1 }
  0xe2   : > { %v4374_v20 = vpop.f32.mrf.mxu0 }
  0xe6   : > { %v4380_v38 = vpop.f32.mrf.mxu2 }
  0xe7   : > { %v4382_v39 = vpop.f32.mrf.mxu3 }
  0xe8   : > { %5323 = vst [vmem:[#allocation5_spill] sm:$0xff] %v4382_v39  ;;  %v680_v19 = vpop.f32.mrf.mxu1  ;;  %v4414_v39 = vpack.c.bf16 %v3529_v59, %v3528_v58 }
  0xe9   : > { %v760_v51 = vadd.f32 %v680_v19, %v4256_v12  ;;  %v842_v19 = vld [vmem:[%s4009_s8 + $0xda] sm:$0xff] }
  0xea   : > { %v1572_v52 = vpop.f32.mrf.mxu0 }
  0xeb   : > { %719 = vmatmul.bf16.gmra.mxu1 %v4360_v6  ;;  %1016 = vmatmul.bf16.gmra.mxu2 %v4384_v40 }
  0xec   : > { %1314 = vmatmul.bf16.gmra.mxu3 %v4092_v47 }
  0xed   : > { %1611 = vmatmul.bf16.gmra.mxu0 %v4386_v41 }
  0xee   : > { %v977_v12 = vpop.f32.mrf.mxu2 }
  0xef   : > { %v1057_v60 = vadd.f32 %v977_v12, %v760_v51  ;;  %v1275_v61 = vpop.f32.mrf.mxu3  ;;  %v843_v51 = vld [vmem:[%s4009_s8 + $0xe2] sm:$0xff] }
  0xf0   : > { %v682_v47 = vpop.f32.mrf.mxu1 }
  0xf1   : > { %v1355_v62 = vadd.f32 %v1275_v61, %v1057_v60  ;;  %v761_v63 = vadd.f32 %v682_v47, %v4276_v17  ;;  %v4412_v61 = vpack.c.bf16 %v843_v51, %v842_v19 }
  0xf2   : > { %v1574_v21 = vpop.f32.mrf.mxu0 }
  0xf3   : > { %v4406_v24 = vadd.f32 %v1572_v52, %v1355_v62  ;;  %5325 = vst [vmem:[#allocation7_spill] sm:$0xff] %v4412_v61 }
  0xf5   : > { %5324 = vst [vmem:[#allocation6_spill] sm:$0xff] %v4406_v24 }
  0xf6   : > { %v979_v12 = vpop.f32.mrf.mxu2 }
  0xf7   : > { %v1058_v60 = vadd.f32 %v979_v12, %v761_v63  ;;  %v1277_v17 = vpop.f32.mrf.mxu3  ;;  %v844_v12 = vld [vmem:[%s4009_s8 + $0xf2] sm:$0xff] }
  0xf8   : > { %v685_v47 = vpop.f32.mrf.mxu1 }
  0xf9   : > { %v1356_v13 = vadd.f32 %v1277_v17, %v1058_v60  ;;  %v762_v3 = vadd.f32 %v685_v47, %v4295_v33  ;;  %v845_v60 = vld [vmem:[%s4009_s8 + $0xfa] sm:$0xff]  ;;  %v3530_v17 = vld [vmem:[%s4009_s8 + $0x109] sm:$0xff]  ;;  %v3531_v47 = vld [vmem:[%s4009_s8 + $0x111] sm:$0xff] }
  0xfa   : > { %v1577_v22 = vpop.f32.mrf.mxu0 }
  0xfb   : > { %724 = vmatmul.bf16.gmra.mxu1 %v4386_v41  ;;  %1021 = vmatmul.bf16.gmra.mxu2 %v4412_v61  ;;  %v4419_v52 = vadd.f32 %v1574_v21, %v1356_v13  ;;  %v4432_v61 = vpack.c.bf16 %v3531_v47, %v3530_v17  ;;  %v846_v17 = vld [vmem:[%s4009_s8 + $0x10a] sm:$0xff]  ;;  %v847_v47 = vld [vmem:[%s4009_s8 + $0x112] sm:$0xff] }
  0xfc   : > { %1319 = vmatmul.bf16.gmra.mxu3 %v4151_v9  ;;  %v4430_v9 = vpack.c.bf16 %v845_v60, %v844_v12  ;;  %v3898_v12 = vld [vmem:[%s5311_s1 + $0x208] sm:$0xff] }
  0xfd   : > { %5326 = vst [vmem:[#allocation8_spill] sm:$0xff] %v4419_v52  ;;  %1616 = vmatmul.bf16.gmra.mxu0 %v4414_v39 }
  0xfe   : > { %v982_v62 = vpop.f32.mrf.mxu2  ;;  %2758 = vmatpush.bf16.msra.mxu0 %v3898_v12 }
  0xff   : > { %v1059_v63 = vadd.f32 %v982_v62, %v762_v3  ;;  %v1280_v23 = vpop.f32.mrf.mxu3 }
 0x100   : > { %v687_v19 = vpop.f32.mrf.mxu1 }
 0x101   : > { %v1357_v51 = vadd.f32 %v1280_v23, %v1059_v63  ;;  %v763_v33 = vadd.f32 %v687_v19, %v4306_v37 }
 0x102   : > { %v1579_v58 = vpop.f32.mrf.mxu0 }
 0x103   : > { %v4424_v59 = vadd.f32 %v1577_v22, %v1357_v51  ;;  %v3882_v22 = vld [vmem:[%s5311_s1 + $0x188] sm:$0xff] }
 0x104   : > { %2164 = vmatpush.bf16.msra.mxu2 %v3882_v22 }
 0x106   : > { %v984_v13 = vpop.f32.mrf.mxu2 }
 0x107   : > { %v1060_v21 = vadd.f32 %v984_v13, %v763_v33  ;;  %v1282_v52 = vpop.f32.mrf.mxu3  ;;  %v3468_v13 = vld [vmem:[%s4009_s8 + $0x120] sm:$0xff] }
 0x108   : > { %v690_v24 = vpop.f32.mrf.mxu1 }
 0x109   : > { %v1358_v3 = vadd.f32 %v1282_v52, %v1060_v21  ;;  %v764_v62 = vadd.f32 %v690_v24, %v4322_v48  ;;  %v3890_v48 = vld [vmem:[%s5311_s1 + $0x1c8] sm:$0xff] }
 0x10a   : > { %v1582_v63 = vpop.f32.mrf.mxu0  ;;  %2461 = vmatpush.bf16.msra.mxu3 %v3890_v48  ;;  %v3469_v21 = vld [vmem:[%s4009_s8 + $0x128] sm:$0xff] }
 0x10b   : > { %729 = vmatmul.bf16.gmra.mxu1 %v4414_v39  ;;  %1026 = vmatmul.bf16.gmra.mxu2 %v4430_v9  ;;  %v4437_v37 = vadd.f32 %v1579_v58, %v1358_v3  ;;  %v3874_v58 = vld [vmem:[%s5311_s1 + $0x148] sm:$0xff] }
 0x10c   : > { %1324 = vmatmul.bf16.gmra.mxu3 %v4177_v27  ;;  %1866 = vmatpush.bf16.msra.mxu1 %v3874_v58  ;;  %v3532_v3 = vld [vmem:[%s4009_s8 + $0x121] sm:$0xff] }
 0x10d   : > { %5327 = vst [vmem:[#allocation9_spill] sm:$0xff] %v4437_v37  ;;  %1621 = vmatmul.bf16.gmra.mxu0 %v4432_v61 }
 0x10e   : > { %v987_v24 = vpop.f32.mrf.mxu2 }
 0x10f   : > { %v1061_v52 = vadd.f32 %v987_v24, %v764_v62  ;;  %v1285_v27 = vpop.f32.mrf.mxu3  ;;  %v3533_v62 = vld [vmem:[%s4009_s8 + $0x129] sm:$0xff]  ;;  %v4462_v24 = vpack.c.bf16 %v847_v47, %v846_v17 }
 0x110   : > { %v692_v23 = vpop.f32.mrf.mxu1 }
 0x111   : > { %v1359_v19 = vadd.f32 %v1285_v27, %v1061_v52  ;;  %v765_v51 = vadd.f32 %v692_v23, %v4340_v26  ;;  %5329 = vst [vmem:[#allocation11_spill] sm:$0xff] %v4462_v24  ;;  %v4464_v27 = vpack.c.bf16 %v3469_v21, %v3468_v13  ;;  %v4466_v23 = vpack.c.bf16 %v3533_v62, %v3532_v3 }
 0x112   : > { %v1584_v33 = vpop.f32.mrf.mxu0 }
 0x113   : > { %v4454_v60 = vadd.f32 %v1582_v63, %v1359_v19  ;;  %5330 = vst [vmem:[#allocation12_spill] sm:$0xff] %v4464_v27 }
 0x115   : > { %5328 = vst [vmem:[#allocation10_spill] sm:$0xff] %v4454_v60 }
 0x116   : > { %v989_v26 = vpop.f32.mrf.mxu2 }
 0x117   : > { %v1062_v22 = vadd.f32 %v989_v26, %v765_v51  ;;  %v1287_v48 = vpop.f32.mrf.mxu3  ;;  %v848_v26 = vld [vmem:[%s4009_s8 + $0x122] sm:$0xff] }
 0x118   : > { %v695_v52 = vpop.f32.mrf.mxu1 }
 0x119   : > { %v1360_v58 = vadd.f32 %v1287_v48, %v1062_v22  ;;  %v766_v63 = vadd.f32 %v695_v52, %v4362_v11  ;;  %v849_v22 = vld [vmem:[%s4009_s8 + $0x12a] sm:$0xff]  ;;  %v3470_v48 = vld [vmem:[%s4009_s8 + $0x138] sm:$0xff] }
 0x11a   : > { %v1587_v19 = vpop.f32.mrf.mxu0  ;;  %v3534_v52 = vld [vmem:[%s4009_s8 + $0x139] sm:$0xff]  ;;  %v4484_v37 = vpack.c.bf16 %v849_v22, %v848_v26 }
 0x11b   : > { %734 = vmatmul.bf16.gmra.mxu1 %v4432_v61  ;;  %1031 = vmatmul.bf16.gmra.mxu2 %v4462_v24  ;;  %v4471_v51 = vadd.f32 %v1584_v33, %v1360_v58  ;;  %v3471_v33 = vld [vmem:[%s4009_s8 + $0x140] sm:$0xff] }
 0x11c   : > { %1329 = vmatmul.bf16.gmra.mxu3 %v4464_v27  ;;  %v3535_v58 = vld [vmem:[%s4009_s8 + $0x141] sm:$0xff] }
 0x11d   : > { %5331 = vst [vmem:[#allocation13_spill] sm:$0xff] %v4471_v51  ;;  %1626 = vmatmul.bf16.gmra.mxu0 %v4466_v23  ;;  %v4486_v24 = vpack.c.bf16 %v3535_v58, %v3534_v52  ;;  %v3873_v22 = vld [vmem:[%s5311_s1 + $0x140] sm:$0xff]  ;;  %v3472_v58 = vld [vmem:[%s4009_s8 + $0x150] sm:$0xff] }
 0x11e   : > { %v992_v12 = vpop.f32.mrf.mxu2  ;;  %1867 = vmatpush.bf16.msra.mxu1 %v3873_v22  ;;  %v851_v52 = vld [vmem:[%s4009_s8 + $0x142] sm:$0xff] }
 0x11f   : > { %v1063_v17 = vadd.f32 %v992_v12, %v766_v63  ;;  %v1290_v47 = vpop.f32.mrf.mxu3  ;;  %v1166_v12 = vpack.c.bf16 %v3471_v33, %v3470_v48  ;;  %v850_v33 = vld [vmem:[%s4009_s8 + $0x13a] sm:$0xff] }
 0x120   : > { %v697_v11 = vpop.f32.mrf.mxu1 }
 0x121   : > { %v1361_v13 = vadd.f32 %v1290_v47, %v1063_v17  ;;  %v767_v21 = vadd.f32 %v697_v11, %v4374_v20  ;;  %v3889_v47 = vld [vmem:[%s5311_s1 + $0x1c0] sm:$0xff] }
 0x122   : > { %v1589_v3 = vpop.f32.mrf.mxu0  ;;  %2462 = vmatpush.bf16.msra.mxu3 %v3889_v47 }
 0x123   : > { %v4476_v62 = vadd.f32 %v1587_v19, %v1361_v13 }
 0x126   : > { %v994_v51 = vpop.f32.mrf.mxu2 }
 0x127   : > { %v1064_v27 = vadd.f32 %v994_v51, %v767_v21  ;;  %v1292_v60 = vpop.f32.mrf.mxu3  ;;  %v3881_v51 = vld [vmem:[%s5311_s1 + $0x180] sm:$0xff] }
 0x128   : > { %v700_v63 = vpop.f32.mrf.mxu1  ;;  %2165 = vmatpush.bf16.msra.mxu2 %v3881_v51  ;;  %v3537_v51 = vld [vmem:[%s4009_s8 + $0x159] sm:$0xff] }
 0x129   : > { %v1362_v17 = vadd.f32 %v1292_v60, %v1064_v27  ;;  %v768_v60 = vadd.f32 %v700_v63, %v4254_v10  ;;  %v3897_v10 = vld [vmem:[%s5311_s1 + $0x200] sm:$0xff] }
 0x12a   : > { %v1592_v20 = vpop.f32.mrf.mxu0  ;;  %2759 = vmatpush.bf16.msra.mxu0 %v3897_v10 }
 0x12b   : > { %739 = vmatmul.bf16.gmra.mxu1 %v4466_v23  ;;  %1036 = vmatmul.bf16.gmra.mxu2 %v4484_v37  ;;  %v4490_v19 = vadd.f32 %v1589_v3, %v1362_v17  ;;  %v3536_v17 = vld [vmem:[%s4009_s8 + $0x151] sm:$0xff] }
 0x12c   : > { %1334 = vmatmul.bf16.gmra.mxu3 %v1166_v12  ;;  %v3473_v12 = vld [vmem:[%s4009_s8 + $0x158] sm:$0xff]  ;;  %v4519_v22 = vpack.c.bf16 %v3537_v51, %v3536_v17 }
 0x12d   : > { %5332 = vst [vmem:[#allocation14_spill] sm:$0xff] %v4490_v19  ;;  %1631 = vmatmul.bf16.gmra.mxu0 %v4486_v24  ;;  %v4517_v19 = vpack.c.bf16 %v3473_v12, %v3472_v58  ;;  %v852_v51 = vld [vmem:[%s4009_s8 + $0x152] sm:$0xff] }
 0x12e   : > { %v997_v27 = vpop.f32.mrf.mxu2 }
 0x12f   : > { %v1065_v11 = vadd.f32 %v997_v27, %v768_v60  ;;  %v1295_v13 = vpop.f32.mrf.mxu3  ;;  %5334 = vst [vmem:[#allocation16_spill] sm:$0xff] %v4517_v19 }
 0x130   : > { %v702_v21 = vpop.f32.mrf.mxu1 }
 0x131   : > { %v1363_v3 = vadd.f32 %v1295_v13, %v1065_v11  ;;  %v769_v63 = vadd.f32 %v702_v21, %v4274_v16  ;;  %v4515_v11 = vpack.c.bf16 %v851_v52, %v850_v33 }
 0x132   : > { %v1594_v26 = vpop.f32.mrf.mxu0 }
 0x133   : > { %v4506_v48 = vadd.f32 %v1592_v20, %v1363_v3 }
 0x135   : > { %5333 = vst [vmem:[#allocation15_spill] sm:$0xff] %v4506_v48 }
 0x136   : > { %v999_v47 = vpop.f32.mrf.mxu2 }
 0x137   : > { %v1066_v60 = vadd.f32 %v999_v47, %v769_v63  ;;  %v1297_v27 = vpop.f32.mrf.mxu3  ;;  %v853_v47 = vld [vmem:[%s4009_s8 + $0x15a] sm:$0xff] }
 0x138   : > { %v705_v13 = vpop.f32.mrf.mxu1  ;;  %v4535_v48 = vpack.c.bf16 %v853_v47, %v852_v51  ;;  %v854_v47 = vld [vmem:[%s4009_s8 + $0x16a] sm:$0xff] }
 0x139   : > { %v1364_v20 = vadd.f32 %v1297_v27, %v1066_v60  ;;  %v770_v21 = vadd.f32 %v705_v13, %v4291_v31  ;;  %v3539_v27 = vld [vmem:[%s4009_s8 + $0x171] sm:$0xff] }
 0x13a   : > { %v1597_v3 = vpop.f32.mrf.mxu0 }
 0x13b   : > { %744 = vmatmul.bf16.gmra.mxu1 %v4486_v24  ;;  %1041 = vmatmul.bf16.gmra.mxu2 %v4515_v11  ;;  %v4523_v16 = vadd.f32 %v1594_v26, %v1364_v20  ;;  %v3538_v26 = vld [vmem:[%s4009_s8 + $0x169] sm:$0xff] }
 0x13c   : > { %1339 = vmatmul.bf16.gmra.mxu3 %v4517_v19  ;;  %v1465_v13 = vpack.c.bf16 %v3539_v27, %v3538_v26  ;;  %v3476_v26 = vld [vmem:[%s4009_s8 + $0x180] sm:$0xff]  ;;  %v3477_v27 = vld [vmem:[%s4009_s8 + $0x188] sm:$0xff] }
 0x13d   : > { %5335 = vst [vmem:[#allocation17_spill] sm:$0xff] %v4523_v16  ;;  %1636 = vmatmul.bf16.gmra.mxu0 %v4519_v22 }
 0x13e   : > { %v1002_v10 = vpop.f32.mrf.mxu2 }
 0x13f   : > { %v1067_v33 = vadd.f32 %v1002_v10, %v770_v21  ;;  %v1300_v52 = vpop.f32.mrf.mxu3 }
 0x140   : > { %v707_v58 = vpop.f32.mrf.mxu1 }
 0x141   : > { %v1365_v63 = vadd.f32 %v1300_v52, %v1067_v33  ;;  %v771_v60 = vadd.f32 %v707_v58, %v4304_v36 }
 0x142   : > { %v1599_v12 = vpop.f32.mrf.mxu0 }
 0x143   : > { %v4528_v17 = vadd.f32 %v1597_v3, %v1365_v63 }
 0x145   : > { %5336 = vst [vmem:[#allocation18_spill] sm:$0xff] %v4528_v17 }
 0x146   : > { %v1004_v20 = vpop.f32.mrf.mxu2 }
 0x147   : > { %v1068_v16 = vadd.f32 %v1004_v20, %v771_v60  ;;  %v1302_v19 = vpop.f32.mrf.mxu3  ;;  %v855_v60 = vld [vmem:[%s4009_s8 + $0x172] sm:$0xff]  ;;  %v3540_v20 = vld [vmem:[%s4009_s8 + $0x181] sm:$0xff] }
 0x148   : > { %v710_v31 = vpop.f32.mrf.mxu1 }
 0x149   : > { %v1366_v21 = vadd.f32 %v1302_v19, %v1068_v16  ;;  %v772_v3 = vadd.f32 %v710_v31, %v4318_v8  ;;  %v4552_v8 = vpack.c.bf16 %v855_v60, %v854_v47 }
 0x14a   : > { %v1602_v10 = vpop.f32.mrf.mxu0 }
 0x14b   : > { %749 = vmatmul.bf16.gmra.mxu1 %v4519_v22  ;;  %1046 = vmatmul.bf16.gmra.mxu2 %v4535_v48  ;;  %v4539_v36 = vadd.f32 %v1599_v12, %v1366_v21 }
 0x14c   : > { %1344 = vmatmul.bf16.gmra.mxu3 %v4179_v28  ;;  %v3541_v28 = vld [vmem:[%s4009_s8 + $0x189] sm:$0xff] }
 0x14d   : > { %5337 = vst [vmem:[#allocation19_spill] sm:$0xff] %v4539_v36  ;;  %1641 = vmatmul.bf16.gmra.mxu0 %v1465_v13 }
 0x14e   : > { %v1007_v33 = vpop.f32.mrf.mxu2 }
 0x14f   : > { %v1069_v52 = vadd.f32 %v1007_v33, %v772_v3  ;;  %v1305_v19 = vpop.f32.mrf.mxu3  ;;  %v1169_v3 = vpack.c.bf16 %v3477_v27, %v3476_v26  ;;  %v1466_v33 = vpack.c.bf16 %v3541_v28, %v3540_v20 }
 0x150   : > { %v712_v16 = vpop.f32.mrf.mxu1 }
 0x151   : > { %v1367_v58 = vadd.f32 %v1305_v19, %v1069_v52  ;;  %v773_v12 = vadd.f32 %v712_v16, %v4338_v57 }
 0x152   : > { %v1604_v63 = vpop.f32.mrf.mxu0 }
 0x153   : > { %v4543_v51 = vadd.f32 %v1602_v10, %v1367_v58 }
 0x156   : > { %v1009_v21 = vpop.f32.mrf.mxu2 }
 0x157   : > { %v1070_v36 = vadd.f32 %v1009_v21, %v773_v12  ;;  %v1307_v17 = vpop.f32.mrf.mxu3 }
 0x158   : > { %v715_v31 = vpop.f32.mrf.mxu1 }
 0x159   : > { %v1368_v52 = vadd.f32 %v1307_v17, %v1070_v36  ;;  %v774_v57 = vadd.f32 %v715_v31, %v4358_v5  ;;  %v3638_v17 = vld [vmem:[%s4009_s8 + $0x30] sm:$0xff]  ;;  %v3639_v36 = vld [vmem:[%s4009_s8 + $0x38] sm:$0xff] }
 0x15a   : > { %v1607_v10 = vpop.f32.mrf.mxu0  ;;  %v2046_v21 = vpack.c.bf16 %v3639_v36, %v3638_v17  ;;  %v3641_v17 = vld [vmem:[%s4009_s8 + $0x50] sm:$0xff] }
 0x15b   : > { %754 = vmatmul.bf16.gmra.mxu1 %v1465_v13  ;;  %1051 = vmatmul.bf16.gmra.mxu2 %v4552_v8  ;;  %v4555_v19 = vadd.f32 %v1604_v63, %v1368_v52 }
 0x15c   : > { %1349 = vmatmul.bf16.gmra.mxu3 %v1169_v3 }
 0x15d   : > { %1646 = vmatmul.bf16.gmra.mxu0 %v1466_v33 }
 0x15e   : > { %v1012_v16 = vpop.f32.mrf.mxu2 }
 0x15f   : > { %v1071_v58 = vadd.f32 %v1012_v16, %v774_v57  ;;  %v1310_v47 = vpop.f32.mrf.mxu3 }
 0x160   : > { %v717_v60 = vpop.f32.mrf.mxu1 }
 0x161   : > { %v1369_v12 = vadd.f32 %v1310_v47, %v1071_v58  ;;  %v775_v13 = vadd.f32 %v717_v60, %v4372_v46 }
 0x162   : > { %v1609_v26 = vpop.f32.mrf.mxu0 }
 0x163   : > { %v4558_v27 = vadd.f32 %v1607_v10, %v1369_v12  ;;  %v3640_v12 = vld [vmem:[%s4009_s8 + $0x48] sm:$0xff] }
 0x166   : > { %v1014_v20 = vpop.f32.mrf.mxu2 }
 0x167   : > { %v1072_v28 = vadd.f32 %v1014_v20, %v775_v13  ;;  %v1312_v63 = vpop.f32.mrf.mxu3 }
 0x168   : > { %v720_v3 = vpop.f32.mrf.mxu1 }
 0x169   : > { %v1370_v33 = vadd.f32 %v1312_v63, %v1072_v28  ;;  %v776_v46 = vadd.f32 %v720_v3, %v4267_v14 }
 0x16a   : > { %v1612_v5 = vpop.f32.mrf.mxu0 }
 0x16b   : > { %1868 = vmatmul.bf16.vlgmr.msra.gmra.mxu1 %v4207_v49  ;;  %2166 = vmatmul.bf16.vlgmr.msra.gmra.mxu2 %v2046_v21  ;;  %v4564_v31 = vadd.f32 %v1609_v26, %v1370_v33 }
 0x16c   : > { %2463 = vmatmul.bf16.vlgmr.msra.gmra.mxu3 %v4209_v50  ;;  %v2047_v50 = vpack.c.bf16 %v3641_v17, %v3640_v12 }
 0x16d   : > { %2760 = vmatmul.bf16.vlgmr.msra.gmra.mxu0 %v4217_v55 }
 0x16e   : > { %v1017_v52 = vpop.f32.mrf.mxu2 }
 0x16f   : > { %v1073_v10 = vadd.f32 %v1017_v52, %v776_v46  ;;  %v1315_v57 = vpop.f32.mrf.mxu3 }
 0x170   : > { %v722_v16 = vpop.f32.mrf.mxu1 }
 0x171   : > { %v1371_v58 = vadd.f32 %v1315_v57, %v1073_v10  ;;  %v777_v49 = vadd.f32 %v722_v16, %v4285_v25  ;;  %v3642_v57 = vld [vmem:[%s4009_s8 + $0x60] sm:$0xff]  ;;  %v3643_v16 = vld [vmem:[%s4009_s8 + $0x68] sm:$0xff] }
 0x172   : > { %v1614_v47 = vpop.f32.mrf.mxu0 }
 0x173   : > { %v4569_v60 = vadd.f32 %v1612_v5, %v1371_v58 }
 0x176   : > { %v1019_v26 = vpop.f32.mrf.mxu2 }
 0x177   : > { %v1074_v36 = vadd.f32 %v1019_v26, %v777_v49  ;;  %v1317_v13 = vpop.f32.mrf.mxu3 }
 0x178   : > { %v725_v20 = vpop.f32.mrf.mxu1 }
 0x179   : > { %v1372_v28 = vadd.f32 %v1317_v13, %v1074_v36  ;;  %v778_v25 = vadd.f32 %v725_v20, %v4300_v34 }
 0x17a   : > { %v1617_v14 = vpop.f32.mrf.mxu0 }
 0x17b   : > { %1873 = vmatmul.bf16.gmra.mxu1 %v4217_v55  ;;  %2171 = vmatmul.bf16.gmra.mxu2 %v2047_v50  ;;  %v4575_v63 = vadd.f32 %v1614_v47, %v1372_v28 }
 0x17c   : > { %2468 = vmatmul.bf16.gmra.mxu3 %v4219_v56  ;;  %v2048_v56 = vpack.c.bf16 %v3643_v16, %v3642_v57 }
 0x17d   : > { %2765 = vmatmul.bf16.gmra.mxu0 %v4240_v1 }
 0x17e   : > { %v1022_v21 = vpop.f32.mrf.mxu2 }
 0x17f   : > { %v1075_v3 = vadd.f32 %v1022_v21, %v778_v25  ;;  %v1320_v33 = vpop.f32.mrf.mxu3  ;;  %v3580_v25 = vld [vmem:[%s4009_s8 + $0x62] sm:$0xff]  ;;  %v3581_v21 = vld [vmem:[%s4009_s8 + $0x6a] sm:$0xff] }
 0x180   : > { %v727_v5 = vpop.f32.mrf.mxu1 }
 0x181   : > { %v1373_v46 = vadd.f32 %v1320_v33, %v1075_v3  ;;  %v779_v55 = vadd.f32 %v727_v5, %v4312_v42  ;;  %v3644_v3 = vld [vmem:[%s4009_s8 + $0x78] sm:$0xff]  ;;  %v3645_v33 = vld [vmem:[%s4009_s8 + $0x80] sm:$0xff] }
 0x182   : > { %v1619_v52 = vpop.f32.mrf.mxu0  ;;  %v2049_v16 = vpack.c.bf16 %v3645_v33, %v3644_v3 }
 0x183   : > { %v4580_v10 = vadd.f32 %v1617_v14, %v1373_v46  ;;  %v3709_v46 = vld [vmem:[%s4009_s8 + $0x81] sm:$0xff] }
 0x186   : > { %v1024_v58 = vpop.f32.mrf.mxu2 }
 0x187   : > { %v1076_v47 = vadd.f32 %v1024_v58, %v779_v55  ;;  %v1322_v12 = vpop.f32.mrf.mxu3 }
 0x188   : > { %v730_v17 = vpop.f32.mrf.mxu1 }
 0x189   : > { %v1374_v49 = vadd.f32 %v1322_v12, %v1076_v47  ;;  %v780_v42 = vadd.f32 %v730_v17, %v4334_v53  ;;  %v1751_v53 = vpack.c.bf16 %v3581_v21, %v3580_v25 }
 0x18a   : > { %v1622_v34 = vpop.f32.mrf.mxu0 }
 0x18b   : > { %1878 = vmatmul.bf16.gmra.mxu1 %v4240_v1  ;;  %2176 = vmatmul.bf16.gmra.mxu2 %v2048_v56  ;;  %v4586_v26 = vadd.f32 %v1619_v52, %v1374_v49 }
 0x18c   : > { %2473 = vmatmul.bf16.gmra.mxu3 %v4242_v2  ;;  %v3708_v2 = vld [vmem:[%s4009_s8 + $0x79] sm:$0xff] }
 0x18d   : > { %2770 = vmatmul.bf16.gmra.mxu0 %v4252_v7  ;;  %v2346_v58 = vpack.c.bf16 %v3709_v46, %v3708_v2 }
 0x18e   : > { %v1027_v36 = vpop.f32.mrf.mxu2 }
 0x18f   : > { %v1077_v13 = vadd.f32 %v1027_v36, %v780_v42  ;;  %v1325_v50 = vpop.f32.mrf.mxu3 }
 0x190   : > { %v732_v20 = vpop.f32.mrf.mxu1 }
 0x191   : > { %v1375_v28 = vadd.f32 %v1325_v50, %v1077_v13  ;;  %v781_v5 = vadd.f32 %v732_v20, %v4352_v0  ;;  %v3646_v20 = vld [vmem:[%s4009_s8 + $0x90] sm:$0xff] }
 0x192   : > { %v1624_v14 = vpop.f32.mrf.mxu0 }
 0x193   : > { %v4592_v1 = vadd.f32 %v1622_v34, %v1375_v28  ;;  %v3647_v28 = vld [vmem:[%s4009_s8 + $0x98] sm:$0xff] }
 0x194   : > { %v2050_v33 = vpack.c.bf16 %v3647_v28, %v3646_v20 }
 0x196   : > { %v1029_v52 = vpop.f32.mrf.mxu2 }
 0x197   : > { %v1078_v7 = vadd.f32 %v1029_v52, %v781_v5  ;;  %v1327_v57 = vpop.f32.mrf.mxu3 }
 0x198   : > { %v735_v55 = vpop.f32.mrf.mxu1 }
 0x199   : > { %v1376_v47 = vadd.f32 %v1327_v57, %v1078_v7  ;;  %v782_v0 = vadd.f32 %v735_v55, %v4368_v18 }
 0x19a   : > { %v1627_v12 = vpop.f32.mrf.mxu0 }
 0x19b   : > { %1883 = vmatmul.bf16.gmra.mxu1 %v1751_v53  ;;  %2181 = vmatmul.bf16.gmra.mxu2 %v2049_v16  ;;  %v4600_v56 = vadd.f32 %v1624_v14, %v1376_v47 }
 0x19c   : > { %2478 = vmatmul.bf16.gmra.mxu3 %v2346_v58  ;;  %v3584_v58 = vld [vmem:[%s4009_s8 + $0x92] sm:$0xff] }
 0x19d   : > { %2775 = vmatmul.bf16.gmra.mxu0 %v4289_v30 }
 0x19e   : > { %v1032_v17 = vpop.f32.mrf.mxu2 }
 0x19f   : > { %v1079_v49 = vadd.f32 %v1032_v17, %v782_v0  ;;  %v1330_v34 = vpop.f32.mrf.mxu3  ;;  %v3649_v0 = vld [vmem:[%s4009_s8 + $0xb0] sm:$0xff] }
 0x1a0   : > { %v737_v42 = vpop.f32.mrf.mxu1 }
 0x1a1   : > { %v1377_v36 = vadd.f32 %v1330_v34, %v1079_v49  ;;  %v783_v25 = vadd.f32 %v737_v42, %v4380_v38 }
 0x1a2   : > { %v1629_v13 = vpop.f32.mrf.mxu0 }
 0x1a3   : > { %v4604_v50 = vadd.f32 %v1627_v12, %v1377_v36  ;;  %v3648_v12 = vld [vmem:[%s4009_s8 + $0xa8] sm:$0xff] }
 0x1a4   : > { %v2051_v42 = vpack.c.bf16 %v3649_v0, %v3648_v12 }
 0x1a6   : > { %v1034_v21 = vpop.f32.mrf.mxu2 }
 0x1a7   : > { %v1080_v14 = vadd.f32 %v1034_v21, %v783_v25  ;;  %v1332_v3 = vpop.f32.mrf.mxu3 }
 0x1a8   : > { %v740_v5 = vpop.f32.mrf.mxu1 }
 0x1a9   : > { %v1378_v2 = vadd.f32 %v1332_v3, %v1080_v14  ;;  %v784_v38 = vadd.f32 %v740_v5, %v4269_v15 }
 0x1aa   : > { %v1632_v18 = vpop.f32.mrf.mxu0 }
 0x1ab   : > { %1888 = vmatmul.bf16.gmra.mxu1 %v4289_v30  ;;  %2186 = vmatmul.bf16.gmra.mxu2 %v2050_v33  ;;  %v4610_v46 = vadd.f32 %v1629_v13, %v1378_v2  ;;  %v3585_v30 = vld [vmem:[%s4009_s8 + $0x9a] sm:$0xff] }
 0x1ac   : > { %2483 = vmatmul.bf16.gmra.mxu3 %v4293_v32  ;;  %v3650_v2 = vld [vmem:[%s4009_s8 + $0xc0] sm:$0xff] }
 0x1ad   : > { %2780 = vmatmul.bf16.gmra.mxu0 %v4316_v44  ;;  %v1753_v44 = vpack.c.bf16 %v3585_v30, %v3584_v58 }
 0x1ae   : > { %v1037_v52 = vpop.f32.mrf.mxu2 }
 0x1af   : > { %v1081_v7 = vadd.f32 %v1037_v52, %v784_v38  ;;  %v1335_v57 = vpop.f32.mrf.mxu3 }
 0x1b0   : > { %v742_v53 = vpop.f32.mrf.mxu1 }
 0x1b1   : > { %v1379_v16 = vadd.f32 %v1335_v57, %v1081_v7  ;;  %v785_v17 = vadd.f32 %v742_v53, %v4287_v29 }
 0x1b2   : > { %v1634_v55 = vpop.f32.mrf.mxu0 }
 0x1b3   : > { %v4616_v47 = vadd.f32 %v1632_v18, %v1379_v16  ;;  %v3651_v18 = vld [vmem:[%s4009_s8 + $0xc8] sm:$0xff] }
 0x1b6   : > { %v1039_v49 = vpop.f32.mrf.mxu2 }
 0x1b7   : > { %v1082_v32 = vadd.f32 %v1039_v49, %v785_v17  ;;  %v1337_v34 = vpop.f32.mrf.mxu3 }
 0x1b8   : > { %v745_v15 = vpop.f32.mrf.mxu1 }
 0x1b9   : > { %v1380_v36 = vadd.f32 %v1337_v34, %v1082_v32  ;;  %v786_v29 = vadd.f32 %v745_v15, %v4302_v35  ;;  %v3652_v34 = vld [vmem:[%s4009_s8 + $0xd8] sm:$0xff] }
 0x1ba   : > { %v1637_v13 = vpop.f32.mrf.mxu0 }
 0x1bb   : > { %1893 = vmatmul.bf16.gmra.mxu1 %v1753_v44  ;;  %2191 = vmatmul.bf16.gmra.mxu2 %v2051_v42  ;;  %v4622_v20 = vadd.f32 %v1634_v55, %v1380_v36  ;;  %v3653_v44 = vld [vmem:[%s4009_s8 + $0xe0] sm:$0xff] }
 0x1bc   : > { %2488 = vmatmul.bf16.gmra.mxu3 %v4320_v45  ;;  %v2052_v45 = vpack.c.bf16 %v3651_v18, %v3650_v2 }
 0x1bd   : > { %2785 = vmatmul.bf16.gmra.mxu0 %v4356_v4 }
 0x1be   : > { %v1042_v28 = vpop.f32.mrf.mxu2 }
 0x1bf   : > { %v1083_v25 = vadd.f32 %v1042_v28, %v786_v29  ;;  %v1340_v21 = vpop.f32.mrf.mxu3 }
 0x1c0   : > { %v747_v14 = vpop.f32.mrf.mxu1 }
 0x1c1   : > { %v1381_v3 = vadd.f32 %v1340_v21, %v1083_v25  ;;  %v787_v38 = vadd.f32 %v747_v14, %v4314_v43  ;;  %v5339_v21 = vld [vmem:[#allocation7_spill] sm:$0xff]  ;;  %v5340_v14 = vld [vmem:[#allocation4_spill] sm:$0xff] }
 0x1c2   : > { %v1639_v33 = vpop.f32.mrf.mxu0 }
 0x1c3   : > { %v4627_v5 = vadd.f32 %v1637_v13, %v1381_v3 }
 0x1c6   : > { %v1044_v52 = vpop.f32.mrf.mxu2 }
 0x1c7   : > { %v1084_v7 = vadd.f32 %v1044_v52, %v787_v38  ;;  %v1342_v57 = vpop.f32.mrf.mxu3 }
 0x1c8   : > { %v750_v53 = vpop.f32.mrf.mxu1 }
 0x1c9   : > { %v1382_v16 = vadd.f32 %v1342_v57, %v1084_v7  ;;  %v788_v43 = vadd.f32 %v750_v53, %v4336_v54  ;;  %v3655_v53 = vld [vmem:[%s4009_s8 + $0xf8] sm:$0xff] }
 0x1ca   : > { %v1642_v35 = vpop.f32.mrf.mxu0 }
 0x1cb   : > { %1898 = vmatmul.bf16.gmra.mxu1 %v4356_v4  ;;  %2196 = vmatmul.bf16.gmra.mxu2 %v2052_v45  ;;  %v4633_v55 = vadd.f32 %v1639_v33, %v1382_v16  ;;  %v5338_v4 = vld [vmem:[#allocation3_spill] sm:$0xff]  ;;  %v3654_v45 = vld [vmem:[%s4009_s8 + $0xf0] sm:$0xff] }
 0x1cc   : > { %2493 = vmatmul.bf16.gmra.mxu3 %v4360_v6  ;;  %v2053_v6 = vpack.c.bf16 %v3653_v44, %v3652_v34 }
 0x1cd   : > { %2790 = vmatmul.bf16.gmra.mxu0 %v4384_v40 }
 0x1ce   : > { %v1047_v58 = vpop.f32.mrf.mxu2 }
 0x1cf   : > { %v1085_v30 = vadd.f32 %v1047_v58, %v788_v43  ;;  %v1345_v12 = vpop.f32.mrf.mxu3 }
 0x1d0   : > { %v752_v0 = vpop.f32.mrf.mxu1 }
 0x1d1   : > { %v1383_v17 = vadd.f32 %v1345_v12, %v1085_v30  ;;  %v789_v42 = vadd.f32 %v752_v0, %v5338_v4  ;;  %v5342_v0 = vld [vmem:[#allocation6_spill] sm:$0xff] }
 0x1d2   : > { %v1644_v49 = vpop.f32.mrf.mxu0 }
 0x1d3   : > { %v4638_v32 = vadd.f32 %v1642_v35, %v1383_v17 }
 0x1d6   : > { %v1049_v15 = vpop.f32.mrf.mxu2 }
 0x1d7   : > { %v1086_v36 = vadd.f32 %v1049_v15, %v789_v42  ;;  %v1347_v13 = vpop.f32.mrf.mxu3 }
 0x1d8   : > { %v755_v29 = vpop.f32.mrf.mxu1 }
 0x1d9   : > { %v1384_v28 = vadd.f32 %v1347_v13, %v1086_v36  ;;  %v790_v3 = vadd.f32 %v755_v29, %v5340_v14  ;;  %v5343_v13 = vld [vmem:[#allocation8_spill] sm:$0xff]  ;;  %v3657_v14 = vld [vmem:[%s4009_s8 + $0x110] sm:$0xff] }
 0x1da   : > { %v1647_v54 = vpop.f32.mrf.mxu0 }
 0x1db   : > { %1903 = vmatmul.bf16.gmra.mxu1 %v4384_v40  ;;  %2201 = vmatmul.bf16.gmra.mxu2 %v2053_v6  ;;  %v4644_v25 = vadd.f32 %v1644_v49, %v1384_v28  ;;  %v5341_v40 = vld [vmem:[#allocation5_spill] sm:$0xff] }
 0x1dc   : > { %2498 = vmatmul.bf16.gmra.mxu3 %v4386_v41  ;;  %v2054_v41 = vpack.c.bf16 %v3655_v53, %v3654_v45  ;;  %v5344_v45 = vld [vmem:[#allocation11_spill] sm:$0xff] }
 0x1dd   : > { %2795 = vmatmul.bf16.gmra.mxu0 %v5339_v21 }
 0x1de   : > { %v1052_v33 = vpop.f32.mrf.mxu2 }
 0x1df   : > { %v1087_v2 = vadd.f32 %v1052_v33, %v790_v3  ;;  %v1350_v18 = vpop.f32.mrf.mxu3 }
 0x1e0   : > { %v757_v38 = vpop.f32.mrf.mxu1 }
 0x1e1   : > { %v1385_v52 = vadd.f32 %v1350_v18, %v1087_v2  ;;  %v791_v16 = vadd.f32 %v757_v38, %v5341_v40 }
 0x1e2   : > { %v1649_v7 = vpop.f32.mrf.mxu0 }
 0x1e3   : > { %v4649_v57 = vadd.f32 %v1647_v54, %v1385_v52  ;;  %v3656_v54 = vld [vmem:[%s4009_s8 + $0x108] sm:$0xff] }
 0x1e4   : > { %v2055_v2 = vpack.c.bf16 %v3657_v14, %v3656_v54  ;;  %v5348_v14 = vld [vmem:[#allocation13_spill] sm:$0xff] }
 0x1e6   : > { %v1054_v35 = vpop.f32.mrf.mxu2 }
 0x1e7   : > { %v1088_v43 = vadd.f32 %v1054_v35, %v791_v16  ;;  %v1352_v58 = vpop.f32.mrf.mxu3 }
 0x1e8   : > { %v1869_v30 = vpop.f32.mrf.mxu1 }
 0x1e9   : > { %v1386_v12 = vadd.f32 %v1352_v58, %v1088_v43  ;;  %v1949_v17 = vadd.f32 %v1869_v30, %v5342_v0  ;;  %v5345_v58 = vld [vmem:[#allocation9_spill] sm:$0xff] }
 0x1ea   : > { %v2761_v49 = vpop.f32.mrf.mxu0 }
 0x1eb   : > { %1908 = vmatmul.bf16.gmra.mxu1 %v5339_v21  ;;  %2206 = vmatmul.bf16.gmra.mxu2 %v2054_v41  ;;  %v4656_v34 = vadd.f32 %v1649_v7, %v1386_v12 }
 0x1ec   : > { %2503 = vmatmul.bf16.gmra.mxu3 %v4414_v39 }
 0x1ed   : > { %2800 = vmatmul.bf16.gmra.mxu0 %v4430_v9 }
 0x1ee   : > { %v2167_v44 = vpop.f32.mrf.mxu2 }
 0x1ef   : > { %v2247_v4 = vadd.f32 %v2167_v44, %v1949_v17  ;;  %v2464_v42 = vpop.f32.mrf.mxu3  ;;  %v5346_v44 = vld [vmem:[#allocation10_spill] sm:$0xff] }
 0x1f0   : > { %v1871_v15 = vpop.f32.mrf.mxu1 }
 0x1f1   : > { %v2544_v36 = vadd.f32 %v2464_v42, %v2247_v4  ;;  %v1950_v6 = vadd.f32 %v1871_v15, %v5343_v13  ;;  %v5347_v15 = vld [vmem:[#allocation12_spill] sm:$0xff] }
 0x1f2   : > { %v2763_v29 = vpop.f32.mrf.mxu0 }
 0x1f3   : > { %v4661_v28 = vadd.f32 %v2761_v49, %v2544_v36 }
 0x1f6   : > { %v2169_v21 = vpop.f32.mrf.mxu2 }
 0x1f7   : > { %v2248_v3 = vadd.f32 %v2169_v21, %v1950_v6  ;;  %v2466_v33 = vpop.f32.mrf.mxu3 }
 0x1f8   : > { %v1874_v18 = vpop.f32.mrf.mxu1 }
 0x1f9   : > { %v2545_v39 = vadd.f32 %v2466_v33, %v2248_v3  ;;  %v1951_v38 = vadd.f32 %v1874_v18, %v4424_v59  ;;  %v3597_v18 = vld [vmem:[%s4009_s8 + $0x12a] sm:$0xff] }
 0x1fa   : > { %v2766_v52 = vpop.f32.mrf.mxu0 }
 0x1fb   : > { %v4666_v7 = vadd.f32 %v2763_v29, %v2545_v39  ;;  %1913 = vmatmul.bf16.gmra.mxu1 %v4430_v9  ;;  %2211 = vmatmul.bf16.gmra.mxu2 %v2055_v2  ;;  %v3596_v2 = vld [vmem:[%s4009_s8 + $0x122] sm:$0xff]  ;;  %v3660_v39 = vld [vmem:[%s4009_s8 + $0x138] sm:$0xff] }
 0x1fc   : > { %2508 = vmatmul.bf16.gmra.mxu3 %v4432_v61 }
 0x1fd   : > { %2805 = vmatmul.bf16.gmra.mxu0 %v5344_v45 }
 0x1fe   : > { %v2172_v53 = vpop.f32.mrf.mxu2 }
 0x1ff   : > { %v2249_v40 = vadd.f32 %v2172_v53, %v1951_v38  ;;  %v2469_v16 = vpop.f32.mrf.mxu3  ;;  %v3661_v38 = vld [vmem:[%s4009_s8 + $0x140] sm:$0xff] }
 0x200   : > { %v1876_v35 = vpop.f32.mrf.mxu1 }
 0x201   : > { %v2546_v43 = vadd.f32 %v2469_v16, %v2249_v40  ;;  %v1952_v41 = vadd.f32 %v1876_v35, %v5345_v58  ;;  %v2057_v40 = vpack.c.bf16 %v3661_v38, %v3660_v39  ;;  %v5352_v38 = vld [vmem:[#allocation17_spill] sm:$0xff] }
 0x202   : > { %v2768_v30 = vpop.f32.mrf.mxu0 }
 0x203   : > { %v4672_v12 = vadd.f32 %v2766_v52, %v2546_v43 }
 0x206   : > { %v2174_v59 = vpop.f32.mrf.mxu2 }
 0x207   : > { %v2250_v0 = vadd.f32 %v2174_v59, %v1952_v41  ;;  %v2471_v17 = vpop.f32.mrf.mxu3 }
 0x208   : > { %v1879_v49 = vpop.f32.mrf.mxu1 }
 0x209   : > { %v2547_v9 = vadd.f32 %v2471_v17, %v2250_v0  ;;  %v1953_v61 = vadd.f32 %v1879_v49, %v5346_v44  ;;  %v5349_v49 = vld [vmem:[#allocation14_spill] sm:$0xff] }
 0x20a   : > { %v2771_v4 = vpop.f32.mrf.mxu0 }
 0x20b   : > { %v4675_v42 = vadd.f32 %v2768_v30, %v2547_v9  ;;  %1918 = vmatmul.bf16.gmra.mxu1 %v5344_v45  ;;  %2216 = vmatmul.bf16.gmra.mxu2 %v5347_v15 }
 0x20c   : > { %2513 = vmatmul.bf16.gmra.mxu3 %v4466_v23  ;;  %v1759_v23 = vpack.c.bf16 %v3597_v18, %v3596_v2 }
 0x20d   : > { %2810 = vmatmul.bf16.gmra.mxu0 %v4484_v37 }
 0x20e   : > { %v2177_v36 = vpop.f32.mrf.mxu2 }
 0x20f   : > { %v2251_v13 = vadd.f32 %v2177_v36, %v1953_v61  ;;  %v2474_v6 = vpop.f32.mrf.mxu3 }
 0x210   : > { %v1881_v29 = vpop.f32.mrf.mxu1 }
 0x211   : > { %v2548_v54 = vadd.f32 %v2474_v6, %v2251_v13  ;;  %v1954_v21 = vadd.f32 %v1881_v29, %v5348_v14  ;;  %v5350_v6 = vld [vmem:[#allocation15_spill] sm:$0xff]  ;;  %v5351_v14 = vld [vmem:[#allocation16_spill] sm:$0xff] }
 0x212   : > { %v2773_v3 = vpop.f32.mrf.mxu0 }
 0x213   : > { %v4682_v33 = vadd.f32 %v2771_v4, %v2548_v54 }
 0x216   : > { %v2179_v52 = vpop.f32.mrf.mxu2 }
 0x217   : > { %v2252_v45 = vadd.f32 %v2179_v52, %v1954_v21  ;;  %v2476_v53 = vpop.f32.mrf.mxu3 }
 0x218   : > { %v1884_v37 = vpop.f32.mrf.mxu1 }
 0x219   : > { %v2549_v16 = vadd.f32 %v2476_v53, %v2252_v45  ;;  %v1955_v35 = vadd.f32 %v1884_v37, %v4476_v62  ;;  %v3665_v37 = vld [vmem:[%s4009_s8 + $0x170] sm:$0xff] }
 0x21a   : > { %v2776_v43 = vpop.f32.mrf.mxu0 }
 0x21b   : > { %v4689_v58 = vadd.f32 %v2773_v3, %v2549_v16  ;;  %1923 = vmatmul.bf16.gmra.mxu1 %v1759_v23  ;;  %2221 = vmatmul.bf16.gmra.mxu2 %v2057_v40  ;;  %v3600_v23 = vld [vmem:[%s4009_s8 + $0x152] sm:$0xff]  ;;  %v3664_v40 = vld [vmem:[%s4009_s8 + $0x168] sm:$0xff] }
 0x21c   : > { %2518 = vmatmul.bf16.gmra.mxu3 %v4486_v24  ;;  %v3728_v16 = vld [vmem:[%s4009_s8 + $0x169] sm:$0xff] }
 0x21d   : > { %2815 = vmatmul.bf16.gmra.mxu0 %v4515_v11 }
 0x21e   : > { %v2182_v41 = vpop.f32.mrf.mxu2 }
 0x21f   : > { %v2253_v30 = vadd.f32 %v2182_v41, %v1955_v35  ;;  %v2479_v59 = vpop.f32.mrf.mxu3  ;;  %v3729_v35 = vld [vmem:[%s4009_s8 + $0x171] sm:$0xff] }
 0x220   : > { %v1886_v0 = vpop.f32.mrf.mxu1 }
 0x221   : > { %v2550_v17 = vadd.f32 %v2479_v59, %v2253_v30  ;;  %v1956_v9 = vadd.f32 %v1886_v0, %v5349_v49  ;;  %v2059_v30 = vpack.c.bf16 %v3665_v37, %v3664_v40  ;;  %v2356_v0 = vpack.c.bf16 %v3729_v35, %v3728_v16  ;;  %v5353_v49 = vld [vmem:[#allocation18_spill] sm:$0xff] }
 0x222   : > { %v2778_v44 = vpop.f32.mrf.mxu0 }
 0x223   : > { %v4694_v61 = vadd.f32 %v2776_v43, %v2550_v17 }
 0x226   : > { %v2184_v62 = vpop.f32.mrf.mxu2 }
 0x227   : > { %v2254_v4 = vadd.f32 %v2184_v62, %v1956_v9  ;;  %v2481_v15 = vpop.f32.mrf.mxu3 }
 0x228   : > { %v1889_v36 = vpop.f32.mrf.mxu1 }
 0x229   : > { %v2551_v13 = vadd.f32 %v2481_v15, %v2254_v4  ;;  %v1957_v24 = vadd.f32 %v1889_v36, %v5350_v6 }
 0x22a   : > { %v2781_v29 = vpop.f32.mrf.mxu0 }
 0x22b   : > { %v4697_v54 = vadd.f32 %v2778_v44, %v2551_v13  ;;  %1928 = vmatmul.bf16.gmra.mxu1 %v4515_v11  ;;  %2226 = vmatmul.bf16.gmra.mxu2 %v5351_v14  ;;  %v3601_v11 = vld [vmem:[%s4009_s8 + $0x15a] sm:$0xff] }
 0x22c   : > { %2523 = vmatmul.bf16.gmra.mxu3 %v4519_v22 }
 0x22d   : > { %2820 = vmatmul.bf16.gmra.mxu0 %v4535_v48  ;;  %v1761_v48 = vpack.c.bf16 %v3601_v11, %v3600_v23  ;;  %v3795_v23 = vld [vmem:[%s4009_s8 + $0x18a] sm:$0xff] }
 0x22e   : > { %v2187_v21 = vpop.f32.mrf.mxu2 }
 0x22f   : > { %v2255_v3 = vadd.f32 %v2187_v21, %v1957_v24  ;;  %v2484_v2 = vpop.f32.mrf.mxu3  ;;  %v5354_v24 = vld [vmem:[#allocation19_spill] sm:$0xff] }
 0x230   : > { %v1891_v18 = vpop.f32.mrf.mxu1 }
 0x231   : > { %v2552_v39 = vadd.f32 %v2484_v2, %v2255_v3  ;;  %v1958_v52 = vadd.f32 %v1891_v18, %v5352_v38  ;;  %v3602_v3 = vld [vmem:[%s4009_s8 + $0x16a] sm:$0xff]  ;;  %v3603_v2 = vld [vmem:[%s4009_s8 + $0x172] sm:$0xff]  ;;  %v3666_v18 = vld [vmem:[%s4009_s8 + $0x180] sm:$0xff] }
 0x232   : > { %v2783_v45 = vpop.f32.mrf.mxu0  ;;  %v3730_v38 = vld [vmem:[%s4009_s8 + $0x181] sm:$0xff]  ;;  %v1762_v37 = vpack.c.bf16 %v3603_v2, %v3602_v3 }
 0x233   : > { %v4704_v53 = vadd.f32 %v2781_v29, %v2552_v39  ;;  %v3667_v39 = vld [vmem:[%s4009_s8 + $0x188] sm:$0xff] }
 0x234   : > { %v2060_v16 = vpack.c.bf16 %v3667_v39, %v3666_v18 }
 0x236   : > { %v2189_v43 = vpop.f32.mrf.mxu2 }
 0x237   : > { %v2256_v22 = vadd.f32 %v2189_v43, %v1958_v52  ;;  %v2486_v41 = vpop.f32.mrf.mxu3  ;;  %v3731_v52 = vld [vmem:[%s4009_s8 + $0x189] sm:$0xff] }
 0x238   : > { %v1894_v59 = vpop.f32.mrf.mxu1  ;;  %v2357_v43 = vpack.c.bf16 %v3731_v52, %v3730_v38 }
 0x239   : > { %v2553_v17 = vadd.f32 %v2486_v41, %v2256_v22  ;;  %v1959_v9 = vadd.f32 %v1894_v59, %v5353_v49 }
 0x23a   : > { %v2786_v44 = vpop.f32.mrf.mxu0 }
 0x23b   : > { %v4713_v62 = vadd.f32 %v2783_v45, %v2553_v17  ;;  %1933 = vmatmul.bf16.gmra.mxu1 %v1761_v48  ;;  %2231 = vmatmul.bf16.gmra.mxu2 %v2059_v30  ;;  %v3794_v45 = vld [vmem:[%s4009_s8 + $0x182] sm:$0xff] }
 0x23c   : > { %2528 = vmatmul.bf16.gmra.mxu3 %v2356_v0  ;;  %v2654_v22 = vpack.c.bf16 %v3795_v23, %v3794_v45 }
 0x23d   : > { %2825 = vmatmul.bf16.gmra.mxu0 %v4552_v8 }
 0x23e   : > { %v2192_v4 = vpop.f32.mrf.mxu2 }
 0x23f   : > { %v2257_v15 = vadd.f32 %v2192_v4, %v1959_v9  ;;  %v2489_v36 = vpop.f32.mrf.mxu3 }
 0x240   : > { %v1896_v13 = vpop.f32.mrf.mxu1 }
 0x241   : > { %v2554_v6 = vadd.f32 %v2489_v36, %v2257_v15  ;;  %v1960_v29 = vadd.f32 %v1896_v13, %v5354_v24  ;;  %v3668_v36 = vld [vmem:[%s4009_s8 + $0x198] sm:$0xff]  ;;  %v3669_v13 = vld [vmem:[%s4009_s8 + $0x1a0] sm:$0xff] }
 0x242   : > { %v2788_v14 = vpop.f32.mrf.mxu0  ;;  %v3733_v24 = vld [vmem:[%s4009_s8 + $0x1a1] sm:$0xff]  ;;  %v2061_v39 = vpack.c.bf16 %v3669_v13, %v3668_v36 }
 0x243   : > { %v4717_v21 = vadd.f32 %v2786_v44, %v2554_v6  ;;  %v3732_v6 = vld [vmem:[%s4009_s8 + $0x199] sm:$0xff] }
 0x244   : > { %v2358_v52 = vpack.c.bf16 %v3733_v24, %v3732_v6 }
 0x246   : > { %v2194_v8 = vpop.f32.mrf.mxu2 }
 0x247   : > { %v2258_v11 = vadd.f32 %v2194_v8, %v1960_v29  ;;  %v2491_v40 = vpop.f32.mrf.mxu3  ;;  %v3796_v29 = vld [vmem:[%s4009_s8 + $0x19a] sm:$0xff] }
 0x248   : > { %v1899_v35 = vpop.f32.mrf.mxu1 }
 0x249   : > { %v2555_v41 = vadd.f32 %v2491_v40, %v2258_v11  ;;  %v1961_v48 = vadd.f32 %v1899_v35, %v4543_v51 }
 0x24a   : > { %v2791_v30 = vpop.f32.mrf.mxu0 }
 0x24b   : > { %v4728_v59 = vadd.f32 %v2788_v14, %v2555_v41  ;;  %1938 = vmatmul.bf16.gmra.mxu1 %v1762_v37  ;;  %2236 = vmatmul.bf16.gmra.mxu2 %v2060_v16  ;;  %v3797_v14 = vld [vmem:[%s4009_s8 + $0x1a2] sm:$0xff] }
 0x24c   : > { %2533 = vmatmul.bf16.gmra.mxu3 %v2357_v43  ;;  %v2655_v45 = vpack.c.bf16 %v3797_v14, %v3796_v29 }
 0x24d   : > { %2830 = vmatmul.bf16.gmra.mxu0 %v2654_v22 }
 0x24e   : > { %v2197_v0 = vpop.f32.mrf.mxu2 }
 0x24f   : > { %v2259_v17 = vadd.f32 %v2197_v0, %v1961_v48  ;;  %v2494_v49 = vpop.f32.mrf.mxu3 }
 0x250   : > { %v1901_v9 = vpop.f32.mrf.mxu1 }
 0x251   : > { %v2556_v44 = vadd.f32 %v2494_v49, %v2259_v17  ;;  %v1962_v4 = vadd.f32 %v1901_v9, %v4555_v19 }
 0x252   : > { %v2793_v51 = vpop.f32.mrf.mxu0 }
 0x253   : > { %v4731_v15 = vadd.f32 %v2791_v30, %v2556_v44 }
 0x256   : > { %v2199_v3 = vpop.f32.mrf.mxu2 }
 0x257   : > { %v2260_v2 = vadd.f32 %v2199_v3, %v1962_v4  ;;  %v2496_v18 = vpop.f32.mrf.mxu3 }
 0x258   : > { %v1904_v38 = vpop.f32.mrf.mxu1 }
 0x259   : > { %v2557_v23 = vadd.f32 %v2496_v18, %v2260_v2  ;;  %v1963_v8 = vadd.f32 %v1904_v38, %v4558_v27 }
 0x25a   : > { %v2796_v19 = vpop.f32.mrf.mxu0 }
 0x25b   : > { %v4740_v11 = vadd.f32 %v2793_v51, %v2557_v23  ;;  %1943 = vmatmul.bf16.gmra.mxu1 %v2654_v22  ;;  %2241 = vmatmul.bf16.gmra.mxu2 %v2061_v39 }
 0x25c   : > { %2538 = vmatmul.bf16.gmra.mxu3 %v2358_v52 }
 0x25d   : > { %2835 = vmatmul.bf16.gmra.mxu0 %v2655_v45 }
 0x25e   : > { %v2202_v40 = vpop.f32.mrf.mxu2 }
 0x25f   : > { %v2261_v37 = vadd.f32 %v2202_v40, %v1963_v8  ;;  %v2499_v16 = vpop.f32.mrf.mxu3 }
 0x260   : > { %v1906_v35 = vpop.f32.mrf.mxu1 }
 0x261   : > { %v2558_v43 = vadd.f32 %v2499_v16, %v2261_v37  ;;  %v1964_v41 = vadd.f32 %v1906_v35, %v4564_v31 }
 0x262   : > { %v2798_v48 = vpop.f32.mrf.mxu0 }
 0x263   : > { %v4743_v30 = vadd.f32 %v2796_v19, %v2558_v43 }
 0x266   : > { %v2204_v0 = vpop.f32.mrf.mxu2 }
 0x267   : > { %v2262_v17 = vadd.f32 %v2204_v0, %v1964_v41  ;;  %v2501_v27 = vpop.f32.mrf.mxu3 }
 0x268   : > { %v1909_v49 = vpop.f32.mrf.mxu1 }
 0x269   : > { %v2559_v9 = vadd.f32 %v2501_v27, %v2262_v17  ;;  %v1965_v22 = vadd.f32 %v1909_v49, %v4569_v60 }
 0x26a   : > { %v2801_v44 = vpop.f32.mrf.mxu0 }
 0x26b   : > { %v4746_v4 = vadd.f32 %v2798_v48, %v2559_v9 }
 0x26e   : > { %v2207_v51 = vpop.f32.mrf.mxu2 }
 0x26f   : > { %v2263_v36 = vadd.f32 %v2207_v51, %v1965_v22  ;;  %v2504_v13 = vpop.f32.mrf.mxu3 }
 0x270   : > { %v1911_v6 = vpop.f32.mrf.mxu1 }
 0x271   : > { %v2560_v24 = vadd.f32 %v2504_v13, %v2263_v36  ;;  %v1966_v31 = vadd.f32 %v1911_v6, %v4575_v63 }
 0x272   : > { %v2803_v29 = vpop.f32.mrf.mxu0 }
 0x273   : > { %v4749_v14 = vadd.f32 %v2801_v44, %v2560_v24 }
 0x276   : > { %v2209_v3 = vpop.f32.mrf.mxu2 }
 0x277   : > { %v2264_v2 = vadd.f32 %v2209_v3, %v1966_v31  ;;  %v2506_v18 = vpop.f32.mrf.mxu3 }
 0x278   : > { %v1914_v39 = vpop.f32.mrf.mxu1 }
 0x279   : > { %v2561_v38 = vadd.f32 %v2506_v18, %v2264_v2  ;;  %v1967_v60 = vadd.f32 %v1914_v39, %v4580_v10 }
 0x27a   : > { %v2806_v52 = vpop.f32.mrf.mxu0 }
 0x27b   : > { %v4752_v45 = vadd.f32 %v2803_v29, %v2561_v38 }
 0x27e   : > { %v2212_v23 = vpop.f32.mrf.mxu2 }
 0x27f   : > { %v2265_v8 = vadd.f32 %v2212_v23, %v1967_v60  ;;  %v2509_v19 = vpop.f32.mrf.mxu3 }
 0x280   : > { %v1916_v40 = vpop.f32.mrf.mxu1 }
 0x281   : > { %v2562_v37 = vadd.f32 %v2509_v19, %v2265_v8  ;;  %v1968_v63 = vadd.f32 %v1916_v40, %v4586_v26  ;;  %v4765_v26 = vld [vmem:[%s5312_s2] ss:$0 sm:$0xff] }
 0x282   : > { %v2808_v16 = vpop.f32.mrf.mxu0  ;;  %v4771_v6 = vadd.f32 %v4765_v26, %v4666_v7  ;;  %v4777_v24 = vadd.f32 %v4765_v26, %v4661_v28  ;;  %v4781_v31 = vadd.f32 %v4765_v26, %v4672_v12  ;;  %v4789_v2 = vadd.f32 %v4765_v26, %v4675_v42 }
 0x283   : > { %v4755_v35 = vadd.f32 %v2806_v52, %v2562_v37  ;;  %v4799_v12 = vadd.f32 %v4765_v26, %v4682_v33  ;;  %v4809_v23 = vadd.f32 %v4765_v26, %v4689_v58  ;;  %v4816_v40 = vadd.f32 %v4765_v26, %v4694_v61 }
 0x284   : > { %v3011_v3 = vmul.f32 %v4771_v6, %v4771_v6  ;;  %v3010_v28 = vmul.f32 %v4777_v24, %v4777_v24  ;;  %v3012_v39 = vmul.f32 %v4781_v31, %v4781_v31  ;;  %v2973_v60 = vadd.f32 %v4771_v6, %v4777_v24 }
 0x285   : > { %v3013_v52 = vmul.f32 %v4789_v2, %v4789_v2  ;;  %v3014_v33 = vmul.f32 %v4799_v12, %v4799_v12  ;;  %v4823_v58 = vadd.f32 %v4765_v26, %v4697_v54  ;;  %v3016_v61 = vmul.f32 %v4816_v40, %v4816_v40 }
 0x286   : > { %v2214_v43 = vpop.f32.mrf.mxu2  ;;  %v3042_v42 = vadd.f32 %v3011_v3, %v3010_v28  ;;  %v2974_v8 = vadd.f32 %v2973_v60, %v4781_v31 }
 0x287   : > { %v2266_v41 = vadd.f32 %v2214_v43, %v1968_v63  ;;  %v2511_v48 = vpop.f32.mrf.mxu3  ;;  %v3015_v43 = vmul.f32 %v4809_v23, %v4809_v23  ;;  %v3017_v54 = vmul.f32 %v4823_v58, %v4823_v58 }
 0x288   : > { %v1919_v0 = vpop.f32.mrf.mxu1  ;;  %v3043_v19 = vadd.f32 %v3042_v42, %v3012_v39  ;;  %v2975_v63 = vadd.f32 %v2974_v8, %v4789_v2 }
 0x289   : > { %v2563_v17 = vadd.f32 %v2511_v48, %v2266_v41  ;;  %v1969_v10 = vadd.f32 %v1919_v0, %v4592_v1 }
 0x28a   : > { %v2811_v27 = vpop.f32.mrf.mxu0  ;;  %v2976_v0 = vadd.f32 %v2975_v63, %v4799_v12 }
 0x28b   : > { %v4758_v49 = vadd.f32 %v2808_v16, %v2563_v17  ;;  %v3044_v16 = vadd.f32 %v3043_v19, %v3013_v52 }
 0x28d   : > { %v3045_v17 = vadd.f32 %v3044_v16, %v3014_v33 }
 0x28e   : > { %v2217_v9 = vpop.f32.mrf.mxu2 }
 0x28f   : > { %v2267_v22 = vadd.f32 %v2217_v9, %v1969_v10  ;;  %v2514_v44 = vpop.f32.mrf.mxu3  ;;  %v4832_v10 = vadd.f32 %v4765_v26, %v4704_v53  ;;  %v2977_v9 = vadd.f32 %v2976_v0, %v4809_v23  ;;  %v4848_v53 = vadd.f32 %v4765_v26, %v4717_v21 }
 0x290   : > { %v4760_v51 = vpop.f32.mrf.mxu1 }
 0x291   : > { %v2564_v36 = vadd.f32 %v2514_v44, %v2267_v22  ;;  %v3046_v22 = vadd.f32 %v3045_v17, %v3015_v43  ;;  %v4841_v44 = vadd.f32 %v4765_v26, %v4713_v62  ;;  %v3018_v28 = vmul.f32 %v4832_v10, %v4832_v10 }
 0x292   : > { %v4767_v13 = vpop.f32.mrf.mxu0  ;;  %v4855_v62 = vadd.f32 %v4765_v26, %v4728_v59  ;;  %v3020_v21 = vmul.f32 %v4848_v53, %v4848_v53  ;;  %v4864_v43 = vadd.f32 %v4765_v26, %v4731_v15  ;;  %v4878_v15 = vadd.f32 %v4765_v26, %v4743_v30 }
 0x293   : > { %v4773_v1 = vadd.f32 %v2811_v27, %v2564_v36  ;;  %v2978_v36 = vadd.f32 %v2977_v9, %v4816_v40  ;;  %v3047_v3 = vadd.f32 %v3046_v22, %v3016_v61  ;;  %v3019_v52 = vmul.f32 %v4841_v44, %v4841_v44 }
 0x294   : > { %v3021_v59 = vmul.f32 %v4855_v62, %v4855_v62  ;;  %v4871_v61 = vadd.f32 %v4765_v26, %v4740_v11 }
 0x295   : > { %v2979_v60 = vadd.f32 %v2978_v36, %v4823_v58  ;;  %v3048_v42 = vadd.f32 %v3047_v3, %v3017_v54  ;;  %v3022_v54 = vmul.f32 %v4864_v43, %v4864_v43  ;;  %v1970_v36 = vadd.f32 %v4760_v51, %v4600_v56 }
 0x296   : > { %v4783_v29 = vpop.f32.mrf.mxu2  ;;  %v3023_v11 = vmul.f32 %v4871_v61, %v4871_v61 }
 0x297   : > { %v4791_v7 = vpop.f32.mrf.mxu3  ;;  %v2980_v33 = vadd.f32 %v2979_v60, %v4832_v10  ;;  %v3049_v63 = vadd.f32 %v3048_v42, %v3018_v28 }
 0x298   : > { %v1924_v18 = vpop.f32.mrf.mxu1 }
 0x299   : > { %v2981_v0 = vadd.f32 %v2980_v33, %v4841_v44  ;;  %v3050_v17 = vadd.f32 %v3049_v63, %v3019_v52  ;;  %v4887_v52 = vadd.f32 %v4765_v26, %v4746_v4  ;;  %v2268_v33 = vadd.f32 %v4783_v29, %v1970_v36 }
 0x29a   : > { %v4801_v38 = vpop.f32.mrf.mxu0  ;;  %v1971_v30 = vadd.f32 %v1924_v18, %v4604_v50  ;;  %v4904_v18 = vadd.f32 %v4765_v26, %v4752_v45 }
 0x29b   : > { %v2982_v9 = vadd.f32 %v2981_v0, %v4848_v53  ;;  %v3051_v22 = vadd.f32 %v3050_v17, %v3020_v21  ;;  %v3024_v0 = vmul.f32 %v4878_v15, %v4878_v15  ;;  %v4896_v17 = vadd.f32 %v4765_v26, %v4749_v14 }
 0x29c   : > { %v3025_v50 = vmul.f32 %v4887_v52, %v4887_v52 }
 0x29d   : > { %v2983_v28 = vadd.f32 %v2982_v9, %v4855_v62  ;;  %v3052_v60 = vadd.f32 %v3051_v22, %v3021_v59  ;;  %v2565_v22 = vadd.f32 %v4791_v7, %v2268_v33 }
 0x29e   : > { %v2222_v37 = vpop.f32.mrf.mxu2 }
 0x29f   : > { %v4825_v41 = vpop.f32.mrf.mxu3  ;;  %v2984_v21 = vadd.f32 %v2983_v28, %v4864_v43  ;;  %v3053_v51 = vadd.f32 %v3052_v60, %v3022_v54  ;;  %v2269_v59 = vadd.f32 %v2222_v37, %v1971_v30  ;;  %v3026_v28 = vmul.f32 %v4896_v17, %v4896_v17 }
 0x2a0   : > { %v1926_v48 = vpop.f32.mrf.mxu1 }
 0x2a1   : > { %v2985_v4 = vadd.f32 %v2984_v21, %v4871_v61  ;;  %v1972_v9 = vadd.f32 %v1926_v48, %v4610_v46  ;;  %v3054_v29 = vadd.f32 %v3053_v51, %v3023_v11  ;;  %v4913_v46 = vadd.f32 %v4765_v26, %v4755_v35 }
 0x2a2   : > { %v4834_v27 = vpop.f32.mrf.mxu0  ;;  %v2566_v48 = vadd.f32 %v4825_v41, %v2269_v59  ;;  %v2862_v35 = vadd.f32 %v4767_v13, %v2565_v22 }
 0x2a3   : > { %v2986_v54 = vadd.f32 %v2985_v4, %v4878_v15  ;;  %v3055_v37 = vadd.f32 %v3054_v29, %v3024_v0 }
 0x2a4   : > { %v2863_v59 = vadd.f32 %v4801_v38, %v2566_v48 }
 0x2a5   : > { %v2987_v45 = vadd.f32 %v2986_v54, %v4887_v52 }
 0x2a6   : > { %v2224_v39 = vpop.f32.mrf.mxu2 }
 0x2a7   : > { %v2521_v8 = vpop.f32.mrf.mxu3  ;;  %v2270_v36 = vadd.f32 %v2224_v39, %v1972_v9  ;;  %v3056_v39 = vadd.f32 %v3055_v37, %v3025_v50  ;;  %v2988_v41 = vadd.f32 %v2987_v45, %v4896_v17 }
 0x2a8   : > { %v1929_v19 = vpop.f32.mrf.mxu1 }
 0x2a9   : > { %v1973_v14 = vadd.f32 %v1929_v19, %v4616_v47  ;;  %v3027_v47 = vmul.f32 %v4904_v18, %v4904_v18  ;;  %v4922_v19 = vadd.f32 %v4765_v26, %v4758_v49  ;;  %v2567_v21 = vadd.f32 %v2521_v8, %v2270_v36 }
 0x2aa   : > { %v4860_v16 = vpop.f32.mrf.mxu0  ;;  %v2989_v49 = vadd.f32 %v2988_v41, %v4904_v18  ;;  %v4937_v8 = vadd.f32 %v4765_v26, %v2862_v35 }
 0x2ab   : > { %v3029_v9 = vmul.f32 %v4922_v19, %v4922_v19  ;;  %v2864_v50 = vadd.f32 %v4834_v27, %v2567_v21 }
 0x2ac   : > { %v2990_v29 = vadd.f32 %v2989_v49, %v4913_v46  ;;  %v3031_v27 = vmul.f32 %v4937_v8, %v4937_v8 }
 0x2ae   : > { %v2227_v3 = vpop.f32.mrf.mxu2 }
 0x2af   : > { %v2524_v42 = vpop.f32.mrf.mxu3  ;;  %v2271_v11 = vadd.f32 %v2227_v3, %v1973_v14  ;;  %v3057_v3 = vadd.f32 %v3056_v39, %v3026_v28  ;;  %v2991_v14 = vadd.f32 %v2990_v29, %v4922_v19 }
 0x2b0   : > { %v1931_v63 = vpop.f32.mrf.mxu1 }
 0x2b1   : > { %v1974_v7 = vadd.f32 %v1931_v63, %v4622_v20  ;;  %v3028_v20 = vmul.f32 %v4913_v46, %v4913_v46  ;;  %v4930_v63 = vadd.f32 %v4765_v26, %v4773_v1  ;;  %v2568_v4 = vadd.f32 %v2524_v42, %v2271_v11 }
 0x2b2   : > { %v2823_v56 = vpop.f32.mrf.mxu0  ;;  %v3058_v13 = vadd.f32 %v3057_v3, %v3027_v47  ;;  %v4945_v42 = vadd.f32 %v4765_v26, %v2863_v59  ;;  %v4953_v11 = vadd.f32 %v4765_v26, %v2864_v50 }
 0x2b3   : > { %v3030_v38 = vmul.f32 %v4930_v63, %v4930_v63  ;;  %v2865_v37 = vadd.f32 %v4860_v16, %v2568_v4 }
 0x2b4   : > { %v3059_v54 = vadd.f32 %v3058_v13, %v3028_v20  ;;  %v3032_v47 = vmul.f32 %v4945_v42, %v4945_v42  ;;  %v3033_v3 = vmul.f32 %v4953_v11, %v4953_v11 }
 0x2b6   : > { %v2229_v60 = vpop.f32.mrf.mxu2 }
 0x2b7   : > { %v2526_v33 = vpop.f32.mrf.mxu3  ;;  %v2272_v51 = vadd.f32 %v2229_v60, %v1974_v7  ;;  %v3060_v60 = vadd.f32 %v3059_v54, %v3029_v9 }
 0x2b8   : > { %v1934_v30 = vpop.f32.mrf.mxu1 }
 0x2b9   : > { %v2569_v22 = vadd.f32 %v2526_v33, %v2272_v51  ;;  %v1975_v1 = vadd.f32 %v1934_v30, %v4627_v5  ;;  %v2992_v5 = vadd.f32 %v2991_v14, %v4930_v63  ;;  %v3061_v39 = vadd.f32 %v3060_v60, %v3030_v38 }
 0x2ba   : > { %v2826_v0 = vpop.f32.mrf.mxu0  ;;  %v4959_v30 = vadd.f32 %v4765_v26, %v2865_v37 }
 0x2bb   : > { %v2866_v7 = vadd.f32 %v2823_v56, %v2569_v22  ;;  %v2993_v16 = vadd.f32 %v2992_v5, %v4937_v8  ;;  %v3062_v21 = vadd.f32 %v3061_v39, %v3031_v27 }
 0x2bc   : > { %v3034_v13 = vmul.f32 %v4959_v30, %v4959_v30 }
 0x2bd   : > { %v2994_v51 = vadd.f32 %v2993_v16, %v4945_v42  ;;  %v4965_v56 = vadd.f32 %v4765_v26, %v2866_v7  ;;  %v3063_v59 = vadd.f32 %v3062_v21, %v3032_v47 }
 0x2be   : > { %v2232_v36 = vpop.f32.mrf.mxu2 }
 0x2bf   : > { %v2273_v28 = vadd.f32 %v2232_v36, %v1975_v1  ;;  %v2529_v48 = vpop.f32.mrf.mxu3  ;;  %v2995_v4 = vadd.f32 %v2994_v51, %v4953_v11  ;;  %v3064_v22 = vadd.f32 %v3063_v59, %v3033_v3  ;;  %v3035_v54 = vmul.f32 %v4965_v56, %v4965_v56 }
 0x2c0   : > { %v1936_v45 = vpop.f32.mrf.mxu1 }
 0x2c1   : > { %v2570_v33 = vadd.f32 %v2529_v48, %v2273_v28  ;;  %v1976_v20 = vadd.f32 %v1936_v45, %v4633_v55  ;;  %v2996_v1 = vadd.f32 %v2995_v4, %v4959_v30  ;;  %v3065_v38 = vadd.f32 %v3064_v22, %v3034_v13 }
 0x2c2   : > { %v2828_v35 = vpop.f32.mrf.mxu0 }
 0x2c3   : > { %v2867_v41 = vadd.f32 %v2826_v0, %v2570_v33  ;;  %v2997_v36 = vadd.f32 %v2996_v1, %v4965_v56  ;;  %v3066_v48 = vadd.f32 %v3065_v38, %v3035_v54 }
 0x2c5   : > { %v4972_v0 = vadd.f32 %v4765_v26, %v2867_v41 }
 0x2c6   : > { %v2234_v49 = vpop.f32.mrf.mxu2 }
 0x2c7   : > { %v2274_v9 = vadd.f32 %v2234_v49, %v1976_v20  ;;  %v2531_v29 = vpop.f32.mrf.mxu3  ;;  %v3036_v14 = vmul.f32 %v4972_v0, %v4972_v0  ;;  %v2998_v60 = vadd.f32 %v2997_v36, %v4972_v0 }
 0x2c8   : > { %v1939_v50 = vpop.f32.mrf.mxu1 }
 0x2c9   : > { %v2571_v55 = vadd.f32 %v2531_v29, %v2274_v9  ;;  %v1977_v45 = vadd.f32 %v1939_v50, %v4638_v32  ;;  %v3067_v7 = vadd.f32 %v3066_v48, %v3036_v14 }
 0x2ca   : > { %v2831_v28 = vpop.f32.mrf.mxu0 }
 0x2cb   : > { %v2868_v37 = vadd.f32 %v2828_v35, %v2571_v55 }
 0x2cd   : > { %v4982_v27 = vadd.f32 %v4765_v26, %v2868_v37 }
 0x2ce   : > { %v2237_v5 = vpop.f32.mrf.mxu2 }
 0x2cf   : > { %v2999_v33 = vadd.f32 %v2998_v60, %v4982_v27  ;;  %v3037_v39 = vmul.f32 %v4982_v27, %v4982_v27  ;;  %v2275_v47 = vadd.f32 %v2237_v5, %v1977_v45  ;;  %v2534_v16 = vpop.f32.mrf.mxu3 }
 0x2d0   : > { %v1941_v41 = vpop.f32.mrf.mxu1 }
 0x2d1   : > { %v3068_v35 = vadd.f32 %v3067_v7, %v3037_v39  ;;  %v2572_v21 = vadd.f32 %v2534_v16, %v2275_v47  ;;  %v1978_v20 = vadd.f32 %v1941_v41, %v4644_v25 }
 0x2d2   : > { %v2833_v59 = vpop.f32.mrf.mxu0 }
 0x2d3   : > { %v2869_v51 = vadd.f32 %v2831_v28, %v2572_v21 }
 0x2d5   : > { %v4989_v3 = vadd.f32 %v4765_v26, %v2869_v51 }
 0x2d6   : > { %v2239_v32 = vpop.f32.mrf.mxu2 }
 0x2d7   : > { %v3000_v49 = vadd.f32 %v2999_v33, %v4989_v3  ;;  %v3038_v4 = vmul.f32 %v4989_v3, %v4989_v3  ;;  %v2276_v13 = vadd.f32 %v2239_v32, %v1978_v20  ;;  %v2536_v9 = vpop.f32.mrf.mxu3 }
 0x2d8   : > { %v1944_v29 = vpop.f32.mrf.mxu1 }
 0x2d9   : > { %v3069_v50 = vadd.f32 %v3068_v35, %v3038_v4  ;;  %v2573_v22 = vadd.f32 %v2536_v9, %v2276_v13  ;;  %v1979_v55 = vadd.f32 %v1944_v29, %v4649_v57 }
 0x2da   : > { %v2836_v28 = vpop.f32.mrf.mxu0 }
 0x2db   : > { %v2870_v1 = vadd.f32 %v2833_v59, %v2573_v22 }
 0x2dd   : > { %v4996_v54 = vadd.f32 %v4765_v26, %v2870_v1 }
 0x2de   : > { %v2242_v38 = vpop.f32.mrf.mxu2 }
 0x2df   : > { %v3001_v25 = vadd.f32 %v3000_v49, %v4996_v54  ;;  %v3039_v36 = vmul.f32 %v4996_v54, %v4996_v54  ;;  %v2277_v14 = vadd.f32 %v2242_v38, %v1979_v55  ;;  %v2539_v37 = vpop.f32.mrf.mxu3 }
 0x2e0   : > { %v1946_v45 = vpop.f32.mrf.mxu1 }
 0x2e1   : > { %v3070_v48 = vadd.f32 %v3069_v50, %v3039_v36  ;;  %v2574_v60 = vadd.f32 %v2539_v37, %v2277_v14  ;;  %v1980_v33 = vadd.f32 %v1946_v45, %v4656_v34 }
 0x2e2   : > { %v2838_v51 = vpop.f32.mrf.mxu0 }
 0x2e3   : > { %v2871_v5 = vadd.f32 %v2836_v28, %v2574_v60 }
 0x2e5   : > { %v5003_v7 = vadd.f32 %v4765_v26, %v2871_v5 }
 0x2e6   : > { %v2244_v39 = vpop.f32.mrf.mxu2 }
 0x2e7   : > { %v3002_v57 = vadd.f32 %v3001_v25, %v5003_v7  ;;  %v3040_v47 = vmul.f32 %v5003_v7, %v5003_v7  ;;  %v2278_v16 = vadd.f32 %v2244_v39, %v1980_v33  ;;  %v2541_v41 = vpop.f32.mrf.mxu3 }
 0x2e9   : > { %v3071_v35 = vadd.f32 %v3070_v48, %v3040_v47  ;;  %v2575_v21 = vadd.f32 %v2541_v41, %v2278_v16 }
 0x2eb   : > { %v2872_v20 = vadd.f32 %v2838_v51, %v2575_v21 }
 0x2ed   : > { %v5010_v59 = vadd.f32 %v4765_v26, %v2872_v20 }
 0x2ef   : > { %v3003_v32 = vadd.f32 %v3002_v57, %v5010_v59  ;;  %v3041_v34 = vmul.f32 %v5010_v59, %v5010_v59 }
 0x2f1   : > { %v3004_v49 = vrot.slane %v3003_v32, 4  ;;  %v3072_v4 = vadd.f32 %v3071_v35, %v3041_v34 }
 0x2f3   : > { %v3005_v13 = vadd.f32 %v3004_v49, %v3003_v32  ;;  %v3073_v9 = vrot.slane %v3072_v4, 4 }
 0x2f5   : > { %v3006_v29 = vrot.slane %v3005_v13, 2  ;;  %v3074_v50 = vadd.f32 %v3073_v9, %v3072_v4 }
 0x2f7   : > { %v3007_v22 = vadd.f32 %v3006_v29, %v3005_v13  ;;  %v3075_v1 = vrot.slane %v3074_v50, 2 }
 0x2f9   : > { %v3008_v55 = vrot.slane %v3007_v22, 1  ;;  %v3076_v38 = vadd.f32 %v3075_v1, %v3074_v50 }
 0x2fb   : > { %v3009_v25 = vadd.f32 %v3008_v55, %v3007_v22  ;;  %v3077_v36 = vrot.slane %v3076_v38, 1 }
 0x2fd   : > { %v3078_v14 = vadd.f32 %v3077_v36, %v3076_v38  ;;  %v5015_v26 = vmul.f32 0.00390625, %v3009_v25 }
 0x2ff   : > { %v3080_v37 = vmul.f32 0.00390625, %v3078_v14  ;;  %v3081_v28 = vmul.f32 %v5015_v26, %v5015_v26  ;;  %v3110_v45 = vsub.f32 %v4972_v0, %v5015_v26  ;;  %v3111_v5 = vsub.f32 %v4982_v27, %v5015_v26 }
 0x300   : > { %v3112_v33 = vsub.f32 %v4989_v3, %v5015_v26  ;;  %v3113_v39 = vsub.f32 %v4996_v54, %v5015_v26  ;;  %v3114_v57 = vsub.f32 %v5003_v7, %v5015_v26  ;;  %v3115_v47 = vsub.f32 %v5010_v59, %v5015_v26  ;;  %v3191_v54 = vld [vmem:[%s5313_s3] sm:$0xff]  ;;  %v3192_v7 = vld [vmem:[%s5313_s3 + $0x8] sm:$0xff] }
 0x301   : > { %v3082_v48 = vsub.f32 %v3080_v37, %v3081_v28  ;;  %v3084_v51 = vsub.f32 %v4777_v24, %v5015_v26  ;;  %v3085_v20 = vsub.f32 %v4771_v6, %v5015_v26  ;;  %v3086_v32 = vsub.f32 %v4781_v31, %v5015_v26 }
 0x302   : > { %v3087_v34 = vsub.f32 %v4789_v2, %v5015_v26  ;;  %v3088_v49 = vsub.f32 %v4799_v12, %v5015_v26  ;;  %v3089_v4 = vsub.f32 %v4809_v23, %v5015_v26  ;;  %v3090_v13 = vsub.f32 %v4816_v40, %v5015_v26 }
 0x303   : > { %v3083_v60 = vmax.f32 %v3082_v48, 0.0  ;;  %v3091_v24 = vsub.f32 %v4823_v58, %v5015_v26  ;;  %v3092_v6 = vsub.f32 %v4832_v10, %v5015_v26  ;;  %v3093_v31 = vsub.f32 %v4841_v44, %v5015_v26 }
 0x304   : > { %v3094_v2 = vsub.f32 %v4848_v53, %v5015_v26  ;;  %v3095_v12 = vsub.f32 %v4855_v62, %v5015_v26  ;;  %v3096_v23 = vsub.f32 %v4864_v43, %v5015_v26  ;;  %v3097_v58 = vsub.f32 %v4871_v61, %v5015_v26 }
 0x305   : > { %v3116_v16 = vadd.f32 1e-05, %v3083_v60  ;;  %v3098_v10 = vsub.f32 %v4878_v15, %v5015_v26  ;;  %v3099_v44 = vsub.f32 %v4887_v52, %v5015_v26  ;;  %v3100_v53 = vsub.f32 %v4896_v17, %v5015_v26 }
 0x306   : > { %v3101_v62 = vsub.f32 %v4904_v18, %v5015_v26  ;;  %v3102_v43 = vsub.f32 %v4913_v46, %v5015_v26  ;;  %v3103_v61 = vsub.f32 %v4922_v19, %v5015_v26  ;;  %v3104_v15 = vsub.f32 %v4930_v63, %v5015_v26 }
 0x307   : > { %3939 = vrsqrt.f32 %v3116_v16  ;;  %vm3123_vm1 = vweird.f32 %v3116_v16  ;;  %v3105_v52 = vsub.f32 %v4937_v8, %v5015_v26  ;;  %v3106_v17 = vsub.f32 %v4945_v42, %v5015_v26 }
 0x308   : > { %v3107_v18 = vsub.f32 %v4953_v11, %v5015_v26  ;;  %v3108_v46 = vsub.f32 %v4959_v30, %v5015_v26  ;;  %v3109_v50 = vsub.f32 %v4965_v56, %v5015_v26  ;;  %v3194_v26 = vld [vmem:[%s5313_s3 + $0x18] sm:$0xff] }
 0x30d   : > { %v3940_v41 = vpop.eup %3939 }
 0x30e   : > { %v3118_v35 = vmul.f32 %v3940_v41, %v3116_v16  ;;  %vm3124_vm0 = vweird.f32 %v3940_v41 }
 0x30f   : > { %vm3125_vm2 = vmor %vm3123_vm1, %vm3124_vm0 }
 0x310   : > { %v3119_v21 = vmul.f32 %v3940_v41, %v3118_v35 }
 0x312   : > { %v3120_v9 = vmul.f32 0.5, %v3119_v21 }
 0x314   : > { %v3121_v40 = vsub.f32 1.5, %v3120_v9 }
 0x316   : > { %v3122_v29 = vmul.f32 %v3940_v41, %v3121_v40 }
 0x318   : > { %v3126_v19 = vsel %vm3125_vm2, %v3940_v41, %v3122_v29  ;;  %v3199_v29 = vld [vmem:[%s5313_s3 + $0x40] sm:$0xff] }
 0x319   : > { %v3127_v22 = vmul.f32 %v3126_v19, %v3084_v51  ;;  %v3128_v1 = vmul.f32 %v3126_v19, %v3085_v20  ;;  %v3129_v63 = vmul.f32 %v3126_v19, %v3086_v32  ;;  %v3130_v55 = vmul.f32 %v3126_v19, %v3087_v34 }
 0x31a   : > { %v3131_v38 = vmul.f32 %v3126_v19, %v3088_v49  ;;  %v3132_v8 = vmul.f32 %v3126_v19, %v3089_v4  ;;  %v3133_v25 = vmul.f32 %v3126_v19, %v3090_v13  ;;  %v3134_v36 = vmul.f32 %v3126_v19, %v3091_v24 }
 0x31b   : > { %v5083_v42 = vmul.f32 %v3126_v19, %v3092_v6  ;;  %v5085_v14 = vmul.f32 %v3126_v19, %v3093_v31  ;;  %v5087_v11 = vmul.f32 %v3126_v19, %v3094_v2  ;;  %v5089_v37 = vmul.f32 %v3126_v19, %v3095_v12  ;;  %v3196_v31 = vld [vmem:[%s5313_s3 + $0x28] sm:$0xff] }
 0x31c   : > { %v5091_v30 = vmul.f32 %v3126_v19, %v3096_v23  ;;  %v5093_v56 = vmul.f32 %v3126_v19, %v3097_v58  ;;  %v5095_v28 = vmul.f32 %v3126_v19, %v3098_v10  ;;  %v5097_v48 = vmul.f32 %v3126_v19, %v3099_v44  ;;  %v3197_v58 = vld [vmem:[%s5313_s3 + $0x30] sm:$0xff] }
 0x31d   : > { %v5099_v60 = vmul.f32 %v3126_v19, %v3100_v53  ;;  %v5101_v16 = vmul.f32 %v3126_v19, %v3101_v62  ;;  %v5103_v41 = vmul.f32 %v3126_v19, %v3102_v43  ;;  %v5105_v35 = vmul.f32 %v3126_v19, %v3103_v61  ;;  %v3198_v53 = vld [vmem:[%s5313_s3 + $0x38] sm:$0xff] }
 0x31e   : > { %v5107_v21 = vmul.f32 %v3126_v19, %v3104_v15  ;;  %v5109_v51 = vmul.f32 %v3126_v19, %v3105_v52  ;;  %v5111_v20 = vmul.f32 %v3126_v19, %v3106_v17  ;;  %v5113_v32 = vmul.f32 %v3126_v19, %v3107_v18  ;;  %v3200_v52 = vld [vmem:[%s5313_s3 + $0x48] sm:$0xff] }
 0x31f   : > { %v5115_v34 = vmul.f32 %v3126_v19, %v3108_v46  ;;  %v5117_v49 = vmul.f32 %v3126_v19, %v3109_v50  ;;  %v5122_v4 = vmul.f32 %v3126_v19, %v3110_v45  ;;  %v5127_v13 = vmul.f32 %v3126_v19, %v3111_v5  ;;  %v3201_v46 = vld [vmem:[%s5313_s3 + $0x50] sm:$0xff] }
 0x320   : > { %v5132_v9 = vmul.f32 %v3126_v19, %v3112_v33  ;;  %v5137_v24 = vmul.f32 %v3126_v19, %v3113_v39  ;;  %v5142_v0 = vmul.f32 %v3126_v19, %v3114_v57  ;;  %v5147_v27 = vmul.f32 %v3126_v19, %v3115_v47  ;;  %v3193_v39 = vld [vmem:[%s5313_s3 + $0x10] sm:$0xff]  ;;  %v3195_v47 = vld [vmem:[%s5313_s3 + $0x20] sm:$0xff] }
 0x321   : > { %v3159_v45 = vmax.f32 %v3127_v22, 0.0  ;;  %v3160_v3 = vmax.f32 %v3128_v1, 0.0  ;;  %v3161_v5 = vmax.f32 %v3129_v63, 0.0  ;;  %v3162_v33 = vmax.f32 %v3130_v55, 0.0  ;;  %v3202_v22 = vld [vmem:[%s5313_s3 + $0x58] sm:$0xff]  ;;  %v3203_v55 = vld [vmem:[%s5313_s3 + $0x60] sm:$0xff] }
 0x322   : > { %v3163_v59 = vmax.f32 %v3131_v38, 0.0  ;;  %v3164_v57 = vmax.f32 %v3132_v8, 0.0  ;;  %v3165_v6 = vmax.f32 %v3133_v25, 0.0  ;;  %v3166_v40 = vmax.f32 %v3134_v36, 0.0  ;;  %v3204_v25 = vld [vmem:[%s5313_s3 + $0x68] sm:$0xff] }
 0x323   : > { %v3223_v2 = vadd.f32 %v3191_v54, %v3159_v45  ;;  %v3224_v12 = vadd.f32 %v3192_v7, %v3160_v3  ;;  %v3225_v23 = vadd.f32 %v3193_v39, %v3161_v5  ;;  %v3226_v10 = vadd.f32 %v3194_v26, %v3162_v33 }
 0x324   : > { %v3167_v44 = vmax.f32 %v5083_v42, 0.0  ;;  %v3227_v62 = vadd.f32 %v3195_v47, %v3163_v59  ;;  %v3168_v43 = vmax.f32 %v5085_v14, 0.0  ;;  %v3228_v61 = vadd.f32 %v3196_v31, %v3164_v57  ;;  %v3205_v14 = vld [vmem:[%s5313_s3 + $0x70] sm:$0xff] }
 0x325   : > { %3255 = vst [vmem:[%s5165_s12] sm:$0xff] %v3223_v2  ;;  %v3169_v15 = vmax.f32 %v5087_v11, 0.0  ;;  %v3229_v17 = vadd.f32 %v3197_v58, %v3165_v6  ;;  %v3170_v18 = vmax.f32 %v5089_v37, 0.0  ;;  %v3230_v50 = vadd.f32 %v3198_v53, %v3166_v40 }
 0x326   : > { %3256 = vst [vmem:[%s5165_s12 + $0x8] sm:$0xff] %v3224_v12  ;;  %v3171_v19 = vmax.f32 %v5091_v30, 0.0  ;;  %v3231_v1 = vadd.f32 %v3199_v29, %v3167_v44  ;;  %v3172_v63 = vmax.f32 %v5093_v56, 0.0  ;;  %v3232_v38 = vadd.f32 %v3200_v52, %v3168_v43  ;;  %v3206_v30 = vld [vmem:[%s5313_s3 + $0x78] sm:$0xff] }
 0x327   : > { %3257 = vst [vmem:[%s5165_s12 + $0x10] sm:$0xff] %v3225_v23  ;;  %v3173_v8 = vmax.f32 %v5095_v28, 0.0  ;;  %v3233_v36 = vadd.f32 %v3201_v46, %v3169_v15  ;;  %v3174_v42 = vmax.f32 %v5097_v48, 0.0  ;;  %v3234_v11 = vadd.f32 %v3202_v22, %v3170_v18  ;;  %v3207_v48 = vld [vmem:[%s5313_s3 + $0x80] sm:$0xff] }
 0x328   : > { %3258 = vst [vmem:[%s5165_s12 + $0x18] sm:$0xff] %v3226_v10  ;;  %v3175_v37 = vmax.f32 %v5099_v60, 0.0  ;;  %v3235_v56 = vadd.f32 %v3203_v55, %v3171_v19  ;;  %v3176_v28 = vmax.f32 %v5101_v16, 0.0  ;;  %v3236_v45 = vadd.f32 %v3204_v25, %v3172_v63  ;;  %v3208_v60 = vld [vmem:[%s5313_s3 + $0x88] sm:$0xff]  ;;  %v3209_v16 = vld [vmem:[%s5313_s3 + $0x90] sm:$0xff] }
 0x329   : > { %3259 = vst [vmem:[%s5165_s12 + $0x20] sm:$0xff] %v3227_v62  ;;  %v3177_v3 = vmax.f32 %v5103_v41, 0.0  ;;  %v3237_v5 = vadd.f32 %v3205_v14, %v3173_v8  ;;  %v3178_v33 = vmax.f32 %v5105_v35, 0.0  ;;  %v3238_v54 = vadd.f32 %v3206_v30, %v3174_v42  ;;  %v3210_v41 = vld [vmem:[%s5313_s3 + $0x98] sm:$0xff]  ;;  %v3211_v35 = vld [vmem:[%s5313_s3 + $0xa0] sm:$0xff] }
 0x32a   : > { %3260 = vst [vmem:[%s5165_s12 + $0x28] sm:$0xff] %v3228_v61  ;;  %v3179_v7 = vmax.f32 %v5107_v21, 0.0  ;;  %v3239_v39 = vadd.f32 %v3207_v48, %v3175_v37  ;;  %v3180_v59 = vmax.f32 %v5109_v51, 0.0  ;;  %v3240_v26 = vadd.f32 %v3208_v60, %v3176_v28  ;;  %v3212_v21 = vld [vmem:[%s5313_s3 + $0xa8] sm:$0xff]  ;;  %v3213_v51 = vld [vmem:[%s5313_s3 + $0xb0] sm:$0xff] }
 0x32b   : > { %3261 = vst [vmem:[%s5165_s12 + $0x30] sm:$0xff] %v3229_v17  ;;  %v3181_v57 = vmax.f32 %v5111_v20, 0.0  ;;  %v3241_v47 = vadd.f32 %v3209_v16, %v3177_v3  ;;  %v3182_v6 = vmax.f32 %v5113_v32, 0.0  ;;  %v3242_v31 = vadd.f32 %v3210_v41, %v3178_v33  ;;  %v3214_v20 = vld [vmem:[%s5313_s3 + $0xb8] sm:$0xff]  ;;  %v3215_v32 = vld [vmem:[%s5313_s3 + $0xc0] sm:$0xff]  ;;  %v3221_v17 = vld [vmem:[%s5313_s3 + $0xf0] sm:$0xff] }
 0x32c   : > { %3262 = vst [vmem:[%s5165_s12 + $0x38] sm:$0xff] %v3230_v50  ;;  %v3183_v2 = vmax.f32 %v5115_v34, 0.0  ;;  %v3243_v12 = vadd.f32 %v3211_v35, %v3179_v7  ;;  %v3184_v23 = vmax.f32 %v5117_v49, 0.0  ;;  %v3244_v40 = vadd.f32 %v3212_v21, %v3180_v59  ;;  %v3216_v34 = vld [vmem:[%s5313_s3 + $0xc8] sm:$0xff]  ;;  %v3217_v49 = vld [vmem:[%s5313_s3 + $0xd0] sm:$0xff] }
 0x32d   : > { %3263 = vst [vmem:[%s5165_s12 + $0x40] sm:$0xff] %v3231_v1  ;;  %v3185_v58 = vmax.f32 %v5122_v4, 0.0  ;;  %v3245_v10 = vadd.f32 %v3213_v51, %v3181_v57  ;;  %v3186_v44 = vmax.f32 %v5127_v13, 0.0  ;;  %v3246_v53 = vadd.f32 %v3214_v20, %v3182_v6  ;;  %v3218_v4 = vld [vmem:[%s5313_s3 + $0xd8] sm:$0xff]  ;;  %v3219_v13 = vld [vmem:[%s5313_s3 + $0xe0] sm:$0xff] }
 0x32e   : > { %3264 = vst [vmem:[%s5165_s12 + $0x48] sm:$0xff] %v3232_v38  ;;  %v3187_v62 = vmax.f32 %v5132_v9, 0.0  ;;  %v3247_v43 = vadd.f32 %v3215_v32, %v3183_v2  ;;  %v3188_v29 = vmax.f32 %v5137_v24, 0.0  ;;  %v3248_v61 = vadd.f32 %v3216_v34, %v3184_v23  ;;  %v3220_v9 = vld [vmem:[%s5313_s3 + $0xe8] sm:$0xff] }
 0x32f   : > { %3265 = vst [vmem:[%s5165_s12 + $0x50] sm:$0xff] %v3233_v36  ;;  %v3189_v15 = vmax.f32 %v5142_v0, 0.0  ;;  %v3249_v52 = vadd.f32 %v3217_v49, %v3185_v58  ;;  %v3190_v24 = vmax.f32 %v5147_v27, 0.0  ;;  %v3250_v18 = vadd.f32 %v3218_v4, %v3186_v44  ;;  %v3222_v0 = vld [vmem:[%s5313_s3 + $0xf8] sm:$0xff] }
 0x330   : > { %3266 = vst [vmem:[%s5165_s12 + $0x58] sm:$0xff] %v3234_v11  ;;  %v3251_v46 = vadd.f32 %v3219_v13, %v3187_v62  ;;  %v3252_v50 = vadd.f32 %v3220_v9, %v3188_v29 }
 0x331   : > { %3267 = vst [vmem:[%s5165_s12 + $0x60] sm:$0xff] %v3235_v56  ;;  %v3253_v19 = vadd.f32 %v3221_v17, %v3189_v15  ;;  %v3254_v22 = vadd.f32 %v3222_v0, %v3190_v24 }
 0x332   : > { %3268 = vst [vmem:[%s5165_s12 + $0x68] sm:$0xff] %v3236_v45 }
 0x333   : > { %3269 = vst [vmem:[%s5165_s12 + $0x70] sm:$0xff] %v3237_v5 }
 0x334   : > { %3270 = vst [vmem:[%s5165_s12 + $0x78] sm:$0xff] %v3238_v54 }
 0x335   : > { %3271 = vst [vmem:[%s5165_s12 + $0x80] sm:$0xff] %v3239_v39 }
 0x336   : > { %3272 = vst [vmem:[%s5165_s12 + $0x88] sm:$0xff] %v3240_v26 }
 0x337   : > { %3273 = vst [vmem:[%s5165_s12 + $0x90] sm:$0xff] %v3241_v47 }
 0x338   : > { %3274 = vst [vmem:[%s5165_s12 + $0x98] sm:$0xff] %v3242_v31 }
 0x339   : > { %3275 = vst [vmem:[%s5165_s12 + $0xa0] sm:$0xff] %v3243_v12 }
 0x33a   : > { %3276 = vst [vmem:[%s5165_s12 + $0xa8] sm:$0xff] %v3244_v40 }
 0x33b   : > { %3277 = vst [vmem:[%s5165_s12 + $0xb0] sm:$0xff] %v3245_v10 }
 0x33c   : > { %3278 = vst [vmem:[%s5165_s12 + $0xb8] sm:$0xff] %v3246_v53 }
 0x33d   : > { %3279 = vst [vmem:[%s5165_s12 + $0xc0] sm:$0xff] %v3247_v43 }
 0x33e   : > { %3280 = vst [vmem:[%s5165_s12 + $0xc8] sm:$0xff] %v3248_v61 }
 0x33f   : > { %3281 = vst [vmem:[%s5165_s12 + $0xd0] sm:$0xff] %v3249_v52 }
 0x340   : > { %3282 = vst [vmem:[%s5165_s12 + $0xd8] sm:$0xff] %v3250_v18 }
 0x341   : > { %3283 = vst [vmem:[%s5165_s12 + $0xe0] sm:$0xff] %v3251_v46 }
 0x342   : > { %3284 = vst [vmem:[%s5165_s12 + $0xe8] sm:$0xff] %v3252_v50 }
 0x343   : > { %3285 = vst [vmem:[%s5165_s12 + $0xf0] sm:$0xff] %v3253_v19 }
 0x344   : > { %3286 = vst [vmem:[%s5165_s12 + $0xf8] sm:$0xff] %v3254_v22 }
 0x345 PF: > { %s14_s15 = sadd.s32 1, %s3947_s15  }
 0x346   : > { %p11_p4 = scmp.ge.s32.totalorder %s14_s15, 4  }
 0x348   :  { %13 = sbr.rel (!%p11_p4) target bundleno = 1 (0x1), region = 68 }

// kernel: inr_cls4_forward.4
= control target key start
LH: loop header
LB: loop body
LE: loop exit
PB: predicated region body
PF: predicated region fallthrough
CT: control target
= control target key end

     0   :  { %s4813_s12 = smov 0   ;;  %s6092_s0 = inlined_call_operand.vmem [shape: f32[2,4,10,10,128], index: 0, kind: input, shape index: {}]   ;;  %s6093_s1 = inlined_call_operand.vmem [shape: bf16[3200,128], index: 1, kind: input, shape index: {}]   ;;  %s6094_s2 = inlined_call_operand.vmem [shape: f32[1,128], index: 2, kind: input, shape index: {}]   ;;  %s6095_s3 = inlined_call_operand.vmem [shape: f32[2,64,128], index: 3, kind: output, shape index: {}]  }
   0x1 LB: > { %s3570_s13 = sadd.s32 4294967295, %s4791_s12   ;;  %p3574_p0 = scmp.ge.s32.totalorder %s4791_s12, 1  ;;  %s4791_s12 = sphi %s4813_s12, %s13_s12  }
   0x2   : > { %p137_p1 = scmp.lt.s32.totalorder %s4791_s12, 3 }
   0x4   : > { %p138_p2 = pnand %p3574_p0, %p137_p1 }
   0x5   : > { %p161_p3 = scmp.lt.s32.totalorder (!%p138_p2), %s3570_s13, 1 }
   0x6   : > { %141 = sbr.rel (%p138_p2) target bundleno = 641 (0x281), region = 32 }
   0xb   : > { %v4564_v0 = vld [vmem:[%s6093_s1 + $0x38] sm:$0xff]  ;;  %v4563_v2 = vld [vmem:[%s6093_s1 + $0x30] sm:$0xff]  ;;  %v4562_v6 = vld [vmem:[%s6093_s1 + $0x28] sm:$0xff]  ;;  %s6097_s13 = smov (!%p161_p3, %s3570_s13), 1 }
   0xc   : > { %v4580_v1 = vld [vmem:[%s6093_s1 + $0xb8] sm:$0xff]  ;;  %4757 = vmatpush.bf16.msra.mxu1 %v4564_v0  ;;  %263 = vmatpush.bf16.msra.mxu0 %v4564_v0  ;;  %v4579_v3 = vld [vmem:[%s6093_s1 + $0xb0] sm:$0xff]  ;;  %v4578_v7 = vld [vmem:[%s6093_s1 + $0xa8] sm:$0xff]  ;;  %s4773_s21 = smul.u32 640, %s6097_s13  ;;  %s4556_s7 = sshll.u32 %s6097_s13, 6 }
   0xd   : > { %522 = vmatpush.bf16.msra.mxu2 %v4580_v1  ;;  %v4588_v4 = vld [vmem:[%s6093_s1 + $0xf8] sm:$0xff]  ;;  %v4587_v5 = vld [vmem:[%s6093_s1 + $0xf0] sm:$0xff]  ;;  %v4586_v8 = vld [vmem:[%s6093_s1 + $0xe8] sm:$0xff]  ;;  %s170_s10 = scalar_lea.vmem %s6095_s3, %s4556_s7 }
   0xe   : > { %651 = vmatpush.bf16.msra.mxu3 %v4588_v4  ;;  %v4561_v9 = vld [vmem:[%s6093_s1 + $0x20] sm:$0xff]  ;;  %v4560_v12 = vld [vmem:[%s6093_s1 + $0x18] sm:$0xff]  ;;  %v4559_v15 = vld [vmem:[%s6093_s1 + $0x10] sm:$0xff]  ;;  %s4888_s30 = scalar_lea.vmem %s6092_s0, %s4773_s21 }
   0xf   : > { %v4577_v10 = vld [vmem:[%s6093_s1 + $0xa0] sm:$0xff]  ;;  %v4576_v13 = vld [vmem:[%s6093_s1 + $0x98] sm:$0xff]  ;;  %v4575_v16 = vld [vmem:[%s6093_s1 + $0x90] sm:$0xff] }
  0x10   : > { %4758 = vmatpush.bf16.msra.mxu1 %v4563_v2  ;;  %264 = vmatpush.bf16.msra.mxu0 %v4563_v2  ;;  %v4585_v11 = vld [vmem:[%s6093_s1 + $0xe0] sm:$0xff]  ;;  %v4584_v14 = vld [vmem:[%s6093_s1 + $0xd8] sm:$0xff]  ;;  %v4583_v17 = vld [vmem:[%s6093_s1 + $0xd0] sm:$0xff] }
  0x11   : > { %523 = vmatpush.bf16.msra.mxu2 %v4579_v3  ;;  %v4558_v18 = vld [vmem:[%s6093_s1 + $0x8] sm:$0xff]  ;;  %v4557_v20 = vld [vmem:[%s6093_s1] sm:$0xff]  ;;  %v4572_v22 = vld [vmem:[%s6093_s1 + $0x78] sm:$0xff] }
  0x12   : > { %652 = vmatpush.bf16.msra.mxu3 %v4587_v5  ;;  %v4574_v19 = vld [vmem:[%s6093_s1 + $0x88] sm:$0xff]  ;;  %v4897_v21 = vld [vmem:[%s4888_s30 + $0x40] sm:$0xff]  ;;  %v184_v24 = vld [vmem:[%s4888_s30 + $0x50] sm:$0xff] }
  0x13   : > { %v4582_v23 = vld [vmem:[%s6093_s1 + $0xc8] sm:$0xff]  ;;  %v179_v25 = vld [vmem:[%s4888_s30] sm:$0xff]  ;;  %v4908_v26 = vld [vmem:[%s4888_s30 + $0x10] sm:$0xff]  ;;  %v189_v32 = vpack.c.bf16 %v184_v24, %v4897_v21 }
  0x14   : > { %4759 = vmatpush.bf16.msra.mxu1 %v4562_v6  ;;  %265 = vmatpush.bf16.msra.mxu0 %v4562_v6  ;;  %v4573_v27 = vld [vmem:[%s6093_s1 + $0x80] sm:$0xff]  ;;  %v439_v29 = vld [vmem:[%s4888_s30 + $0x11] sm:$0xff]  ;;  %v187_v33 = vpack.c.bf16 %v4908_v26, %v179_v25  ;;  %v4570_v43 = vld [vmem:[%s6093_s1 + $0x68] sm:$0xff] }
  0x15   : > { %524 = vmatpush.bf16.msra.mxu2 %v4578_v7  ;;  %v438_v28 = vld [vmem:[%s4888_s30 + $0x1] sm:$0xff]  ;;  %v4596_v30 = vld [vmem:[%s6093_s1 + $0x138] sm:$0xff]  ;;  %v4571_v38 = vld [vmem:[%s6093_s1 + $0x70] sm:$0xff] }
  0x16   : > { %653 = vmatpush.bf16.msra.mxu3 %v4586_v8  ;;  %v4612_v31 = vld [vmem:[%s6093_s1 + $0x1b8] sm:$0xff]  ;;  %v446_v34 = vpack.c.bf16 %v439_v29, %v438_v28  ;;  %v4581_v35 = vld [vmem:[%s6093_s1 + $0xc0] sm:$0xff]  ;;  %v4595_v40 = vld [vmem:[%s6093_s1 + $0x130] sm:$0xff] }
  0x17   : > { %v3682_v36 = vld [vmem:[%s4888_s30 + $0xa1] sm:$0xff]  ;;  %v3683_v37 = vld [vmem:[%s4888_s30 + $0xb1] sm:$0xff] }
  0x18   : > { %4760 = vmatpush.bf16.msra.mxu1 %v4561_v9  ;;  %266 = vmatpush.bf16.msra.mxu0 %v4561_v9  ;;  %v4620_v39 = vld [vmem:[%s6093_s1 + $0x1f8] sm:$0xff]  ;;  %v4611_v41 = vld [vmem:[%s6093_s1 + $0x1b0] sm:$0xff]  ;;  %v575_v42 = vpack.c.bf16 %v3683_v37, %v3682_v36  ;;  %v4594_v45 = vld [vmem:[%s6093_s1 + $0x128] sm:$0xff] }
  0x19   : > { %525 = vmatpush.bf16.msra.mxu2 %v4577_v10  ;;  %v4619_v44 = vld [vmem:[%s6093_s1 + $0x1f0] sm:$0xff]  ;;  %v4610_v46 = vld [vmem:[%s6093_s1 + $0x1a8] sm:$0xff]  ;;  %v4569_v47 = vld [vmem:[%s6093_s1 + $0x60] sm:$0xff] }
  0x1a   : > { %654 = vmatpush.bf16.msra.mxu3 %v4585_v11  ;;  %v4618_v48 = vld [vmem:[%s6093_s1 + $0x1e8] sm:$0xff]  ;;  %v4593_v49 = vld [vmem:[%s6093_s1 + $0x120] sm:$0xff]  ;;  %v186_v52 = vld [vmem:[%s4888_s30 + $0x70] sm:$0xff] }
  0x1b   : > { %v4609_v50 = vld [vmem:[%s6093_s1 + $0x1a0] sm:$0xff]  ;;  %v4972_v54 = vld [vmem:[%s4888_s30 + $0x30] sm:$0xff]  ;;  %v4568_v55 = vld [vmem:[%s6093_s1 + $0x58] sm:$0xff] }
  0x1c   : > { %4761 = vmatpush.bf16.msra.mxu1 %v4560_v12  ;;  %267 = vmatpush.bf16.msra.mxu0 %v4560_v12  ;;  %v4965_v51 = vld [vmem:[%s4888_s30 + $0x60] sm:$0xff]  ;;  %v4981_v57 = vld [vmem:[%s4888_s30 + $0x31] sm:$0xff]  ;;  %v4566_v4 = vld [vmem:[%s6093_s1 + $0x48] sm:$0xff] }
  0x1d   : > { %526 = vmatpush.bf16.msra.mxu2 %v4576_v13  ;;  %v4969_v53 = vld [vmem:[%s4888_s30 + $0x20] sm:$0xff]  ;;  %v4592_v58 = vld [vmem:[%s6093_s1 + $0x118] sm:$0xff]  ;;  %v190_v59 = vpack.c.bf16 %v186_v52, %v4965_v51  ;;  %v4567_v0 = vld [vmem:[%s6093_s1 + $0x50] sm:$0xff] }
  0x1e   : > { %655 = vmatpush.bf16.msra.mxu3 %v4584_v14  ;;  %v4978_v56 = vld [vmem:[%s4888_s30 + $0x21] sm:$0xff]  ;;  %v188_v60 = vpack.c.bf16 %v4972_v54, %v4969_v53  ;;  %v3685_v63 = vld [vmem:[%s4888_s30 + $0xd1] sm:$0xff] }
  0x1f   : > { %v447_v61 = vpack.c.bf16 %v4981_v57, %v4978_v56  ;;  %v3684_v62 = vld [vmem:[%s4888_s30 + $0xc1] sm:$0xff]  ;;  %v4591_v1 = vld [vmem:[%s6093_s1 + $0x110] sm:$0xff]  ;;  %v4608_v3 = vld [vmem:[%s6093_s1 + $0x198] sm:$0xff] }
  0x20   : > { %4762 = vmatpush.bf16.msra.mxu1 %v4559_v15  ;;  %268 = vmatpush.bf16.msra.mxu0 %v4559_v15  ;;  %v576_v2 = vpack.c.bf16 %v3685_v63, %v3684_v62  ;;  %v4617_v5 = vld [vmem:[%s6093_s1 + $0x1e0] sm:$0xff]  ;;  %v4590_v6 = vld [vmem:[%s6093_s1 + $0x108] sm:$0xff]  ;;  %v4607_v7 = vld [vmem:[%s6093_s1 + $0x190] sm:$0xff] }
  0x21   : > { %527 = vmatpush.bf16.msra.mxu2 %v4575_v16  ;;  %v4616_v8 = vld [vmem:[%s6093_s1 + $0x1d8] sm:$0xff]  ;;  %v4565_v9 = vld [vmem:[%s6093_s1 + $0x40] sm:$0xff]  ;;  %v5031_v14 = vld [vmem:[%s4888_s30 + $0xb0] sm:$0xff] }
  0x22   : > { %656 = vmatpush.bf16.msra.mxu3 %v4583_v17  ;;  %v4604_v10 = vld [vmem:[%s6093_s1 + $0x178] sm:$0xff]  ;;  %v4589_v11 = vld [vmem:[%s6093_s1 + $0x100] sm:$0xff]  ;;  %v4602_v28 = vld [vmem:[%s6093_s1 + $0x168] sm:$0xff] }
  0x23   : > { %v3610_v12 = vld [vmem:[%s4888_s30 + $0xa0] sm:$0xff]  ;;  %v4628_v13 = vld [vmem:[%s6093_s1 + $0x238] sm:$0xff]  ;;  %v4606_v29 = vld [vmem:[%s6093_s1 + $0x188] sm:$0xff] }
  0x24   : > { %4763 = vmatpush.bf16.msra.mxu1 %v4558_v18  ;;  %269 = vmatpush.bf16.msra.mxu0 %v4558_v18  ;;  %v696_v15 = vld [vmem:[%s4888_s30 + $0x2] sm:$0xff]  ;;  %v697_v16 = vld [vmem:[%s4888_s30 + $0x12] sm:$0xff] }
  0x25   : > { %528 = vmatpush.bf16.msra.mxu2 %v4574_v19  ;;  %v5036_v17 = vld [vmem:[%s4888_s30 + $0x41] sm:$0xff]  ;;  %v443_v18 = vld [vmem:[%s4888_s30 + $0x51] sm:$0xff] }
  0x26   : > { %657 = vmatpush.bf16.msra.mxu3 %v4582_v23  ;;  %v4603_v19 = vld [vmem:[%s6093_s1 + $0x170] sm:$0xff]  ;;  %v448_v23 = vpack.c.bf16 %v443_v18, %v5036_v17  ;;  %v3686_v24 = vld [vmem:[%s4888_s30 + $0xe1] sm:$0xff]  ;;  %v4600_v37 = vld [vmem:[%s6093_s1 + $0x158] sm:$0xff] }
  0x27   : > { %v3687_v25 = vld [vmem:[%s4888_s30 + $0xf1] sm:$0xff]  ;;  %v4614_v36 = vld [vmem:[%s6093_s1 + $0x1c8] sm:$0xff] }
  0x28   : > { %4764 = vmatpush.bf16.msra.mxu1 %v4557_v20  ;;  %270 = vmatpush.bf16.msra.mxu0 %v4557_v20  ;;  %v317_v20 = vpack.c.bf16 %v5031_v14, %v3610_v12  ;;  %v4598_v52 = vld [vmem:[%s6093_s1 + $0x148] sm:$0xff]  ;;  %v4623_v62 = vld [vmem:[%s6093_s1 + $0x210] sm:$0xff]  ;;  %v4652_v63 = vld [vmem:[%s6093_s1 + $0x2f8] sm:$0xff] }
  0x29   : > { %529 = vmatpush.bf16.msra.mxu2 %v4573_v27  ;;  %v4627_v27 = vld [vmem:[%s6093_s1 + $0x230] sm:$0xff] }
  0x2a   : > { %658 = vmatpush.bf16.msra.mxu3 %v4581_v35  ;;  %v4625_v35 = vld [vmem:[%s6093_s1 + $0x220] sm:$0xff]  ;;  %v4651_v18 = vld [vmem:[%s6093_s1 + $0x2f0] sm:$0xff] }
  0x2b   : > { %281 = vmatmul.bf16.vlgmr.msra.gmra.mxu1 %v189_v32  ;;  %271 = vmatmul.bf16.vlgmr.msra.gmra.mxu0 %v187_v33  ;;  %v4605_v32 = vld [vmem:[%s6093_s1 + $0x180] sm:$0xff]  ;;  %v4615_v33 = vld [vmem:[%s6093_s1 + $0x1d0] sm:$0xff] }
  0x2c   : > { %393 = vmatpush.bf16.msrb.mxu1 %v4572_v22  ;;  %780 = vmatpush.bf16.msrb.mxu0 %v4596_v30  ;;  %v704_v22 = vpack.c.bf16 %v697_v16, %v696_v15  ;;  %v577_v30 = vpack.c.bf16 %v3687_v25, %v3686_v24  ;;  %v4642_v15 = vld [vmem:[%s6093_s1 + $0x2a8] sm:$0xff]  ;;  %v4621_v16 = vld [vmem:[%s6093_s1 + $0x200] sm:$0xff]  ;;  %v5168_v24 = vld [vmem:[%s4888_s30 + $0x110] sm:$0xff] }
  0x2d   : > { %1040 = vmatpush.bf16.msrb.mxu2 %v4612_v31  ;;  %659 = vmatmul.bf16.vlgmr.msra.gmra.mxu3 %v575_v42  ;;  %v4626_v31 = vld [vmem:[%s6093_s1 + $0x228] sm:$0xff] }
  0x2e   : > { %530 = vmatmul.bf16.vlgmr.msra.gmra.mxu2 %v446_v34  ;;  %1169 = vmatpush.bf16.msrb.mxu3 %v4620_v39  ;;  %v4601_v34 = vld [vmem:[%s6093_s1 + $0x160] sm:$0xff]  ;;  %v5080_v39 = vld [vmem:[%s4888_s30 + $0xd0] sm:$0xff] }
  0x2f   : > { %v5087_v42 = vld [vmem:[%s4888_s30 + $0x61] sm:$0xff] }
  0x30   : > { %394 = vmatpush.bf16.msrb.mxu1 %v4571_v38  ;;  %781 = vmatpush.bf16.msrb.mxu0 %v4595_v40  ;;  %v5077_v38 = vld [vmem:[%s4888_s30 + $0xc0] sm:$0xff] }
  0x31   : > { %1041 = vmatpush.bf16.msrb.mxu2 %v4611_v41  ;;  %v5083_v40 = vld [vmem:[%s4888_s30 + $0x22] sm:$0xff]  ;;  %v699_v41 = vld [vmem:[%s4888_s30 + $0x32] sm:$0xff] }
  0x32   : > { %1170 = vmatpush.bf16.msrb.mxu3 %v4619_v44  ;;  %v4599_v44 = vld [vmem:[%s6093_s1 + $0x150] sm:$0xff]  ;;  %v702_v25 = vld [vmem:[%s4888_s30 + $0x62] sm:$0xff] }
  0x34   : > { %395 = vmatpush.bf16.msrb.mxu1 %v4570_v43  ;;  %782 = vmatpush.bf16.msrb.mxu0 %v4594_v45  ;;  %v445_v43 = vld [vmem:[%s4888_s30 + $0x71] sm:$0xff]  ;;  %v318_v45 = vpack.c.bf16 %v5080_v39, %v5077_v38 }
  0x35   : > { %1042 = vmatpush.bf16.msrb.mxu2 %v4610_v46  ;;  %v705_v46 = vpack.c.bf16 %v699_v41, %v5083_v40  ;;  %v4660_v41 = vld [vmem:[%s6093_s1 + $0x338] sm:$0xff] }
  0x36   : > { %1171 = vmatpush.bf16.msrb.mxu3 %v4618_v48  ;;  %v3688_v48 = vld [vmem:[%s4888_s30 + $0x101] sm:$0xff] }
  0x38   : > { %396 = vmatpush.bf16.msrb.mxu1 %v4569_v47  ;;  %783 = vmatpush.bf16.msrb.mxu0 %v4593_v49  ;;  %v449_v47 = vpack.c.bf16 %v445_v43, %v5087_v42  ;;  %v3689_v49 = vld [vmem:[%s4888_s30 + $0x111] sm:$0xff]  ;;  %v4649_v43 = vld [vmem:[%s6093_s1 + $0x2e0] sm:$0xff] }
  0x39   : > { %1043 = vmatpush.bf16.msrb.mxu2 %v4609_v50  ;;  %v578_v50 = vpack.c.bf16 %v3689_v49, %v3688_v48  ;;  %v5204_v48 = vld [vmem:[%s4888_s30 + $0x150] sm:$0xff]  ;;  %v3874_v49 = vld [vmem:[%s4888_s30 + $0x1e1] sm:$0xff] }
  0x3a   : > { %1172 = vmatpush.bf16.msrb.mxu3 %v4617_v5  ;;  %v3794_v5 = vld [vmem:[%s4888_s30 + $0x1e0] sm:$0xff] }
  0x3b   : > { %286 = vmatmul.bf16.gmra.mxu1 %v190_v59  ;;  %276 = vmatmul.bf16.gmra.mxu0 %v188_v60  ;;  %v4613_v59 = vld [vmem:[%s6093_s1 + $0x1c0] sm:$0xff] }
  0x3c   : > { %397 = vmatpush.bf16.msrb.mxu1 %v4568_v55  ;;  %784 = vmatpush.bf16.msrb.mxu0 %v4592_v58  ;;  %v4644_v55 = vld [vmem:[%s6093_s1 + $0x2b8] sm:$0xff]  ;;  %v4597_v60 = vld [vmem:[%s6093_s1 + $0x140] sm:$0xff] }
  0x3d   : > { %1044 = vmatpush.bf16.msrb.mxu2 %v4608_v3  ;;  %664 = vmatmul.bf16.gmra.mxu3 %v576_v2  ;;  %v4624_v58 = vld [vmem:[%s6093_s1 + $0x218] sm:$0xff]  ;;  %v5130_v2 = vld [vmem:[%s4888_s30 + $0xf0] sm:$0xff]  ;;  %v5133_v3 = vld [vmem:[%s4888_s30 + $0x42] sm:$0xff] }
  0x3e   : > { %535 = vmatmul.bf16.gmra.mxu2 %v447_v61  ;;  %1173 = vmatpush.bf16.msrb.mxu3 %v4616_v8  ;;  %v4643_v61 = vld [vmem:[%s6093_s1 + $0x2b0] sm:$0xff] }
  0x40   : > { %398 = vmatpush.bf16.msrb.mxu1 %v4567_v0  ;;  %785 = vmatpush.bf16.msrb.mxu0 %v4591_v1  ;;  %v4622_v0 = vld [vmem:[%s6093_s1 + $0x208] sm:$0xff]  ;;  %v5127_v1 = vld [vmem:[%s4888_s30 + $0xe0] sm:$0xff] }
  0x41   : > { %1045 = vmatpush.bf16.msrb.mxu2 %v4607_v7  ;;  %v319_v7 = vpack.c.bf16 %v5130_v2, %v5127_v1 }
  0x42   : > { %1174 = vmatpush.bf16.msrb.mxu3 %v4615_v33  ;;  %v3836_v33 = vld [vmem:[%s4888_s30 + $0x161] sm:$0xff] }
  0x44   : > { %399 = vmatpush.bf16.msrb.mxu1 %v4566_v4  ;;  %786 = vmatpush.bf16.msrb.mxu0 %v4590_v6  ;;  %v701_v4 = vld [vmem:[%s4888_s30 + $0x52] sm:$0xff] }
  0x45   : > { %1046 = vmatpush.bf16.msrb.mxu2 %v4606_v29  ;;  %v3795_v6 = vld [vmem:[%s4888_s30 + $0x1f0] sm:$0xff]  ;;  %v706_v8 = vpack.c.bf16 %v701_v4, %v5133_v3 }
  0x46   : > { %1175 = vmatpush.bf16.msrb.mxu3 %v4614_v36  ;;  %v3797_v29 = vld [vmem:[%s4888_s30 + $0x210] sm:$0xff]  ;;  %v4634_v36 = vld [vmem:[%s6093_s1 + $0x268] sm:$0xff] }
  0x48   : > { %400 = vmatpush.bf16.msrb.mxu1 %v4565_v9  ;;  %787 = vmatpush.bf16.msrb.mxu0 %v4589_v11  ;;  %v964_v9 = vpack.c.bf16 %v3795_v6, %v3794_v5  ;;  %v3835_v11 = vld [vmem:[%s4888_s30 + $0x151] sm:$0xff]  ;;  %v4658_v6 = vld [vmem:[%s6093_s1 + $0x328] sm:$0xff] }
  0x49   : > { %1047 = vmatpush.bf16.msrb.mxu2 %v4605_v32  ;;  %v4632_v5 = vld [vmem:[%s6093_s1 + $0x258] sm:$0xff] }
  0x4a   : > { %1176 = vmatpush.bf16.msrb.mxu3 %v4613_v59 }
  0x4b   : > { %401 = vmatmul.bf16.vlgmr.msrb.gmra.mxu1 %v317_v20  ;;  %788 = vmatmul.bf16.vlgmr.msrb.gmra.mxu0 %v704_v22  ;;  %v4641_v20 = vld [vmem:[%s6093_s1 + $0x2a0] sm:$0xff]  ;;  %v4650_v22 = vld [vmem:[%s6093_s1 + $0x2e8] sm:$0xff] }
  0x4c   : > { %910 = vmatpush.bf16.msra.mxu1 %v4604_v10  ;;  %1298 = vmatpush.bf16.msra.mxu0 %v4628_v13  ;;  %v3834_v10 = vld [vmem:[%s4888_s30 + $0x141] sm:$0xff]  ;;  %v4636_v13 = vld [vmem:[%s6093_s1 + $0x278] sm:$0xff] }
  0x4d   : > { %669 = vmatmul.bf16.gmra.mxu3 %v577_v30  ;;  %1557 = vmatpush.bf16.msra.mxu2 %v4644_v55  ;;  %v1093_v12 = vpack.c.bf16 %v3835_v11, %v3834_v10  ;;  %v3799_v55 = vld [vmem:[%s4888_s30 + $0x230] sm:$0xff]  ;;  %v4657_v10 = vld [vmem:[%s6093_s1 + $0x320] sm:$0xff] }
  0x4e   : > { %540 = vmatmul.bf16.gmra.mxu2 %v448_v23  ;;  %1687 = vmatpush.bf16.msra.mxu3 %v4652_v63  ;;  %v5165_v23 = vld [vmem:[%s4888_s30 + $0x100] sm:$0xff]  ;;  %v4648_v63 = vld [vmem:[%s6093_s1 + $0x2d8] sm:$0xff] }
  0x4f   : > { %v320_v30 = vpack.c.bf16 %v5168_v24, %v5165_v23  ;;  %v5238_v11 = vld [vmem:[%s4888_s30 + $0x160] sm:$0xff] }
  0x50   : > { %911 = vmatpush.bf16.msra.mxu1 %v4603_v19  ;;  %1299 = vmatpush.bf16.msra.mxu0 %v4627_v27  ;;  %v4635_v19 = vld [vmem:[%s6093_s1 + $0x270] sm:$0xff] }
  0x51   : > { %1558 = vmatpush.bf16.msra.mxu2 %v4643_v61  ;;  %v703_v27 = vld [vmem:[%s4888_s30 + $0x72] sm:$0xff]  ;;  %v3838_v61 = vld [vmem:[%s4888_s30 + $0x181] sm:$0xff] }
  0x52   : > { %1688 = vmatpush.bf16.msra.mxu3 %v4651_v18  ;;  %v3801_v18 = vld [vmem:[%s4888_s30 + $0x250] sm:$0xff] }
  0x54   : > { %912 = vmatpush.bf16.msra.mxu1 %v4602_v28  ;;  %1300 = vmatpush.bf16.msra.mxu0 %v4626_v31  ;;  %v5173_v28 = vld [vmem:[%s4888_s30 + $0x200] sm:$0xff]  ;;  %v707_v31 = vpack.c.bf16 %v703_v27, %v702_v25  ;;  %v3841_v27 = vld [vmem:[%s4888_s30 + $0x1b1] sm:$0xff] }
  0x55   : > { %1559 = vmatpush.bf16.msra.mxu2 %v4642_v15  ;;  %v965_v32 = vpack.c.bf16 %v3797_v29, %v5173_v28  ;;  %v3877_v15 = vld [vmem:[%s4888_s30 + $0x211] sm:$0xff]  ;;  %v3840_v25 = vld [vmem:[%s4888_s30 + $0x1a1] sm:$0xff] }
  0x56   : > { %1689 = vmatpush.bf16.msra.mxu3 %v4650_v22  ;;  %v4646_v29 = vld [vmem:[%s6093_s1 + $0x2c8] sm:$0xff] }
  0x58   : > { %913 = vmatpush.bf16.msra.mxu1 %v4601_v34  ;;  %1301 = vmatpush.bf16.msra.mxu0 %v4625_v35  ;;  %v3837_v34 = vld [vmem:[%s4888_s30 + $0x171] sm:$0xff] }
  0x59   : > { %1560 = vmatpush.bf16.msra.mxu2 %v4641_v20  ;;  %v1094_v35 = vpack.c.bf16 %v3837_v34, %v3836_v33  ;;  %v4656_v33 = vld [vmem:[%s6093_s1 + $0x318] sm:$0xff]  ;;  %v4645_v34 = vld [vmem:[%s6093_s1 + $0x2c0] sm:$0xff] }
  0x5a   : > { %1690 = vmatpush.bf16.msra.mxu3 %v4649_v43  ;;  %v5279_v43 = vld [vmem:[%s4888_s30 + $0x190] sm:$0xff] }
  0x5b   : > { %406 = vmatmul.bf16.gmra.mxu1 %v318_v45  ;;  %793 = vmatmul.bf16.gmra.mxu0 %v705_v46  ;;  %v4639_v45 = vld [vmem:[%s6093_s1 + $0x290] sm:$0xff] }
  0x5c   : > { %914 = vmatpush.bf16.msra.mxu1 %v4600_v37  ;;  %1302 = vmatpush.bf16.msra.mxu0 %v4624_v58  ;;  %v4640_v37 = vld [vmem:[%s6093_s1 + $0x298] sm:$0xff]  ;;  %v4659_v46 = vld [vmem:[%s6093_s1 + $0x330] sm:$0xff] }
  0x5d   : > { %674 = vmatmul.bf16.gmra.mxu3 %v578_v50  ;;  %1561 = vmatpush.bf16.msra.mxu2 %v4640_v37  ;;  %v3875_v50 = vld [vmem:[%s4888_s30 + $0x1f1] sm:$0xff] }
  0x5e   : > { %545 = vmatmul.bf16.gmra.mxu2 %v449_v47  ;;  %v3754_v47 = vld [vmem:[%s4888_s30 + $0x140] sm:$0xff]  ;;  %v1222_v59 = vpack.c.bf16 %v3875_v50, %v3874_v49  ;;  %1691 = vmatpush.bf16.msra.mxu3 %v4648_v63  ;;  %v4655_v37 = vld [vmem:[%s6093_s1 + $0x310] sm:$0xff] }
  0x5f   : > { %v834_v58 = vpack.c.bf16 %v5204_v48, %v3754_v47 }
  0x60   : > { %915 = vmatpush.bf16.msra.mxu1 %v4599_v44  ;;  %1303 = vmatpush.bf16.msra.mxu0 %v4623_v62  ;;  %v4633_v44 = vld [vmem:[%s6093_s1 + $0x260] sm:$0xff]  ;;  %v3839_v62 = vld [vmem:[%s4888_s30 + $0x191] sm:$0xff] }
  0x61   : > { %1562 = vmatpush.bf16.msra.mxu2 %v4639_v45  ;;  %v1095_v4 = vpack.c.bf16 %v3839_v62, %v3838_v61  ;;  %v3879_v45 = vld [vmem:[%s4888_s30 + $0x231] sm:$0xff]  ;;  %v5313_v62 = vld [vmem:[%s4888_s30 + $0x1a0] sm:$0xff] }
  0x64   : > { %916 = vmatpush.bf16.msra.mxu1 %v4598_v52  ;;  %1304 = vmatpush.bf16.msra.mxu0 %v4622_v0  ;;  %v3798_v52 = vld [vmem:[%s4888_s30 + $0x220] sm:$0xff]  ;;  %v4638_v0 = vld [vmem:[%s6093_s1 + $0x288] sm:$0xff] }
  0x65   : > { %1563 = vmatpush.bf16.msra.mxu2 %v4638_v0  ;;  %v4683_v0 = vld [vmem:[%s6093_s1 + $0x3f0] sm:$0xff] }
  0x68   : > { %917 = vmatpush.bf16.msra.mxu1 %v4597_v60  ;;  %1305 = vmatpush.bf16.msra.mxu0 %v4621_v16  ;;  %v966_v60 = vpack.c.bf16 %v3799_v55, %v3798_v52  ;;  %v3800_v16 = vld [vmem:[%s4888_s30 + $0x240] sm:$0xff]  ;;  %v1481_v52 = vpack.c.bf16 %v4969_v53, %v4908_v26  ;;  %v4654_v55 = vld [vmem:[%s6093_s1 + $0x308] sm:$0xff] }
  0x69   : > { %v967_v22 = vpack.c.bf16 %v3801_v18, %v3800_v16  ;;  %v4674_v26 = vld [vmem:[%s6093_s1 + $0x3a8] sm:$0xff]  ;;  %v4653_v53 = vld [vmem:[%s6093_s1 + $0x300] sm:$0xff]  ;;  %v1482_v18 = vpack.c.bf16 %v4897_v21, %v4972_v54  ;;  %v4672_v21 = vld [vmem:[%s6093_s1 + $0x398] sm:$0xff] }
  0x6a   : > { %v4692_v54 = vld [vmem:[%s6093_s1 + $0x438] sm:$0xff] }
  0x6b   : > { %411 = vmatmul.bf16.gmra.mxu1 %v319_v7  ;;  %798 = vmatmul.bf16.gmra.mxu0 %v706_v8  ;;  %v4637_v7 = vld [vmem:[%s6093_s1 + $0x280] sm:$0xff]  ;;  %v4647_v8 = vld [vmem:[%s6093_s1 + $0x2d0] sm:$0xff] }
  0x6c   : > { %1427 = vmatpush.bf16.msrb.mxu1 %v4636_v13  ;;  %1816 = vmatpush.bf16.msrb.mxu0 %v4660_v41  ;;  %v3876_v13 = vld [vmem:[%s4888_s30 + $0x201] sm:$0xff] }
  0x6d   : > { %1177 = vmatmul.bf16.vlgmr.msrb.gmra.mxu3 %v1093_v12  ;;  %1564 = vmatpush.bf16.msra.mxu2 %v4637_v7  ;;  %v5241_v12 = vld [vmem:[%s4888_s30 + $0x170] sm:$0xff]  ;;  %v1223_v20 = vpack.c.bf16 %v3877_v15, %v3876_v13  ;;  %v5276_v41 = vld [vmem:[%s4888_s30 + $0x180] sm:$0xff] }
  0x6e   : > { %1048 = vmatmul.bf16.vlgmr.msrb.gmra.mxu2 %v964_v9  ;;  %v4631_v9 = vld [vmem:[%s6093_s1 + $0x250] sm:$0xff]  ;;  %1692 = vmatpush.bf16.msra.mxu3 %v4647_v8  ;;  %v3880_v7 = vld [vmem:[%s4888_s30 + $0x241] sm:$0xff] }
  0x6f   : > { %v3881_v8 = vld [vmem:[%s4888_s30 + $0x251] sm:$0xff] }
  0x70   : > { %1428 = vmatpush.bf16.msrb.mxu1 %v4635_v19  ;;  %1817 = vmatpush.bf16.msrb.mxu0 %v4659_v46  ;;  %v835_v19 = vpack.c.bf16 %v5241_v12, %v5238_v11  ;;  %v836_v46 = vpack.c.bf16 %v5279_v43, %v5276_v41  ;;  %v1225_v13 = vpack.c.bf16 %v3881_v8, %v3880_v7 }
  0x72   : > { %1693 = vmatpush.bf16.msra.mxu3 %v4646_v29  ;;  %v3914_v29 = vld [vmem:[%s4888_s30 + $0x142] sm:$0xff] }
  0x74   : > { %1429 = vmatpush.bf16.msrb.mxu1 %v4634_v36  ;;  %1818 = vmatpush.bf16.msrb.mxu0 %v4658_v6  ;;  %v4675_v36 = vld [vmem:[%s6093_s1 + $0x3b0] sm:$0xff] }
  0x75   : > { %v5327_v6 = vld [vmem:[%s4888_s30 + $0x1b0] sm:$0xff] }
  0x76   : > { %1694 = vmatpush.bf16.msra.mxu3 %v4645_v34  ;;  %v5376_v34 = vld [vmem:[%s4888_s30 + $0x152] sm:$0xff] }
  0x78   : > { %1430 = vmatpush.bf16.msrb.mxu1 %v4633_v44  ;;  %1819 = vmatpush.bf16.msrb.mxu0 %v4657_v10  ;;  %v3878_v44 = vld [vmem:[%s4888_s30 + $0x221] sm:$0xff] }
  0x79   : > { %v1224_v47 = vpack.c.bf16 %v3879_v45, %v3878_v44  ;;  %v1351_v44 = vpack.c.bf16 %v5376_v34, %v3914_v29 }
  0x7b   : > { %416 = vmatmul.bf16.gmra.mxu1 %v320_v30  ;;  %803 = vmatmul.bf16.gmra.mxu0 %v707_v31  ;;  %v1096_v30 = vpack.c.bf16 %v3841_v27, %v3840_v25  ;;  %v4630_v31 = vld [vmem:[%s6093_s1 + $0x248] sm:$0xff] }
  0x7c   : > { %1431 = vmatpush.bf16.msrb.mxu1 %v4632_v5  ;;  %1820 = vmatpush.bf16.msrb.mxu0 %v4656_v33  ;;  %v4673_v5 = vld [vmem:[%s6093_s1 + $0x3a0] sm:$0xff]  ;;  %v4666_v25 = vld [vmem:[%s6093_s1 + $0x368] sm:$0xff]  ;;  %v4671_v33 = vld [vmem:[%s6093_s1 + $0x390] sm:$0xff] }
  0x7d   : > { %1182 = vmatmul.bf16.gmra.mxu3 %v1094_v35  ;;  %v4629_v35 = vld [vmem:[%s6093_s1 + $0x240] sm:$0xff] }
  0x7e   : > { %1053 = vmatmul.bf16.gmra.mxu2 %v965_v32  ;;  %v4676_v32 = vld [vmem:[%s6093_s1 + $0x3b8] sm:$0xff] }
  0x7f   : > { %2074 = vmatpush.bf16.msrb.mxu2 %v4676_v32  ;;  %v4665_v32 = vld [vmem:[%s6093_s1 + $0x360] sm:$0xff] }
  0x80   : > { %1432 = vmatpush.bf16.msrb.mxu1 %v4631_v9  ;;  %1821 = vmatpush.bf16.msrb.mxu0 %v4655_v37  ;;  %v837_v9 = vpack.c.bf16 %v5327_v6, %v5313_v62  ;;  %v3958_v37 = vld [vmem:[%s4888_s30 + $0x50] sm:$0xff] }
  0x83   : > { %2075 = vmatpush.bf16.msrb.mxu2 %v4675_v36  ;;  %v4691_v36 = vld [vmem:[%s6093_s1 + $0x430] sm:$0xff] }
  0x84   : > { %1433 = vmatpush.bf16.msrb.mxu1 %v4630_v31  ;;  %1822 = vmatpush.bf16.msrb.mxu0 %v4654_v55  ;;  %v4681_v31 = vld [vmem:[%s6093_s1 + $0x3e0] sm:$0xff]  ;;  %v1483_v55 = vpack.c.bf16 %v4965_v51, %v3958_v37  ;;  %v4664_v51 = vld [vmem:[%s6093_s1 + $0x358] sm:$0xff] }
  0x87   : > { %2076 = vmatpush.bf16.msrb.mxu2 %v4674_v26 }
  0x88   : > { %1434 = vmatpush.bf16.msrb.mxu1 %v4629_v35  ;;  %1823 = vmatpush.bf16.msrb.mxu0 %v4653_v53  ;;  %v4034_v35 = vld [vmem:[%s4888_s30 + $0x11] sm:$0xff]  ;;  %v1613_v53 = vpack.c.bf16 %v5165_v23, %v5130_v2  ;;  %v4669_v2 = vld [vmem:[%s6093_s1 + $0x380] sm:$0xff] }
  0x8b   : > { %918 = vmatmul.bf16.vlgmr.msra.gmra.mxu1 %v834_v58  ;;  %1306 = vmatmul.bf16.vlgmr.msra.gmra.mxu0 %v1222_v59  ;;  %v1611_v58 = vpack.c.bf16 %v5077_v38, %v5031_v14  ;;  %v4684_v59 = vld [vmem:[%s6093_s1 + $0x3f8] sm:$0xff] }
  0x8c   : > { %2204 = vmatpush.bf16.msrb.mxu3 %v4684_v59  ;;  %2077 = vmatpush.bf16.msrb.mxu2 %v4673_v5 }
  0x8d   : > { %1187 = vmatmul.bf16.gmra.mxu3 %v1095_v4  ;;  %v4667_v4 = vld [vmem:[%s6093_s1 + $0x370] sm:$0xff]  ;;  %2334 = vmatpush.bf16.msra.mxu0 %v4692_v54 }
  0x8e   : > { %1058 = vmatmul.bf16.gmra.mxu2 %v966_v60  ;;  %v4668_v60 = vld [vmem:[%s6093_s1 + $0x378] sm:$0xff] }
  0x8f   : > { %1945 = vmatpush.bf16.msra.mxu1 %v4668_v60  ;;  %v4670_v60 = vld [vmem:[%s6093_s1 + $0x388] sm:$0xff] }
  0x90   : > { %2205 = vmatpush.bf16.msrb.mxu3 %v4683_v0  ;;  %2078 = vmatpush.bf16.msrb.mxu2 %v4672_v21 }
  0x91   : > { %2335 = vmatpush.bf16.msra.mxu0 %v4691_v36  ;;  %v4001_v36 = vld [vmem:[%s4888_s30 + $0x120] sm:$0xff] }
  0x93   : > { %1946 = vmatpush.bf16.msra.mxu1 %v4667_v4 }
  0x94   : > { %2079 = vmatpush.bf16.msrb.mxu2 %v4671_v33 }
  0x97   : > { %1947 = vmatpush.bf16.msra.mxu1 %v4666_v25  ;;  %v3961_v25 = vld [vmem:[%s4888_s30 + $0x80] sm:$0xff] }
  0x98   : > { %2080 = vmatpush.bf16.msrb.mxu2 %v4670_v60 }
  0x9b   : > { %923 = vmatmul.bf16.gmra.mxu1 %v835_v19  ;;  %1311 = vmatmul.bf16.gmra.mxu0 %v1223_v20  ;;  %v1612_v20 = vpack.c.bf16 %v5127_v1, %v5080_v39 }
  0x9c   : > { %1948 = vmatpush.bf16.msra.mxu1 %v4665_v32  ;;  %2081 = vmatpush.bf16.msrb.mxu2 %v4669_v2  ;;  %v5486_v2 = vld [vmem:[%s4888_s30 + $0x192] sm:$0xff] }
  0x9d   : > { %1192 = vmatmul.bf16.gmra.mxu3 %v1096_v30 }
  0x9e   : > { %1063 = vmatmul.bf16.gmra.mxu2 %v967_v22  ;;  %v4682_v22 = vld [vmem:[%s6093_s1 + $0x3e8] sm:$0xff] }
  0x9f   : > { %2206 = vmatpush.bf16.msrb.mxu3 %v4682_v22 }
  0xa0   : > { %1949 = vmatpush.bf16.msra.mxu1 %v4664_v51  ;;  %v4707_v51 = vld [vmem:[%s6093_s1 + $0x4b0] sm:$0xff] }
  0xa3   : > { %2207 = vmatpush.bf16.msrb.mxu3 %v4681_v31  ;;  %v1741_v31 = vpack.c.bf16 %v5036_v17, %v4981_v57  ;;  %v4662_v57 = vld [vmem:[%s6093_s1 + $0x348] sm:$0xff]  ;;  %v4708_v17 = vld [vmem:[%s6093_s1 + $0x4b8] sm:$0xff] }
  0xa8   : > { %v5285_v49 = vpop.f32.mrf.mxu1  ;;  %v5287_v50 = vpop.f32.mrf.mxu0 }
  0xab   : > { %928 = vmatmul.bf16.gmra.mxu1 %v836_v46  ;;  %1316 = vmatmul.bf16.gmra.mxu0 %v1224_v47  ;;  %v1740_v46 = vpack.c.bf16 %v4978_v56, %v4034_v35  ;;  %v4680_v56 = vld [vmem:[%s6093_s1 + $0x3d8] sm:$0xff] }
  0xac   : > { %2208 = vmatpush.bf16.msrb.mxu3 %v4680_v56  ;;  %v4661_v56 = vld [vmem:[%s6093_s1 + $0x340] sm:$0xff] }
  0xad   : > { %1695 = vmatmul.bf16.vlgmr.msra.gmra.mxu3 %v1611_v58 }
  0xae   : > { %1565 = vmatmul.bf16.vlgmr.msra.gmra.mxu2 %v1481_v52 }
  0xaf   : > { %2592 = vmatpush.bf16.msra.mxu2 %v4708_v17  ;;  %v5542_v17 = vld [vmem:[%s4888_s30 + $0x1b2] sm:$0xff] }
  0xb0   : > { %v5308_v38 = vpop.f32.mrf.mxu1  ;;  %v5310_v61 = vpop.f32.mrf.mxu0 }
  0xb1   : > { %v531_v14 = vpop.f32.mrf.mxu2  ;;  %v5315_v63 = vpop.f32.mrf.mxu3 }
  0xb3   : > { %2593 = vmatpush.bf16.msra.mxu2 %v4707_v51 }
  0xb8   : > { %v5335_v15 = vpop.f32.mrf.mxu1  ;;  %v5337_v16 = vpop.f32.mrf.mxu0 }
  0xb9   : > { %v5333_v10 = vpop.f32.mrf.mxu2  ;;  %v5341_v19 = vpop.f32.mrf.mxu3 }
  0xbb   : > { %933 = vmatmul.bf16.gmra.mxu1 %v837_v9  ;;  %1321 = vmatmul.bf16.gmra.mxu0 %v1225_v13  ;;  %v4679_v9 = vld [vmem:[%s6093_s1 + $0x3d0] sm:$0xff] }
  0xbc   : > { %v4663_v13 = vld [vmem:[%s6093_s1 + $0x350] sm:$0xff]  ;;  %2209 = vmatpush.bf16.msrb.mxu3 %v4679_v9 }
  0xbd   : > { %1700 = vmatmul.bf16.gmra.mxu3 %v1612_v20  ;;  %v5427_v20 = vld [vmem:[%s4888_s30 + $0x162] sm:$0xff]  ;;  %1950 = vmatpush.bf16.msra.mxu1 %v4663_v13 }
  0xbe   : > { %1570 = vmatmul.bf16.gmra.mxu2 %v1482_v18  ;;  %v4689_v18 = vld [vmem:[%s6093_s1 + $0x420] sm:$0xff] }
  0xc0   : > { %v5359_v1 = vpop.f32.mrf.mxu1  ;;  %v5361_v27 = vpop.f32.mrf.mxu0 }
  0xc1   : > { %v5357_v39 = vpop.f32.mrf.mxu2  ;;  %v5364_v30 = vpop.f32.mrf.mxu3  ;;  %1951 = vmatpush.bf16.msra.mxu1 %v4662_v57  ;;  %v4705_v57 = vld [vmem:[%s6093_s1 + $0x4a0] sm:$0xff] }
  0xc5   : > { %1952 = vmatpush.bf16.msra.mxu1 %v4661_v56 }
  0xc8   : > { %v402_v47 = vpop.f32.mrf.mxu1  ;;  %v789_v52 = vpop.f32.mrf.mxu0 }
  0xc9   : > { %v5384_v45 = vpop.f32.mrf.mxu2  ;;  %v422_v58 = vadd.f32 %v402_v47, %v5287_v50  ;;  %v5389_v59 = vpop.f32.mrf.mxu3  ;;  %v4690_v50 = vld [vmem:[%s6093_s1 + $0x428] sm:$0xff]  ;;  %v1614_v47 = vpack.c.bf16 %v4001_v36, %v5168_v24 }
  0xca   : > { %2336 = vmatpush.bf16.msra.mxu0 %v4690_v50  ;;  %v4687_v50 = vld [vmem:[%s6093_s1 + $0x410] sm:$0xff] }
  0xcb   : > { %v551_v26 = vadd.f32 %v531_v14, %v422_v58  ;;  %1435 = vmatmul.bf16.vlgmr.msrb.gmra.mxu1 %v1351_v44  ;;  %1824 = vmatmul.bf16.vlgmr.msrb.gmra.mxu0 %v1740_v46 }
  0xcd   : > { %v680_v14 = vadd.f32 %v5315_v63, %v551_v26  ;;  %1705 = vmatmul.bf16.gmra.mxu3 %v1613_v53 }
  0xce   : > { %1575 = vmatmul.bf16.gmra.mxu2 %v1483_v55  ;;  %2337 = vmatpush.bf16.msra.mxu0 %v4689_v18 }
  0xcf   : > { %v5409_v23 = vadd.f32 %v789_v52, %v680_v14  ;;  %v5483_v14 = vld [vmem:[%s4888_s30 + $0x182] sm:$0xff] }
  0xd0   : > { %v404_v4 = vpop.f32.mrf.mxu1  ;;  %v791_v5 = vpop.f32.mrf.mxu0 }
  0xd1   : > { %v5411_v0 = vpop.f32.mrf.mxu2  ;;  %v423_v63 = vadd.f32 %v404_v4, %v5310_v61  ;;  %v5414_v7 = vpop.f32.mrf.mxu3  ;;  %v5430_v61 = vld [vmem:[%s4888_s30 + $0x172] sm:$0xff] }
  0xd2   : > { %v1352_v54 = vpack.c.bf16 %v5430_v61, %v5427_v20 }
  0xd3   : > { %v552_v8 = vadd.f32 %v5333_v10, %v423_v63  ;;  %v3960_v10 = vld [vmem:[%s4888_s30 + $0x70] sm:$0xff]  ;;  %v1353_v63 = vpack.c.bf16 %v5486_v2, %v5483_v14 }
  0xd4   : > { %v1484_v35 = vpack.c.bf16 %v3961_v25, %v3960_v10 }
  0xd5   : > { %v681_v22 = vadd.f32 %v5341_v19, %v552_v8  ;;  %v4678_v19 = vld [vmem:[%s6093_s1 + $0x3c8] sm:$0xff] }
  0xd6   : > { %2210 = vmatpush.bf16.msrb.mxu3 %v4678_v19  ;;  %v5527_v19 = vld [vmem:[%s4888_s30 + $0x1a2] sm:$0xff] }
  0xd7   : > { %v5435_v21 = vadd.f32 %v791_v5, %v681_v22 }
  0xd8   : > { %v407_v32 = vpop.f32.mrf.mxu1  ;;  %v794_v33 = vpop.f32.mrf.mxu0 }
  0xd9   : > { %v5439_v29 = vpop.f32.mrf.mxu2  ;;  %v424_v37 = vadd.f32 %v407_v32, %v5337_v16  ;;  %v5448_v44 = vpop.f32.mrf.mxu3  ;;  %v4688_v16 = vld [vmem:[%s6093_s1 + $0x418] sm:$0xff] }
  0xda   : > { %2338 = vmatpush.bf16.msra.mxu0 %v4688_v16  ;;  %v4041_v16 = vld [vmem:[%s4888_s30 + $0x81] sm:$0xff] }
  0xdb   : > { %v553_v46 = vadd.f32 %v5357_v39, %v424_v37  ;;  %1440 = vmatmul.bf16.gmra.mxu1 %v1352_v54  ;;  %1829 = vmatmul.bf16.gmra.mxu0 %v1741_v31  ;;  %v4677_v39 = vld [vmem:[%s6093_s1 + $0x3c0] sm:$0xff]  ;;  %v4700_v31 = vld [vmem:[%s6093_s1 + $0x478] sm:$0xff] }
  0xdc   : > { %2211 = vmatpush.bf16.msrb.mxu3 %v4677_v39  ;;  %2463 = vmatpush.bf16.msrb.mxu1 %v4700_v31  ;;  %v4723_v31 = vld [vmem:[%s6093_s1 + $0x530] sm:$0xff] }
  0xdd   : > { %v682_v52 = vadd.f32 %v5364_v30, %v553_v46  ;;  %1710 = vmatmul.bf16.gmra.mxu3 %v1614_v47  ;;  %v4715_v46 = vld [vmem:[%s6093_s1 + $0x4f0] sm:$0xff] }
  0xde   : > { %1580 = vmatmul.bf16.gmra.mxu2 %v1484_v35  ;;  %2339 = vmatpush.bf16.msra.mxu0 %v4687_v50  ;;  %v4699_v47 = vld [vmem:[%s6093_s1 + $0x470] sm:$0xff] }
  0xdf   : > { %v5465_v24 = vadd.f32 %v794_v33, %v682_v52  ;;  %v4116_v52 = vld [vmem:[%s4888_s30 + $0x32] sm:$0xff] }
  0xe0   : > { %v409_v58 = vpop.f32.mrf.mxu1  ;;  %v796_v60 = vpop.f32.mrf.mxu0  ;;  %2464 = vmatpush.bf16.msrb.mxu1 %v4699_v47  ;;  %v1999_v51 = vpack.c.bf16 %v5133_v3, %v4116_v52  ;;  %v4698_v3 = vld [vmem:[%s6093_s1 + $0x468] sm:$0xff] }
  0xe1   : > { %v5467_v55 = vpop.f32.mrf.mxu2  ;;  %v425_v26 = vadd.f32 %v409_v58, %v5361_v27  ;;  %v5470_v53 = vpop.f32.mrf.mxu3  ;;  %v4038_v27 = vld [vmem:[%s4888_s30 + $0x51] sm:$0xff]  ;;  %v1354_v58 = vpack.c.bf16 %v5542_v17, %v5527_v19  ;;  %v4722_v52 = vld [vmem:[%s6093_s1 + $0x528] sm:$0xff] }
  0xe2   : > { %v1742_v9 = vpack.c.bf16 %v5087_v42, %v4038_v27  ;;  %v2128_v42 = vpack.c.bf16 %v5238_v11, %v5204_v48 }
  0xe3   : > { %v554_v30 = vadd.f32 %v5384_v45, %v425_v26  ;;  %v4114_v45 = vld [vmem:[%s4888_s30 + $0x12] sm:$0xff] }
  0xe4   : > { %v1998_v22 = vpack.c.bf16 %v5083_v40, %v4114_v45  ;;  %v4716_v40 = vld [vmem:[%s6093_s1 + $0x4f8] sm:$0xff]  ;;  %v4714_v45 = vld [vmem:[%s6093_s1 + $0x4e8] sm:$0xff]  ;;  %2465 = vmatpush.bf16.msrb.mxu1 %v4698_v3  ;;  %v4196_v3 = vld [vmem:[%s4888_s30 + $0x210] sm:$0xff] }
  0xe5   : > { %v683_v4 = vadd.f32 %v5389_v59, %v554_v30  ;;  %v4686_v59 = vld [vmem:[%s6093_s1 + $0x408] sm:$0xff]  ;;  %2721 = vmatpush.bf16.msra.mxu3 %v4716_v40 }
  0xe6   : > { %2340 = vmatpush.bf16.msra.mxu0 %v4686_v59  ;;  %v5593_v40 = vld [vmem:[%s4888_s30 + $0xc1] sm:$0xff] }
  0xe7   : > { %v5491_v5 = vadd.f32 %v796_v60, %v683_v4  ;;  %v2129_v4 = vpack.c.bf16 %v5276_v41, %v5241_v12 }
  0xe8   : > { %v412_v13 = vpop.f32.mrf.mxu1  ;;  %v799_v18 = vpop.f32.mrf.mxu0 }
  0xe9   : > { %v5495_v8 = vpop.f32.mrf.mxu2  ;;  %v426_v10 = vadd.f32 %v412_v13, %v5285_v49  ;;  %v5503_v25 = vpop.f32.mrf.mxu3  ;;  %v4706_v49 = vld [vmem:[%s6093_s1 + $0x4a8] sm:$0xff]  ;;  %2722 = vmatpush.bf16.msra.mxu3 %v4715_v46 }
  0xea   : > { %2594 = vmatpush.bf16.msra.mxu2 %v4706_v49  ;;  %v4118_v49 = vld [vmem:[%s4888_s30 + $0x52] sm:$0xff] }
  0xeb   : > { %v555_v54 = vadd.f32 %v5411_v0, %v426_v10  ;;  %1445 = vmatmul.bf16.gmra.mxu1 %v1353_v63  ;;  %1834 = vmatmul.bf16.gmra.mxu0 %v1742_v9  ;;  %v4685_v0 = vld [vmem:[%s6093_s1 + $0x400] sm:$0xff] }
  0xec   : > { %2341 = vmatpush.bf16.msra.mxu0 %v4685_v0  ;;  %v4713_v10 = vld [vmem:[%s6093_s1 + $0x4e0] sm:$0xff] }
  0xed   : > { %v684_v48 = vadd.f32 %v5414_v7, %v555_v54  ;;  %2212 = vmatmul.bf16.vlgmr.msrb.gmra.mxu3 %v2128_v42  ;;  %v4697_v54 = vld [vmem:[%s6093_s1 + $0x460] sm:$0xff]  ;;  %v4703_v42 = vld [vmem:[%s6093_s1 + $0x490] sm:$0xff] }
  0xee   : > { %2082 = vmatmul.bf16.vlgmr.msrb.gmra.mxu2 %v1998_v22  ;;  %2723 = vmatpush.bf16.msra.mxu3 %v4714_v45  ;;  %v4074_v22 = vld [vmem:[%s4888_s30 + $0xb1] sm:$0xff]  ;;  %v4119_v0 = vld [vmem:[%s4888_s30 + $0x62] sm:$0xff] }
  0xef   : > { %v5521_v11 = vadd.f32 %v799_v18, %v684_v48  ;;  %2595 = vmatpush.bf16.msra.mxu2 %v4705_v57  ;;  %2466 = vmatpush.bf16.msrb.mxu1 %v4697_v54  ;;  %v2000_v47 = vpack.c.bf16 %v4119_v0, %v4118_v49  ;;  %v4721_v45 = vld [vmem:[%s6093_s1 + $0x520] sm:$0xff]  ;;  %v4694_v0 = vld [vmem:[%s6093_s1 + $0x448] sm:$0xff] }
  0xf0   : > { %v414_v33 = vpop.f32.mrf.mxu1  ;;  %v801_v35 = vpop.f32.mrf.mxu0  ;;  %v4161_v54 = vld [vmem:[%s4888_s30 + $0x1c0] sm:$0xff] }
  0xf1   : > { %v5523_v32 = vpop.f32.mrf.mxu2  ;;  %v427_v36 = vadd.f32 %v414_v33, %v5308_v38  ;;  %v5529_v7 = vpop.f32.mrf.mxu3  ;;  %v4040_v38 = vld [vmem:[%s4888_s30 + $0x71] sm:$0xff]  ;;  %v1869_v33 = vpack.c.bf16 %v5593_v40, %v4074_v22  ;;  %v2131_v49 = vpack.c.bf16 %v4161_v54, %v5327_v6 }
  0xf2   : > { %v1743_v26 = vpack.c.bf16 %v4041_v16, %v4040_v38  ;;  %2724 = vmatpush.bf16.msra.mxu3 %v4713_v10  ;;  %v4702_v38 = vld [vmem:[%s6093_s1 + $0x488] sm:$0xff] }
  0xf3   : > { %v556_v37 = vadd.f32 %v5439_v29, %v427_v36 }
  0xf5   : > { %v685_v39 = vadd.f32 %v5448_v44, %v556_v37 }
  0xf7   : > { %v5548_v29 = vadd.f32 %v801_v35, %v685_v39  ;;  %v2130_v39 = vpack.c.bf16 %v5313_v62, %v5279_v43  ;;  %v4701_v43 = vld [vmem:[%s6093_s1 + $0x480] sm:$0xff] }
  0xf8   : > { %v417_v30 = vpop.f32.mrf.mxu1  ;;  %v804_v56 = vpop.f32.mrf.mxu0 }
  0xf9   : > { %v5552_v60 = vpop.f32.mrf.mxu2  ;;  %v428_v50 = vadd.f32 %v417_v30, %v5335_v15  ;;  %v5556_v27 = vpop.f32.mrf.mxu3  ;;  %v4704_v15 = vld [vmem:[%s6093_s1 + $0x498] sm:$0xff] }
  0xfa   : > { %2596 = vmatpush.bf16.msra.mxu2 %v4704_v15  ;;  %v4197_v15 = vld [vmem:[%s4888_s30 + $0x220] sm:$0xff] }
  0xfb   : > { %v557_v44 = vadd.f32 %v5467_v55, %v428_v50  ;;  %1450 = vmatmul.bf16.gmra.mxu1 %v1354_v58  ;;  %1839 = vmatmul.bf16.gmra.mxu0 %v1743_v26  ;;  %v4724_v55 = vld [vmem:[%s6093_s1 + $0x538] sm:$0xff]  ;;  %v2259_v22 = vpack.c.bf16 %v4197_v15, %v4196_v3 }
  0xfc   : > { %2851 = vmatpush.bf16.msrb.mxu0 %v4724_v55 }
  0xfd   : > { %v686_v12 = vadd.f32 %v5470_v53, %v557_v44  ;;  %2217 = vmatmul.bf16.gmra.mxu3 %v2129_v4  ;;  %v4711_v44 = vld [vmem:[%s6093_s1 + $0x4d0] sm:$0xff] }
  0xfe   : > { %2087 = vmatmul.bf16.gmra.mxu2 %v1999_v51  ;;  %v4695_v4 = vld [vmem:[%s6093_s1 + $0x450] sm:$0xff] }
  0xff   : > { %v5574_v41 = vadd.f32 %v804_v56, %v686_v12  ;;  %2597 = vmatpush.bf16.msra.mxu2 %v4703_v42  ;;  %v5636_v56 = vld [vmem:[%s4888_s30 + $0xd1] sm:$0xff]  ;;  %v5660_v12 = vld [vmem:[%s4888_s30 + $0x82] sm:$0xff] }
 0x100   : > { %v419_v9 = vpop.f32.mrf.mxu1  ;;  %v806_v13 = vpop.f32.mrf.mxu0  ;;  %2852 = vmatpush.bf16.msrb.mxu0 %v4723_v31  ;;  %v4710_v42 = vld [vmem:[%s6093_s1 + $0x4c8] sm:$0xff] }
 0x101   : > { %v5576_v63 = vpop.f32.mrf.mxu2  ;;  %v429_v18 = vadd.f32 %v419_v9, %v5359_v1  ;;  %v5580_v59 = vpop.f32.mrf.mxu3  ;;  %v4194_v1 = vld [vmem:[%s4888_s30 + $0x1f0] sm:$0xff] }
 0x102   : > { %v2258_v36 = vpack.c.bf16 %v5173_v28, %v4194_v1  ;;  %v4712_v28 = vld [vmem:[%s6093_s1 + $0x4d8] sm:$0xff] }
 0x103   : > { %v558_v53 = vadd.f32 %v5495_v8, %v429_v18  ;;  %2725 = vmatpush.bf16.msra.mxu3 %v4712_v28  ;;  %2598 = vmatpush.bf16.msra.mxu2 %v4702_v38  ;;  %v5698_v38 = vld [vmem:[%s4888_s30 + $0xf1] sm:$0xff] }
 0x104   : > { %2853 = vmatpush.bf16.msrb.mxu0 %v4722_v52  ;;  %v4739_v28 = vld [vmem:[%s6093_s1 + $0x5b0] sm:$0xff]  ;;  %v5713_v52 = vld [vmem:[%s4888_s30 + $0x101] sm:$0xff] }
 0x105   : > { %v687_v8 = vadd.f32 %v5503_v25, %v558_v53 }
 0x107   : > { %v5602_v48 = vadd.f32 %v806_v13, %v687_v8  ;;  %2599 = vmatpush.bf16.msra.mxu2 %v4701_v43  ;;  %2726 = vmatpush.bf16.msra.mxu3 %v4711_v44 }
 0x108   : > { %v919_v37 = vpop.f32.mrf.mxu1  ;;  %v1307_v46 = vpop.f32.mrf.mxu0  ;;  %2854 = vmatpush.bf16.msrb.mxu0 %v4721_v45 }
 0x109   : > { %v5605_v35 = vpop.f32.mrf.mxu2  ;;  %v939_v57 = vadd.f32 %v919_v37, %v5409_v23  ;;  %v5609_v25 = vpop.f32.mrf.mxu3  ;;  %v4696_v23 = vld [vmem:[%s6093_s1 + $0x458] sm:$0xff] }
 0x10a   : > { %2467 = vmatpush.bf16.msrb.mxu1 %v4696_v23  ;;  %v4719_v23 = vld [vmem:[%s6093_s1 + $0x510] sm:$0xff] }
 0x10b   : > { %v1069_v16 = vadd.f32 %v5523_v32, %v939_v57  ;;  %1953 = vmatmul.bf16.vlgmr.msra.gmra.mxu1 %v1869_v33  ;;  %2342 = vmatmul.bf16.vlgmr.msra.gmra.mxu0 %v2258_v36  ;;  %v4740_v33 = vld [vmem:[%s6093_s1 + $0x5b8] sm:$0xff] }
 0x10c   : > { %2727 = vmatpush.bf16.msra.mxu3 %v4710_v42  ;;  %3110 = vmatpush.bf16.msrb.mxu2 %v4740_v33  ;;  %v4731_v33 = vld [vmem:[%s6093_s1 + $0x570] sm:$0xff] }
 0x10d   : > { %v1198_v32 = vadd.f32 %v5529_v7, %v1069_v16  ;;  %2222 = vmatmul.bf16.gmra.mxu3 %v2130_v39  ;;  %v4693_v39 = vld [vmem:[%s6093_s1 + $0x440] sm:$0xff] }
 0x10e   : > { %2092 = vmatmul.bf16.gmra.mxu2 %v2000_v47  ;;  %2468 = vmatpush.bf16.msrb.mxu1 %v4695_v4 }
 0x10f   : > { %v5630_v62 = vadd.f32 %v1307_v46, %v1198_v32  ;;  %v4199_v32 = vld [vmem:[%s4888_s30 + $0x240] sm:$0xff] }
 0x110   : > { %v921_v26 = vpop.f32.mrf.mxu1  ;;  %v1309_v7 = vpop.f32.mrf.mxu0  ;;  %3111 = vmatpush.bf16.msrb.mxu2 %v4739_v28 }
 0x111   : > { %v5632_v58 = vpop.f32.mrf.mxu2  ;;  %v940_v30 = vadd.f32 %v921_v26, %v5435_v21  ;;  %v5638_v51 = vpop.f32.mrf.mxu3  ;;  %v5651_v21 = vld [vmem:[%s4888_s30 + $0xe1] sm:$0xff]  ;;  %v4274_v26 = vld [vmem:[%s4888_s30 + $0x1f1] sm:$0xff] }
 0x112   : > { %v1870_v13 = vpack.c.bf16 %v5651_v21, %v5636_v56  ;;  %2469 = vmatpush.bf16.msrb.mxu1 %v4694_v0  ;;  %v4747_v0 = vld [vmem:[%s6093_s1 + $0x5f0] sm:$0xff] }
 0x113   : > { %v1070_v50 = vadd.f32 %v5552_v60, %v940_v30  ;;  %v5657_v60 = vld [vmem:[%s4888_s30 + $0x72] sm:$0xff]  ;;  %v1871_v30 = vpack.c.bf16 %v5713_v52, %v5698_v38 }
 0x115   : > { %v1199_v55 = vadd.f32 %v5556_v27, %v1070_v50  ;;  %v2001_v27 = vpack.c.bf16 %v5660_v12, %v5657_v60 }
 0x116   : > { %2470 = vmatpush.bf16.msrb.mxu1 %v4693_v39 }
 0x117   : > { %v5662_v9 = vadd.f32 %v1309_v7, %v1199_v55 }
 0x118   : > { %v924_v53 = vpop.f32.mrf.mxu1  ;;  %v1312_v10 = vpop.f32.mrf.mxu0 }
 0x119   : > { %v5666_v18 = vpop.f32.mrf.mxu2  ;;  %v941_v1 = vadd.f32 %v924_v53, %v5465_v24  ;;  %v5675_v31 = vpop.f32.mrf.mxu3  ;;  %v4720_v24 = vld [vmem:[%s6093_s1 + $0x518] sm:$0xff] }
 0x11a   : > { %2855 = vmatpush.bf16.msrb.mxu0 %v4720_v24  ;;  %v4748_v53 = vld [vmem:[%s6093_s1 + $0x5f8] sm:$0xff]  ;;  %v4737_v24 = vld [vmem:[%s6093_s1 + $0x5a0] sm:$0xff] }
 0x11b   : > { %v1071_v8 = vadd.f32 %v5576_v63, %v941_v1  ;;  %1958 = vmatmul.bf16.gmra.mxu1 %v1870_v13  ;;  %2347 = vmatmul.bf16.gmra.mxu0 %v2259_v22  ;;  %v4709_v63 = vld [vmem:[%s6093_s1 + $0x4c0] sm:$0xff]  ;;  %v2645_v22 = vpack.c.bf16 %v5427_v20, %v5376_v34 }
 0x11c   : > { %2728 = vmatpush.bf16.msra.mxu3 %v4709_v63  ;;  %v5769_v63 = vld [vmem:[%s4888_s30 + $0x121] sm:$0xff] }
 0x11d   : > { %v1200_v6 = vadd.f32 %v5580_v59, %v1071_v8  ;;  %2227 = vmatmul.bf16.gmra.mxu3 %v2131_v49  ;;  %v5754_v8 = vld [vmem:[%s4888_s30 + $0x111] sm:$0xff] }
 0x11e   : > { %2097 = vmatmul.bf16.gmra.mxu2 %v2001_v27  ;;  %2856 = vmatpush.bf16.msrb.mxu0 %v4719_v23 }
 0x11f   : > { %v5692_v36 = vadd.f32 %v1312_v10, %v1200_v6  ;;  %v4732_v10 = vld [vmem:[%s6093_s1 + $0x578] sm:$0xff]  ;;  %v4201_v6 = vld [vmem:[%s4888_s30 + $0x260] sm:$0xff] }
 0x120   : > { %v926_v46 = vpop.f32.mrf.mxu1  ;;  %v1314_v47 = vpop.f32.mrf.mxu0  ;;  %3239 = vmatpush.bf16.msrb.mxu3 %v4748_v53  ;;  %2981 = vmatpush.bf16.msra.mxu1 %v4732_v10  ;;  %v4745_v53 = vld [vmem:[%s6093_s1 + $0x5e0] sm:$0xff] }
 0x121   : > { %v5694_v37 = vpop.f32.mrf.mxu2  ;;  %v942_v57 = vadd.f32 %v926_v46, %v5491_v5  ;;  %v5700_v59 = vpop.f32.mrf.mxu3  ;;  %v4198_v5 = vld [vmem:[%s4888_s30 + $0x230] sm:$0xff]  ;;  %v4729_v10 = vld [vmem:[%s6093_s1 + $0x560] sm:$0xff] }
 0x122   : > { %v2260_v44 = vpack.c.bf16 %v4199_v32, %v4198_v5 }
 0x123   : > { %v1072_v16 = vadd.f32 %v5605_v35, %v942_v57  ;;  %v4275_v35 = vld [vmem:[%s4888_s30 + $0x201] sm:$0xff] }
 0x124   : > { %v2516_v3 = vpack.c.bf16 %v4275_v35, %v4274_v26  ;;  %3240 = vmatpush.bf16.msrb.mxu3 %v4747_v0  ;;  %2982 = vmatpush.bf16.msra.mxu1 %v4731_v33  ;;  %v2646_v35 = vpack.c.bf16 %v5483_v14, %v5430_v61 }
 0x125   : > { %v1201_v43 = vadd.f32 %v5609_v25, %v1072_v16  ;;  %v4718_v25 = vld [vmem:[%s6093_s1 + $0x508] sm:$0xff]  ;;  %v1872_v16 = vpack.c.bf16 %v5769_v63, %v5754_v8 }
 0x126   : > { %2857 = vmatpush.bf16.msrb.mxu0 %v4718_v25 }
 0x127   : > { %v5720_v7 = vadd.f32 %v1314_v47, %v1201_v43  ;;  %v4276_v47 = vld [vmem:[%s4888_s30 + $0x211] sm:$0xff] }
 0x128   : > { %v929_v4 = vpop.f32.mrf.mxu1  ;;  %v1317_v45 = vpop.f32.mrf.mxu0 }
 0x129   : > { %v5724_v50 = vpop.f32.mrf.mxu2  ;;  %v943_v15 = vadd.f32 %v929_v4, %v5521_v11  ;;  %v5730_v55 = vpop.f32.mrf.mxu3  ;;  %v4738_v11 = vld [vmem:[%s6093_s1 + $0x5a8] sm:$0xff] }
 0x12a   : > { %3112 = vmatpush.bf16.msrb.mxu2 %v4738_v11  ;;  %v4735_v11 = vld [vmem:[%s6093_s1 + $0x590] sm:$0xff] }
 0x12b   : > { %v1073_v13 = vadd.f32 %v5632_v58, %v943_v15  ;;  %1963 = vmatmul.bf16.gmra.mxu1 %v1871_v30  ;;  %2352 = vmatmul.bf16.gmra.mxu0 %v2260_v44  ;;  %v4717_v58 = vld [vmem:[%s6093_s1 + $0x500] sm:$0xff]  ;;  %v4746_v30 = vld [vmem:[%s6093_s1 + $0x5e8] sm:$0xff]  ;;  %v4234_v15 = vld [vmem:[%s4888_s30 + $0x151] sm:$0xff] }
 0x12c   : > { %2858 = vmatpush.bf16.msrb.mxu0 %v4717_v58  ;;  %v4730_v44 = vld [vmem:[%s6093_s1 + $0x568] sm:$0xff]  ;;  %3241 = vmatpush.bf16.msrb.mxu3 %v4746_v30  ;;  %v4354_v58 = vld [vmem:[%s4888_s30 + $0x20] sm:$0xff] }
 0x12d   : > { %v1202_v34 = vadd.f32 %v5638_v51, %v1073_v13  ;;  %2729 = vmatmul.bf16.vlgmr.msra.gmra.mxu3 %v2645_v22  ;;  %2983 = vmatpush.bf16.msra.mxu1 %v4730_v44  ;;  %v4743_v44 = vld [vmem:[%s6093_s1 + $0x5d0] sm:$0xff] }
 0x12e   : > { %2600 = vmatmul.bf16.vlgmr.msra.gmra.mxu2 %v2516_v3 }
 0x12f   : > { %v5748_v20 = vadd.f32 %v1317_v45, %v1202_v34  ;;  %3113 = vmatpush.bf16.msrb.mxu2 %v4737_v24  ;;  %v4755_v34 = vld [vmem:[%s6093_s1 + $0x630] sm:$0xff] }
 0x130   : > { %v931_v54 = vpop.f32.mrf.mxu1  ;;  %v1319_v42 = vpop.f32.mrf.mxu0  ;;  %3242 = vmatpush.bf16.msrb.mxu3 %v4745_v53 }
 0x131   : > { %v5750_v27 = vpop.f32.mrf.mxu2  ;;  %v944_v1 = vadd.f32 %v931_v54, %v5548_v29  ;;  %v5756_v51 = vpop.f32.mrf.mxu3  ;;  %v4200_v29 = vld [vmem:[%s4888_s30 + $0x250] sm:$0xff]  ;;  %2984 = vmatpush.bf16.msra.mxu1 %v4729_v10 }
 0x132   : > { %v2261_v28 = vpack.c.bf16 %v4201_v6, %v4200_v29  ;;  %v4278_v54 = vld [vmem:[%s4888_s30 + $0x231] sm:$0xff] }
 0x133   : > { %v1074_v49 = vadd.f32 %v5666_v18, %v944_v1  ;;  %v4277_v18 = vld [vmem:[%s4888_s30 + $0x221] sm:$0xff] }
 0x134   : > { %v2517_v32 = vpack.c.bf16 %v4277_v18, %v4276_v47 }
 0x135   : > { %v1203_v46 = vadd.f32 %v5675_v31, %v1074_v49 }
 0x137   : > { %v5776_v57 = vadd.f32 %v1319_v42, %v1203_v46  ;;  %v4279_v42 = vld [vmem:[%s4888_s30 + $0x241] sm:$0xff] }
 0x138   : > { %v934_v23 = vpop.f32.mrf.mxu1  ;;  %v1322_v5 = vpop.f32.mrf.mxu0  ;;  %v2518_v6 = vpack.c.bf16 %v4279_v42, %v4278_v54 }
 0x139   : > { %v5780_v39 = vpop.f32.mrf.mxu2  ;;  %v945_v43 = vadd.f32 %v934_v23, %v5574_v41  ;;  %v5783_v26 = vpop.f32.mrf.mxu3  ;;  %v4736_v41 = vld [vmem:[%s6093_s1 + $0x598] sm:$0xff]  ;;  %v4754_v23 = vld [vmem:[%s6093_s1 + $0x628] sm:$0xff] }
 0x13a   : > { %3114 = vmatpush.bf16.msrb.mxu2 %v4736_v41  ;;  %v4727_v41 = vld [vmem:[%s6093_s1 + $0x550] sm:$0xff] }
 0x13b   : > { %v1075_v31 = vadd.f32 %v5694_v37, %v945_v43  ;;  %1968 = vmatmul.bf16.gmra.mxu1 %v1872_v16  ;;  %2357 = vmatmul.bf16.gmra.mxu0 %v2261_v28  ;;  %v5800_v37 = vld [vmem:[%s6093_s1 + $0x638] sm:$0xff]  ;;  %v2647_v16 = vpack.c.bf16 %v5527_v19, %v5486_v2  ;;  %v4733_v2 = vld [vmem:[%s6093_s1 + $0x580] sm:$0xff] }
 0x13c   : > { %3368 = vmatpush.bf16.msra.mxu0 %v5800_v37  ;;  %v4744_v28 = vld [vmem:[%s6093_s1 + $0x5d8] sm:$0xff] }
 0x13d   : > { %v1204_v61 = vadd.f32 %v5700_v59, %v1075_v31  ;;  %2734 = vmatmul.bf16.gmra.mxu3 %v2646_v35  ;;  %v4235_v59 = vld [vmem:[%s4888_s30 + $0x161] sm:$0xff]  ;;  %v4236_v31 = vld [vmem:[%s4888_s30 + $0x171] sm:$0xff] }
 0x13e   : > { %2605 = vmatmul.bf16.gmra.mxu2 %v2517_v32  ;;  %v2387_v49 = vpack.c.bf16 %v4235_v59, %v4234_v15  ;;  %3243 = vmatpush.bf16.msrb.mxu3 %v4744_v28  ;;  %v4281_v15 = vld [vmem:[%s4888_s30 + $0x261] sm:$0xff]  ;;  %v4751_v28 = vld [vmem:[%s6093_s1 + $0x610] sm:$0xff] }
 0x13f   : > { %v5804_v14 = vadd.f32 %v1322_v5, %v1204_v61  ;;  %3115 = vmatpush.bf16.msrb.mxu2 %v4735_v11  ;;  %v4753_v61 = vld [vmem:[%s6093_s1 + $0x620] sm:$0xff] }
 0x140   : > { %v936_v45 = vpop.f32.mrf.mxu1  ;;  %v1324_v3 = vpop.f32.mrf.mxu0  ;;  %3369 = vmatpush.bf16.msra.mxu0 %v4755_v34 }
 0x141   : > { %v5806_v4 = vpop.f32.mrf.mxu2  ;;  %v946_v25 = vadd.f32 %v936_v45, %v5602_v48  ;;  %v5811_v13 = vpop.f32.mrf.mxu3  ;;  %v4355_v48 = vld [vmem:[%s4888_s30 + $0x30] sm:$0xff]  ;;  %v4356_v45 = vld [vmem:[%s4888_s30 + $0x40] sm:$0xff] }
 0x142   : > { %v2775_v33 = vpack.c.bf16 %v4355_v48, %v4354_v58  ;;  %3244 = vmatpush.bf16.msrb.mxu3 %v4743_v44  ;;  %v4321_v48 = vld [vmem:[%s4888_s30 + $0x1c2] sm:$0xff] }
 0x143   : > { %v1076_v22 = vadd.f32 %v5724_v50, %v946_v25  ;;  %v4280_v25 = vld [vmem:[%s4888_s30 + $0x251] sm:$0xff] }
 0x144   : > { %3370 = vmatpush.bf16.msra.mxu0 %v4754_v23  ;;  %v2519_v58 = vpack.c.bf16 %v4281_v15, %v4280_v25 }
 0x145   : > { %v1205_v50 = vadd.f32 %v5730_v55, %v1076_v22  ;;  %v4734_v55 = vld [vmem:[%s6093_s1 + $0x588] sm:$0xff] }
 0x146   : > { %3116 = vmatpush.bf16.msrb.mxu2 %v4734_v55 }
 0x147   : > { %v5831_v1 = vadd.f32 %v1324_v3, %v1205_v50  ;;  %v4357_v3 = vld [vmem:[%s4888_s30 + $0x50] sm:$0xff] }
 0x148   : > { %v1436_v24 = vpop.f32.mrf.mxu1  ;;  %v1825_v29 = vpop.f32.mrf.mxu0  ;;  %3371 = vmatpush.bf16.msra.mxu0 %v4753_v61  ;;  %v2776_v10 = vpack.c.bf16 %v4357_v3, %v4356_v45  ;;  %v3163_v3 = vpack.c.bf16 %v5636_v56, %v5593_v40 }
 0x149   : > { %v5833_v0 = vpop.f32.mrf.mxu2  ;;  %v1456_v46 = vadd.f32 %v1436_v24, %v5630_v62  ;;  %v5836_v47 = vpop.f32.mrf.mxu3  ;;  %v4728_v62 = vld [vmem:[%s6093_s1 + $0x558] sm:$0xff] }
 0x14a   : > { %2985 = vmatpush.bf16.msra.mxu1 %v4728_v62  ;;  %3117 = vmatpush.bf16.msrb.mxu2 %v4733_v2  ;;  %v4239_v62 = vld [vmem:[%s4888_s30 + $0x1a1] sm:$0xff] }
 0x14b   : > { %v1586_v18 = vadd.f32 %v5750_v27, %v1456_v46  ;;  %2471 = vmatmul.bf16.vlgmr.msrb.gmra.mxu1 %v2387_v49  ;;  %2859 = vmatmul.bf16.vlgmr.msrb.gmra.mxu0 %v2775_v33  ;;  %v2648_v49 = vpack.c.bf16 %v4321_v48, %v5542_v17  ;;  %v4752_v33 = vld [vmem:[%s6093_s1 + $0x618] sm:$0xff] }
 0x14c   : > { %3372 = vmatpush.bf16.msra.mxu0 %v4752_v33 }
 0x14d   : > { %v1716_v27 = vadd.f32 %v5756_v51, %v1586_v18  ;;  %2739 = vmatmul.bf16.gmra.mxu3 %v2647_v16  ;;  %v4238_v18 = vld [vmem:[%s4888_s30 + $0x191] sm:$0xff]  ;;  %v4725_v16 = vld [vmem:[%s6093_s1 + $0x540] sm:$0xff] }
 0x14e   : > { %2610 = vmatmul.bf16.gmra.mxu2 %v2518_v6  ;;  %2986 = vmatpush.bf16.msra.mxu1 %v4727_v41 }
 0x14f   : > { %v5857_v19 = vadd.f32 %v1825_v29, %v1716_v27  ;;  %4765 = vmatpush.bf16.msra.mxu2 %v5800_v37  ;;  %v4359_v27 = vld [vmem:[%s4888_s30 + $0x70] sm:$0xff] }
 0x150   : > { %v1438_v32 = vpop.f32.mrf.mxu1  ;;  %v1827_v51 = vpop.f32.mrf.mxu0  ;;  %3373 = vmatpush.bf16.msra.mxu0 %v4751_v28 }
 0x151   : > { %v5859_v5 = vpop.f32.mrf.mxu2  ;;  %v1457_v43 = vadd.f32 %v1438_v32, %v5662_v9  ;;  %v5863_v35 = vpop.f32.mrf.mxu3  ;;  %v4237_v9 = vld [vmem:[%s4888_s30 + $0x181] sm:$0xff]  ;;  %v4435_v32 = vld [vmem:[%s4888_s30 + $0x31] sm:$0xff] }
 0x152   : > { %v2388_v22 = vpack.c.bf16 %v4237_v9, %v4236_v31 }
 0x153   : > { %v1587_v30 = vadd.f32 %v5780_v39, %v1457_v43  ;;  %4766 = vmatpush.bf16.msra.mxu2 %v4755_v34  ;;  %v4726_v34 = vld [vmem:[%s6093_s1 + $0x548] sm:$0xff] }
 0x154   : > { %2987 = vmatpush.bf16.msra.mxu1 %v4726_v34 }
 0x155   : > { %v1717_v39 = vadd.f32 %v5783_v26, %v1587_v30  ;;  %v4742_v26 = vld [vmem:[%s6093_s1 + $0x5c8] sm:$0xff] }
 0x156   : > { %3245 = vmatpush.bf16.msrb.mxu3 %v4742_v26  ;;  %v4436_v26 = vld [vmem:[%s4888_s30 + $0x41] sm:$0xff] }
 0x157   : > { %v5882_v59 = vadd.f32 %v1827_v51, %v1717_v39  ;;  %4767 = vmatpush.bf16.msra.mxu2 %v4754_v23  ;;  %v4358_v23 = vld [vmem:[%s4888_s30 + $0x60] sm:$0xff]  ;;  %v2389_v51 = vpack.c.bf16 %v4239_v62, %v4238_v18 }
 0x158   : > { %v1441_v11 = vpop.f32.mrf.mxu1  ;;  %v1830_v37 = vpop.f32.mrf.mxu0  ;;  %2988 = vmatpush.bf16.msra.mxu1 %v4725_v16  ;;  %v2777_v31 = vpack.c.bf16 %v4359_v27, %v4358_v23  ;;  %v4749_v39 = vld [vmem:[%s6093_s1 + $0x600] sm:$0xff]  ;;  %v4395_v27 = vld [vmem:[%s4888_s30 + $0xd0] sm:$0xff] }
 0x159   : > { %v5884_v53 = vpop.f32.mrf.mxu2  ;;  %v1458_v50 = vadd.f32 %v1441_v11, %v5692_v36  ;;  %v5891_v54 = vpop.f32.mrf.mxu3  ;;  %v4741_v36 = vld [vmem:[%s6093_s1 + $0x5c0] sm:$0xff]  ;;  %v4240_v11 = vld [vmem:[%s4888_s30 + $0x1b1] sm:$0xff] }
 0x15a   : > { %3246 = vmatpush.bf16.msrb.mxu3 %v4741_v36  ;;  %v4394_v23 = vld [vmem:[%s4888_s30 + $0xc0] sm:$0xff] }
 0x15b   : > { %v1588_v42 = vadd.f32 %v5806_v4, %v1458_v50  ;;  %2476 = vmatmul.bf16.gmra.mxu1 %v2388_v22  ;;  %2864 = vmatmul.bf16.gmra.mxu0 %v2776_v10  ;;  %v4437_v50 = vld [vmem:[%s4888_s30 + $0x51] sm:$0xff] }
 0x15c   : > { %4768 = vmatpush.bf16.msra.mxu2 %v4753_v61  ;;  %v4750_v61 = vld [vmem:[%s6093_s1 + $0x608] sm:$0xff] }
 0x15d   : > { %v1718_v4 = vadd.f32 %v5811_v13, %v1588_v42  ;;  %2744 = vmatmul.bf16.gmra.mxu3 %v2648_v49  ;;  %3374 = vmatpush.bf16.msra.mxu0 %v4750_v61 }
 0x15e   : > { %2615 = vmatmul.bf16.gmra.mxu2 %v2519_v58  ;;  %v4360_v58 = vld [vmem:[%s4888_s30 + $0x80] sm:$0xff] }
 0x15f   : > { %v5905_v17 = vadd.f32 %v1830_v37, %v1718_v4  ;;  %v4241_v37 = vld [vmem:[%s4888_s30 + $0x1c1] sm:$0xff] }
 0x160   : > { %v1443_v29 = vpop.f32.mrf.mxu1  ;;  %v1832_v6 = vpop.f32.mrf.mxu0  ;;  %4769 = vmatpush.bf16.msra.mxu2 %v4752_v33  ;;  %v2390_v49 = vpack.c.bf16 %v4241_v37, %v4240_v11  ;;  %v4516_v11 = vld [vmem:[%s4888_s30 + $0x42] sm:$0xff]  ;;  %v4517_v37 = vld [vmem:[%s4888_s30 + $0x52] sm:$0xff] }
 0x161   : > { %v5907_v24 = vpop.f32.mrf.mxu2  ;;  %v1459_v46 = vadd.f32 %v1443_v29, %v5720_v7  ;;  %v5910_v55 = vpop.f32.mrf.mxu3  ;;  %v4434_v7 = vld [vmem:[%s4888_s30 + $0x21] sm:$0xff]  ;;  %3375 = vmatpush.bf16.msra.mxu0 %v4749_v39 }
 0x162   : > { %v3034_v41 = vpack.c.bf16 %v4435_v32, %v4434_v7  ;;  %v4515_v7 = vld [vmem:[%s4888_s30 + $0x32] sm:$0xff] }
 0x163   : > { %v1589_v13 = vadd.f32 %v5833_v0, %v1459_v46  ;;  %v4439_v32 = vld [vmem:[%s4888_s30 + $0x71] sm:$0xff] }
 0x164   : > { %4770 = vmatpush.bf16.msra.mxu2 %v4751_v28 }
 0x165   : > { %v1719_v2 = vadd.f32 %v5836_v47, %v1589_v13 }
 0x167   : > { %v5926_v0 = vadd.f32 %v1832_v6, %v1719_v2  ;;  %v4514_v2 = vld [vmem:[%s4888_s30 + $0x22] sm:$0xff] }
 0x168   : > { %v1446_v30 = vpop.f32.mrf.mxu1  ;;  %v1835_v44 = vpop.f32.mrf.mxu0  ;;  %4771 = vmatpush.bf16.msra.mxu2 %v4750_v61 }
 0x169   : > { %v1583_v43 = vpop.f32.mrf.mxu2  ;;  %v1460_v9 = vadd.f32 %v1446_v30, %v5748_v20  ;;  %v1713_v47 = vpop.f32.mrf.mxu3  ;;  %v3292_v30 = vpack.c.bf16 %v4515_v7, %v4514_v2 }
 0x16b   : > { %v1590_v45 = vadd.f32 %v5859_v5, %v1460_v9  ;;  %2481 = vmatmul.bf16.gmra.mxu1 %v2389_v51  ;;  %2869 = vmatmul.bf16.gmra.mxu0 %v2777_v31 }
 0x16c   : > { %4772 = vmatpush.bf16.msra.mxu2 %v4749_v39 }
 0x16d   : > { %v1720_v20 = vadd.f32 %v5863_v35, %v1590_v45  ;;  %3247 = vmatmul.bf16.vlgmr.msrb.gmra.mxu3 %v3163_v3  ;;  %v4361_v35 = vld [vmem:[%s4888_s30 + $0x90] sm:$0xff] }
 0x16e   : > { %3118 = vmatmul.bf16.vlgmr.msrb.gmra.mxu2 %v3034_v41  ;;  %v2778_v33 = vpack.c.bf16 %v4361_v35, %v4360_v58  ;;  %v4441_v58 = vld [vmem:[%s4888_s30 + $0x91] sm:$0xff] }
 0x16f   : > { %v5939_v5 = vadd.f32 %v1835_v44, %v1720_v20 }
 0x170   : > { %v1448_v15 = vpop.f32.mrf.mxu1  ;;  %v1837_v40 = vpop.f32.mrf.mxu0 }
 0x171   : > { %v2083_v25 = vpop.f32.mrf.mxu2  ;;  %v1461_v56 = vadd.f32 %v1448_v15, %v5776_v57  ;;  %v2213_v22 = vpop.f32.mrf.mxu3  ;;  %v3035_v57 = vpack.c.bf16 %v4437_v50, %v4436_v26  ;;  %v3293_v26 = vpack.c.bf16 %v4517_v37, %v4516_v11 }
 0x173   : > { %v1591_v10 = vadd.f32 %v5884_v53, %v1461_v56  ;;  %v4396_v56 = vld [vmem:[%s4888_s30 + $0xe0] sm:$0xff] }
 0x175   : > { %v1721_v48 = vadd.f32 %v5891_v54, %v1591_v10  ;;  %v3164_v54 = vpack.c.bf16 %v5698_v38, %v5651_v21  ;;  %v4438_v38 = vld [vmem:[%s4888_s30 + $0x61] sm:$0xff]  ;;  %v4397_v10 = vld [vmem:[%s4888_s30 + $0xf0] sm:$0xff] }
 0x176   : > { %v3036_v61 = vpack.c.bf16 %v4439_v32, %v4438_v38 }
 0x177   : > { %v5950_v42 = vadd.f32 %v1837_v40, %v1721_v48 }
 0x178   : > { %v1451_v36 = vpop.f32.mrf.mxu1  ;;  %v1840_v4 = vpop.f32.mrf.mxu0 }
 0x179   : > { %v2085_v34 = vpop.f32.mrf.mxu2  ;;  %v1462_v29 = vadd.f32 %v1451_v36, %v5804_v14  ;;  %v2215_v53 = vpop.f32.mrf.mxu3  ;;  %v4481_v36 = vld [vmem:[%s4888_s30 + $0x131] sm:$0xff] }
 0x17b   : > { %v1592_v6 = vadd.f32 %v5907_v24, %v1462_v29  ;;  %2486 = vmatmul.bf16.gmra.mxu1 %v2390_v49  ;;  %2874 = vmatmul.bf16.gmra.mxu0 %v2778_v33 }
 0x17d   : > { %v1722_v46 = vadd.f32 %v5910_v55, %v1592_v6  ;;  %3252 = vmatmul.bf16.gmra.mxu3 %v3164_v54  ;;  %v2905_v55 = vpack.c.bf16 %v4395_v27, %v4394_v23  ;;  %v4521_v27 = vld [vmem:[%s4888_s30 + $0x92] sm:$0xff] }
 0x17e   : > { %3123 = vmatmul.bf16.gmra.mxu2 %v3035_v57  ;;  %v3166_v57 = vpack.c.bf16 %v4481_v36, %v5769_v63  ;;  %v3295_v32 = vpack.c.bf16 %v4521_v27, %v5660_v12  ;;  %v4401_v12 = vld [vmem:[%s4888_s30 + $0x130] sm:$0xff] }
 0x17f   : > { %v5957_v13 = vadd.f32 %v1840_v4, %v1722_v46 }
 0x180   : > { %v1453_v18 = vpop.f32.mrf.mxu1  ;;  %v1842_v16 = vpop.f32.mrf.mxu0 }
 0x181   : > { %v2088_v14 = vpop.f32.mrf.mxu2  ;;  %v1463_v24 = vadd.f32 %v1453_v18, %v5831_v1  ;;  %v2218_v28 = vpop.f32.mrf.mxu3 }
 0x183   : > { %v1593_v62 = vadd.f32 %v1583_v43, %v1463_v24  ;;  %v4398_v24 = vld [vmem:[%s4888_s30 + $0x100] sm:$0xff] }
 0x185   : > { %v1723_v21 = vadd.f32 %v1713_v47, %v1593_v62  ;;  %v3165_v47 = vpack.c.bf16 %v5754_v8, %v5713_v52  ;;  %v4440_v8 = vld [vmem:[%s4888_s30 + $0x81] sm:$0xff] }
 0x186   : > { %v3037_v33 = vpack.c.bf16 %v4441_v58, %v4440_v8  ;;  %v4518_v62 = vld [vmem:[%s4888_s30 + $0x62] sm:$0xff] }
 0x187   : > { %v5966_v51 = vadd.f32 %v1842_v16, %v1723_v21 }
 0x188   : > { %v1954_v44 = vpop.f32.mrf.mxu1  ;;  %v2343_v41 = vpop.f32.mrf.mxu0 }
 0x189   : > { %v2090_v31 = vpop.f32.mrf.mxu2  ;;  %v1974_v9 = vadd.f32 %v1954_v44, %v5857_v19  ;;  %v2220_v1 = vpop.f32.mrf.mxu3 }
 0x18b   : > { %v2103_v43 = vadd.f32 %v2083_v25, %v1974_v9  ;;  %2989 = vmatmul.bf16.vlgmr.msra.gmra.mxu1 %v2905_v55  ;;  %3376 = vmatmul.bf16.vlgmr.msra.gmra.mxu0 %v3292_v30 }
 0x18d   : > { %v2233_v45 = vadd.f32 %v2213_v22, %v2103_v43  ;;  %3257 = vmatmul.bf16.gmra.mxu3 %v3165_v47  ;;  %v2906_v22 = vpack.c.bf16 %v4397_v10, %v4396_v56  ;;  %v4400_v47 = vld [vmem:[%s4888_s30 + $0x120] sm:$0xff] }
 0x18e   : > { %3128 = vmatmul.bf16.gmra.mxu2 %v3036_v61 }
 0x18f   : > { %v5971_v3 = vadd.f32 %v2343_v41, %v2233_v45 }
 0x190   : > { %v1956_v19 = vpop.f32.mrf.mxu1  ;;  %v2345_v20 = vpop.f32.mrf.mxu0 }
 0x191   : > { %v2093_v39 = vpop.f32.mrf.mxu2  ;;  %v1975_v15 = vadd.f32 %v1956_v19, %v5882_v59  ;;  %v2223_v25 = vpop.f32.mrf.mxu3 }
 0x193   : > { %v2104_v40 = vadd.f32 %v2085_v34, %v1975_v15 }
 0x195   : > { %v2234_v52 = vadd.f32 %v2215_v53, %v2104_v40 }
 0x197   : > { %v5980_v35 = vadd.f32 %v2345_v20, %v2234_v52 }
 0x198   : > { %v1959_v50 = vpop.f32.mrf.mxu1  ;;  %v2348_v49 = vpop.f32.mrf.mxu0 }
 0x199   : > { %v2095_v48 = vpop.f32.mrf.mxu2  ;;  %v1976_v59 = vadd.f32 %v1959_v50, %v5905_v17  ;;  %v2225_v34 = vpop.f32.mrf.mxu3 }
 0x19b   : > { %v2105_v4 = vadd.f32 %v2088_v14, %v1976_v59  ;;  %2994 = vmatmul.bf16.gmra.mxu1 %v2906_v22  ;;  %3381 = vmatmul.bf16.gmra.mxu0 %v3293_v26  ;;  %v4399_v14 = vld [vmem:[%s4888_s30 + $0x110] sm:$0xff] }
 0x19c   : > { %v2907_v63 = vpack.c.bf16 %v4399_v14, %v4398_v24 }
 0x19d   : > { %v2235_v29 = vadd.f32 %v2218_v28, %v2105_v4  ;;  %3262 = vmatmul.bf16.gmra.mxu3 %v3166_v57  ;;  %v3294_v28 = vpack.c.bf16 %v5657_v60, %v4518_v62 }
 0x19e   : > { %3133 = vmatmul.bf16.gmra.mxu2 %v3037_v33 }
 0x19f   : > { %v5985_v53 = vadd.f32 %v2348_v49, %v2235_v29 }
 0x1a0   : > { %v1961_v54 = vpop.f32.mrf.mxu1  ;;  %v2350_v46 = vpop.f32.mrf.mxu0 }
 0x1a1   : > { %v2098_v6 = vpop.f32.mrf.mxu2  ;;  %v1977_v17 = vadd.f32 %v1961_v54, %v5926_v0  ;;  %v2228_v18 = vpop.f32.mrf.mxu3 }
 0x1a3   : > { %v2106_v16 = vadd.f32 %v2090_v31, %v1977_v17 }
 0x1a5   : > { %v2236_v23 = vadd.f32 %v2220_v1, %v2106_v16 }
 0x1a7   : > { %v5992_v2 = vadd.f32 %v2350_v46, %v2236_v23 }
 0x1a8   : > { %v1964_v21 = vpop.f32.mrf.mxu1  ;;  %v2353_v38 = vpop.f32.mrf.mxu0 }
 0x1a9   : > { %v2100_v7 = vpop.f32.mrf.mxu2  ;;  %v1978_v0 = vadd.f32 %v1964_v21, %v5939_v5  ;;  %v2230_v55 = vpop.f32.mrf.mxu3  ;;  %v2908_v5 = vpack.c.bf16 %v4401_v12, %v4400_v47 }
 0x1ab   : > { %v2107_v31 = vadd.f32 %v2093_v39, %v1978_v0  ;;  %2999 = vmatmul.bf16.gmra.mxu1 %v2907_v63  ;;  %3386 = vmatmul.bf16.gmra.mxu0 %v3294_v28 }
 0x1ad   : > { %v2237_v30 = vadd.f32 %v2223_v25, %v2107_v31 }
 0x1ae   : > { %3391 = vmatmul.bf16.vlgmr.msra.gmra.mxu2 %v3295_v32 }
 0x1af   : > { %v5997_v44 = vadd.f32 %v2353_v38, %v2237_v30 }
 0x1b0   : > { %v1966_v61 = vpop.f32.mrf.mxu1  ;;  %v2355_v9 = vpop.f32.mrf.mxu0 }
 0x1b1   : > { %v2601_v41 = vpop.f32.mrf.mxu2  ;;  %v1979_v60 = vadd.f32 %v1966_v61, %v5950_v42  ;;  %v2730_v1 = vpop.f32.mrf.mxu3 }
 0x1b3   : > { %v2108_v43 = vadd.f32 %v2095_v48, %v1979_v60 }
 0x1b5   : > { %v2238_v45 = vadd.f32 %v2225_v34, %v2108_v43 }
 0x1b7   : > { %v2368_v19 = vadd.f32 %v2355_v9, %v2238_v45 }
 0x1b8   : > { %v1969_v39 = vpop.f32.mrf.mxu1  ;;  %v2358_v15 = vpop.f32.mrf.mxu0 }
 0x1b9   : > { %v2603_v20 = vpop.f32.mrf.mxu2  ;;  %v1980_v40 = vadd.f32 %v1969_v39, %v5957_v13  ;;  %v2732_v25 = vpop.f32.mrf.mxu3 }
 0x1bb   : > { %v2109_v56 = vadd.f32 %v2098_v6, %v1980_v40  ;;  %3004 = vmatmul.bf16.gmra.mxu1 %v2908_v5 }
 0x1bd   : > { %v2239_v10 = vadd.f32 %v2228_v18, %v2109_v56 }
 0x1bf   : > { %v2369_v11 = vadd.f32 %v2358_v15, %v2239_v10 }
 0x1c0   : > { %v1971_v52 = vpop.f32.mrf.mxu1  ;;  %v2360_v42 = vpop.f32.mrf.mxu0 }
 0x1c1   : > { %v2606_v37 = vpop.f32.mrf.mxu2  ;;  %v1981_v8 = vadd.f32 %v1971_v52, %v5966_v51  ;;  %v2735_v58 = vpop.f32.mrf.mxu3 }
 0x1c3   : > { %v2110_v22 = vadd.f32 %v2100_v7, %v1981_v8 }
 0x1c5   : > { %v2240_v48 = vadd.f32 %v2230_v55, %v2110_v22 }
 0x1c7   : > { %v2370_v26 = vadd.f32 %v2360_v42, %v2240_v48 }
 0x1c8   : > { %v2472_v49 = vpop.f32.mrf.mxu1  ;;  %v2860_v33 = vpop.f32.mrf.mxu0 }
 0x1c9   : > { %v2608_v50 = vpop.f32.mrf.mxu2  ;;  %v2492_v36 = vadd.f32 %v2472_v49, %v5971_v3  ;;  %v2737_v59 = vpop.f32.mrf.mxu3 }
 0x1cb   : > { %v2621_v13 = vadd.f32 %v2601_v41, %v2492_v36 }
 0x1cd   : > { %v2750_v34 = vadd.f32 %v2730_v1, %v2621_v13 }
 0x1cf   : > { %v2880_v4 = vadd.f32 %v2860_v33, %v2750_v34 }
 0x1d0   : > { %v2474_v29 = vpop.f32.mrf.mxu1  ;;  %v2862_v6 = vpop.f32.mrf.mxu0 }
 0x1d1   : > { %v2611_v57 = vpop.f32.mrf.mxu2  ;;  %v2493_v54 = vadd.f32 %v2474_v29, %v5980_v35  ;;  %v2740_v17 = vpop.f32.mrf.mxu3 }
 0x1d3   : > { %v2622_v46 = vadd.f32 %v2603_v20, %v2493_v54 }
 0x1d5   : > { %v2751_v51 = vadd.f32 %v2732_v25, %v2622_v46 }
 0x1d7   : > { %v2881_v18 = vadd.f32 %v2862_v6, %v2751_v51 }
 0x1d8   : > { %v2477_v24 = vpop.f32.mrf.mxu1  ;;  %v2865_v14 = vpop.f32.mrf.mxu0 }
 0x1d9   : > { %v2613_v16 = vpop.f32.mrf.mxu2  ;;  %v2494_v62 = vadd.f32 %v2477_v24, %v5985_v53  ;;  %v2742_v7 = vpop.f32.mrf.mxu3 }
 0x1db   : > { %v2623_v23 = vadd.f32 %v2606_v37, %v2494_v62 }
 0x1dd   : > { %v2752_v3 = vadd.f32 %v2735_v58, %v2623_v23 }
 0x1df   : > { %v2882_v27 = vadd.f32 %v2865_v14, %v2752_v3 }
 0x1e0   : > { %v2479_v28 = vpop.f32.mrf.mxu1  ;;  %v2867_v21 = vpop.f32.mrf.mxu0 }
 0x1e1   : > { %v2616_v63 = vpop.f32.mrf.mxu2  ;;  %v2495_v38 = vadd.f32 %v2479_v28, %v5992_v2  ;;  %v6011_v61 = vpop.f32.mrf.mxu3 }
 0x1e3   : > { %v2624_v32 = vadd.f32 %v2608_v50, %v2495_v38 }
 0x1e5   : > { %v2753_v35 = vadd.f32 %v2737_v59, %v2624_v32  ;;  %v6030_v59 = vld [vmem:[%s6094_s2] ss:$0 sm:$0xff] }
 0x1e7   : > { %v2883_v0 = vadd.f32 %v2867_v21, %v2753_v35 }
 0x1e8   : > { %v2482_v31 = vpop.f32.mrf.mxu1  ;;  %v6008_v30 = vpop.f32.mrf.mxu0 }
 0x1e9   : > { %v2618_v55 = vpop.f32.mrf.mxu2  ;;  %v2496_v41 = vadd.f32 %v2482_v31, %v5997_v44  ;;  %v6015_v2 = vpop.f32.mrf.mxu3 }
 0x1eb   : > { %v2625_v53 = vadd.f32 %v2611_v57, %v2496_v41 }
 0x1ed   : > { %v2754_v9 = vadd.f32 %v2740_v17, %v2625_v53 }
 0x1ef   : > { %v2884_v53 = vadd.f32 %v6008_v30, %v2754_v9 }
 0x1f0   : > { %v2484_v1 = vpop.f32.mrf.mxu1  ;;  %v6013_v43 = vpop.f32.mrf.mxu0 }
 0x1f1   : > { %v3119_v60 = vpop.f32.mrf.mxu2  ;;  %v2497_v47 = vadd.f32 %v2484_v1, %v2368_v19  ;;  %v3248_v40 = vpop.f32.mrf.mxu3 }
 0x1f3   : > { %v2626_v12 = vadd.f32 %v2613_v16, %v2497_v47 }
 0x1f5   : > { %v6017_v45 = vadd.f32 %v2742_v7, %v2626_v12 }
 0x1f8   : > { %v2487_v20 = vpop.f32.mrf.mxu1  ;;  %v6019_v39 = vpop.f32.mrf.mxu0 }
 0x1f9   : > { %v3121_v5 = vpop.f32.mrf.mxu2  ;;  %v2498_v15 = vadd.f32 %v2487_v20, %v2369_v11  ;;  %v3250_v19 = vpop.f32.mrf.mxu3 }
 0x1fb   : > { %v6021_v44 = vadd.f32 %v2616_v63, %v2498_v15 }
 0x200   : > { %v2489_v56 = vpop.f32.mrf.mxu1  ;;  %v6023_v10 = vpop.f32.mrf.mxu0 }
 0x201   : > { %v3124_v25 = vpop.f32.mrf.mxu2  ;;  %v2499_v37 = vadd.f32 %v2489_v56, %v2370_v26  ;;  %v3253_v36 = vpop.f32.mrf.mxu3 }
 0x203   : > { %v6025_v52 = vadd.f32 %v2618_v55, %v2499_v37  ;;  %v2885_v37 = vadd.f32 %v6013_v43, %v6017_v45 }
 0x208   : > { %v2990_v42 = vpop.f32.mrf.mxu1  ;;  %v3377_v8 = vpop.f32.mrf.mxu0 }
 0x209   : > { %v3010_v58 = vadd.f32 %v2990_v42, %v2880_v4  ;;  %v3126_v22 = vpop.f32.mrf.mxu2  ;;  %v3255_v14 = vpop.f32.mrf.mxu3 }
 0x20b   : > { %v3139_v48 = vadd.f32 %v3119_v60, %v3010_v58 }
 0x20d   : > { %v3268_v50 = vadd.f32 %v3248_v40, %v3139_v48 }
 0x20f   : > { %v3397_v13 = vadd.f32 %v3377_v8, %v3268_v50 }
 0x210   : > { %v2992_v49 = vpop.f32.mrf.mxu1  ;;  %v3379_v33 = vpop.f32.mrf.mxu0 }
 0x211   : > { %v3011_v11 = vadd.f32 %v2992_v49, %v2881_v18  ;;  %v3129_v34 = vpop.f32.mrf.mxu2  ;;  %v6033_v29 = vadd.f32 %v6030_v59, %v3397_v13  ;;  %v3258_v41 = vpop.f32.mrf.mxu3 }
 0x213   : > { %v3140_v26 = vadd.f32 %v3121_v5, %v3011_v11  ;;  %v3446_v17 = vmul.f32 %v6033_v29, %v6033_v29 }
 0x215   : > { %v3269_v57 = vadd.f32 %v3250_v19, %v3140_v26 }
 0x217   : > { %v3398_v4 = vadd.f32 %v3379_v33, %v3269_v57 }
 0x218   : > { %v2995_v6 = vpop.f32.mrf.mxu1  ;;  %v3382_v54 = vpop.f32.mrf.mxu0 }
 0x219   : > { %v6036_v46 = vadd.f32 %v6030_v59, %v3398_v4  ;;  %v3012_v51 = vadd.f32 %v2995_v6, %v2882_v27  ;;  %v3131_v3 = vpop.f32.mrf.mxu2  ;;  %v3260_v9 = vpop.f32.mrf.mxu3 }
 0x21b   : > { %v3433_v18 = vadd.f32 %v6036_v46, %v6033_v29  ;;  %v3447_v16 = vmul.f32 %v6036_v46, %v6036_v46  ;;  %v3141_v24 = vadd.f32 %v3124_v25, %v3012_v51 }
 0x21d   : > { %v3454_v62 = vadd.f32 %v3447_v16, %v3446_v17  ;;  %v3270_v23 = vadd.f32 %v3253_v36, %v3141_v24 }
 0x21f   : > { %v3399_v63 = vadd.f32 %v3382_v54, %v3270_v23 }
 0x220   : > { %v2997_v7 = vpop.f32.mrf.mxu1  ;;  %v3384_v28 = vpop.f32.mrf.mxu0 }
 0x221   : > { %v6045_v21 = vadd.f32 %v6030_v59, %v3399_v63  ;;  %v3013_v27 = vadd.f32 %v2997_v7, %v2883_v0  ;;  %v3134_v1 = vpop.f32.mrf.mxu2  ;;  %v3263_v57 = vpop.f32.mrf.mxu3 }
 0x223   : > { %v3434_v38 = vadd.f32 %v3433_v18, %v6045_v21  ;;  %v3448_v32 = vmul.f32 %v6045_v21, %v6045_v21  ;;  %v3142_v35 = vadd.f32 %v3126_v22, %v3013_v27  ;;  %v2756_v22 = vadd.f32 %v6011_v61, %v6021_v44 }
 0x224   : > { %v2757_v61 = vadd.f32 %v6015_v2, %v6025_v52 }
 0x225   : > { %v3455_v55 = vadd.f32 %v3454_v62, %v3448_v32  ;;  %v3271_v31 = vadd.f32 %v3255_v14, %v3142_v35  ;;  %v2886_v45 = vadd.f32 %v6019_v39, %v2756_v22 }
 0x226   : > { %v2887_v39 = vadd.f32 %v6023_v10, %v2757_v61 }
 0x227   : > { %v3400_v60 = vadd.f32 %v3384_v28, %v3271_v31 }
 0x228   : > { %v3000_v47 = vpop.f32.mrf.mxu1  ;;  %v3387_v20 = vpop.f32.mrf.mxu0 }
 0x229   : > { %v6052_v12 = vadd.f32 %v6030_v59, %v3400_v60  ;;  %v3014_v5 = vadd.f32 %v3000_v47, %v2884_v53  ;;  %v3136_v58 = vpop.f32.mrf.mxu2  ;;  %v3265_v2 = vpop.f32.mrf.mxu3 }
 0x22b   : > { %v3435_v0 = vadd.f32 %v3434_v38, %v6052_v12  ;;  %v3449_v15 = vmul.f32 %v6052_v12, %v6052_v12  ;;  %v3143_v40 = vadd.f32 %v3129_v34, %v3014_v5 }
 0x22d   : > { %v3456_v25 = vadd.f32 %v3455_v55, %v3449_v15  ;;  %v3272_v56 = vadd.f32 %v3258_v41, %v3143_v40 }
 0x22f   : > { %v3401_v30 = vadd.f32 %v3387_v20, %v3272_v56 }
 0x230   : > { %v3002_v19 = vpop.f32.mrf.mxu1  ;;  %v3389_v33 = vpop.f32.mrf.mxu0 }
 0x231   : > { %v6060_v42 = vadd.f32 %v6030_v59, %v3401_v30  ;;  %v3015_v8 = vadd.f32 %v3002_v19, %v2885_v37  ;;  %v3392_v54 = vpop.f32.mrf.mxu2 }
 0x233   : > { %v3436_v48 = vadd.f32 %v3435_v0, %v6060_v42  ;;  %v3450_v50 = vmul.f32 %v6060_v42, %v6060_v42  ;;  %v3144_v49 = vadd.f32 %v3131_v3, %v3015_v8 }
 0x235   : > { %v3457_v11 = vadd.f32 %v3456_v25, %v3450_v50  ;;  %v3273_v43 = vadd.f32 %v3260_v9, %v3144_v49 }
 0x237   : > { %v3402_v36 = vadd.f32 %v3389_v33, %v3273_v43 }
 0x238   : > { %v3005_v13 = vpop.f32.mrf.mxu1 }
 0x239   : > { %v6069_v26 = vadd.f32 %v6030_v59, %v3402_v36  ;;  %v3016_v34 = vadd.f32 %v3005_v13, %v2886_v45  ;;  %v3394_v7 = vpop.f32.mrf.mxu2 }
 0x23b   : > { %v3437_v44 = vadd.f32 %v3436_v48, %v6069_v26  ;;  %v3451_v4 = vmul.f32 %v6069_v26, %v6069_v26  ;;  %v3145_v6 = vadd.f32 %v3134_v1, %v3016_v34 }
 0x23d   : > { %v3458_v51 = vadd.f32 %v3457_v11, %v3451_v4  ;;  %v3274_v17 = vadd.f32 %v3263_v57, %v3145_v6 }
 0x23f   : > { %v3403_v18 = vadd.f32 %v3392_v54, %v3274_v17 }
 0x240   : > { %v3007_v16 = vpop.f32.mrf.mxu1 }
 0x241   : > { %v3431_v24 = vadd.f32 %v6030_v59, %v3403_v18  ;;  %v3017_v14 = vadd.f32 %v3007_v16, %v2887_v39 }
 0x243   : > { %v3438_v62 = vadd.f32 %v3437_v44, %v3431_v24  ;;  %v3452_v23 = vmul.f32 %v3431_v24, %v3431_v24  ;;  %v3146_v3 = vadd.f32 %v3136_v58, %v3017_v14 }
 0x245   : > { %v3459_v52 = vadd.f32 %v3458_v51, %v3452_v23  ;;  %v3275_v63 = vadd.f32 %v3265_v2, %v3146_v3 }
 0x247   : > { %v3404_v28 = vadd.f32 %v3394_v7, %v3275_v63 }
 0x249   : > { %v3432_v27 = vadd.f32 %v6030_v59, %v3404_v28 }
 0x24b   : > { %v3439_v38 = vadd.f32 %v3438_v62, %v3432_v27  ;;  %v3453_v32 = vmul.f32 %v3432_v27, %v3432_v27 }
 0x24d   : > { %v3440_v35 = vrot.slane %v3439_v38, 4  ;;  %v3460_v55 = vadd.f32 %v3459_v52, %v3453_v32 }
 0x24f   : > { %v3441_v10 = vadd.f32 %v3440_v35, %v3439_v38  ;;  %v3461_v31 = vrot.slane %v3460_v55, 4 }
 0x251   : > { %v3442_v41 = vrot.slane %v3441_v10, 2  ;;  %v3462_v53 = vadd.f32 %v3461_v31, %v3460_v55 }
 0x253   : > { %v3443_v60 = vadd.f32 %v3442_v41, %v3441_v10  ;;  %v3463_v1 = vrot.slane %v3462_v53, 2 }
 0x255   : > { %v3444_v47 = vrot.slane %v3443_v60, 1  ;;  %v3464_v5 = vadd.f32 %v3463_v1, %v3462_v53 }
 0x257   : > { %v3445_v20 = vadd.f32 %v3444_v47, %v3443_v60  ;;  %v3465_v0 = vrot.slane %v3464_v5, 1 }
 0x259   : > { %v3466_v15 = vadd.f32 %v3465_v0, %v3464_v5  ;;  %v3467_v40 = vmul.f32 0.015625, %v3445_v20 }
 0x25b   : > { %v3468_v25 = vmul.f32 0.015625, %v3466_v15  ;;  %v3469_v56 = vmul.f32 %v3467_v40, %v3467_v40  ;;  %v3472_v59 = vsub.f32 %v6033_v29, %v3467_v40  ;;  %v3473_v37 = vsub.f32 %v6036_v46, %v3467_v40 }
 0x25c   : > { %v3474_v30 = vsub.f32 %v6045_v21, %v3467_v40  ;;  %v3475_v9 = vsub.f32 %v6052_v12, %v3467_v40  ;;  %v3476_v19 = vsub.f32 %v6060_v42, %v3467_v40  ;;  %v3477_v8 = vsub.f32 %v6069_v26, %v3467_v40 }
 0x25d   : > { %v3470_v58 = vsub.f32 %v3468_v25, %v3469_v56  ;;  %v3478_v22 = vsub.f32 %v3431_v24, %v3467_v40  ;;  %v3479_v48 = vsub.f32 %v3432_v27, %v3467_v40 }
 0x25f   : > { %v3471_v50 = vmax.f32 %v3470_v58, 0.0 }
 0x261   : > { %v3480_v49 = vadd.f32 1e-05, %v3471_v50 }
 0x263   : > { %4783 = vrsqrt.f32 %v3480_v49  ;;  %vm3487_vm1 = vweird.f32 %v3480_v49 }
 0x269   : > { %v4784_v33 = vpop.eup %4783 }
 0x26a   : > { %v3482_v11 = vmul.f32 %v4784_v33, %v3480_v49  ;;  %vm3488_vm0 = vweird.f32 %v4784_v33 }
 0x26b   : > { %vm3489_vm2 = vmor %vm3487_vm1, %vm3488_vm0 }
 0x26c   : > { %v3483_v29 = vmul.f32 %v4784_v33, %v3482_v11 }
 0x26e   : > { %v3484_v43 = vmul.f32 0.5, %v3483_v29 }
 0x270   : > { %v3485_v46 = vsub.f32 1.5, %v3484_v43 }
 0x272   : > { %v3486_v21 = vmul.f32 %v4784_v33, %v3485_v46 }
 0x274   : > { %v3490_v12 = vsel %vm3489_vm2, %v4784_v33, %v3486_v21 }
 0x275   : > { %v3491_v42 = vmul.f32 %v3490_v12, %v3472_v59  ;;  %v3492_v45 = vmul.f32 %v3490_v12, %v3473_v37  ;;  %v3493_v36 = vmul.f32 %v3490_v12, %v3474_v30  ;;  %v3494_v13 = vmul.f32 %v3490_v12, %v3475_v9 }
 0x276   : > { %v3495_v26 = vmul.f32 %v3490_v12, %v3476_v19  ;;  %v3496_v34 = vmul.f32 %v3490_v12, %v3477_v8  ;;  %v3497_v57 = vmul.f32 %v3490_v12, %v3478_v22  ;;  %v3498_v61 = vmul.f32 %v3490_v12, %v3479_v48 }
 0x277   : > { %v3499_v44 = vmax.f32 %v3491_v42, 0.0  ;;  %v3500_v4 = vmax.f32 %v3492_v45, 0.0  ;;  %v3501_v6 = vmax.f32 %v3493_v36, 0.0  ;;  %v3502_v54 = vmax.f32 %v3494_v13, 0.0 }
 0x278   : > { %v3503_v51 = vmax.f32 %v3495_v26, 0.0  ;;  %v3504_v17 = vmax.f32 %v3496_v34, 0.0  ;;  %v3505_v39 = vmax.f32 %v3497_v57, 0.0  ;;  %v3506_v18 = vmax.f32 %v3498_v61, 0.0 }
 0x279   : > { %3507 = vst [vmem:[%s170_s10] sm:$0xff] %v3499_v44 }
 0x27a   : > { %3508 = vst [vmem:[%s170_s10 + $0x8] sm:$0xff] %v3500_v4 }
 0x27b   : > { %3509 = vst [vmem:[%s170_s10 + $0x10] sm:$0xff] %v3501_v6 }
 0x27c   : > { %3510 = vst [vmem:[%s170_s10 + $0x18] sm:$0xff] %v3502_v54 }
 0x27d   : > { %3511 = vst [vmem:[%s170_s10 + $0x20] sm:$0xff] %v3503_v51 }
 0x27e   : > { %3512 = vst [vmem:[%s170_s10 + $0x28] sm:$0xff] %v3504_v17 }
 0x27f   : > { %3513 = vst [vmem:[%s170_s10 + $0x30] sm:$0xff] %v3505_v39 }
 0x280   : > { %3514 = vst [vmem:[%s170_s10 + $0x38] sm:$0xff] %v3506_v18 }
 0x281 PF: > { %s13_s12 = sadd.s32 1, %s4791_s12  }
 0x282   : > { %p10_p4 = scmp.ge.s32.totalorder %s13_s12, 4  }
 0x284   :  { %12 = sbr.rel (!%p10_p4) target bundleno = 1 (0x1), region = 71 }

// kernel: inr_cls4_forward.5
= control target key start
LH: loop header
LB: loop body
LE: loop exit
PB: predicated region body
PF: predicated region fallthrough
CT: control target
= control target key end

     0   :  { %12 = vsyncpa [#allocation4], 0  ;;  %s6559_s0 = inlined_call_operand.vmem [shape: f32[2,12,12,128], index: 0, kind: input, shape index: {}]   ;;  %s6560_s1 = inlined_call_operand.vmem [shape: bf16[3200,128], index: 1, kind: input, shape index: {}]   ;;  %s6561_s2 = inlined_call_operand.vmem [shape: f32[1,128], index: 2, kind: input, shape index: {}]   ;;  %s6562_s3 = inlined_call_operand.vmem [shape: f32[128,128], index: 3, kind: input, shape index: {}]   ;;  %s6563_s4 = inlined_call_operand.vmem [shape: f32[1,128], index: 4, kind: input, shape index: {}]   ;;  %s6564_s5 = inlined_call_operand.vmem [shape: f32[128,128], index: 5, kind: input, shape index: {}]   ;;  %s6565_s6 = inlined_call_operand.vmem [shape: f32[1,128], index: 6, kind: input, shape index: {}]   ;;  %s6566_s7 = inlined_call_operand.hbm [shape: f32[2,1,128], index: 7, kind: output, shape index: {}]  }
   0x1   :  { %14 = vsyncpa [#allocation4 + $0x1], 0  ;;  %s5111_s24 = smov 0   ;;  %s5113_s25 = smov 0  }
   0x2   :  { %s5115_s26 = smov 0   ;;  %s5117_s27 = smov 0  }
   0x3 LB: > { %s5132_s28 = sadd.s32 4294967295, %s5069_s27   ;;  %s3781_s29 = sadd.s32 4294967294, %s5069_s27   ;;  %s5069_s27 = sphi %s5117_s27, %s6572_s27   ;;  %s5065_s26 = sphi %s5115_s26, %s6571_s26   ;;  %s5061_s25 = sphi %s5113_s25, %s6570_s25   ;;  %s5057_s24 = sphi %s5111_s24, %s6569_s24  }
   0x4   : > { %s5136_s30 = sadd.s32 1, %s5069_s27   ;;  %s179_s8 = sadd.s32 1, %s5065_s26 }
   0x5   : > { %s176_s9 = ssub.s32 %s5069_s27, %s5136_s30  ;;  %p189_p0 = scmp.ne.s32.totalorder %s5065_s26, %s5061_s25 }
   0x6   : > { %p177_p1 = scmp.eq.s32.totalorder %s176_s9, 0  ;;  %p190_p2 = scmp.eq.s32.totalorder %s5132_s28, 1 }
   0x7   : > { %p195_p3 = scmp.ne.s32.totalorder %s5061_s25, %s5057_s24  ;;  %p196_p4 = scmp.eq.s32.totalorder %s3781_s29, 1 }
   0x8   : > { %s5147_s10 = scalar_select %p177_p1, %s5065_s26, %s179_s8  }
   0x9   : > { %p5149_p5 = por %p190_p2, %p189_p0  ;;  %p5153_p6 = por %p196_p4, %p195_p3 }
   0xa   : > { %p3784_p7 = scmp.ge.s32.totalorder %s5069_s27, 1  ;;  %p240_p8 = scmp.lt.s32.totalorder %s5069_s27, 3 }
   0xc   : > { %p241_p9 = pnand %p3784_p7, %p240_p8 }
   0xd   : > { %p271_p10 = scmp.lt.s32.totalorder (!%p241_p9), %s5132_s28, 1  ;;  %s269_s13 = sand.u32 (!%p241_p9), 1, %s5061_s25  }
   0xe   : > { %244 = sbr.rel (%p241_p9) target bundleno = 940 (0x3ac), region = 48  ;;  %s3722_s16 = scalar_lea.hbm (!%p241_p9), %s6566_s7, %s5132_s28 }
   0xf   : > { %s270_s19 = scalar_lea.vmem (!%p241_p9), [#allocation3], %s269_s13  ;;  %s3726_s21 = sshll.u32 (!%p241_p9), %s3722_s16, 4  ;;  %s3727_s21 = int_to_ptr.hbm [resolvable:$true] %s3726_s21 }
  0x10   : > { %s3724_s20 = sshll.u32 (!%p241_p9), %s270_s19, 4  ;;  %s3714_s22 = scalar_lea.sflag (!%p241_p9), [#allocation4], %s269_s13  ;;  %s3725_s20 = int_to_ptr.vmem [resolvable:$true] %s3724_s20 }
  0x11   : > { %s5027_s9 = scalar_lea.hbm (!%p241_p9), %s6566_s7, 2 }
  0x13   : > { %v4763_v0 = vld [vmem:[%s6560_s1 + $0x38] sm:$0xff]  ;;  %v4762_v3 = vld [vmem:[%s6560_s1 + $0x30] sm:$0xff]  ;;  %v4761_v6 = vld [vmem:[%s6560_s1 + $0x28] sm:$0xff]  ;;  %s272_s8 = scalar_select %p271_p10, %s5132_s28, 1 }
  0x14   : > { %v4771_v1 = vld [vmem:[%s6560_s1 + $0x78] sm:$0xff]  ;;  %368 = vmatpush.bf16.msra.mxu0 %v4763_v0  ;;  %4956 = vmatpush.bf16.msra.mxu3 %v4763_v0  ;;  %v4770_v4 = vld [vmem:[%s6560_s1 + $0x70] sm:$0xff]  ;;  %v4769_v7 = vld [vmem:[%s6560_s1 + $0x68] sm:$0xff] }
  0x15   : > { %v4779_v2 = vld [vmem:[%s6560_s1 + $0xb8] sm:$0xff]  ;;  %497 = vmatpush.bf16.msra.mxu1 %v4771_v1  ;;  %v4778_v5 = vld [vmem:[%s6560_s1 + $0xb0] sm:$0xff]  ;;  %v4777_v8 = vld [vmem:[%s6560_s1 + $0xa8] sm:$0xff]  ;;  %s4964_s18 = smul.u32 192, %s272_s8 }
  0x16   : > { %626 = vmatpush.bf16.msra.mxu2 %v4779_v2  ;;  %v4760_v9 = vld [vmem:[%s6560_s1 + $0x20] sm:$0xff]  ;;  %v4759_v12 = vld [vmem:[%s6560_s1 + $0x18] sm:$0xff]  ;;  %v4758_v15 = vld [vmem:[%s6560_s1 + $0x10] sm:$0xff] }
  0x17   : > { %v4768_v10 = vld [vmem:[%s6560_s1 + $0x60] sm:$0xff]  ;;  %v4767_v13 = vld [vmem:[%s6560_s1 + $0x58] sm:$0xff]  ;;  %v4766_v16 = vld [vmem:[%s6560_s1 + $0x50] sm:$0xff]  ;;  %s5221_s8 = scalar_lea.vmem %s6559_s0, %s4964_s18 }
  0x18   : > { %369 = vmatpush.bf16.msra.mxu0 %v4762_v3  ;;  %4957 = vmatpush.bf16.msra.mxu3 %v4762_v3  ;;  %v4776_v11 = vld [vmem:[%s6560_s1 + $0xa0] sm:$0xff]  ;;  %v4775_v14 = vld [vmem:[%s6560_s1 + $0x98] sm:$0xff]  ;;  %v4774_v17 = vld [vmem:[%s6560_s1 + $0x90] sm:$0xff] }
  0x19   : > { %498 = vmatpush.bf16.msra.mxu1 %v4770_v4  ;;  %v4757_v18 = vld [vmem:[%s6560_s1 + $0x8] sm:$0xff]  ;;  %v4756_v21 = vld [vmem:[%s6560_s1] sm:$0xff]  ;;  %v5240_v25 = vld [vmem:[%s5221_s8 + $0x10] sm:$0xff] }
  0x1a   : > { %627 = vmatpush.bf16.msra.mxu2 %v4778_v5  ;;  %v4765_v19 = vld [vmem:[%s6560_s1 + $0x48] sm:$0xff]  ;;  %v4764_v22 = vld [vmem:[%s6560_s1 + $0x40] sm:$0xff]  ;;  %v5246_v27 = vld [vmem:[%s5221_s8 + $0x50] sm:$0xff] }
  0x1b   : > { %v4773_v20 = vld [vmem:[%s6560_s1 + $0x88] sm:$0xff]  ;;  %v4772_v23 = vld [vmem:[%s6560_s1 + $0x80] sm:$0xff]  ;;  %v5250_v29 = vld [vmem:[%s5221_s8 + $0x11] sm:$0xff] }
  0x1c   : > { %370 = vmatpush.bf16.msra.mxu0 %v4761_v6  ;;  %4958 = vmatpush.bf16.msra.mxu3 %v4761_v6  ;;  %v284_v24 = vld [vmem:[%s5221_s8] sm:$0xff]  ;;  %v5254_v31 = vld [vmem:[%s5221_s8 + $0x12] sm:$0xff]  ;;  %v4785_v44 = vld [vmem:[%s6560_s1 + $0xe8] sm:$0xff] }
  0x1d   : > { %499 = vmatpush.bf16.msra.mxu1 %v4769_v7  ;;  %v5243_v26 = vld [vmem:[%s5221_s8 + $0x40] sm:$0xff]  ;;  %v4787_v32 = vld [vmem:[%s6560_s1 + $0xf8] sm:$0xff]  ;;  %v292_v34 = vpack.c.bf16 %v5240_v25, %v284_v24  ;;  %v4786_v39 = vld [vmem:[%s6560_s1 + $0xf0] sm:$0xff] }
  0x1e   : > { %628 = vmatpush.bf16.msra.mxu2 %v4777_v8  ;;  %v413_v28 = vld [vmem:[%s5221_s8 + $0x1] sm:$0xff]  ;;  %v4795_v33 = vld [vmem:[%s6560_s1 + $0x138] sm:$0xff]  ;;  %v5265_v35 = vpack.c.bf16 %v5246_v27, %v5243_v26  ;;  %v4794_v40 = vld [vmem:[%s6560_s1 + $0x130] sm:$0xff] }
  0x1f   : > { %v542_v30 = vld [vmem:[%s5221_s8 + $0x2] sm:$0xff]  ;;  %v421_v36 = vpack.c.bf16 %v5250_v29, %v413_v28  ;;  %v4811_v38 = vld [vmem:[%s6560_s1 + $0x1b8] sm:$0xff]  ;;  %v4802_v42 = vld [vmem:[%s6560_s1 + $0x170] sm:$0xff] }
  0x20   : > { %371 = vmatpush.bf16.msra.mxu0 %v4760_v9  ;;  %4959 = vmatpush.bf16.msra.mxu3 %v4760_v9  ;;  %v550_v37 = vpack.c.bf16 %v5254_v31, %v542_v30  ;;  %v4803_v41 = vld [vmem:[%s6560_s1 + $0x178] sm:$0xff]  ;;  %v4810_v43 = vld [vmem:[%s6560_s1 + $0x1b0] sm:$0xff]  ;;  %v4793_v45 = vld [vmem:[%s6560_s1 + $0x128] sm:$0xff] }
  0x21   : > { %500 = vmatpush.bf16.msra.mxu1 %v4768_v10  ;;  %v4801_v46 = vld [vmem:[%s6560_s1 + $0x168] sm:$0xff]  ;;  %v4784_v48 = vld [vmem:[%s6560_s1 + $0xe0] sm:$0xff]  ;;  %v5310_v51 = vld [vmem:[%s5221_s8 + $0x30] sm:$0xff] }
  0x22   : > { %629 = vmatpush.bf16.msra.mxu2 %v4776_v11  ;;  %v4809_v47 = vld [vmem:[%s6560_s1 + $0x1a8] sm:$0xff]  ;;  %v4792_v49 = vld [vmem:[%s6560_s1 + $0x120] sm:$0xff]  ;;  %v5316_v53 = vld [vmem:[%s5221_s8 + $0x70] sm:$0xff] }
  0x23   : > { %v5307_v50 = vld [vmem:[%s5221_s8 + $0x20] sm:$0xff]  ;;  %v5322_v55 = vld [vmem:[%s5221_s8 + $0x31] sm:$0xff]  ;;  %v4781_v8 = vld [vmem:[%s6560_s1 + $0xc8] sm:$0xff] }
  0x24   : > { %372 = vmatpush.bf16.msra.mxu0 %v4759_v12  ;;  %4960 = vmatpush.bf16.msra.mxu3 %v4759_v12  ;;  %v5313_v52 = vld [vmem:[%s5221_s8 + $0x60] sm:$0xff]  ;;  %v5328_v57 = vld [vmem:[%s5221_s8 + $0x32] sm:$0xff]  ;;  %v5344_v62 = vpack.c.bf16 %v5310_v51, %v5307_v50  ;;  %v4789_v9 = vld [vmem:[%s6560_s1 + $0x108] sm:$0xff] }
  0x25   : > { %501 = vmatpush.bf16.msra.mxu1 %v4767_v13  ;;  %v5319_v54 = vld [vmem:[%s5221_s8 + $0x21] sm:$0xff]  ;;  %v4783_v60 = vld [vmem:[%s6560_s1 + $0xd8] sm:$0xff]  ;;  %v5348_v63 = vpack.c.bf16 %v5316_v53, %v5313_v52  ;;  %v4782_v2 = vld [vmem:[%s6560_s1 + $0xd0] sm:$0xff] }
  0x26   : > { %630 = vmatpush.bf16.msra.mxu2 %v4775_v14  ;;  %v5325_v56 = vld [vmem:[%s5221_s8 + $0x22] sm:$0xff]  ;;  %v4791_v61 = vld [vmem:[%s6560_s1 + $0x118] sm:$0xff]  ;;  %v5352_v0 = vpack.c.bf16 %v5322_v55, %v5319_v54  ;;  %v4790_v3 = vld [vmem:[%s6560_s1 + $0x110] sm:$0xff] }
  0x27   : > { %v4800_v58 = vld [vmem:[%s6560_s1 + $0x160] sm:$0xff]  ;;  %v5356_v1 = vpack.c.bf16 %v5328_v57, %v5325_v56  ;;  %v4799_v4 = vld [vmem:[%s6560_s1 + $0x158] sm:$0xff]  ;;  %v4798_v6 = vld [vmem:[%s6560_s1 + $0x150] sm:$0xff] }
  0x28   : > { %373 = vmatpush.bf16.msra.mxu0 %v4758_v15  ;;  %4961 = vmatpush.bf16.msra.mxu3 %v4758_v15  ;;  %v4808_v59 = vld [vmem:[%s6560_s1 + $0x1a0] sm:$0xff]  ;;  %v4807_v5 = vld [vmem:[%s6560_s1 + $0x198] sm:$0xff]  ;;  %v4806_v7 = vld [vmem:[%s6560_s1 + $0x190] sm:$0xff] }
  0x29   : > { %502 = vmatpush.bf16.msra.mxu1 %v4766_v16  ;;  %v4797_v10 = vld [vmem:[%s6560_s1 + $0x148] sm:$0xff]  ;;  %v4780_v12 = vld [vmem:[%s6560_s1 + $0xc0] sm:$0xff]  ;;  %v5402_v15 = vld [vmem:[%s5221_s8 + $0x51] sm:$0xff] }
  0x2a   : > { %631 = vmatpush.bf16.msra.mxu2 %v4774_v17  ;;  %v4805_v11 = vld [vmem:[%s6560_s1 + $0x188] sm:$0xff]  ;;  %v4788_v13 = vld [vmem:[%s6560_s1 + $0x100] sm:$0xff] }
  0x2b   : > { %v5399_v14 = vld [vmem:[%s5221_s8 + $0x41] sm:$0xff] }
  0x2c   : > { %374 = vmatpush.bf16.msra.mxu0 %v4757_v18  ;;  %4962 = vmatpush.bf16.msra.mxu3 %v4757_v18  ;;  %v5405_v16 = vld [vmem:[%s5221_s8 + $0x42] sm:$0xff]  ;;  %v4819_v18 = vld [vmem:[%s6560_s1 + $0x1f8] sm:$0xff] }
  0x2d   : > { %503 = vmatpush.bf16.msra.mxu1 %v4765_v19  ;;  %v671_v17 = vld [vmem:[%s5221_s8 + $0x3] sm:$0xff]  ;;  %v4827_v19 = vld [vmem:[%s6560_s1 + $0x238] sm:$0xff] }
  0x2e   : > { %632 = vmatpush.bf16.msra.mxu2 %v4773_v20  ;;  %v5415_v20 = vld [vmem:[%s5221_s8 + $0x13] sm:$0xff]  ;;  %v4796_v24 = vld [vmem:[%s6560_s1 + $0x140] sm:$0xff] }
  0x2f   : > { %v4804_v28 = vld [vmem:[%s6560_s1 + $0x180] sm:$0xff]  ;;  %v679_v30 = vpack.c.bf16 %v5415_v20, %v671_v17  ;;  %v5541_v17 = vld [vmem:[%s5221_s8 + $0x54] sm:$0xff] }
  0x30   : > { %375 = vmatpush.bf16.msra.mxu0 %v4756_v21  ;;  %4963 = vmatpush.bf16.msra.mxu3 %v4756_v21  ;;  %v800_v21 = vld [vmem:[%s5221_s8 + $0x4] sm:$0xff] }
  0x31   : > { %504 = vmatpush.bf16.msra.mxu1 %v4764_v22  ;;  %v5419_v22 = vld [vmem:[%s5221_s8 + $0x14] sm:$0xff] }
  0x32   : > { %633 = vmatpush.bf16.msra.mxu2 %v4772_v23  ;;  %v5422_v23 = vld [vmem:[%s5221_s8 + $0x52] sm:$0xff] }
  0x33   : > { %376 = vmatmul.bf16.vlgmr.msra.gmra.mxu0 %v292_v34  ;;  %386 = vmatmul.bf16.vlgmr.msra.gmra.mxu3 %v5265_v35  ;;  %v5438_v34 = vpack.c.bf16 %v5422_v23, %v5405_v16 }
  0x34   : > { %755 = vmatpush.bf16.msrb.mxu3 %v4787_v32  ;;  %884 = vmatpush.bf16.msrb.mxu0 %v4795_v33  ;;  %v808_v32 = vpack.c.bf16 %v5419_v22, %v800_v21  ;;  %v5434_v33 = vpack.c.bf16 %v5402_v15, %v5399_v14  ;;  %v938_v21 = vpack.c.bf16 %v5307_v50, %v5240_v25  ;;  %v4842_v25 = vld [vmem:[%s6560_s1 + $0x2b0] sm:$0xff]  ;;  %v4859_v50 = vld [vmem:[%s6560_s1 + $0x338] sm:$0xff] }
  0x35   : > { %505 = vmatmul.bf16.vlgmr.msra.gmra.mxu1 %v421_v36  ;;  %634 = vmatmul.bf16.vlgmr.msra.gmra.mxu2 %v550_v37  ;;  %v4818_v36 = vld [vmem:[%s6560_s1 + $0x1f0] sm:$0xff] }
  0x36   : > { %1143 = vmatpush.bf16.msrb.mxu2 %v4811_v38  ;;  %1014 = vmatpush.bf16.msrb.mxu1 %v4803_v41  ;;  %v4826_v37 = vld [vmem:[%s6560_s1 + $0x230] sm:$0xff]  ;;  %v4817_v38 = vld [vmem:[%s6560_s1 + $0x1e8] sm:$0xff]  ;;  %v4824_v41 = vld [vmem:[%s6560_s1 + $0x220] sm:$0xff] }
  0x38   : > { %756 = vmatpush.bf16.msrb.mxu3 %v4786_v39  ;;  %885 = vmatpush.bf16.msrb.mxu0 %v4794_v40  ;;  %v4825_v39 = vld [vmem:[%s6560_s1 + $0x228] sm:$0xff]  ;;  %v4816_v40 = vld [vmem:[%s6560_s1 + $0x1e0] sm:$0xff] }
  0x3a   : > { %1015 = vmatpush.bf16.msrb.mxu1 %v4802_v42  ;;  %1144 = vmatpush.bf16.msrb.mxu2 %v4810_v43  ;;  %v5461_v42 = vld [vmem:[%s5221_s8 + $0x61] sm:$0xff]  ;;  %v5464_v43 = vld [vmem:[%s5221_s8 + $0x71] sm:$0xff] }
  0x3c   : > { %757 = vmatpush.bf16.msrb.mxu3 %v4785_v44  ;;  %886 = vmatpush.bf16.msrb.mxu0 %v4793_v45  ;;  %v5467_v44 = vld [vmem:[%s5221_s8 + $0x62] sm:$0xff] }
  0x3d   : > { %v5470_v45 = vld [vmem:[%s5221_s8 + $0x23] sm:$0xff] }
  0x3e   : > { %1016 = vmatpush.bf16.msrb.mxu1 %v4801_v46  ;;  %1145 = vmatpush.bf16.msrb.mxu2 %v4809_v47  ;;  %v5473_v46 = vld [vmem:[%s5221_s8 + $0x33] sm:$0xff]  ;;  %v5476_v47 = vld [vmem:[%s5221_s8 + $0x24] sm:$0xff] }
  0x40   : > { %758 = vmatpush.bf16.msrb.mxu3 %v4784_v48  ;;  %887 = vmatpush.bf16.msrb.mxu0 %v4792_v49  ;;  %v5479_v48 = vld [vmem:[%s5221_s8 + $0x34] sm:$0xff] }
  0x41   : > { %v5482_v49 = vld [vmem:[%s5221_s8 + $0x72] sm:$0xff] }
  0x42   : > { %1017 = vmatpush.bf16.msrb.mxu1 %v4800_v58  ;;  %1146 = vmatpush.bf16.msrb.mxu2 %v4808_v59  ;;  %v4815_v58 = vld [vmem:[%s6560_s1 + $0x1d8] sm:$0xff] }
  0x43   : > { %381 = vmatmul.bf16.gmra.mxu0 %v5344_v62  ;;  %391 = vmatmul.bf16.gmra.mxu3 %v5348_v63  ;;  %v4823_v59 = vld [vmem:[%s6560_s1 + $0x218] sm:$0xff] }
  0x44   : > { %759 = vmatpush.bf16.msrb.mxu3 %v4783_v60  ;;  %888 = vmatpush.bf16.msrb.mxu0 %v4791_v61  ;;  %v5492_v60 = vpack.c.bf16 %v5473_v46, %v5470_v45  ;;  %v5496_v61 = vpack.c.bf16 %v5479_v48, %v5476_v47 }
  0x45   : > { %510 = vmatmul.bf16.gmra.mxu1 %v5352_v0  ;;  %639 = vmatmul.bf16.gmra.mxu2 %v5356_v1 }
  0x46   : > { %1018 = vmatpush.bf16.msrb.mxu1 %v4799_v4  ;;  %1147 = vmatpush.bf16.msrb.mxu2 %v4807_v5  ;;  %v4814_v4 = vld [vmem:[%s6560_s1 + $0x1d0] sm:$0xff] }
  0x47   : > { %v4822_v5 = vld [vmem:[%s6560_s1 + $0x210] sm:$0xff] }
  0x48   : > { %760 = vmatpush.bf16.msrb.mxu3 %v4782_v2  ;;  %889 = vmatpush.bf16.msrb.mxu0 %v4790_v3  ;;  %v5500_v2 = vpack.c.bf16 %v5464_v43, %v5461_v42  ;;  %v5504_v3 = vpack.c.bf16 %v5482_v49, %v5467_v44 }
  0x4a   : > { %1019 = vmatpush.bf16.msrb.mxu1 %v4798_v6  ;;  %1148 = vmatpush.bf16.msrb.mxu2 %v4806_v7  ;;  %v4813_v6 = vld [vmem:[%s6560_s1 + $0x1c8] sm:$0xff]  ;;  %v4843_v7 = vld [vmem:[%s6560_s1 + $0x2b8] sm:$0xff] }
  0x4c   : > { %761 = vmatpush.bf16.msrb.mxu3 %v4781_v8  ;;  %890 = vmatpush.bf16.msrb.mxu0 %v4789_v9  ;;  %v4821_v8 = vld [vmem:[%s6560_s1 + $0x208] sm:$0xff]  ;;  %v4812_v9 = vld [vmem:[%s6560_s1 + $0x1c0] sm:$0xff] }
  0x4e   : > { %1020 = vmatpush.bf16.msrb.mxu1 %v4797_v10  ;;  %1149 = vmatpush.bf16.msrb.mxu2 %v4805_v11  ;;  %v4820_v10 = vld [vmem:[%s6560_s1 + $0x200] sm:$0xff] }
  0x4f   : > { %v5532_v11 = vld [vmem:[%s5221_s8 + $0x43] sm:$0xff] }
  0x50   : > { %762 = vmatpush.bf16.msrb.mxu3 %v4780_v12  ;;  %891 = vmatpush.bf16.msrb.mxu0 %v4788_v13  ;;  %v5535_v12 = vld [vmem:[%s5221_s8 + $0x53] sm:$0xff]  ;;  %v5538_v13 = vld [vmem:[%s5221_s8 + $0x44] sm:$0xff] }
  0x52   : > { %1021 = vmatpush.bf16.msrb.mxu1 %v4796_v24  ;;  %1150 = vmatpush.bf16.msrb.mxu2 %v4804_v28  ;;  %v1067_v24 = vpack.c.bf16 %v5319_v54, %v5250_v29  ;;  %v4835_v28 = vld [vmem:[%s6560_s1 + $0x278] sm:$0xff]  ;;  %v4834_v29 = vld [vmem:[%s6560_s1 + $0x270] sm:$0xff] }
  0x53   : > { %763 = vmatmul.bf16.vlgmr.msrb.gmra.mxu3 %v679_v30  ;;  %892 = vmatmul.bf16.vlgmr.msrb.gmra.mxu0 %v808_v32  ;;  %v4851_v30 = vld [vmem:[%s6560_s1 + $0x2f8] sm:$0xff]  ;;  %v4850_v54 = vld [vmem:[%s6560_s1 + $0x2f0] sm:$0xff]  ;;  %v4841_v32 = vld [vmem:[%s6560_s1 + $0x2a8] sm:$0xff] }
  0x54   : > { %1272 = vmatpush.bf16.msra.mxu3 %v4819_v18  ;;  %1401 = vmatpush.bf16.msra.mxu0 %v4827_v19  ;;  %v5545_v18 = vpack.c.bf16 %v5535_v12, %v5532_v11  ;;  %v5549_v19 = vpack.c.bf16 %v5541_v17, %v5538_v13 }
  0x55   : > { %515 = vmatmul.bf16.gmra.mxu1 %v5434_v33  ;;  %644 = vmatmul.bf16.gmra.mxu2 %v5438_v34 }
  0x56   : > { %1660 = vmatpush.bf16.msra.mxu2 %v4843_v7  ;;  %1530 = vmatpush.bf16.msra.mxu1 %v4835_v28  ;;  %v4831_v7 = vld [vmem:[%s6560_s1 + $0x258] sm:$0xff]  ;;  %v1196_v28 = vpack.c.bf16 %v5325_v56, %v5254_v31  ;;  %v4856_v56 = vld [vmem:[%s6560_s1 + $0x320] sm:$0xff] }
  0x57   : > { %v4847_v31 = vld [vmem:[%s6560_s1 + $0x2d8] sm:$0xff] }
  0x58   : > { %1273 = vmatpush.bf16.msra.mxu3 %v4818_v36  ;;  %1402 = vmatpush.bf16.msra.mxu0 %v4826_v37  ;;  %v4833_v36 = vld [vmem:[%s6560_s1 + $0x268] sm:$0xff]  ;;  %v4840_v37 = vld [vmem:[%s6560_s1 + $0x2a0] sm:$0xff] }
  0x5a   : > { %1661 = vmatpush.bf16.msra.mxu2 %v4842_v25  ;;  %1531 = vmatpush.bf16.msra.mxu1 %v4834_v29  ;;  %v4828_v25 = vld [vmem:[%s6560_s1 + $0x240] sm:$0xff] }
  0x5b   : > { %v4836_v29 = vld [vmem:[%s6560_s1 + $0x280] sm:$0xff] }
  0x5c   : > { %1274 = vmatpush.bf16.msra.mxu3 %v4817_v38  ;;  %1403 = vmatpush.bf16.msra.mxu0 %v4825_v39  ;;  %v5585_v38 = vld [vmem:[%s5221_s8 + $0x63] sm:$0xff]  ;;  %v5588_v39 = vld [vmem:[%s5221_s8 + $0x73] sm:$0xff] }
  0x5e   : > { %1662 = vmatpush.bf16.msra.mxu2 %v4841_v32  ;;  %1532 = vmatpush.bf16.msra.mxu1 %v4833_v36 }
  0x60   : > { %1275 = vmatpush.bf16.msra.mxu3 %v4816_v40  ;;  %1404 = vmatpush.bf16.msra.mxu0 %v4824_v41  ;;  %v5591_v40 = vld [vmem:[%s5221_s8 + $0x64] sm:$0xff]  ;;  %v5594_v41 = vld [vmem:[%s5221_s8 + $0x74] sm:$0xff] }
  0x62   : > { %1663 = vmatpush.bf16.msra.mxu2 %v4840_v37  ;;  %v4845_v37 = vld [vmem:[%s6560_s1 + $0x2c8] sm:$0xff] }
  0x63   : > { %768 = vmatmul.bf16.gmra.mxu3 %v5492_v60  ;;  %897 = vmatmul.bf16.gmra.mxu0 %v5496_v61 }
  0x64   : > { %1276 = vmatpush.bf16.msra.mxu3 %v4815_v58  ;;  %1405 = vmatpush.bf16.msra.mxu0 %v4823_v59  ;;  %v4832_v58 = vld [vmem:[%s6560_s1 + $0x260] sm:$0xff]  ;;  %v5601_v59 = vpack.c.bf16 %v5588_v39, %v5585_v38 }
  0x65   : > { %520 = vmatmul.bf16.gmra.mxu1 %v5500_v2  ;;  %649 = vmatmul.bf16.gmra.mxu2 %v5504_v3 }
  0x66   : > { %1533 = vmatpush.bf16.msra.mxu1 %v4832_v58 }
  0x68   : > { %1277 = vmatpush.bf16.msra.mxu3 %v4814_v4  ;;  %1406 = vmatpush.bf16.msra.mxu0 %v4822_v5  ;;  %v5605_v4 = vpack.c.bf16 %v5594_v41, %v5591_v40  ;;  %v939_v5 = vpack.c.bf16 %v5243_v26, %v5310_v51  ;;  %v4849_v26 = vld [vmem:[%s6560_s1 + $0x2e8] sm:$0xff]  ;;  %v4858_v51 = vld [vmem:[%s6560_s1 + $0x330] sm:$0xff] }
  0x6a   : > { %1534 = vmatpush.bf16.msra.mxu1 %v4831_v7 }
  0x6c   : > { %1278 = vmatpush.bf16.msra.mxu3 %v4813_v6  ;;  %1407 = vmatpush.bf16.msra.mxu0 %v4821_v8  ;;  %v1068_v6 = vpack.c.bf16 %v5399_v14, %v5322_v55  ;;  %v4839_v8 = vld [vmem:[%s6560_s1 + $0x298] sm:$0xff]  ;;  %v4830_v55 = vld [vmem:[%s6560_s1 + $0x250] sm:$0xff] }
  0x6d   : > { %1664 = vmatpush.bf16.msra.mxu2 %v4839_v8  ;;  %v4838_v14 = vld [vmem:[%s6560_s1 + $0x290] sm:$0xff]  ;;  %v4875_v8 = vld [vmem:[%s6560_s1 + $0x3b8] sm:$0xff] }
  0x6e   : > { %1535 = vmatpush.bf16.msra.mxu1 %v4830_v55 }
  0x70   : > { %1279 = vmatpush.bf16.msra.mxu3 %v4812_v9  ;;  %1408 = vmatpush.bf16.msra.mxu0 %v4820_v10  ;;  %v4848_v9 = vld [vmem:[%s6560_s1 + $0x2e0] sm:$0xff]  ;;  %v4857_v10 = vld [vmem:[%s6560_s1 + $0x328] sm:$0xff] }
  0x71   : > { %1665 = vmatpush.bf16.msra.mxu2 %v4838_v14  ;;  %v4882_v14 = vld [vmem:[%s6560_s1 + $0x3f0] sm:$0xff] }
  0x73   : > { %773 = vmatmul.bf16.gmra.mxu3 %v5545_v18  ;;  %902 = vmatmul.bf16.gmra.mxu0 %v5549_v19 }
  0x74   : > { %1789 = vmatpush.bf16.msrb.mxu3 %v4851_v30  ;;  %1918 = vmatpush.bf16.msrb.mxu0 %v4859_v50  ;;  %v1325_v30 = vpack.c.bf16 %v5470_v45, %v5415_v20  ;;  %v940_v50 = vpack.c.bf16 %v5313_v52, %v5246_v27  ;;  %v4846_v27 = vld [vmem:[%s6560_s1 + $0x2d0] sm:$0xff]  ;;  %v4855_v52 = vld [vmem:[%s6560_s1 + $0x318] sm:$0xff]  ;;  %v5673_v20 = vld [vmem:[%s5221_s8 + $0x81] sm:$0xff]  ;;  %v1326_v45 = vpack.c.bf16 %v5532_v11, %v5473_v46 }
  0x75   : > { %1022 = vmatmul.bf16.vlgmr.msrb.gmra.mxu1 %v938_v21  ;;  %1151 = vmatmul.bf16.vlgmr.msrb.gmra.mxu2 %v1067_v24  ;;  %v4829_v21 = vld [vmem:[%s6560_s1 + $0x248] sm:$0xff]  ;;  %v1070_v36 = vpack.c.bf16 %v5673_v20, %v5464_v43  ;;  %v1198_v43 = vpack.c.bf16 %v5467_v44, %v5422_v23  ;;  %v1327_v46 = vpack.c.bf16 %v5585_v38, %v5535_v12  ;;  %v4852_v11 = vld [vmem:[%s6560_s1 + $0x300] sm:$0xff]  ;;  %v4867_v23 = vld [vmem:[%s6560_s1 + $0x378] sm:$0xff] }
  0x76   : > { %v4837_v24 = vld [vmem:[%s6560_s1 + $0x288] sm:$0xff]  ;;  %1536 = vmatpush.bf16.msra.mxu1 %v4829_v21  ;;  %v4866_v12 = vld [vmem:[%s6560_s1 + $0x370] sm:$0xff] }
  0x77   : > { %1666 = vmatpush.bf16.msra.mxu2 %v4837_v24  ;;  %v4873_v21 = vld [vmem:[%s6560_s1 + $0x3a8] sm:$0xff] }
  0x78   : > { %1790 = vmatpush.bf16.msrb.mxu3 %v4850_v54  ;;  %1919 = vmatpush.bf16.msrb.mxu0 %v4858_v51  ;;  %v1069_v54 = vpack.c.bf16 %v5461_v42, %v5402_v15  ;;  %v5670_v15 = vld [vmem:[%s5221_s8 + $0x80] sm:$0xff]  ;;  %v1197_v42 = vpack.c.bf16 %v5405_v16, %v5328_v57  ;;  %v4854_v57 = vld [vmem:[%s6560_s1 + $0x310] sm:$0xff]  ;;  %v4853_v16 = vld [vmem:[%s6560_s1 + $0x308] sm:$0xff] }
  0x79   : > { %v941_v32 = vpack.c.bf16 %v5670_v15, %v5316_v53  ;;  %v4844_v53 = vld [vmem:[%s6560_s1 + $0x2c0] sm:$0xff] }
  0x7a   : > { %1537 = vmatpush.bf16.msra.mxu1 %v4828_v25  ;;  %v5737_v24 = vld [vmem:[%s5221_s8 + $0x82] sm:$0xff] }
  0x7b   : > { %1667 = vmatpush.bf16.msra.mxu2 %v4836_v29  ;;  %v1199_v29 = vpack.c.bf16 %v5737_v24, %v5482_v49 }
  0x7c   : > { %1791 = vmatpush.bf16.msrb.mxu3 %v4849_v26  ;;  %1920 = vmatpush.bf16.msrb.mxu0 %v4857_v10  ;;  %v4865_v10 = vld [vmem:[%s6560_s1 + $0x368] sm:$0xff] }
  0x7e   : > { %2047 = vmatpush.bf16.msrb.mxu1 %v4867_v23  ;;  %v4868_v23 = vld [vmem:[%s6560_s1 + $0x380] sm:$0xff] }
  0x7f   : > { %2176 = vmatpush.bf16.msrb.mxu2 %v4875_v8  ;;  %v4860_v8 = vld [vmem:[%s6560_s1 + $0x340] sm:$0xff] }
  0x80   : > { %1792 = vmatpush.bf16.msrb.mxu3 %v4848_v9  ;;  %1921 = vmatpush.bf16.msrb.mxu0 %v4856_v56  ;;  %v4891_v9 = vld [vmem:[%s6560_s1 + $0x438] sm:$0xff] }
  0x82   : > { %2048 = vmatpush.bf16.msrb.mxu1 %v4866_v12  ;;  %v1456_v12 = vpack.c.bf16 %v5591_v40, %v5541_v17  ;;  %v4888_v17 = vld [vmem:[%s6560_s1 + $0x420] sm:$0xff] }
  0x83   : > { %778 = vmatmul.bf16.gmra.mxu3 %v5601_v59  ;;  %907 = vmatmul.bf16.gmra.mxu0 %v5605_v4 }
  0x84   : > { %1793 = vmatpush.bf16.msrb.mxu3 %v4847_v31  ;;  %1922 = vmatpush.bf16.msrb.mxu0 %v4855_v52  ;;  %v4872_v31 = vld [vmem:[%s6560_s1 + $0x3a0] sm:$0xff]  ;;  %v1455_v52 = vpack.c.bf16 %v5538_v13, %v5479_v48  ;;  %v4881_v48 = vld [vmem:[%s6560_s1 + $0x3e8] sm:$0xff]  ;;  %v4890_v13 = vld [vmem:[%s6560_s1 + $0x430] sm:$0xff] }
  0x85   : > { %1027 = vmatmul.bf16.gmra.mxu1 %v939_v5  ;;  %1156 = vmatmul.bf16.gmra.mxu2 %v1068_v6  ;;  %v1454_v5 = vpack.c.bf16 %v5476_v47, %v5419_v22  ;;  %v4883_v22 = vld [vmem:[%s6560_s1 + $0x3f8] sm:$0xff] }
  0x86   : > { %2049 = vmatpush.bf16.msrb.mxu1 %v4865_v10  ;;  %v4878_v10 = vld [vmem:[%s6560_s1 + $0x3d0] sm:$0xff] }
  0x88   : > { %1794 = vmatpush.bf16.msrb.mxu3 %v4846_v27  ;;  %1923 = vmatpush.bf16.msrb.mxu0 %v4854_v57 }
  0x8c   : > { %1795 = vmatpush.bf16.msrb.mxu3 %v4845_v37  ;;  %1924 = vmatpush.bf16.msrb.mxu0 %v4853_v16  ;;  %v4862_v37 = vld [vmem:[%s6560_s1 + $0x350] sm:$0xff] }
  0x90   : > { %1796 = vmatpush.bf16.msrb.mxu3 %v4844_v53  ;;  %1925 = vmatpush.bf16.msrb.mxu0 %v4852_v11  ;;  %v4889_v11 = vld [vmem:[%s6560_s1 + $0x428] sm:$0xff] }
  0x93   : > { %1280 = vmatmul.bf16.vlgmr.msra.gmra.mxu3 %v1196_v28  ;;  %1409 = vmatmul.bf16.vlgmr.msra.gmra.mxu0 %v1325_v30  ;;  %v5740_v28 = vld [vmem:[%s5221_s8 + $0x83] sm:$0xff] }
  0x94   : > { %2306 = vmatpush.bf16.msra.mxu3 %v4883_v22  ;;  %2435 = vmatpush.bf16.msra.mxu0 %v4891_v9 }
  0x95   : > { %1032 = vmatmul.bf16.gmra.mxu1 %v940_v50  ;;  %1161 = vmatmul.bf16.gmra.mxu2 %v1069_v54  ;;  %v1328_v50 = vpack.c.bf16 %v5740_v28, %v5588_v39  ;;  %v4864_v54 = vld [vmem:[%s6560_s1 + $0x360] sm:$0xff]  ;;  %v4863_v39 = vld [vmem:[%s6560_s1 + $0x358] sm:$0xff] }
  0x96   : > { %2050 = vmatpush.bf16.msrb.mxu1 %v4864_v54 }
  0x98   : > { %2307 = vmatpush.bf16.msra.mxu3 %v4882_v14  ;;  %2436 = vmatpush.bf16.msra.mxu0 %v4890_v13 }
  0x9a   : > { %2051 = vmatpush.bf16.msrb.mxu1 %v4863_v39 }
  0x9c   : > { %2308 = vmatpush.bf16.msra.mxu3 %v4881_v48  ;;  %2437 = vmatpush.bf16.msra.mxu0 %v4889_v11 }
  0x9e   : > { %2052 = vmatpush.bf16.msrb.mxu1 %v4862_v37  ;;  %v4876_v37 = vld [vmem:[%s6560_s1 + $0x3c0] sm:$0xff] }
  0xa0   : > { %2438 = vmatpush.bf16.msra.mxu0 %v4888_v17  ;;  %v4914_v17 = vld [vmem:[%s6560_s1 + $0x4f0] sm:$0xff] }
  0xa3   : > { %1285 = vmatmul.bf16.gmra.mxu3 %v1197_v42  ;;  %1414 = vmatmul.bf16.gmra.mxu0 %v1326_v45  ;;  %v4871_v45 = vld [vmem:[%s6560_s1 + $0x398] sm:$0xff] }
  0xa5   : > { %1037 = vmatmul.bf16.gmra.mxu1 %v941_v32  ;;  %1166 = vmatmul.bf16.gmra.mxu2 %v1070_v36 }
  0xb0   : > { %v377_v58 = vpop.f32.mrf.mxu0 }
  0xb2   : > { %v506_v6 = vpop.f32.mrf.mxu1 }
  0xb3   : > { %v526_v7 = vadd.f32 %v506_v6, %v377_v58  ;;  %1290 = vmatmul.bf16.gmra.mxu3 %v1198_v43  ;;  %1419 = vmatmul.bf16.gmra.mxu0 %v1327_v46  ;;  %v4880_v46 = vld [vmem:[%s6560_s1 + $0x3e0] sm:$0xff]  ;;  %v4861_v58 = vld [vmem:[%s6560_s1 + $0x348] sm:$0xff] }
  0xb4   : > { %2309 = vmatpush.bf16.msra.mxu3 %v4880_v46  ;;  %2053 = vmatpush.bf16.msrb.mxu1 %v4861_v58 }
  0xb5   : > { %1538 = vmatmul.bf16.vlgmr.msra.gmra.mxu1 %v1454_v5  ;;  %1668 = vmatmul.bf16.vlgmr.msra.gmra.mxu2 %v5344_v62  ;;  %v4874_v62 = vld [vmem:[%s6560_s1 + $0x3b0] sm:$0xff]  ;;  %v4869_v5 = vld [vmem:[%s6560_s1 + $0x388] sm:$0xff] }
  0xb6   : > { %v5714_v44 = vpop.f32.mrf.mxu3  ;;  %2177 = vmatpush.bf16.msrb.mxu2 %v4874_v62 }
  0xb8   : > { %v635_v47 = vpop.f32.mrf.mxu2  ;;  %v379_v26 = vpop.f32.mrf.mxu0  ;;  %2054 = vmatpush.bf16.msrb.mxu1 %v4860_v8  ;;  %v4899_v8 = vld [vmem:[%s6560_s1 + $0x478] sm:$0xff] }
  0xb9   : > { %v5722_v38 = vadd.f32 %v635_v47, %v526_v7 }
  0xba   : > { %v508_v51 = vpop.f32.mrf.mxu1  ;;  %2178 = vmatpush.bf16.msrb.mxu2 %v4873_v21  ;;  %v4887_v21 = vld [vmem:[%s6560_s1 + $0x418] sm:$0xff] }
  0xbb   : > { %v527_v55 = vadd.f32 %v508_v51, %v379_v26  ;;  %v4879_v51 = vld [vmem:[%s6560_s1 + $0x3d8] sm:$0xff]  ;;  %2439 = vmatpush.bf16.msra.mxu0 %v4887_v21 }
  0xbc   : > { %2310 = vmatpush.bf16.msra.mxu3 %v4879_v51  ;;  %2564 = vmatpush.bf16.msra.mxu1 %v4899_v8  ;;  %v4900_v8 = vld [vmem:[%s6560_s1 + $0x480] sm:$0xff] }
  0xbe   : > { %v5742_v30 = vpop.f32.mrf.mxu3  ;;  %2179 = vmatpush.bf16.msrb.mxu2 %v4872_v31 }
  0xc0   : > { %v637_v25 = vpop.f32.mrf.mxu2  ;;  %v382_v27 = vpop.f32.mrf.mxu0  ;;  %2311 = vmatpush.bf16.msra.mxu3 %v4878_v10 }
  0xc1   : > { %v5754_v56 = vadd.f32 %v637_v25, %v527_v55  ;;  %v5818_v25 = vld [vmem:[%s5221_s8 + $0x84] sm:$0xff] }
  0xc2   : > { %v511_v42 = vpop.f32.mrf.mxu1  ;;  %2180 = vmatpush.bf16.msrb.mxu2 %v4871_v45 }
  0xc3   : > { %v528_v49 = vadd.f32 %v511_v42, %v382_v27  ;;  %1295 = vmatmul.bf16.gmra.mxu3 %v1199_v29  ;;  %1424 = vmatmul.bf16.gmra.mxu0 %v1328_v50  ;;  %v5821_v29 = vld [vmem:[%s5221_s8 + $0x90] sm:$0xff]  ;;  %v1457_v27 = vpack.c.bf16 %v5818_v25, %v5594_v41 }
  0xc4   : > { %v4886_v41 = vld [vmem:[%s6560_s1 + $0x410] sm:$0xff] }
  0xc5   : > { %1543 = vmatmul.bf16.gmra.mxu1 %v1455_v52  ;;  %1673 = vmatmul.bf16.gmra.mxu2 %v5265_v35  ;;  %v4870_v35 = vld [vmem:[%s6560_s1 + $0x390] sm:$0xff]  ;;  %v1587_v52 = vpack.c.bf16 %v5821_v29, %v5670_v15 }
  0xc6   : > { %v392_v32 = vpop.f32.mrf.mxu3  ;;  %2181 = vmatpush.bf16.msrb.mxu2 %v4870_v35  ;;  %2440 = vmatpush.bf16.msra.mxu0 %v4886_v41  ;;  %v4885_v35 = vld [vmem:[%s6560_s1 + $0x408] sm:$0xff]  ;;  %v4902_v41 = vld [vmem:[%s6560_s1 + $0x490] sm:$0xff] }
  0xc8   : > { %v640_v36 = vpop.f32.mrf.mxu2  ;;  %v384_v53 = vpop.f32.mrf.mxu0 }
  0xc9   : > { %v5777_v57 = vadd.f32 %v640_v36, %v528_v49 }
  0xca   : > { %v513_v16 = vpop.f32.mrf.mxu1  ;;  %2182 = vmatpush.bf16.msrb.mxu2 %v4869_v5  ;;  %2441 = vmatpush.bf16.msra.mxu0 %v4885_v35  ;;  %v4901_v35 = vld [vmem:[%s6560_s1 + $0x488] sm:$0xff] }
  0xcb   : > { %v529_v43 = vadd.f32 %v513_v16, %v384_v53 }
  0xce   : > { %v394_v6 = vpop.f32.mrf.mxu3  ;;  %2183 = vmatpush.bf16.msrb.mxu2 %v4868_v23  ;;  %v4915_v23 = vld [vmem:[%s6560_s1 + $0x4f8] sm:$0xff] }
  0xd0   : > { %v642_v7 = vpop.f32.mrf.mxu2  ;;  %v893_v47 = vpop.f32.mrf.mxu0 }
  0xd1   : > { %v658_v22 = vadd.f32 %v642_v7, %v529_v43  ;;  %v4907_v7 = vld [vmem:[%s6560_s1 + $0x4b8] sm:$0xff] }
  0xd2   : > { %v516_v62 = vpop.f32.mrf.mxu1  ;;  %2693 = vmatpush.bf16.msra.mxu2 %v4907_v7  ;;  %v4892_v7 = vld [vmem:[%s6560_s1 + $0x440] sm:$0xff] }
  0xd3   : > { %v530_v26 = vadd.f32 %v516_v62, %v5714_v44  ;;  %1797 = vmatmul.bf16.vlgmr.msrb.gmra.mxu3 %v5352_v0  ;;  %1926 = vmatmul.bf16.vlgmr.msrb.gmra.mxu0 %v5356_v1 }
  0xd5   : > { %1548 = vmatmul.bf16.gmra.mxu1 %v1456_v12  ;;  %1678 = vmatmul.bf16.gmra.mxu2 %v5348_v63 }
  0xd6   : > { %v764_v40 = vpop.f32.mrf.mxu3 }
  0xd7   : > { %v784_v0 = vadd.f32 %v764_v40, %v5722_v38  ;;  %v4923_v40 = vld [vmem:[%s6560_s1 + $0x538] sm:$0xff] }
  0xd8   : > { %v645_v44 = vpop.f32.mrf.mxu2  ;;  %v895_v55 = vpop.f32.mrf.mxu0 }
  0xd9   : > { %v659_v1 = vadd.f32 %v645_v44, %v530_v26  ;;  %v913_v63 = vadd.f32 %v893_v47, %v784_v0  ;;  %v4898_v47 = vld [vmem:[%s6560_s1 + $0x470] sm:$0xff]  ;;  %v4897_v44 = vld [vmem:[%s6560_s1 + $0x468] sm:$0xff] }
  0xda   : > { %v518_v14 = vpop.f32.mrf.mxu1  ;;  %2565 = vmatpush.bf16.msra.mxu1 %v4898_v47  ;;  %v4905_v0 = vld [vmem:[%s6560_s1 + $0x4a8] sm:$0xff]  ;;  %v4911_v47 = vld [vmem:[%s6560_s1 + $0x4d8] sm:$0xff] }
  0xdb   : > { %v531_v9 = vadd.f32 %v518_v14, %v5742_v30 }
  0xde   : > { %v766_v38 = vpop.f32.mrf.mxu3  ;;  %2566 = vmatpush.bf16.msra.mxu1 %v4897_v44  ;;  %v4910_v44 = vld [vmem:[%s6560_s1 + $0x4d0] sm:$0xff] }
  0xdf   : > { %v785_v54 = vadd.f32 %v766_v38, %v5754_v56  ;;  %v4877_v56 = vld [vmem:[%s6560_s1 + $0x3c8] sm:$0xff]  ;;  %v4896_v38 = vld [vmem:[%s6560_s1 + $0x460] sm:$0xff] }
  0xe0   : > { %v647_v50 = vpop.f32.mrf.mxu2  ;;  %v898_v30 = vpop.f32.mrf.mxu0  ;;  %2312 = vmatpush.bf16.msra.mxu3 %v4877_v56 }
  0xe1   : > { %v5824_v31 = vadd.f32 %v647_v50, %v531_v9  ;;  %v914_v49 = vadd.f32 %v895_v55, %v785_v54  ;;  %v5893_v55 = vld [vmem:[%s5221_s8 + $0x92] sm:$0xff]  ;;  %v4904_v50 = vld [vmem:[%s6560_s1 + $0x4a0] sm:$0xff] }
  0xe2   : > { %v521_v42 = vpop.f32.mrf.mxu1  ;;  %v1845_v21 = vpack.c.bf16 %v5893_v55, %v5737_v24  ;;  %2567 = vmatpush.bf16.msra.mxu1 %v4896_v38  ;;  %v4895_v24 = vld [vmem:[%s6560_s1 + $0x458] sm:$0xff] }
  0xe3   : > { %v532_v39 = vadd.f32 %v521_v42, %v392_v32  ;;  %1802 = vmatmul.bf16.gmra.mxu3 %v5434_v33  ;;  %1931 = vmatmul.bf16.gmra.mxu0 %v5438_v34  ;;  %v4913_v42 = vld [vmem:[%s6560_s1 + $0x4e8] sm:$0xff] }
  0xe4   : > { %2313 = vmatpush.bf16.msra.mxu3 %v4876_v37  ;;  %v4346_v37 = vld [vmem:[%s5221_s8 + $0x30] sm:$0xff] }
  0xe5   : > { %1553 = vmatmul.bf16.gmra.mxu1 %v1457_v27  ;;  %1683 = vmatmul.bf16.gmra.mxu2 %v1587_v52  ;;  %v4903_v52 = vld [vmem:[%s6560_s1 + $0x498] sm:$0xff] }
  0xe6   : > { %v769_v45 = vpop.f32.mrf.mxu3  ;;  %2568 = vmatpush.bf16.msra.mxu1 %v4895_v24 }
  0xe7   : > { %v786_v48 = vadd.f32 %v769_v45, %v5777_v57  ;;  %v4884_v57 = vld [vmem:[%s6560_s1 + $0x400] sm:$0xff] }
  0xe8   : > { %v650_v15 = vpop.f32.mrf.mxu2  ;;  %v900_v33 = vpop.f32.mrf.mxu0  ;;  %2442 = vmatpush.bf16.msra.mxu0 %v4884_v57  ;;  %2822 = vmatpush.bf16.msrb.mxu3 %v4915_v23 }
  0xe9   : > { %v5839_v13 = vadd.f32 %v650_v15, %v532_v39  ;;  %v915_v32 = vadd.f32 %v898_v30, %v786_v48 }
  0xea   : > { %v523_v34 = vpop.f32.mrf.mxu1 }
  0xeb   : > { %v533_v36 = vadd.f32 %v523_v34, %v394_v6  ;;  %v4912_v34 = vld [vmem:[%s6560_s1 + $0x4e0] sm:$0xff] }
  0xec   : > { %2823 = vmatpush.bf16.msrb.mxu3 %v4914_v17  ;;  %2952 = vmatpush.bf16.msrb.mxu0 %v4923_v40 }
  0xee   : > { %v771_v53 = vpop.f32.mrf.mxu3 }
  0xef   : > { %v787_v43 = vadd.f32 %v771_v53, %v658_v22  ;;  %v5950_v53 = vld [vmem:[%s5221_s8 + $0x40] sm:$0xff] }
  0xf0   : > { %v652_v16 = vpop.f32.mrf.mxu2  ;;  %v903_v11 = vpop.f32.mrf.mxu0  ;;  %2824 = vmatpush.bf16.msrb.mxu3 %v4913_v42 }
  0xf1   : > { %v5850_v46 = vadd.f32 %v652_v16, %v533_v36  ;;  %v5852_v5 = vadd.f32 %v900_v33, %v787_v43  ;;  %v4893_v36 = vld [vmem:[%s6560_s1 + $0x448] sm:$0xff]  ;;  %v4386_v16 = vld [vmem:[%s5221_s8 + $0x31] sm:$0xff] }
  0xf2   : > { %v1023_v58 = vpop.f32.mrf.mxu1  ;;  %v5954_v43 = vld [vmem:[%s5221_s8 + $0x41] sm:$0xff] }
  0xf3   : > { %v1043_v6 = vadd.f32 %v1023_v58, %v913_v63  ;;  %1807 = vmatmul.bf16.gmra.mxu3 %v5500_v2  ;;  %1936 = vmatmul.bf16.gmra.mxu0 %v5504_v3 }
  0xf4   : > { %2825 = vmatpush.bf16.msrb.mxu3 %v4912_v34  ;;  %v4908_v34 = vld [vmem:[%s6560_s1 + $0x4c0] sm:$0xff] }
  0xf5   : > { %2055 = vmatmul.bf16.vlgmr.msrb.gmra.mxu1 %v5492_v60  ;;  %2184 = vmatmul.bf16.vlgmr.msrb.gmra.mxu2 %v5496_v61  ;;  %v4906_v60 = vld [vmem:[%s6560_s1 + $0x4b0] sm:$0xff] }
  0xf6   : > { %v774_v22 = vpop.f32.mrf.mxu3  ;;  %2694 = vmatpush.bf16.msra.mxu2 %v4906_v60  ;;  %v4920_v60 = vld [vmem:[%s6560_s1 + $0x520] sm:$0xff] }
  0xf7   : > { %v788_v2 = vadd.f32 %v774_v22, %v659_v1  ;;  %v5890_v1 = vld [vmem:[%s5221_s8 + $0x91] sm:$0xff] }
  0xf8   : > { %v1152_v3 = vpop.f32.mrf.mxu2  ;;  %v905_v12 = vpop.f32.mrf.mxu0  ;;  %v1716_v10 = vpack.c.bf16 %v5890_v1, %v5673_v20  ;;  %2826 = vmatpush.bf16.msrb.mxu3 %v4911_v47 }
  0xf9   : > { %v5873_v61 = vadd.f32 %v1152_v3, %v1043_v6  ;;  %v5875_v26 = vadd.f32 %v903_v11, %v788_v2  ;;  %v2359_v6 = vpack.c.bf16 %v5954_v43, %v4386_v16  ;;  %v4426_v16 = vld [vmem:[%s5221_s8 + $0x32] sm:$0xff] }
  0xfa   : > { %v1025_v62 = vpop.f32.mrf.mxu1  ;;  %2695 = vmatpush.bf16.msra.mxu2 %v4905_v0  ;;  %v4919_v0 = vld [vmem:[%s6560_s1 + $0x518] sm:$0xff] }
  0xfb   : > { %v1044_v51 = vadd.f32 %v1025_v62, %v914_v49  ;;  %v4922_v49 = vld [vmem:[%s6560_s1 + $0x530] sm:$0xff] }
  0xfc   : > { %2953 = vmatpush.bf16.msrb.mxu0 %v4922_v49  ;;  %2827 = vmatpush.bf16.msrb.mxu3 %v4910_v44 }
  0xfe   : > { %v776_v14 = vpop.f32.mrf.mxu3  ;;  %2696 = vmatpush.bf16.msra.mxu2 %v4904_v50 }
  0xff   : > { %v789_v63 = vadd.f32 %v776_v14, %v5824_v31  ;;  %v5989_v14 = vld [vmem:[%s5221_s8 + $0x50] sm:$0xff] }
 0x100   : > { %v1154_v9 = vpop.f32.mrf.mxu2  ;;  %v908_v30 = vpop.f32.mrf.mxu0 }
 0x101   : > { %v5906_v54 = vadd.f32 %v1154_v9, %v1044_v51  ;;  %v5908_v31 = vadd.f32 %v905_v12, %v789_v63  ;;  %v5992_v63 = vld [vmem:[%s5221_s8 + $0x60] sm:$0xff] }
 0x102   : > { %v1028_v27 = vpop.f32.mrf.mxu1  ;;  %2697 = vmatpush.bf16.msra.mxu2 %v4903_v52  ;;  %v5998_v9 = vld [vmem:[%s5221_s8 + $0x61] sm:$0xff] }
 0x103   : > { %v1045_v20 = vadd.f32 %v1028_v27, %v915_v32  ;;  %1812 = vmatmul.bf16.gmra.mxu3 %v1716_v10  ;;  %1941 = vmatmul.bf16.gmra.mxu0 %v1845_v21  ;;  %v4921_v32 = vld [vmem:[%s6560_s1 + $0x528] sm:$0xff]  ;;  %v6001_v10 = vld [vmem:[%s5221_s8 + $0x93] sm:$0xff]  ;;  %v2231_v27 = vpack.c.bf16 %v5992_v63, %v5989_v14 }
 0x104   : > { %2954 = vmatpush.bf16.msrb.mxu0 %v4921_v32  ;;  %v6004_v21 = vld [vmem:[%s5221_s8 + $0x94] sm:$0xff]  ;;  %v1974_v52 = vpack.c.bf16 %v6001_v10, %v5740_v28  ;;  %v4917_v32 = vld [vmem:[%s6560_s1 + $0x508] sm:$0xff] }
 0x105   : > { %2060 = vmatmul.bf16.gmra.mxu1 %v5545_v18  ;;  %2189 = vmatmul.bf16.gmra.mxu2 %v5549_v19  ;;  %v4894_v19 = vld [vmem:[%s6560_s1 + $0x450] sm:$0xff]  ;;  %v2103_v42 = vpack.c.bf16 %v6004_v21, %v5818_v25 }
 0x106   : > { %v779_v39 = vpop.f32.mrf.mxu3  ;;  %2569 = vmatpush.bf16.msra.mxu1 %v4894_v19  ;;  %2698 = vmatpush.bf16.msra.mxu2 %v4902_v41  ;;  %v4918_v28 = vld [vmem:[%s6560_s1 + $0x510] sm:$0xff] }
 0x107   : > { %v790_v56 = vadd.f32 %v779_v39, %v5839_v13 }
 0x108   : > { %v1157_v18 = vpop.f32.mrf.mxu2  ;;  %v910_v15 = vpop.f32.mrf.mxu0  ;;  %2955 = vmatpush.bf16.msrb.mxu0 %v4920_v60 }
 0x109   : > { %v5931_v45 = vadd.f32 %v1157_v18, %v1045_v20  ;;  %v5933_v33 = vadd.f32 %v908_v30, %v790_v56  ;;  %v4909_v56 = vld [vmem:[%s6560_s1 + $0x4c8] sm:$0xff] }
 0x10a   : > { %v1030_v48 = vpop.f32.mrf.mxu1  ;;  %2570 = vmatpush.bf16.msra.mxu1 %v4893_v36  ;;  %2699 = vmatpush.bf16.msra.mxu2 %v4901_v35  ;;  %v6038_v36 = vld [vmem:[%s5221_s8 + $0x70] sm:$0xff]  ;;  %v6047_v35 = vld [vmem:[%s5221_s8 + $0x81] sm:$0xff] }
 0x10b   : > { %v1046_v13 = vadd.f32 %v1030_v48, %v5852_v5  ;;  %v2230_v5 = vpack.c.bf16 %v5950_v53, %v4346_v37  ;;  %2828 = vmatpush.bf16.msrb.mxu3 %v4909_v56  ;;  %v6044_v37 = vld [vmem:[%s5221_s8 + $0x71] sm:$0xff]  ;;  %v6109_v56 = vld [vmem:[%s5221_s8 + $0xa1] sm:$0xff] }
 0x10c   : > { %2956 = vmatpush.bf16.msrb.mxu0 %v4919_v0  ;;  %v4930_v0 = vld [vmem:[%s6560_s1 + $0x570] sm:$0xff] }
 0x10e   : > { %v781_v57 = vpop.f32.mrf.mxu3  ;;  %2571 = vmatpush.bf16.msra.mxu1 %v4892_v7  ;;  %2700 = vmatpush.bf16.msra.mxu2 %v4900_v8 }
 0x10f   : > { %v791_v11 = vadd.f32 %v781_v57, %v5850_v46  ;;  %2829 = vmatpush.bf16.msrb.mxu3 %v4908_v34  ;;  %v6051_v57 = vld [vmem:[%s5221_s8 + $0x42] sm:$0xff]  ;;  %v2362_v34 = vpack.c.bf16 %v6109_v56, %v5890_v1 }
 0x110   : > { %v1159_v58 = vpop.f32.mrf.mxu2  ;;  %v1410_v22 = vpop.f32.mrf.mxu0  ;;  %2957 = vmatpush.bf16.msrb.mxu0 %v4918_v28  ;;  %v2488_v47 = vpack.c.bf16 %v6051_v57, %v4426_v16  ;;  %v6115_v28 = vld [vmem:[%s5221_s8 + $0x62] sm:$0xff] }
 0x111   : > { %v5965_v23 = vadd.f32 %v1159_v58, %v1046_v13  ;;  %v920_v3 = vadd.f32 %v910_v15, %v791_v11  ;;  %v4466_v11 = vld [vmem:[%s5221_s8 + $0x33] sm:$0xff]  ;;  %v6055_v58 = vld [vmem:[%s5221_s8 + $0x43] sm:$0xff] }
 0x112   : > { %v1033_v2 = vpop.f32.mrf.mxu1  ;;  %v2617_v60 = vpack.c.bf16 %v6055_v58, %v4466_v11  ;;  %v4936_v16 = vld [vmem:[%s6560_s1 + $0x5a0] sm:$0xff] }
 0x113   : > { %v1047_v46 = vadd.f32 %v1033_v2, %v5875_v26  ;;  %2314 = vmatmul.bf16.vlgmr.msra.gmra.mxu3 %v2230_v5  ;;  %2443 = vmatmul.bf16.vlgmr.msra.gmra.mxu0 %v2359_v6  ;;  %v4916_v2 = vld [vmem:[%s6560_s1 + $0x500] sm:$0xff] }
 0x114   : > { %2958 = vmatpush.bf16.msrb.mxu0 %v4917_v32  ;;  %v4928_v32 = vld [vmem:[%s6560_s1 + $0x560] sm:$0xff] }
 0x115   : > { %2065 = vmatmul.bf16.gmra.mxu1 %v5601_v59  ;;  %2194 = vmatmul.bf16.gmra.mxu2 %v5605_v4 }
 0x116   : > { %v1281_v12 = vpop.f32.mrf.mxu3 }
 0x117   : > { %v1301_v59 = vadd.f32 %v1281_v12, %v5873_v61  ;;  %v5995_v61 = vld [vmem:[%s5221_s8 + $0x51] sm:$0xff] }
 0x118   : > { %v1162_v62 = vpop.f32.mrf.mxu2  ;;  %v1412_v26 = vpop.f32.mrf.mxu0  ;;  %2959 = vmatpush.bf16.msrb.mxu0 %v4916_v2  ;;  %v4945_v2 = vld [vmem:[%s6560_s1 + $0x5e8] sm:$0xff] }
 0x119   : > { %v5977_v4 = vadd.f32 %v1162_v62, %v1047_v46  ;;  %v5979_v17 = vadd.f32 %v1410_v22, %v1301_v59  ;;  %v2361_v22 = vpack.c.bf16 %v6047_v35, %v6044_v37  ;;  %v4939_v59 = vld [vmem:[%s6560_s1 + $0x5b8] sm:$0xff] }
 0x11a   : > { %v1035_v51 = vpop.f32.mrf.mxu1  ;;  %3210 = vmatpush.bf16.msrb.mxu2 %v4939_v59 }
 0x11b   : > { %v1048_v40 = vadd.f32 %v1035_v51, %v5908_v31  ;;  %v2360_v31 = vpack.c.bf16 %v5998_v9, %v5995_v61  ;;  %v4947_v51 = vld [vmem:[%s6560_s1 + $0x5f8] sm:$0xff] }
 0x11c   : > { %3339 = vmatpush.bf16.msra.mxu3 %v4947_v51 }
 0x11e   : > { %v1283_v38 = vpop.f32.mrf.mxu3 }
 0x11f   : > { %v1302_v30 = vadd.f32 %v1283_v38, %v5906_v54  ;;  %v4938_v38 = vld [vmem:[%s6560_s1 + $0x5b0] sm:$0xff] }
 0x120   : > { %v1164_v50 = vpop.f32.mrf.mxu2  ;;  %v1415_v24 = vpop.f32.mrf.mxu0  ;;  %3211 = vmatpush.bf16.msrb.mxu2 %v4938_v38  ;;  %v4933_v38 = vld [vmem:[%s6560_s1 + $0x588] sm:$0xff] }
 0x121   : > { %v6011_v20 = vadd.f32 %v1164_v50, %v1048_v40  ;;  %v6017_v39 = vadd.f32 %v1412_v26, %v1302_v30  ;;  %v4931_v26 = vld [vmem:[%s6560_s1 + $0x578] sm:$0xff] }
 0x122   : > { %v1038_v49 = vpop.f32.mrf.mxu1  ;;  %3081 = vmatpush.bf16.msrb.mxu1 %v4931_v26 }
 0x123   : > { %v1049_v54 = vadd.f32 %v1038_v49, %v5933_v33  ;;  %2319 = vmatmul.bf16.gmra.mxu3 %v2231_v27  ;;  %2448 = vmatmul.bf16.gmra.mxu0 %v2360_v31  ;;  %v4937_v49 = vld [vmem:[%s6560_s1 + $0x5a8] sm:$0xff] }
 0x124   : > { %3212 = vmatpush.bf16.msrb.mxu2 %v4937_v49 }
 0x125   : > { %2070 = vmatmul.bf16.gmra.mxu1 %v1974_v52  ;;  %2199 = vmatmul.bf16.gmra.mxu2 %v2103_v42  ;;  %v4955_v52 = vld [vmem:[%s6560_s1 + $0x638] sm:$0xff]  ;;  %v4929_v42 = vld [vmem:[%s6560_s1 + $0x568] sm:$0xff] }
 0x126   : > { %v1286_v25 = vpop.f32.mrf.mxu3  ;;  %3082 = vmatpush.bf16.msrb.mxu1 %v4930_v0  ;;  %3468 = vmatpush.bf16.msra.mxu0 %v4955_v52  ;;  %v4925_v0 = vld [vmem:[%s6560_s1 + $0x548] sm:$0xff] }
 0x127   : > { %v1303_v19 = vadd.f32 %v1286_v25, %v5931_v45  ;;  %v6041_v45 = vld [vmem:[%s5221_s8 + $0x80] sm:$0xff]  ;;  %v6118_v25 = vld [vmem:[%s5221_s8 + $0x53] sm:$0xff] }
 0x128   : > { %v1167_v18 = vpop.f32.mrf.mxu2  ;;  %v1417_v15 = vpop.f32.mrf.mxu0  ;;  %v2232_v8 = vpack.c.bf16 %v6041_v45, %v6038_v36  ;;  %3213 = vmatpush.bf16.msrb.mxu2 %v4936_v16  ;;  %v6193_v52 = vld [vmem:[%s5221_s8 + $0x83] sm:$0xff] }
 0x129   : > { %v6027_v41 = vadd.f32 %v1167_v18, %v1049_v54  ;;  %v6029_v33 = vadd.f32 %v1415_v24, %v1303_v19  ;;  %v4946_v24 = vld [vmem:[%s6560_s1 + $0x5f0] sm:$0xff]  ;;  %v6106_v54 = vld [vmem:[%s5221_s8 + $0xa0] sm:$0xff] }
 0x12a   : > { %v1040_v48 = vpop.f32.mrf.mxu1  ;;  %3340 = vmatpush.bf16.msra.mxu3 %v4946_v24  ;;  %v6121_v18 = vld [vmem:[%s5221_s8 + $0x63] sm:$0xff]  ;;  %3083 = vmatpush.bf16.msrb.mxu1 %v4929_v42  ;;  %v6190_v24 = vld [vmem:[%s5221_s8 + $0x73] sm:$0xff] }
 0x12b   : > { %v1050_v13 = vadd.f32 %v1040_v48, %v920_v3 }
 0x12e   : > { %v1288_v5 = vpop.f32.mrf.mxu3  ;;  %3084 = vmatpush.bf16.msrb.mxu1 %v4928_v32  ;;  %3341 = vmatpush.bf16.msra.mxu3 %v4945_v2 }
 0x12f   : > { %v1304_v7 = vadd.f32 %v1288_v5, %v5965_v23 }
 0x130   : > { %v1169_v6 = vpop.f32.mrf.mxu2  ;;  %v1420_v46 = vpop.f32.mrf.mxu0 }
 0x131   : > { %v6065_v3 = vadd.f32 %v1169_v6, %v1050_v13  ;;  %v6069_v62 = vadd.f32 %v1417_v15, %v1304_v7  ;;  %v2233_v13 = vpack.c.bf16 %v6106_v54, %v5821_v29  ;;  %v2618_v29 = vpack.c.bf16 %v6121_v18, %v6118_v25 }
 0x132   : > { %v1539_v12 = vpop.f32.mrf.mxu1 }
 0x133   : > { %v1559_v23 = vadd.f32 %v1539_v12, %v5979_v17  ;;  %2324 = vmatmul.bf16.gmra.mxu3 %v2232_v8  ;;  %2453 = vmatmul.bf16.gmra.mxu0 %v2361_v22  ;;  %v4927_v8 = vld [vmem:[%s6560_s1 + $0x558] sm:$0xff]  ;;  %v4926_v12 = vld [vmem:[%s6560_s1 + $0x550] sm:$0xff] }
 0x134   : > { %v4935_v22 = vld [vmem:[%s6560_s1 + $0x598] sm:$0xff]  ;;  %3085 = vmatpush.bf16.msrb.mxu1 %v4927_v8 }
 0x135   : > { %2572 = vmatmul.bf16.vlgmr.msra.gmra.mxu1 %v2488_v47  ;;  %2701 = vmatmul.bf16.vlgmr.msra.gmra.mxu2 %v2617_v60 }
 0x136   : > { %v1291_v40 = vpop.f32.mrf.mxu3  ;;  %3214 = vmatpush.bf16.msrb.mxu2 %v4935_v22 }
 0x137   : > { %v1305_v17 = vadd.f32 %v1291_v40, %v5977_v4 }
 0x138   : > { %v1669_v44 = vpop.f32.mrf.mxu2  ;;  %v1422_v30 = vpop.f32.mrf.mxu0  ;;  %3086 = vmatpush.bf16.msrb.mxu1 %v4926_v12  ;;  %v4951_v12 = vld [vmem:[%s6560_s1 + $0x618] sm:$0xff] }
 0x139   : > { %v6088_v50 = vadd.f32 %v1669_v44, %v1559_v23  ;;  %v6090_v31 = vadd.f32 %v1420_v46, %v1305_v17  ;;  %v4934_v23 = vld [vmem:[%s6560_s1 + $0x590] sm:$0xff]  ;;  %v4944_v17 = vld [vmem:[%s6560_s1 + $0x5e0] sm:$0xff]  ;;  %v4953_v44 = vld [vmem:[%s6560_s1 + $0x628] sm:$0xff] }
 0x13a   : > { %v1541_v27 = vpop.f32.mrf.mxu1  ;;  %3215 = vmatpush.bf16.msrb.mxu2 %v4934_v23  ;;  %3342 = vmatpush.bf16.msra.mxu3 %v4944_v17  ;;  %v6231_v23 = vld [vmem:[%s5221_s8 + $0x54] sm:$0xff] }
 0x13b   : > { %v1560_v4 = vadd.f32 %v1541_v27, %v6017_v39  ;;  %v6112_v39 = vld [vmem:[%s5221_s8 + $0x52] sm:$0xff] }
 0x13c   : > { %v4506_v27 = vld [vmem:[%s5221_s8 + $0x34] sm:$0xff]  ;;  %3087 = vmatpush.bf16.msrb.mxu1 %v4925_v0  ;;  %v2877_v0 = vpack.c.bf16 %v6038_v36, %v5992_v63  ;;  %v4941_v63 = vld [vmem:[%s6560_s1 + $0x5c8] sm:$0xff] }
 0x13e   : > { %v1293_v19 = vpop.f32.mrf.mxu3  ;;  %3216 = vmatpush.bf16.msrb.mxu2 %v4933_v38 }
 0x13f   : > { %v1306_v15 = vadd.f32 %v1293_v19, %v6011_v20  ;;  %v2489_v20 = vpack.c.bf16 %v6115_v28, %v6112_v39 }
 0x140   : > { %v1671_v48 = vpop.f32.mrf.mxu2  ;;  %v1425_v5 = vpop.f32.mrf.mxu0 }
 0x141   : > { %v6134_v11 = vadd.f32 %v1671_v48, %v1560_v4  ;;  %v6140_v7 = vadd.f32 %v1422_v30, %v1306_v15  ;;  %v6180_v30 = vld [vmem:[%s5221_s8 + $0x72] sm:$0xff]  ;;  %v6187_v4 = vld [vmem:[%s5221_s8 + $0x82] sm:$0xff]  ;;  %v2876_v48 = vpack.c.bf16 %v5989_v14, %v5950_v53 }
 0x142   : > { %v1544_v6 = vpop.f32.mrf.mxu1  ;;  %v4943_v14 = vld [vmem:[%s6560_s1 + $0x5d8] sm:$0xff] }
 0x143   : > { %v1561_v1 = vadd.f32 %v1544_v6, %v6029_v33  ;;  %2329 = vmatmul.bf16.gmra.mxu3 %v2233_v13  ;;  %2458 = vmatmul.bf16.gmra.mxu0 %v2362_v34  ;;  %v4954_v33 = vld [vmem:[%s6560_s1 + $0x630] sm:$0xff]  ;;  %v4924_v13 = vld [vmem:[%s6560_s1 + $0x540] sm:$0xff] }
 0x144   : > { %3469 = vmatpush.bf16.msra.mxu0 %v4954_v33  ;;  %v4932_v34 = vld [vmem:[%s6560_s1 + $0x580] sm:$0xff]  ;;  %3088 = vmatpush.bf16.msrb.mxu1 %v4924_v13 }
 0x145   : > { %2577 = vmatmul.bf16.gmra.mxu1 %v2489_v20  ;;  %2706 = vmatmul.bf16.gmra.mxu2 %v2618_v29  ;;  %v4952_v6 = vld [vmem:[%s6560_s1 + $0x620] sm:$0xff] }
 0x146   : > { %v1296_v46 = vpop.f32.mrf.mxu3  ;;  %3217 = vmatpush.bf16.msrb.mxu2 %v4932_v34  ;;  %3343 = vmatpush.bf16.msra.mxu3 %v4943_v14  ;;  %v6266_v14 = vld [vmem:[%s5221_s8 + $0x74] sm:$0xff] }
 0x147   : > { %v1307_v47 = vadd.f32 %v1296_v46, %v6027_v41 }
 0x148   : > { %v1674_v60 = vpop.f32.mrf.mxu2  ;;  %v1427_v26 = vpop.f32.mrf.mxu0  ;;  %3470 = vmatpush.bf16.msra.mxu0 %v4953_v44 }
 0x149   : > { %v6162_v59 = vadd.f32 %v1674_v60, %v1561_v1  ;;  %v6164_v40 = vadd.f32 %v1425_v5, %v1307_v47  ;;  %v2619_v5 = vpack.c.bf16 %v6193_v52, %v6190_v24  ;;  %v4942_v60 = vld [vmem:[%s6560_s1 + $0x5d0] sm:$0xff] }
 0x14a   : > { %v1546_v51 = vpop.f32.mrf.mxu1  ;;  %3344 = vmatpush.bf16.msra.mxu3 %v4942_v60 }
 0x14b   : > { %v1562_v41 = vadd.f32 %v1546_v51, %v6069_v62  ;;  %v6184_v62 = vld [vmem:[%s5221_s8 + $0x44] sm:$0xff] }
 0x14c   : > { %v2746_v15 = vpack.c.bf16 %v6184_v62, %v4506_v27  ;;  %3471 = vmatpush.bf16.msra.mxu0 %v4952_v6  ;;  %v6240_v51 = vld [vmem:[%s5221_s8 + $0xa3] sm:$0xff] }
 0x14d   : > { %v6269_v6 = vld [vmem:[%s5221_s8 + $0x84] sm:$0xff] }
 0x14e   : > { %v1298_v42 = vpop.f32.mrf.mxu3  ;;  %3345 = vmatpush.bf16.msra.mxu3 %v4941_v63 }
 0x14f   : > { %v1308_v49 = vadd.f32 %v1298_v42, %v6065_v3  ;;  %v2490_v3 = vpack.c.bf16 %v6187_v4, %v6180_v30 }
 0x150   : > { %v1676_v19 = vpop.f32.mrf.mxu2  ;;  %v1927_v16 = vpop.f32.mrf.mxu0  ;;  %3472 = vmatpush.bf16.msra.mxu0 %v4951_v12  ;;  %v3005_v12 = vpack.c.bf16 %v5995_v61, %v5954_v43  ;;  %v6285_v61 = vld [vmem:[%s5221_s8 + $0xa4] sm:$0xff] }
 0x151   : > { %v6205_v32 = vadd.f32 %v1676_v19, %v1562_v41  ;;  %v1437_v29 = vadd.f32 %v1427_v26, %v1308_v49  ;;  %v6234_v26 = vld [vmem:[%s5221_s8 + $0x64] sm:$0xff]  ;;  %v2620_v49 = vpack.c.bf16 %v6240_v51, %v6001_v10 }
 0x152   : > { %v1549_v20 = vpop.f32.mrf.mxu1  ;;  %v2747_v44 = vpack.c.bf16 %v6234_v26, %v6231_v23 }
 0x153   : > { %v1563_v53 = vadd.f32 %v1549_v20, %v6090_v31  ;;  %2830 = vmatmul.bf16.vlgmr.msrb.gmra.mxu3 %v2746_v15  ;;  %2960 = vmatmul.bf16.vlgmr.msrb.gmra.mxu0 %v2876_v48  ;;  %v4940_v20 = vld [vmem:[%s6560_s1 + $0x5c0] sm:$0xff] }
 0x154   : > { %3346 = vmatpush.bf16.msra.mxu3 %v4940_v20 }
 0x155   : > { %2582 = vmatmul.bf16.gmra.mxu1 %v2490_v3  ;;  %2711 = vmatmul.bf16.gmra.mxu2 %v2619_v5 }
 0x156   : > { %v1798_v1 = vpop.f32.mrf.mxu3 }
 0x157   : > { %v1818_v8 = vadd.f32 %v1798_v1, %v6088_v50  ;;  %v6237_v50 = vld [vmem:[%s5221_s8 + $0xa2] sm:$0xff]  ;;  %v4551_v1 = vld [vmem:[%s5221_s8 + $0x90] sm:$0xff] }
 0x158   : > { %v1679_v31 = vpop.f32.mrf.mxu2  ;;  %v1929_v2 = vpop.f32.mrf.mxu0  ;;  %v2491_v42 = vpack.c.bf16 %v6237_v50, %v5893_v55  ;;  %v4950_v55 = vld [vmem:[%s6560_s1 + $0x610] sm:$0xff] }
 0x159   : > { %v6219_v22 = vadd.f32 %v1679_v31, %v1563_v53  ;;  %v6221_v33 = vadd.f32 %v1927_v16, %v1818_v8  ;;  %3473 = vmatpush.bf16.msra.mxu0 %v4950_v55  ;;  %v4949_v53 = vld [vmem:[%s6560_s1 + $0x608] sm:$0xff] }
 0x15a   : > { %v1551_v46 = vpop.f32.mrf.mxu1 }
 0x15b   : > { %v1564_v47 = vadd.f32 %v1551_v46, %v6140_v7  ;;  %v4948_v46 = vld [vmem:[%s6560_s1 + $0x600] sm:$0xff] }
 0x15d   : > { %3474 = vmatpush.bf16.msra.mxu0 %v4949_v53 }
 0x15e   : > { %v1800_v41 = vpop.f32.mrf.mxu3 }
 0x15f   : > { %v1819_v17 = vadd.f32 %v1800_v41, %v6134_v11  ;;  %v3134_v41 = vpack.c.bf16 %v6112_v39, %v6051_v57 }
 0x160   : > { %v1681_v7 = vpop.f32.mrf.mxu2  ;;  %v1932_v27 = vpop.f32.mrf.mxu0 }
 0x161   : > { %v1694_v38 = vadd.f32 %v1681_v7, %v1564_v47  ;;  %v1948_v15 = vadd.f32 %v1929_v2, %v1819_v17  ;;  %v2878_v2 = vpack.c.bf16 %v4551_v1, %v6041_v45  ;;  %3475 = vmatpush.bf16.msra.mxu0 %v4948_v46 }
 0x162   : > { %v1554_v19 = vpop.f32.mrf.mxu1 }
 0x163   : > { %v1565_v48 = vadd.f32 %v1554_v19, %v6164_v40  ;;  %2835 = vmatmul.bf16.gmra.mxu3 %v2747_v44  ;;  %2965 = vmatmul.bf16.gmra.mxu0 %v2877_v0 }
 0x165   : > { %2587 = vmatmul.bf16.gmra.mxu1 %v2491_v42  ;;  %2716 = vmatmul.bf16.gmra.mxu2 %v2620_v49  ;;  %v4553_v49 = vld [vmem:[%s5221_s8 + $0xb0] sm:$0xff] }
 0x166   : > { %v1803_v36 = vpop.f32.mrf.mxu3  ;;  %v2879_v63 = vpack.c.bf16 %v4553_v49, %v6106_v54 }
 0x167   : > { %v1820_v40 = vadd.f32 %v1803_v36, %v6162_v59 }
 0x168   : > { %v1684_v11 = vpop.f32.mrf.mxu2  ;;  %v1934_v34 = vpop.f32.mrf.mxu0 }
 0x169   : > { %v1695_v13 = vadd.f32 %v1684_v11, %v1565_v48  ;;  %v1949_v3 = vadd.f32 %v1932_v27, %v1820_v40  ;;  %v2749_v48 = vpack.c.bf16 %v6285_v61, %v6004_v21  ;;  %v3135_v11 = vpack.c.bf16 %v6180_v30, %v6115_v28 }
 0x16a   : > { %v1556_v16 = vpop.f32.mrf.mxu1 }
 0x16b   : > { %v1566_v5 = vadd.f32 %v1556_v16, %v1437_v29  ;;  %v2748_v29 = vpack.c.bf16 %v6269_v6, %v6266_v14 }
 0x16e   : > { %v1805_v59 = vpop.f32.mrf.mxu3 }
 0x16f   : > { %v1821_v8 = vadd.f32 %v1805_v59, %v6205_v32  ;;  %v6297_v59 = vld [vmem:[%s5221_s8 + $0x92] sm:$0xff] }
 0x170   : > { %v1686_v31 = vpop.f32.mrf.mxu2  ;;  %v1937_v60 = vpop.f32.mrf.mxu0  ;;  %v3136_v46 = vpack.c.bf16 %v6297_v59, %v6187_v4 }
 0x171   : > { %v1696_v47 = vadd.f32 %v1686_v31, %v1566_v5  ;;  %v1950_v7 = vadd.f32 %v1934_v34, %v1821_v8  ;;  %v3392_v8 = vpack.c.bf16 %v6231_v23, %v6184_v62 }
 0x172   : > { %v2056_v32 = vpop.f32.mrf.mxu1 }
 0x173   : > { %2840 = vmatmul.bf16.gmra.mxu3 %v2748_v29  ;;  %2970 = vmatmul.bf16.gmra.mxu0 %v2878_v2 }
 0x175   : > { %3089 = vmatmul.bf16.vlgmr.msrb.gmra.mxu1 %v3005_v12  ;;  %3218 = vmatmul.bf16.vlgmr.msrb.gmra.mxu2 %v3134_v41 }
 0x176   : > { %v1808_v45 = vpop.f32.mrf.mxu3 }
 0x177   : > { %v1822_v17 = vadd.f32 %v1808_v45, %v6219_v22  ;;  %v3006_v22 = vpack.c.bf16 %v6044_v37, %v5998_v9  ;;  %v4591_v37 = vld [vmem:[%s5221_s8 + $0x91] sm:$0xff] }
 0x178   : > { %v2185_v44 = vpop.f32.mrf.mxu2  ;;  %v1939_v0 = vpop.f32.mrf.mxu0  ;;  %v3007_v2 = vpack.c.bf16 %v4591_v37, %v6047_v35 }
 0x179   : > { %v1951_v42 = vadd.f32 %v1937_v60, %v1822_v17 }
 0x17a   : > { %v2058_v27 = vpop.f32.mrf.mxu1 }
 0x17b   : > { %v2077_v43 = vadd.f32 %v2058_v27, %v1948_v15  ;;  %v4633_v27 = vld [vmem:[%s5221_s8 + $0xb2] sm:$0xff] }
 0x17e   : > { %v1810_v57 = vpop.f32.mrf.mxu3 }
 0x17f   : > { %v1823_v39 = vadd.f32 %v1810_v57, %v1694_v38 }
 0x180   : > { %v2187_v19 = vpop.f32.mrf.mxu2  ;;  %v1942_v36 = vpop.f32.mrf.mxu0 }
 0x181   : > { %v2206_v55 = vadd.f32 %v2187_v19, %v2077_v43  ;;  %v1952_v40 = vadd.f32 %v1939_v0, %v1823_v39  ;;  %v4593_v0 = vld [vmem:[%s5221_s8 + $0xb1] sm:$0xff]  ;;  %v3137_v19 = vpack.c.bf16 %v4633_v27, %v6237_v50  ;;  %v3265_v50 = vpack.c.bf16 %v6001_v10, %v6193_v52 }
 0x182   : > { %v2061_v15 = vpop.f32.mrf.mxu1  ;;  %v3008_v39 = vpack.c.bf16 %v4593_v0, %v6109_v56  ;;  %v4673_v52 = vld [vmem:[%s5221_s8 + $0xb3] sm:$0xff] }
 0x183   : > { %v2078_v34 = vadd.f32 %v2061_v15, %v1949_v3  ;;  %2845 = vmatmul.bf16.gmra.mxu3 %v2749_v48  ;;  %2975 = vmatmul.bf16.gmra.mxu0 %v2879_v63  ;;  %v3263_v3 = vpack.c.bf16 %v6118_v25, %v6055_v58 }
 0x185   : > { %3094 = vmatmul.bf16.gmra.mxu1 %v3006_v22  ;;  %3223 = vmatmul.bf16.gmra.mxu2 %v3135_v11 }
 0x186   : > { %v1813_v38 = vpop.f32.mrf.mxu3 }
 0x187   : > { %v1824_v16 = vadd.f32 %v1813_v38, %v1695_v13  ;;  %v3394_v38 = vpack.c.bf16 %v6004_v21, %v6269_v6 }
 0x188   : > { %v2190_v54 = vpop.f32.mrf.mxu2  ;;  %v1944_v20 = vpop.f32.mrf.mxu0 }
 0x189   : > { %v2207_v5 = vadd.f32 %v2190_v54, %v2078_v34  ;;  %v1953_v1 = vadd.f32 %v1942_v36, %v1824_v16 }
 0x18a   : > { %v2063_v53 = vpop.f32.mrf.mxu1 }
 0x18b   : > { %v2079_v9 = vadd.f32 %v2063_v53, %v1950_v7 }
 0x18e   : > { %v1815_v28 = vpop.f32.mrf.mxu3 }
 0x18f   : > { %v1825_v30 = vadd.f32 %v1815_v28, %v1696_v47  ;;  %v2076_v47 = vadd.f32 %v2056_v32, %v6221_v33  ;;  %v3264_v33 = vpack.c.bf16 %v6190_v24, %v6121_v18  ;;  %v3393_v32 = vpack.c.bf16 %v6266_v14, %v6234_v26 }
 0x190   : > { %v2192_v31 = vpop.f32.mrf.mxu2  ;;  %v2444_v13 = vpop.f32.mrf.mxu0 }
 0x191   : > { %v2208_v29 = vadd.f32 %v2192_v31, %v2079_v9  ;;  %v1954_v12 = vadd.f32 %v1944_v20, %v1825_v30  ;;  %v2205_v58 = vadd.f32 %v2185_v44, %v2076_v47 }
 0x192   : > { %v2066_v60 = vpop.f32.mrf.mxu1 }
 0x193   : > { %v2080_v41 = vadd.f32 %v2066_v60, %v1951_v42  ;;  %3347 = vmatmul.bf16.vlgmr.msra.gmra.mxu3 %v3263_v3  ;;  %3476 = vmatmul.bf16.vlgmr.msra.gmra.mxu0 %v3392_v8  ;;  %v4713_v8 = vld [vmem:[%s5221_s8 + $0xb4] sm:$0xff] }
 0x195   : > { %3099 = vmatmul.bf16.gmra.mxu1 %v3007_v2  ;;  %3228 = vmatmul.bf16.gmra.mxu2 %v3136_v46  ;;  %v3395_v2 = vpack.c.bf16 %v4713_v8, %v6285_v61 }
 0x196   : > { %v2315_v25 = vpop.f32.mrf.mxu3 }
 0x197   : > { %v2335_v23 = vadd.f32 %v2315_v25, %v2205_v58 }
 0x198   : > { %v2195_v62 = vpop.f32.mrf.mxu2  ;;  %v2446_v35 = vpop.f32.mrf.mxu0 }
 0x199   : > { %v2209_v7 = vadd.f32 %v2195_v62, %v2080_v41  ;;  %v2464_v17 = vadd.f32 %v2444_v13, %v2335_v23  ;;  %v3266_v13 = vpack.c.bf16 %v4673_v52, %v6240_v51 }
 0x19a   : > { %v2068_v45 = vpop.f32.mrf.mxu1 }
 0x19b   : > { %v2081_v4 = vadd.f32 %v2068_v45, %v1952_v40 }
 0x19e   : > { %v2317_v43 = vpop.f32.mrf.mxu3 }
 0x19f   : > { %v2336_v49 = vadd.f32 %v2317_v43, %v2206_v55 }
 0x1a0   : > { %v2197_v42 = vpop.f32.mrf.mxu2  ;;  %v2449_v57 = vpop.f32.mrf.mxu0 }
 0x1a1   : > { %v2210_v44 = vadd.f32 %v2197_v42, %v2081_v4  ;;  %v2465_v63 = vadd.f32 %v2446_v35, %v2336_v49 }
 0x1a2   : > { %v2071_v48 = vpop.f32.mrf.mxu1 }
 0x1a3   : > { %v2082_v36 = vadd.f32 %v2071_v48, %v1953_v1  ;;  %3352 = vmatmul.bf16.gmra.mxu3 %v3264_v33  ;;  %3481 = vmatmul.bf16.gmra.mxu0 %v3393_v32 }
 0x1a5   : > { %3104 = vmatmul.bf16.gmra.mxu1 %v3008_v39  ;;  %3233 = vmatmul.bf16.gmra.mxu2 %v3137_v19 }
 0x1a6   : > { %v2320_v55 = vpop.f32.mrf.mxu3 }
 0x1a7   : > { %v2337_v11 = vadd.f32 %v2320_v55, %v2207_v5 }
 0x1a8   : > { %v2200_v22 = vpop.f32.mrf.mxu2  ;;  %v2451_v24 = vpop.f32.mrf.mxu0 }
 0x1a9   : > { %v2211_v18 = vadd.f32 %v2200_v22, %v2082_v36  ;;  %v2466_v26 = vadd.f32 %v2449_v57, %v2337_v11 }
 0x1aa   : > { %v2073_v15 = vpop.f32.mrf.mxu1 }
 0x1ab   : > { %v2083_v14 = vadd.f32 %v2073_v15, %v1954_v12 }
 0x1ae   : > { %v2322_v40 = vpop.f32.mrf.mxu3 }
 0x1af   : > { %v2338_v56 = vadd.f32 %v2322_v40, %v2208_v29 }
 0x1b0   : > { %v2202_v34 = vpop.f32.mrf.mxu2  ;;  %v2454_v54 = vpop.f32.mrf.mxu0 }
 0x1b1   : > { %v2212_v16 = vadd.f32 %v2202_v34, %v2083_v14  ;;  %v2467_v5 = vadd.f32 %v2451_v24, %v2338_v56 }
 0x1b2   : > { %v2573_v20 = vpop.f32.mrf.mxu1 }
 0x1b3   : > { %v2593_v53 = vadd.f32 %v2573_v20, %v2464_v17  ;;  %3357 = vmatmul.bf16.gmra.mxu3 %v3265_v50  ;;  %3486 = vmatmul.bf16.gmra.mxu0 %v3394_v38 }
 0x1b6   : > { %v2325_v1 = vpop.f32.mrf.mxu3 }
 0x1b7   : > { %v2339_v9 = vadd.f32 %v2325_v1, %v2209_v7 }
 0x1b8   : > { %v2702_v37 = vpop.f32.mrf.mxu2  ;;  %v2456_v30 = vpop.f32.mrf.mxu0 }
 0x1b9   : > { %v2722_v28 = vadd.f32 %v2702_v37, %v2593_v53  ;;  %v2468_v3 = vadd.f32 %v2454_v54, %v2339_v9 }
 0x1ba   : > { %v2575_v31 = vpop.f32.mrf.mxu1 }
 0x1bb   : > { %v2594_v10 = vadd.f32 %v2575_v31, %v2465_v63 }
 0x1be   : > { %v2327_v21 = vpop.f32.mrf.mxu3 }
 0x1bf   : > { %v2340_v6 = vadd.f32 %v2327_v21, %v2210_v44 }
 0x1c0   : > { %v2704_v29 = vpop.f32.mrf.mxu2  ;;  %v2459_v60 = vpop.f32.mrf.mxu0 }
 0x1c1   : > { %v2723_v46 = vadd.f32 %v2704_v29, %v2594_v10  ;;  %v2469_v41 = vadd.f32 %v2456_v30, %v2340_v6 }
 0x1c2   : > { %v2578_v12 = vpop.f32.mrf.mxu1 }
 0x1c3   : > { %v2595_v47 = vadd.f32 %v2578_v12, %v2466_v26  ;;  %3362 = vmatmul.bf16.gmra.mxu3 %v3266_v13  ;;  %3491 = vmatmul.bf16.gmra.mxu0 %v3395_v2 }
 0x1c6   : > { %v2330_v58 = vpop.f32.mrf.mxu3 }
 0x1c7   : > { %v2341_v25 = vadd.f32 %v2330_v58, %v2211_v18 }
 0x1c8   : > { %v2707_v62 = vpop.f32.mrf.mxu2  ;;  %v2461_v7 = vpop.f32.mrf.mxu0 }
 0x1c9   : > { %v2724_v23 = vadd.f32 %v2707_v62, %v2595_v47  ;;  %v6323_v45 = vadd.f32 %v2459_v60, %v2341_v25 }
 0x1ca   : > { %v2580_v35 = vpop.f32.mrf.mxu1 }
 0x1cb   : > { %v2596_v17 = vadd.f32 %v2580_v35, %v2467_v5  ;;  %v6348_v35 = vld [vmem:[%s6561_s2] ss:$0 sm:$0xff] }
 0x1ce   : > { %v2332_v4 = vpop.f32.mrf.mxu3 }
 0x1cf   : > { %v2342_v51 = vadd.f32 %v2332_v4, %v2212_v16 }
 0x1d0   : > { %v2709_v0 = vpop.f32.mrf.mxu2  ;;  %v2961_v27 = vpop.f32.mrf.mxu0 }
 0x1d1   : > { %v2725_v61 = vadd.f32 %v2709_v0, %v2596_v17  ;;  %v6325_v42 = vadd.f32 %v2461_v7, %v2342_v51 }
 0x1d2   : > { %v2583_v43 = vpop.f32.mrf.mxu1 }
 0x1d3   : > { %v2597_v49 = vadd.f32 %v2583_v43, %v2468_v3 }
 0x1d6   : > { %v2831_v33 = vpop.f32.mrf.mxu3 }
 0x1d7   : > { %v2851_v44 = vadd.f32 %v2831_v33, %v2722_v28 }
 0x1d8   : > { %v2712_v32 = vpop.f32.mrf.mxu2  ;;  %v2963_v39 = vpop.f32.mrf.mxu0 }
 0x1d9   : > { %v2726_v57 = vadd.f32 %v2712_v32, %v2597_v49  ;;  %v2981_v48 = vadd.f32 %v2961_v27, %v2851_v44 }
 0x1da   : > { %v2585_v19 = vpop.f32.mrf.mxu1 }
 0x1db   : > { %v2598_v63 = vadd.f32 %v2585_v19, %v2469_v41 }
 0x1de   : > { %v2833_v36 = vpop.f32.mrf.mxu3 }
 0x1df   : > { %v2852_v22 = vadd.f32 %v2833_v36, %v2723_v46 }
 0x1e0   : > { %v2714_v55 = vpop.f32.mrf.mxu2  ;;  %v2966_v18 = vpop.f32.mrf.mxu0 }
 0x1e1   : > { %v2727_v11 = vadd.f32 %v2714_v55, %v2598_v63  ;;  %v2982_v24 = vadd.f32 %v2963_v39, %v2852_v22 }
 0x1e2   : > { %v6327_v34 = vpop.f32.mrf.mxu1 }
 0x1e6   : > { %v2836_v15 = vpop.f32.mrf.mxu3 }
 0x1e7   : > { %v2853_v26 = vadd.f32 %v2836_v15, %v2724_v23 }
 0x1e8   : > { %v2968_v14 = vpop.f32.mrf.mxu0  ;;  %v6329_v38 = vpop.f32.mrf.mxu2 }
 0x1e9   : > { %v2983_v40 = vadd.f32 %v2966_v18, %v2853_v26 }
 0x1ea   : > { %v6331_v53 = vpop.f32.mrf.mxu1 }
 0x1ee   : > { %v2838_v56 = vpop.f32.mrf.mxu3 }
 0x1ef   : > { %v2854_v50 = vadd.f32 %v2838_v56, %v2725_v61 }
 0x1f0   : > { %v2971_v16 = vpop.f32.mrf.mxu0  ;;  %v6333_v37 = vpop.f32.mrf.mxu2 }
 0x1f1   : > { %v2984_v54 = vadd.f32 %v2968_v14, %v2854_v50 }
 0x1f2   : > { %v3090_v10 = vpop.f32.mrf.mxu1 }
 0x1f3   : > { %v3110_v46 = vadd.f32 %v3090_v10, %v2981_v48 }
 0x1f6   : > { %v2841_v20 = vpop.f32.mrf.mxu3 }
 0x1f7   : > { %v2855_v5 = vadd.f32 %v2841_v20, %v2726_v57 }
 0x1f8   : > { %v2973_v1 = vpop.f32.mrf.mxu0  ;;  %v3219_v52 = vpop.f32.mrf.mxu2 }
 0x1f9   : > { %v2985_v9 = vadd.f32 %v2971_v16, %v2855_v5  ;;  %v3239_v41 = vadd.f32 %v3219_v52, %v3110_v46  ;;  %v2599_v46 = vadd.f32 %v6327_v34, %v6323_v45 }
 0x1fa   : > { %v3092_v6 = vpop.f32.mrf.mxu1 }
 0x1fb   : > { %v3111_v62 = vadd.f32 %v3092_v6, %v2982_v24 }
 0x1fe   : > { %v2843_v28 = vpop.f32.mrf.mxu3 }
 0x1ff   : > { %v2856_v30 = vadd.f32 %v2843_v28, %v2727_v11 }
 0x200   : > { %v6335_v31 = vpop.f32.mrf.mxu0  ;;  %v3221_v29 = vpop.f32.mrf.mxu2 }
 0x201   : > { %v6337_v3 = vadd.f32 %v2973_v1, %v2856_v30  ;;  %v3240_v23 = vadd.f32 %v3221_v29, %v3111_v62 }
 0x202   : > { %v3095_v60 = vpop.f32.mrf.mxu1 }
 0x203   : > { %v3112_v49 = vadd.f32 %v3095_v60, %v2983_v40 }
 0x206   : > { %v6339_v8 = vpop.f32.mrf.mxu3 }
 0x208   : > { %v6341_v21 = vpop.f32.mrf.mxu0  ;;  %v3224_v47 = vpop.f32.mrf.mxu2 }
 0x209   : > { %v3241_v32 = vadd.f32 %v3224_v47, %v3112_v49 }
 0x20a   : > { %v3097_v51 = vpop.f32.mrf.mxu1 }
 0x20b   : > { %v3113_v11 = vadd.f32 %v3097_v51, %v2984_v54 }
 0x20e   : > { %v6343_v13 = vpop.f32.mrf.mxu3 }
 0x210   : > { %v3477_v2 = vpop.f32.mrf.mxu0  ;;  %v3226_v43 = vpop.f32.mrf.mxu2 }
 0x211   : > { %v3242_v15 = vadd.f32 %v3226_v43, %v3113_v11 }
 0x212   : > { %v3100_v22 = vpop.f32.mrf.mxu1 }
 0x213   : > { %v3114_v5 = vadd.f32 %v3100_v22, %v2985_v9  ;;  %v2728_v9 = vadd.f32 %v6329_v38, %v2599_v46  ;;  %v2600_v38 = vadd.f32 %v6331_v53, %v6325_v42 }
 0x216   : > { %v3348_v12 = vpop.f32.mrf.mxu3 }
 0x217   : > { %v3368_v25 = vadd.f32 %v3348_v12, %v3239_v41 }
 0x218   : > { %v3479_v58 = vpop.f32.mrf.mxu0  ;;  %v3229_v24 = vpop.f32.mrf.mxu2 }
 0x219   : > { %v3497_v7 = vadd.f32 %v3477_v2, %v3368_v25  ;;  %v3243_v28 = vadd.f32 %v3229_v24, %v3114_v5 }
 0x21a   : > { %v3102_v54 = vpop.f32.mrf.mxu1 }
 0x21b   : > { %v6351_v61 = vadd.f32 %v6348_v35, %v3497_v7  ;;  %v3115_v12 = vadd.f32 %v3102_v54, %v6337_v3 }
 0x21d   : > { %v3546_v44 = vmul.f32 %v6351_v61, %v6351_v61 }
 0x21e   : > { %v3350_v17 = vpop.f32.mrf.mxu3 }
 0x21f   : > { %v3369_v4 = vadd.f32 %v3350_v17, %v3240_v23 }
 0x220   : > { %v3482_v0 = vpop.f32.mrf.mxu0  ;;  %v3231_v52 = vpop.f32.mrf.mxu2 }
 0x221   : > { %v3498_v27 = vadd.f32 %v3479_v58, %v3369_v4  ;;  %v2857_v58 = vadd.f32 %v6339_v8, %v2728_v9  ;;  %v3244_v25 = vadd.f32 %v3231_v52, %v3115_v12 }
 0x222   : > { %v3105_v7 = vpop.f32.mrf.mxu1 }
 0x223   : > { %v6354_v33 = vadd.f32 %v6348_v35, %v3498_v27  ;;  %v2987_v3 = vadd.f32 %v6335_v31, %v2857_v58 }
 0x225   : > { %v3533_v57 = vadd.f32 %v6354_v33, %v6351_v61  ;;  %v3547_v39 = vmul.f32 %v6354_v33, %v6354_v33  ;;  %v3116_v8 = vadd.f32 %v3105_v7, %v2987_v3  ;;  %v3646_v3 = vld [vmem:[%s6562_s3 + $0x48] sm:$0xff] }
 0x226   : > { %v3353_v19 = vpop.f32.mrf.mxu3 }
 0x227   : > { %v3554_v48 = vadd.f32 %v3547_v39, %v3546_v44  ;;  %v3370_v63 = vadd.f32 %v3353_v19, %v3241_v32 }
 0x228   : > { %v3484_v36 = vpop.f32.mrf.mxu0  ;;  %v3234_v4 = vpop.f32.mrf.mxu2 }
 0x229   : > { %v3499_v55 = vadd.f32 %v3482_v0, %v3370_v63  ;;  %v2729_v0 = vadd.f32 %v6333_v37, %v2600_v38  ;;  %v3245_v49 = vadd.f32 %v3234_v4, %v3116_v8  ;;  %v3647_v38 = vld [vmem:[%s6562_s3 + $0x50] sm:$0xff]  ;;  %v3644_v8 = vld [vmem:[%s6562_s3 + $0x38] sm:$0xff] }
 0x22a   : > { %v3107_v31 = vpop.f32.mrf.mxu1 }
 0x22b   : > { %v6363_v18 = vadd.f32 %v6348_v35, %v3499_v55  ;;  %v2858_v43 = vadd.f32 %v6343_v13, %v2729_v0 }
 0x22d   : > { %v3534_v26 = vadd.f32 %v3533_v57, %v6363_v18  ;;  %v3548_v14 = vmul.f32 %v6363_v18, %v6363_v18  ;;  %v2988_v19 = vadd.f32 %v6341_v21, %v2858_v43  ;;  %v3643_v43 = vld [vmem:[%s6562_s3 + $0x30] sm:$0xff] }
 0x22e   : > { %v3355_v40 = vpop.f32.mrf.mxu3 }
 0x22f   : > { %v3555_v56 = vadd.f32 %v3554_v48, %v3548_v14  ;;  %v3371_v50 = vadd.f32 %v3355_v40, %v3242_v15  ;;  %v3117_v63 = vadd.f32 %v3107_v31, %v2988_v19  ;;  %v3639_v31 = vld [vmem:[%s6562_s3 + $0x10] sm:$0xff] }
 0x230   : > { %v3487_v20 = vpop.f32.mrf.mxu0  ;;  %v3236_v48 = vpop.f32.mrf.mxu2 }
 0x231   : > { %v3500_v16 = vadd.f32 %v3484_v36, %v3371_v50  ;;  %v3246_v13 = vadd.f32 %v3236_v48, %v3117_v63 }
 0x233   : > { %v6369_v1 = vadd.f32 %v6348_v35, %v3500_v16 }
 0x235   : > { %v3535_v30 = vadd.f32 %v3534_v26, %v6369_v1  ;;  %v3549_v10 = vmul.f32 %v6369_v1, %v6369_v1 }
 0x236   : > { %v3358_v6 = vpop.f32.mrf.mxu3 }
 0x237   : > { %v3556_v29 = vadd.f32 %v3555_v56, %v3549_v10  ;;  %v3372_v2 = vadd.f32 %v3358_v6, %v3243_v28 }
 0x238   : > { %v3489_v47 = vpop.f32.mrf.mxu0 }
 0x239   : > { %v3501_v60 = vadd.f32 %v3487_v20, %v3372_v2 }
 0x23b   : > { %v6379_v41 = vadd.f32 %v6348_v35, %v3501_v60  ;;  %v3652_v60 = vld [vmem:[%s6562_s3 + $0x78] sm:$0xff] }
 0x23c   : > { %3654 = vmatpush.msra.mxu1 %v3652_v60 }
 0x23d   : > { %v3536_v62 = vadd.f32 %v3535_v30, %v6379_v41  ;;  %v3550_v23 = vmul.f32 %v6379_v41, %v6379_v41 }
 0x23e   : > { %v3360_v17 = vpop.f32.mrf.mxu3 }
 0x23f   : > { %v3557_v45 = vadd.f32 %v3556_v29, %v3550_v23  ;;  %v3373_v34 = vadd.f32 %v3360_v17, %v3244_v25  ;;  %v3651_v25 = vld [vmem:[%s6562_s3 + $0x70] sm:$0xff] }
 0x240   : > { %v3492_v57 = vpop.f32.mrf.mxu0  ;;  %3655 = vmatpush.msra.mxu1 %v3651_v25 }
 0x241   : > { %v3502_v51 = vadd.f32 %v3489_v47, %v3373_v34 }
 0x243   : > { %v6390_v27 = vadd.f32 %v6348_v35, %v3502_v51  ;;  %v3645_v51 = vld [vmem:[%s6562_s3 + $0x40] sm:$0xff] }
 0x245   : > { %v3537_v32 = vadd.f32 %v3536_v62, %v6390_v27  ;;  %v3551_v44 = vmul.f32 %v6390_v27, %v6390_v27 }
 0x246   : > { %v3363_v39 = vpop.f32.mrf.mxu3 }
 0x247   : > { %v3558_v42 = vadd.f32 %v3557_v45, %v3551_v44  ;;  %v3374_v53 = vadd.f32 %v3363_v39, %v3245_v49 }
 0x248   : > { %v3494_v26 = vpop.f32.mrf.mxu0 }
 0x249   : > { %v3503_v37 = vadd.f32 %v3492_v57, %v3374_v53  ;;  %v3641_v57 = vld [vmem:[%s6562_s3 + $0x20] sm:$0xff] }
 0x24b   : > { %v6398_v36 = vadd.f32 %v6348_v35, %v3503_v37  ;;  %v3638_v37 = vld [vmem:[%s6562_s3 + $0x8] sm:$0xff] }
 0x24d   : > { %v3538_v55 = vadd.f32 %v3537_v32, %v6398_v36  ;;  %v3552_v22 = vmul.f32 %v6398_v36, %v6398_v36  ;;  %v3642_v32 = vld [vmem:[%s6562_s3 + $0x28] sm:$0xff] }
 0x24e   : > { %v3365_v11 = vpop.f32.mrf.mxu3 }
 0x24f   : > { %v3559_v24 = vadd.f32 %v3558_v42, %v3552_v22  ;;  %v3375_v15 = vadd.f32 %v3365_v11, %v3246_v13  ;;  %v3640_v42 = vld [vmem:[%s6562_s3 + $0x18] sm:$0xff] }
 0x251   : > { %v3504_v14 = vadd.f32 %v3494_v26, %v3375_v15  ;;  %v4746_v15 = vld [vmem:[%s5221_s8 + $0x22] sm:$0xff]  ;;  %v4747_v26 = vld [vmem:[%s5221_s8 + $0x32] sm:$0xff] }
 0x253   : > { %v6404_v40 = vadd.f32 %v6348_v35, %v3504_v14  ;;  %v3637_v14 = vld [vmem:[%s6562_s3] sm:$0xff] }
 0x255   : > { %v3539_v21 = vadd.f32 %v3538_v55, %v6404_v40  ;;  %v3553_v56 = vmul.f32 %v6404_v40, %v6404_v40 }
 0x257   : > { %v3540_v50 = vrot.slane %v3539_v21, 4  ;;  %v3560_v16 = vadd.f32 %v3559_v24, %v3553_v56 }
 0x259   : > { %v3541_v20 = vadd.f32 %v3540_v50, %v3539_v21  ;;  %v3561_v5 = vrot.slane %v3560_v16, 4  ;;  %v3690_v50 = vld [vmem:[%s6564_s5 + $0x78] sm:$0xff] }
 0x25a   : > { %3692 = vmatpush.msra.mxu2 %v3690_v50 }
 0x25b   : > { %v3542_v54 = vrot.slane %v3541_v20, 2  ;;  %v3562_v28 = vadd.f32 %v3561_v5, %v3560_v16  ;;  %v3689_v16 = vld [vmem:[%s6564_s5 + $0x70] sm:$0xff] }
 0x25c   : > { %3693 = vmatpush.msra.mxu2 %v3689_v16 }
 0x25d   : > { %v3543_v30 = vadd.f32 %v3542_v54, %v3541_v20  ;;  %v3563_v10 = vrot.slane %v3562_v28, 2  ;;  %v4748_v20 = vld [vmem:[%s5221_s8 + $0x42] sm:$0xff] }
 0x25f   : > { %v3544_v52 = vrot.slane %v3543_v30, 1  ;;  %v3564_v6 = vadd.f32 %v3563_v10, %v3562_v28  ;;  %v4749_v10 = vld [vmem:[%s5221_s8 + $0x52] sm:$0xff] }
 0x261   : > { %v3545_v29 = vadd.f32 %v3544_v52, %v3543_v30  ;;  %v3565_v2 = vrot.slane %v3564_v6, 1  ;;  %v3688_v30 = vld [vmem:[%s6564_s5 + $0x68] sm:$0xff] }
 0x262   : > { %3694 = vmatpush.msra.mxu2 %v3688_v30 }
 0x263   : > { %v3566_v46 = vadd.f32 %v3565_v2, %v3564_v6  ;;  %v3567_v35 = vmul.f32 0.015625, %v3545_v29  ;;  %v3687_v2 = vld [vmem:[%s6564_s5 + $0x60] sm:$0xff] }
 0x264   : > { %3695 = vmatpush.msra.mxu2 %v3687_v2 }
 0x265   : > { %v3568_v9 = vmul.f32 0.015625, %v3566_v46  ;;  %v3569_v12 = vmul.f32 %v3567_v35, %v3567_v35  ;;  %v3572_v47 = vsub.f32 %v6351_v61, %v3567_v35  ;;  %v3573_v58 = vsub.f32 %v6354_v33, %v3567_v35  ;;  %v3650_v33 = vld [vmem:[%s6562_s3 + $0x68] sm:$0xff] }
 0x266   : > { %v3574_v62 = vsub.f32 %v6363_v18, %v3567_v35  ;;  %v3575_v23 = vsub.f32 %v6369_v1, %v3567_v35  ;;  %v3576_v7 = vsub.f32 %v6379_v41, %v3567_v35  ;;  %v3577_v17 = vsub.f32 %v6390_v27, %v3567_v35  ;;  %3656 = vmatpush.msra.mxu1 %v3650_v33  ;;  %v3649_v18 = vld [vmem:[%s6562_s3 + $0x60] sm:$0xff]  ;;  %v3648_v41 = vld [vmem:[%s6562_s3 + $0x58] sm:$0xff] }
 0x267   : > { %v3570_v45 = vsub.f32 %v3568_v9, %v3569_v12  ;;  %v3578_v34 = vsub.f32 %v6398_v36, %v3567_v35  ;;  %v3579_v61 = vsub.f32 %v6404_v40, %v3567_v35  ;;  %v4750_v46 = vld [vmem:[%s5221_s8 + $0x62] sm:$0xff]  ;;  %v3686_v12 = vld [vmem:[%s6564_s5 + $0x58] sm:$0xff] }
 0x268   : > { %3657 = vmatpush.msra.mxu1 %v3649_v18  ;;  %3696 = vmatpush.msra.mxu2 %v3686_v12  ;;  %v3683_v18 = vld [vmem:[%s6564_s5 + $0x40] sm:$0xff] }
 0x269   : > { %v3571_v4 = vmax.f32 %v3570_v45, 0.0 }
 0x26a   : > { %3658 = vmatpush.msra.mxu1 %v3648_v41 }
 0x26b   : > { %v3580_v1 = vadd.f32 1e-05, %v3571_v4 }
 0x26c   : > { %3659 = vmatpush.msra.mxu1 %v3647_v38  ;;  %v3682_v38 = vld [vmem:[%s6564_s5 + $0x38] sm:$0xff] }
 0x26d   : > { %5005 = vrsqrt.f32 %v3580_v1  ;;  %vm3587_vm1 = vweird.f32 %v3580_v1 }
 0x26e   : > { %3660 = vmatpush.msra.mxu1 %v3646_v3 }
 0x270   : > { %3661 = vmatpush.msra.mxu1 %v3645_v51  ;;  %v3681_v51 = vld [vmem:[%s6564_s5 + $0x30] sm:$0xff] }
 0x272   : > { %3662 = vmatpush.msra.mxu1 %v3644_v8  ;;  %v3680_v8 = vld [vmem:[%s6564_s5 + $0x28] sm:$0xff] }
 0x273   : > { %v5006_v0 = vpop.eup %5005 }
 0x274   : > { %v3582_v27 = vmul.f32 %v5006_v0, %v3580_v1  ;;  %3663 = vmatpush.msra.mxu1 %v3643_v43  ;;  %vm3588_vm0 = vweird.f32 %v5006_v0 }
 0x275   : > { %vm3589_vm2 = vmor %vm3587_vm1, %vm3588_vm0 }
 0x276   : > { %v3583_v49 = vmul.f32 %v5006_v0, %v3582_v27  ;;  %3664 = vmatpush.msra.mxu1 %v3642_v32 }
 0x278   : > { %v3584_v44 = vmul.f32 0.5, %v3583_v49  ;;  %3665 = vmatpush.msra.mxu1 %v3641_v57  ;;  %v3678_v49 = vld [vmem:[%s6564_s5 + $0x18] sm:$0xff] }
 0x27a   : > { %v3585_v39 = vsub.f32 1.5, %v3584_v44  ;;  %3666 = vmatpush.msra.mxu1 %v3640_v42  ;;  %v3677_v44 = vld [vmem:[%s6564_s5 + $0x10] sm:$0xff] }
 0x27c   : > { %v3586_v53 = vmul.f32 %v5006_v0, %v3585_v39  ;;  %3667 = vmatpush.msra.mxu1 %v3639_v31  ;;  %v3676_v39 = vld [vmem:[%s6564_s5 + $0x8] sm:$0xff]  ;;  %v3675_v31 = vld [vmem:[%s6564_s5] sm:$0xff] }
 0x27e   : > { %v3590_v19 = vsel %vm3589_vm2, %v5006_v0, %v3586_v53  ;;  %3668 = vmatpush.msra.mxu1 %v3638_v37 }
 0x27f   : > { %v3591_v48 = vmul.f32 %v3590_v19, %v3572_v47  ;;  %v3592_v63 = vmul.f32 %v3590_v19, %v3573_v58  ;;  %v3593_v36 = vmul.f32 %v3590_v19, %v3574_v62  ;;  %v3594_v13 = vmul.f32 %v3590_v19, %v3575_v23  ;;  %v4751_v47 = vld [vmem:[%s5221_s8 + $0x72] sm:$0xff] }
 0x280   : > { %v3595_v55 = vmul.f32 %v3590_v19, %v3576_v7  ;;  %v3596_v22 = vmul.f32 %v3590_v19, %v3577_v17  ;;  %v3597_v11 = vmul.f32 %v3590_v19, %v3578_v34  ;;  %v3598_v24 = vmul.f32 %v3590_v19, %v3579_v61  ;;  %3669 = vmatpush.msra.mxu1 %v3637_v14  ;;  %v3685_v23 = vld [vmem:[%s6564_s5 + $0x50] sm:$0xff]  ;;  %v4752_v7 = vld [vmem:[%s5221_s8 + $0x82] sm:$0xff]  ;;  %v3653_v19 = vld [vmem:[%s6563_s4] sm:$0x1]  ;;  %s5021_s8 = sshra.s32 %s3727_s21, 4  ;;  %s5022_s8 = int_to_ptr.hbm [resolvable:$true] %s5021_s8 }
 0x281   : > { %v3599_v40 = vmax.f32 %v3591_v48, 0.0  ;;  %v3600_v21 = vmax.f32 %v3592_v63, 0.0  ;;  %v3601_v56 = vmax.f32 %v3593_v36, 0.0  ;;  %v3602_v5 = vmax.f32 %v3594_v13, 0.0  ;;  %v3684_v61 = vld [vmem:[%s6564_s5 + $0x48] sm:$0xff]  ;;  %3697 = vmatpush.msra.mxu2 %v3685_v23  ;;  %s5023_s23 = scalar_lea.hbm %s5022_s8, 1  ;;  %p5028_p0 = scmp.lt.s32.totalorder %s5022_s8, %s6566_s7 }
 0x282   : > { %v3603_v52 = vmax.f32 %v3595_v55, 0.0  ;;  %v3604_v35 = vmax.f32 %v3596_v22, 0.0  ;;  %v3605_v58 = vmax.f32 %v3597_v11, 0.0  ;;  %v3606_v17 = vmax.f32 %v3598_v24, 0.0  ;;  %v3691_v36 = vld [vmem:[%s6565_s6] sm:$0x1]  ;;  %p5024_p11 = scmp.ne.s32.totalorder %s5022_s8, %s5023_s23  ;;  %p5029_p1 = scmp.lt.s32.totalorder %s5027_s9, %s5023_s23 }
 0x283   : > { %v3615_v54 = vadd.f32 %v4746_v15, %v3599_v40  ;;  %v3616_v28 = vadd.f32 %v4747_v26, %v3600_v21  ;;  %v3617_v6 = vadd.f32 %v4748_v20, %v3601_v56  ;;  %v3618_v60 = vadd.f32 %v4749_v10, %v3602_v5  ;;  %3698 = vmatpush.msra.mxu2 %v3684_v61 }
 0x284   : > { %v3619_v25 = vadd.f32 %v4750_v46, %v3603_v52  ;;  %v3620_v45 = vadd.f32 %v4751_v47, %v3604_v35  ;;  %v3621_v33 = vadd.f32 %v4752_v7, %v3605_v58  ;;  %v3622_v1 = vadd.f32 %v6297_v59, %v3606_v17  ;;  %v3679_v59 = vld [vmem:[%s6564_s5 + $0x20] sm:$0xff]  ;;  %p5025_p12 = pnand %p5024_p11, %p5149_p5  ;;  %p5030_p2 = por %p5029_p1, %p5028_p0 }
 0x285   : > { %v3623_v29 = vadd.f32 %v3616_v28, %v3615_v54  ;;  %3699 = vmatpush.msra.mxu2 %v3683_v18 }
 0x286   : > { %p5026_p13 = pneg %p5025_p12 }
 0x287   : > { %v3624_v9 = vadd.f32 %v3623_v29, %v3617_v6  ;;  %3700 = vmatpush.msra.mxu2 %v3682_v38 }
 0x288   : > { %p5031_p3 = pnand %p5030_p2, %p5026_p13 }
 0x289   : > { %v3625_v62 = vadd.f32 %v3624_v9, %v3618_v60  ;;  %3701 = vmatpush.msra.mxu2 %v3681_v51 }
 0x28b   : > { %v3626_v34 = vadd.f32 %v3625_v62, %v3619_v25  ;;  %3702 = vmatpush.msra.mxu2 %v3680_v8 }
 0x28d   : > { %v3627_v4 = vadd.f32 %v3626_v34, %v3620_v45  ;;  %3703 = vmatpush.msra.mxu2 %v3679_v59 }
 0x28f   : > { %v3628_v41 = vadd.f32 %v3627_v4, %v3621_v33  ;;  %3704 = vmatpush.msra.mxu2 %v3678_v49 }
 0x291   : > { %v3629_v3 = vadd.f32 %v3628_v41, %v3622_v1  ;;  %3705 = vmatpush.msra.mxu2 %v3677_v44 }
 0x293   : > { %v3630_v0 = vrot.slane %v3629_v3, 4  ;;  %3706 = vmatpush.msra.mxu2 %v3676_v39 }
 0x295   : > { %v3631_v27 = vadd.f32 %v3630_v0, %v3629_v3  ;;  %3707 = vmatpush.msra.mxu2 %v3675_v31 }
 0x297   : > { %v3632_v43 = vrot.slane %v3631_v27, 2 }
 0x299   : > { %v3633_v32 = vadd.f32 %v3632_v43, %v3631_v27 }
 0x29b   : > { %v3634_v57 = vrot.slane %v3633_v32, 1 }
 0x29d   : > { %v3635_v42 = vadd.f32 %v3634_v57, %v3633_v32 }
 0x29f   : > { %v3636_v53 = vmul.f32 0.015625, %v3635_v42 }
 0x2a1   : > { %3670 = vmatmul.f32.vlgmr.msra.gmra.mxu1 %v3636_v53 }
 0x31e   : > { %v3671_v37 = vpop.f32.mrf.mxu1 }
 0x31f   : > { %v3672_v48 = vadd.f32 %v3671_v37, %v3653_v19 }
 0x321   : > { %v3674_v63 = vmax.f32 %v3672_v48, 0.0 }
 0x323   : > { %3708 = vmatmul.f32.vlgmr.msra.gmra.mxu2 %v3674_v63 }
 0x3a6   : > { %v3709_v13 = vpop.f32.mrf.mxu2 }
 0x3a7   : > { %v3710_v55 = vadd.f32 %v3709_v13, %v3691_v36 }
 0x3a9   : > { %3712 = vst [vmem:[%s270_s19] sm:$0x1] %v3710_v55 }
 0x3aa   : > { %5034 = shalt.err (!%p5031_p3)
}
 0x3ab   : > { %4965 = dma.vmem_to_hbm [thread:$0]  (%p5149_p5), %s3725_s20, 16, %s3727_s21, %s3714_s22  }
 0x3ac PF: > { %p4971_p4 = scmp.ge.s32.totalorder %s5069_s27, 2  ;;  %s3738_s13 = sand.u32 1, %s5057_s24  }
 0x3ad   : > { %s3739_s16 = scalar_lea.sflag [#allocation4], %s3738_s13 }
 0x3ae   : > { %p4968_p7 = pnand %p4971_p4, %p5153_p6 }
 0x3b0   : > { %p4969_p8 = pneg %p4968_p7 }
 0x3b2   : > { %5052 = dma.done.wait (%p4969_p8), %s3739_s16, 16  }
 0x3b3   : > { %5054 = vsyncadd (%p4969_p8), %s3739_s16, 4294967280  ;;  %p17_p9 = scmp.ge.s32.totalorder %s5136_s30, 4   ;;  %s6569_s24 = smov %s5061_s25 }
 0x3b4   : > { %s6570_s25 = smov %s5065_s26  ;;  %s6571_s26 = smov %s5147_s10 }
 0x3b5   : > { %s6572_s27 = smov %s5136_s30  ;;  %19 = sbr.rel (!%p17_p9) target bundleno = 3 (0x3), region = 87 }
 0x3ba   :  { %3744 = vsyncpa [#allocation4], 1 }
 0x3bb   :  { %3746 = vsyncpa [#allocation4 + $0x1], 1 }

</bundles_post_ra>
